<compile_context>
chip_gen: v7x
topology: tpu7x:2x2x1
jax: 0.10.0
libtpu: 0.0.40
codegen_flags: <defaults>
</compile_context>

<pallas_src>
import functools

import jax
import jax.numpy as jnp
import numpy as np
from jax.experimental import pallas as pl
from jax.experimental.pallas import tpu as pltpu

_LANE = 128


def _round_up(v, m):
    return (v + m - 1) // m * m


def _head_layout(num_classes, bbox_dim):
    # head order: cls, det, ref1, ref2, ref3, bbox1, bbox2, bbox3
    dims = (num_classes,) * 5 + (bbox_dim,) * 3
    pads = tuple(_round_up(d, _LANE) for d in dims)
    offs, acc = [], 0
    for p in pads:
        offs.append(acc)
        acc += p
    return dims, pads, tuple(offs), acc


# ---------------------------------------------------------------------------
# Fused kernel: pool(folded) + 8 linear heads + row softmaxes + per-image
# column softmax for det.
# ---------------------------------------------------------------------------
def _mist_fused_kernel(
    off_ref,        # SMEM (num_images+1,) int32  per-image proposal offsets (prefetch)
    x_ref,          # VMEM (TILE_N, K_pad)        flattened input tile
    w_ref,          # VMEM (K_pad, D_pad)         all-head weights (pool folded in)
    b_ref,          # VMEM (1, D_pad)             all-head biases
    slab_ref,       # VMEM (TILE_N, D_pad)        lane-dense per-head output slab
    det_ref,        # VMEM (N_pad, DET_pad)       det head, resident across the grid
    *,
    num_classes,
    num_images,
    head_dims,
    head_pads,
    head_offs,
    apply_softmax,
):
    i = pl.program_id(0)
    tile_rows = x_ref.shape[0]

    # pool + all 8 linear heads as ONE MXU matmul (f32 accumulate).
    logits = (
        jnp.dot(x_ref[...], w_ref[...], preferred_element_type=jnp.float32)
        + b_ref[...]
    )

    def _row_softmax(block, valid):
        lane = jax.lax.broadcasted_iota(jnp.int32, (1, block.shape[1]), 1)
        cmask = lane < valid
        m = jnp.max(jnp.where(cmask, block, -jnp.inf), axis=-1, keepdims=True)
        e = jnp.where(cmask, jnp.exp(block - m), 0.0)
        s = jnp.sum(e, axis=-1, keepdims=True)
        return e * pl.reciprocal(s, approx=True)

    row_softmax_heads = (0, 2, 3, 4)  # cls, ref1, ref2, ref3
    for h in range(8):
        off, wdt = head_offs[h], head_pads[h]
        blk = logits[:, off:off + wdt]
        if apply_softmax and h in row_softmax_heads:
            slab_ref[:, off:off + wdt] = _row_softmax(blk, head_dims[h])
        else:
            slab_ref[:, off:off + wdt] = blk
        if h == 1:
            # stash this tile's raw det logits into the resident det output
            row0 = pl.multiple_of(i * tile_rows, tile_rows)
            det_ref[pl.ds(row0, tile_rows), :] = blk

    if apply_softmax:
        # Per-image softmax over dim=0 (proposal axis), done once on the last
        # grid step over the full resident det buffer using segment masks.
        @pl.when(i == pl.num_programs(0) - 1)
        def _():
            det = det_ref[...]                                   # (N_pad, DET_pad)
            rows = jax.lax.broadcasted_iota(jnp.int32, (det.shape[0], 1), 0)
            lane = jax.lax.broadcasted_iota(jnp.int32, (1, det.shape[1]), 1)
            cmask = lane < num_classes
            out = jnp.zeros_like(det)
            for img in range(num_images):                        # static unroll
                start = off_ref[img]
                end = off_ref[img + 1]
                smask = (rows >= start) & (rows < end) & cmask
                m = jnp.max(jnp.where(smask, det, -jnp.inf), axis=0, keepdims=True)
                m = jnp.maximum(m, -3.0e38)   # guard empty segments / pad lanes
                e = jnp.where(smask, jnp.exp(det - m), 0.0)
                s = jnp.sum(e, axis=0, keepdims=True)
                r = pl.reciprocal(jnp.where(s > 0.0, s, 1.0), approx=True)
                out = out + e * r
            det_ref[...] = out


# ---------------------------------------------------------------------------
# Parameter init (mirrors _initialize_weights: N(0, 0.001) weights, zero bias),
# stored lane-dense: each head padded to a multiple of 128 output columns.
# ---------------------------------------------------------------------------
def init_params(key, in_channels, num_classes, num_bbox_reg_classes):
    bbox_dim = num_bbox_reg_classes * 4
    head_dims, head_pads, head_offs, d_pad = _head_layout(num_classes, bbox_dim)
    keys = jax.random.split(key, len(head_dims) + 2)

    w_all = jnp.zeros((in_channels, d_pad), jnp.float32)
    for kkey, dim, off in zip(keys[: len(head_dims)], head_dims, head_offs):
        # PyTorch Linear weight is (out, in); stored transposed at a 128-aligned offset
        w = 0.001 * jax.random.normal(kkey, (dim, in_channels), dtype=jnp.float32)
        w_all = w_all.at[:, off:off + dim].set(w.T)
    b_all = jnp.zeros((1, d_pad), jnp.float32)   # constant 0 biases (pad lanes stay 0)

    # ref4 / bbox_pred4 exist in __init__ but are never used in forward()
    ref4_w = 0.001 * jax.random.normal(keys[-2], (num_classes, in_channels), jnp.float32)
    bbox4_w = 0.001 * jax.random.normal(keys[-1], (bbox_dim, in_channels), jnp.float32)

    return {
        "W_all": w_all,
        "b_all": b_all,
        "num_classes": num_classes,
        "bbox_dim": bbox_dim,
        "ref4_w": ref4_w,          # unused (kept for __init__ fidelity)
        "bbox_pred4_w": bbox4_w,   # unused (kept for __init__ fidelity)
    }


# ---------------------------------------------------------------------------
# Forward
# ---------------------------------------------------------------------------
def mist_predictor_forward(x, params, proposal_counts, training=False,
                           compute_dtype=jnp.float32, max_tile_n=256):
    """proposal_counts: static tuple of per-image proposal counts, sum == x.shape[0].

    compute_dtype: jnp.bfloat16 recommended on v6e/v7x (f32 accumulation is kept);
    jnp.float32 on v5e or when tight numerics are required.
    """
    num_classes = params["num_classes"]
    bbox_dim = params["bbox_dim"]
    head_dims, head_pads, head_offs, d_pad = _head_layout(num_classes, bbox_dim)
    w_all, b_all = params["W_all"], params["b_all"]

    if x.ndim == 4:
        n, c, hh, ww = x.shape
        hw = hh * ww
        x_flat = x.reshape(n, c * hw)
        # Fold AdaptiveAvgPool2d(1) into the matmul: W_exp[c*HW + j, :] = W[c, :]/HW.
        # TODO(synk): for very large C*HW, tile the K axis instead of materializing W_exp.
        w_k = jnp.repeat(w_all, hw, axis=0) * jnp.float32(1.0 / hw)
    else:
        assert x.ndim == 2
        n = x.shape[0]
        x_flat = x
        w_k = w_all
    assert sum(proposal_counts) == n

    # Pad the contraction dim to a lane multiple.
    k_dim = x_flat.shape[1]
    k_pad = _round_up(k_dim, _LANE)
    if k_pad != k_dim:
        x_flat = jnp.pad(x_flat, ((0, 0), (0, k_pad - k_dim)))
        w_k = jnp.pad(w_k, ((0, k_pad - k_dim), (0, 0)))

    # Tile / pad the ROI axis (sublane multiple of 8).
    n_sub = _round_up(max(n, 1), 8)
    tile_n = min(n_sub, max_tile_n)
    n_pad = _round_up(n_sub, tile_n)
    if n_pad != n:
        x_flat = jnp.pad(x_flat, ((0, n_pad - n), (0, 0)))

    x_flat = x_flat.astype(compute_dtype)
    w_k = w_k.astype(compute_dtype)

    num_images = len(proposal_counts)
    offsets = jnp.asarray(
        np.concatenate([[0], np.cumsum(proposal_counts)]).astype(np.int32))

    det_pad = head_pads[1]
    kernel = functools.partial(
        _mist_fused_kernel,
        num_classes=num_classes,
        num_images=num_images,
        head_dims=head_dims,
        head_pads=head_pads,
        head_offs=head_offs,
        apply_softmax=not training,
    )

    slab, det_out = pl.pallas_call(
        kernel,
        out_shape=(
            jax.ShapeDtypeStruct((n_pad, d_pad), jnp.float32),
            jax.ShapeDtypeStruct((n_pad, det_pad), jnp.float32),
        ),
        grid_spec=pltpu.PrefetchScalarGridSpec(
            num_scalar_prefetch=1,
            grid=(n_pad // tile_n,),
            in_specs=[
                pl.BlockSpec((tile_n, k_pad), lambda i, off: (i, 0)),   # x tile
                pl.BlockSpec((k_pad, d_pad), lambda i, off: (0, 0)),    # weights resident
                pl.BlockSpec((1, d_pad), lambda i, off: (0, 0)),        # bias resident
            ],
            out_specs=[
                pl.BlockSpec((tile_n, d_pad), lambda i, off: (i, 0)),   # slab, tiled
                pl.BlockSpec((n_pad, det_pad), lambda i, off: (0, 0)),  # det, resident
            ],
        ),
        compiler_params=pltpu.CompilerParams(
            # det output is resident across the ROI-tile axis -> axis must be arbitrary
            dimension_semantics=("arbitrary",),
            vmem_limit_bytes=48 * 1024 * 1024,  # safe on v5e/v6e (128MiB) and v7x (64MiB)
        ),
    )(offsets, x_flat, w_k, b_all)

    def _head(idx):
        off = head_offs[idx]
        return slab[:n, off:off + head_dims[idx]]

    cls_logit = _head(0)
    final_det_logit = det_out[:n, :num_classes]
    ref_logits = [_head(2), _head(3), _head(4)]
    bbox_preds = [_head(5), _head(6), _head(7)]
    return cls_logit, final_det_logit, ref_logits, bbox_preds


# ---------------------------------------------------------------------------
# Pure-JAX reference (for correctness checking only)
# ---------------------------------------------------------------------------
def _reference(x, params, proposal_counts, training=False):
    if x.ndim == 4:
        pooled = jnp.mean(x.reshape(x.shape[0], x.shape[1], -1), axis=-1)
    else:
        pooled = x
    k, bb = params["num_classes"], params["bbox_dim"]
    dims, pads, offs, _ = _head_layout(k, bb)
    heads = []
    for h in range(8):
        w = params["W_all"][:, offs[h]:offs[h] + dims[h]]
        b = params["b_all"][:, offs[h]:offs[h] + dims[h]]
        heads.append(pooled @ w + b)
    cls_l, det_l = heads[0], heads[1]
    refs, bboxes = heads[2:5], heads[5:8]
    if not training:
        cls_l = jax.nn.softmax(cls_l, axis=1)
        pieces, start = [], 0
        for cnt in proposal_counts:
            pieces.append(jax.nn.softmax(det_l[start:start + cnt], axis=0))
            start += cnt
        det_l = jnp.concatenate(pieces, axis=0)
        refs = [jax.nn.softmax(r, axis=1) for r in refs]
    return cls_l, det_l, refs, bboxes


# ---------------------------------------------------------------------------
if __name__ == "__main__":
    num_classes = 21          # config.MODEL.ROI_BOX_HEAD.NUM_CLASSES (VOC)
    cls_agnostic = False      # config.MODEL.CLS_AGNOSTIC_BBOX_REG
    num_bbox_reg_classes = 2 if cls_agnostic else num_classes
    in_channels = 32
    proposal_counts = (8, 8)  # 2 images, 8 ROIs each
    n_rois = sum(proposal_counts)
    h = w = 8

    key = jax.random.PRNGKey(0)
    k_params, k_x = jax.random.split(key)
    params = init_params(k_params, in_channels, num_classes, num_bbox_reg_classes)
    x = jax.random.normal(k_x, (n_rois, in_channels, h, w), dtype=jnp.float32)  # NCHW

    # eval path (softmaxes fused inside the kernel)
    outs = mist_predictor_forward(x, params, proposal_counts, training=False)
    jax.block_until_ready(outs)
    cls_logit, final_det_logit, ref_logits, bbox_preds = outs

    r_cls, r_det, r_refs, r_bboxes = _reference(x, params, proposal_counts, training=False)
    # approx=True reciprocal in-kernel -> slightly looser rtol than exact division
    tol = dict(rtol=5e-3, atol=1e-5)
    np.testing.assert_allclose(np.asarray(cls_logit), np.asarray(r_cls), **tol)
    np.testing.assert_allclose(np.asarray(final_det_logit), np.asarray(r_det), **tol)
    for a, b_ in zip(ref_logits, r_refs):
        np.testing.assert_allclose(np.asarray(a), np.asarray(b_), **tol)
    for a, b_ in zip(bbox_preds, r_bboxes):
        np.testing.assert_allclose(np.asarray(a), np.asarray(b_), **tol)

    # training path (raw logits, no softmax)
    outs_t = mist_predictor_forward(x, params, proposal_counts, training=True)
    jax.block_until_ready(outs_t)
    rt = _reference(x, params, proposal_counts, training=True)
    np.testing.assert_allclose(np.asarray(outs_t[0]), np.asarray(rt[0]), **tol)
    np.testing.assert_allclose(np.asarray(outs_t[1]), np.asarray(rt[1]), **tol)
    for a, b_ in zip(outs_t[2], rt[2]):
        np.testing.assert_allclose(np.asarray(a), np.asarray(b_), **tol)
    for a, b_ in zip(outs_t[3], rt[3]):
        np.testing.assert_allclose(np.asarray(a), np.asarray(b_), **tol)

    print("KERNEL_OK")
</pallas_src>

<mosaic_0001>
module attributes {stable_mosaic.version = 11 : i64} {
  func.func @_mist_fused_kernel(%arg0: i32, %arg1: memref<3xi32, #tpu.memory_space<smem>>, %arg2: memref<16x2048xf32, #tpu.memory_space<vmem>>, %arg3: memref<2048x1024xf32, #tpu.memory_space<vmem>>, %arg4: memref<1x1024xf32, #tpu.memory_space<vmem>>, %arg5: memref<16x1024xf32, #tpu.memory_space<vmem>>, %arg6: memref<16x128xf32, #tpu.memory_space<vmem>>) attributes {dimension_semantics = [#tpu.dimension_semantics<arbitrary>], iteration_bounds = array<i64: 1>, scalar_prefetch = 1 : i64, scratch_operands = 0 : i64, tpu.core_type = #tpu.core_type<tc>, window_params = [{transform_indices = @transform_0, window_bounds = array<i64: 16, 2048>}, {pipeline_mode = #tpu.pipeline_mode<synchronous>, transform_indices = @transform_1, window_bounds = array<i64: 2048, 1024>}, {pipeline_mode = #tpu.pipeline_mode<synchronous>, transform_indices = @transform_2, window_bounds = array<i64: 1, 1024>}, {transform_indices = @transform_3, window_bounds = array<i64: 16, 1024>}, {pipeline_mode = #tpu.pipeline_mode<synchronous>, transform_indices = @transform_4, window_bounds = array<i64: 16, 128>}]} {
    %c0 = arith.constant 0 : index
    %c0_0 = arith.constant 0 : index
    %0 = vector.load %arg2[%c0, %c0_0] : memref<16x2048xf32, #tpu.memory_space<vmem>>, vector<16x2048xf32>
    %c0_1 = arith.constant 0 : index
    %c0_2 = arith.constant 0 : index
    %1 = vector.load %arg3[%c0_1, %c0_2] : memref<2048x1024xf32, #tpu.memory_space<vmem>>, vector<2048x1024xf32>
    %cst = arith.constant dense<0.000000e+00> : vector<16x1024xf32>
    %2 = tpu.matmul %0, %1, %cst {dimension_numbers = #tpu.dot_dimension_numbers<[1], [0], [0], [1], [0, 0, 1, 1], [], []>} : vector<16x2048xf32>, vector<2048x1024xf32>, vector<16x1024xf32> -> vector<16x1024xf32>
    %c0_3 = arith.constant 0 : index
    %c0_4 = arith.constant 0 : index
    %3 = vector.load %arg4[%c0_3, %c0_4] : memref<1x1024xf32, #tpu.memory_space<vmem>>, vector<1x1024xf32>
    %4 = vector.broadcast %3 : vector<1x1024xf32> to vector<16x1024xf32>
    %5 = arith.addf %2, %4 : vector<16x1024xf32>
    %6 = vector.extract_strided_slice %5 {offsets = [0, 0], sizes = [16, 128], strides = [1, 1]} : vector<16x1024xf32> to vector<16x128xf32>
    %7 = tpu.iota {dimensions = array<i32: 1>} : vector<1x128xi32>
    %c21_i32 = arith.constant 21 : i32
    %8 = vector.broadcast %c21_i32 : i32 to vector<1x128xi32>
    %9 = arith.cmpi slt, %7, %8 : vector<1x128xi32>
    %cst_5 = arith.constant 0xFF800000 : f32
    %10 = vector.shape_cast %9 : vector<1x128xi1> to vector<1x128xi1>
    %11 = vector.broadcast %10 : vector<1x128xi1> to vector<16x128xi1>
    %12 = vector.broadcast %cst_5 : f32 to vector<16x128xf32>
    %13 = arith.select %11, %6, %12 : vector<16x128xi1>, vector<16x128xf32>
    %cst_6 = arith.constant dense<0xFF800000> : vector<16xf32>
    %14 = vector.multi_reduction <maximumf>, %13, %cst_6 [1] : vector<16x128xf32> to vector<16xf32>
    %15 = vector.shape_cast %14 : vector<16xf32> to vector<16x1xf32>
    %16 = vector.broadcast %15 : vector<16x1xf32> to vector<16x128xf32>
    %17 = arith.subf %6, %16 : vector<16x128xf32>
    %18 = math.exp %17 : vector<16x128xf32>
    %cst_7 = arith.constant 0.000000e+00 : f32
    %19 = vector.shape_cast %9 : vector<1x128xi1> to vector<1x128xi1>
    %20 = vector.broadcast %19 : vector<1x128xi1> to vector<16x128xi1>
    %21 = vector.broadcast %cst_7 : f32 to vector<16x128xf32>
    %22 = arith.select %20, %18, %21 : vector<16x128xi1>, vector<16x128xf32>
    %cst_8 = arith.constant dense<0.000000e+00> : vector<16xf32>
    %23 = vector.multi_reduction <add>, %22, %cst_8 [1] : vector<16x128xf32> to vector<16xf32>
    %24 = vector.shape_cast %23 : vector<16xf32> to vector<16x1xf32>
    %25 = tpu.reciprocal %24 {approx = true} : vector<16x1xf32> -> vector<16x1xf32>
    %26 = vector.broadcast %25 : vector<16x1xf32> to vector<16x128xf32>
    %27 = arith.mulf %22, %26 : vector<16x128xf32>
    %c0_9 = arith.constant 0 : index
    %c0_10 = arith.constant 0 : index
    %28 = vector.load %arg5[%c0_9, %c0_10] : memref<16x1024xf32, #tpu.memory_space<vmem>>, vector<16x128xf32>
    tpu.vector_store %arg5[%c0_9, %c0_10], %27 {strides = array<i32>} : memref<16x1024xf32, #tpu.memory_space<vmem>>, vector<16x128xf32>,
    %29 = vector.extract_strided_slice %5 {offsets = [0, 128], sizes = [16, 128], strides = [1, 1]} : vector<16x1024xf32> to vector<16x128xf32>
    %c0_11 = arith.constant 0 : index
    %c128 = arith.constant 128 : index
    %30 = vector.load %arg5[%c0_11, %c128] : memref<16x1024xf32, #tpu.memory_space<vmem>>, vector<16x128xf32>
    tpu.vector_store %arg5[%c0_11, %c128], %29 {strides = array<i32>} : memref<16x1024xf32, #tpu.memory_space<vmem>>, vector<16x128xf32>,
    %c16_i32 = arith.constant 16 : i32
    %31 = arith.muli %arg0, %c16_i32 : i32
    %32 = tpu.assume_multiple %31, 16 : i32
    %33 = arith.index_cast %32 : i32 to index
    %c0_12 = arith.constant 0 : index
    %34 = vector.load %arg6[%33, %c0_12] : memref<16x128xf32, #tpu.memory_space<vmem>>, vector<16x128xf32>
    tpu.vector_store %arg6[%33, %c0_12], %29 {strides = array<i32>} : memref<16x128xf32, #tpu.memory_space<vmem>>, vector<16x128xf32>,
    %35 = vector.extract_strided_slice %5 {offsets = [0, 256], sizes = [16, 128], strides = [1, 1]} : vector<16x1024xf32> to vector<16x128xf32>
    %36 = tpu.iota {dimensions = array<i32: 1>} : vector<1x128xi32>
    %c21_i32_13 = arith.constant 21 : i32
    %37 = vector.broadcast %c21_i32_13 : i32 to vector<1x128xi32>
    %38 = arith.cmpi slt, %36, %37 : vector<1x128xi32>
    %cst_14 = arith.constant 0xFF800000 : f32
    %39 = vector.shape_cast %38 : vector<1x128xi1> to vector<1x128xi1>
    %40 = vector.broadcast %39 : vector<1x128xi1> to vector<16x128xi1>
    %41 = vector.broadcast %cst_14 : f32 to vector<16x128xf32>
    %42 = arith.select %40, %35, %41 : vector<16x128xi1>, vector<16x128xf32>
    %cst_15 = arith.constant dense<0xFF800000> : vector<16xf32>
    %43 = vector.multi_reduction <maximumf>, %42, %cst_15 [1] : vector<16x128xf32> to vector<16xf32>
    %44 = vector.shape_cast %43 : vector<16xf32> to vector<16x1xf32>
    %45 = vector.broadcast %44 : vector<16x1xf32> to vector<16x128xf32>
    %46 = arith.subf %35, %45 : vector<16x128xf32>
    %47 = math.exp %46 : vector<16x128xf32>
    %cst_16 = arith.constant 0.000000e+00 : f32
    %48 = vector.shape_cast %38 : vector<1x128xi1> to vector<1x128xi1>
    %49 = vector.broadcast %48 : vector<1x128xi1> to vector<16x128xi1>
    %50 = vector.broadcast %cst_16 : f32 to vector<16x128xf32>
    %51 = arith.select %49, %47, %50 : vector<16x128xi1>, vector<16x128xf32>
    %cst_17 = arith.constant dense<0.000000e+00> : vector<16xf32>
    %52 = vector.multi_reduction <add>, %51, %cst_17 [1] : vector<16x128xf32> to vector<16xf32>
    %53 = vector.shape_cast %52 : vector<16xf32> to vector<16x1xf32>
    %54 = tpu.reciprocal %53 {approx = true} : vector<16x1xf32> -> vector<16x1xf32>
    %55 = vector.broadcast %54 : vector<16x1xf32> to vector<16x128xf32>
    %56 = arith.mulf %51, %55 : vector<16x128xf32>
    %c0_18 = arith.constant 0 : index
    %c256 = arith.constant 256 : index
    %57 = vector.load %arg5[%c0_18, %c256] : memref<16x1024xf32, #tpu.memory_space<vmem>>, vector<16x128xf32>
    tpu.vector_store %arg5[%c0_18, %c256], %56 {strides = array<i32>} : memref<16x1024xf32, #tpu.memory_space<vmem>>, vector<16x128xf32>,
    %58 = vector.extract_strided_slice %5 {offsets = [0, 384], sizes = [16, 128], strides = [1, 1]} : vector<16x1024xf32> to vector<16x128xf32>
    %59 = tpu.iota {dimensions = array<i32: 1>} : vector<1x128xi32>
    %c21_i32_19 = arith.constant 21 : i32
    %60 = vector.broadcast %c21_i32_19 : i32 to vector<1x128xi32>
    %61 = arith.cmpi slt, %59, %60 : vector<1x128xi32>
    %cst_20 = arith.constant 0xFF800000 : f32
    %62 = vector.shape_cast %61 : vector<1x128xi1> to vector<1x128xi1>
    %63 = vector.broadcast %62 : vector<1x128xi1> to vector<16x128xi1>
    %64 = vector.broadcast %cst_20 : f32 to vector<16x128xf32>
    %65 = arith.select %63, %58, %64 : vector<16x128xi1>, vector<16x128xf32>
    %cst_21 = arith.constant dense<0xFF800000> : vector<16xf32>
    %66 = vector.multi_reduction <maximumf>, %65, %cst_21 [1] : vector<16x128xf32> to vector<16xf32>
    %67 = vector.shape_cast %66 : vector<16xf32> to vector<16x1xf32>
    %68 = vector.broadcast %67 : vector<16x1xf32> to vector<16x128xf32>
    %69 = arith.subf %58, %68 : vector<16x128xf32>
    %70 = math.exp %69 : vector<16x128xf32>
    %cst_22 = arith.constant 0.000000e+00 : f32
    %71 = vector.shape_cast %61 : vector<1x128xi1> to vector<1x128xi1>
    %72 = vector.broadcast %71 : vector<1x128xi1> to vector<16x128xi1>
    %73 = vector.broadcast %cst_22 : f32 to vector<16x128xf32>
    %74 = arith.select %72, %70, %73 : vector<16x128xi1>, vector<16x128xf32>
    %cst_23 = arith.constant dense<0.000000e+00> : vector<16xf32>
    %75 = vector.multi_reduction <add>, %74, %cst_23 [1] : vector<16x128xf32> to vector<16xf32>
    %76 = vector.shape_cast %75 : vector<16xf32> to vector<16x1xf32>
    %77 = tpu.reciprocal %76 {approx = true} : vector<16x1xf32> -> vector<16x1xf32>
    %78 = vector.broadcast %77 : vector<16x1xf32> to vector<16x128xf32>
    %79 = arith.mulf %74, %78 : vector<16x128xf32>
    %c0_24 = arith.constant 0 : index
    %c384 = arith.constant 384 : index
    %80 = vector.load %arg5[%c0_24, %c384] : memref<16x1024xf32, #tpu.memory_space<vmem>>, vector<16x128xf32>
    tpu.vector_store %arg5[%c0_24, %c384], %79 {strides = array<i32>} : memref<16x1024xf32, #tpu.memory_space<vmem>>, vector<16x128xf32>,
    %81 = vector.extract_strided_slice %5 {offsets = [0, 512], sizes = [16, 128], strides = [1, 1]} : vector<16x1024xf32> to vector<16x128xf32>
    %82 = tpu.iota {dimensions = array<i32: 1>} : vector<1x128xi32>
    %c21_i32_25 = arith.constant 21 : i32
    %83 = vector.broadcast %c21_i32_25 : i32 to vector<1x128xi32>
    %84 = arith.cmpi slt, %82, %83 : vector<1x128xi32>
    %cst_26 = arith.constant 0xFF800000 : f32
    %85 = vector.shape_cast %84 : vector<1x128xi1> to vector<1x128xi1>
    %86 = vector.broadcast %85 : vector<1x128xi1> to vector<16x128xi1>
    %87 = vector.broadcast %cst_26 : f32 to vector<16x128xf32>
    %88 = arith.select %86, %81, %87 : vector<16x128xi1>, vector<16x128xf32>
    %cst_27 = arith.constant dense<0xFF800000> : vector<16xf32>
    %89 = vector.multi_reduction <maximumf>, %88, %cst_27 [1] : vector<16x128xf32> to vector<16xf32>
    %90 = vector.shape_cast %89 : vector<16xf32> to vector<16x1xf32>
    %91 = vector.broadcast %90 : vector<16x1xf32> to vector<16x128xf32>
    %92 = arith.subf %81, %91 : vector<16x128xf32>
    %93 = math.exp %92 : vector<16x128xf32>
    %cst_28 = arith.constant 0.000000e+00 : f32
    %94 = vector.shape_cast %84 : vector<1x128xi1> to vector<1x128xi1>
    %95 = vector.broadcast %94 : vector<1x128xi1> to vector<16x128xi1>
    %96 = vector.broadcast %cst_28 : f32 to vector<16x128xf32>
    %97 = arith.select %95, %93, %96 : vector<16x128xi1>, vector<16x128xf32>
    %cst_29 = arith.constant dense<0.000000e+00> : vector<16xf32>
    %98 = vector.multi_reduction <add>, %97, %cst_29 [1] : vector<16x128xf32> to vector<16xf32>
    %99 = vector.shape_cast %98 : vector<16xf32> to vector<16x1xf32>
    %100 = tpu.reciprocal %99 {approx = true} : vector<16x1xf32> -> vector<16x1xf32>
    %101 = vector.broadcast %100 : vector<16x1xf32> to vector<16x128xf32>
    %102 = arith.mulf %97, %101 : vector<16x128xf32>
    %c0_30 = arith.constant 0 : index
    %c512 = arith.constant 512 : index
    %103 = vector.load %arg5[%c0_30, %c512] : memref<16x1024xf32, #tpu.memory_space<vmem>>, vector<16x128xf32>
    tpu.vector_store %arg5[%c0_30, %c512], %102 {strides = array<i32>} : memref<16x1024xf32, #tpu.memory_space<vmem>>, vector<16x128xf32>,
    %104 = vector.extract_strided_slice %5 {offsets = [0, 640], sizes = [16, 128], strides = [1, 1]} : vector<16x1024xf32> to vector<16x128xf32>
    %c0_31 = arith.constant 0 : index
    %c640 = arith.constant 640 : index
    %105 = vector.load %arg5[%c0_31, %c640] : memref<16x1024xf32, #tpu.memory_space<vmem>>, vector<16x128xf32>
    tpu.vector_store %arg5[%c0_31, %c640], %104 {strides = array<i32>} : memref<16x1024xf32, #tpu.memory_space<vmem>>, vector<16x128xf32>,
    %106 = vector.extract_strided_slice %5 {offsets = [0, 768], sizes = [16, 128], strides = [1, 1]} : vector<16x1024xf32> to vector<16x128xf32>
    %c0_32 = arith.constant 0 : index
    %c768 = arith.constant 768 : index
    %107 = vector.load %arg5[%c0_32, %c768] : memref<16x1024xf32, #tpu.memory_space<vmem>>, vector<16x128xf32>
    tpu.vector_store %arg5[%c0_32, %c768], %106 {strides = array<i32>} : memref<16x1024xf32, #tpu.memory_space<vmem>>, vector<16x128xf32>,
    %108 = vector.extract_strided_slice %5 {offsets = [0, 896], sizes = [16, 128], strides = [1, 1]} : vector<16x1024xf32> to vector<16x128xf32>
    %c0_33 = arith.constant 0 : index
    %c896 = arith.constant 896 : index
    %109 = vector.load %arg5[%c0_33, %c896] : memref<16x1024xf32, #tpu.memory_space<vmem>>, vector<16x128xf32>
    tpu.vector_store %arg5[%c0_33, %c896], %108 {strides = array<i32>} : memref<16x1024xf32, #tpu.memory_space<vmem>>, vector<16x128xf32>,
    %c0_i32 = arith.constant 0 : i32
    %110 = arith.cmpi eq, %arg0, %c0_i32 : i32
    %111 = arith.extui %110 : i1 to i32
    %c0_i32_34 = arith.constant 0 : i32
    %112 = arith.cmpi ne, %111, %c0_i32_34 : i32
    scf.if %112 {
      %c0_35 = arith.constant 0 : index
      %c0_36 = arith.constant 0 : index
      %113 = vector.load %arg6[%c0_35, %c0_36] : memref<16x128xf32, #tpu.memory_space<vmem>>, vector<16x128xf32>
      %114 = tpu.iota {dimensions = array<i32: 0>} : vector<16x1xi32>
      %115 = tpu.iota {dimensions = array<i32: 1>} : vector<1x128xi32>
      %c21_i32_37 = arith.constant 21 : i32
      %116 = vector.broadcast %c21_i32_37 : i32 to vector<1x128xi32>
      %117 = arith.cmpi slt, %115, %116 : vector<1x128xi32>
      %cst_38 = arith.constant 0.000000e+00 : f32
      %118 = vector.broadcast %cst_38 : f32 to vector<16x128xf32>
      %c0_39 = arith.constant 0 : index
      %119 = memref.load %arg1[%c0_39] : memref<3xi32, #tpu.memory_space<smem>>
      %c1 = arith.constant 1 : index
      %120 = memref.load %arg1[%c1] : memref<3xi32, #tpu.memory_space<smem>>
      %121 = vector.broadcast %119 : i32 to vector<16x1xi32>
      %122 = arith.cmpi sge, %114, %121 : vector<16x1xi32>
      %123 = vector.broadcast %120 : i32 to vector<16x1xi32>
      %124 = arith.cmpi slt, %114, %123 : vector<16x1xi32>
      %125 = arith.andi %122, %124 : vector<16x1xi1>
      %126 = vector.broadcast %125 : vector<16x1xi1> to vector<16x128xi1>
      %127 = vector.broadcast %117 : vector<1x128xi1> to vector<16x128xi1>
      %128 = arith.andi %126, %127 : vector<16x128xi1>
      %cst_40 = arith.constant 0xFF800000 : f32
      %129 = vector.broadcast %cst_40 : f32 to vector<16x128xf32>
      %130 = arith.select %128, %113, %129 : vector<16x128xi1>, vector<16x128xf32>
      %cst_41 = arith.constant dense<0xFF800000> : vector<128xf32>
      %131 = vector.multi_reduction <maximumf>, %130, %cst_41 [0] : vector<16x128xf32> to vector<128xf32>
      %132 = vector.shape_cast %131 : vector<128xf32> to vector<1x128xf32>
      %cst_42 = arith.constant -3.000000e+38 : f32
      %133 = vector.broadcast %cst_42 : f32 to vector<1x128xf32>
      %134 = arith.maximumf %132, %133 : vector<1x128xf32>
      %135 = vector.broadcast %134 : vector<1x128xf32> to vector<16x128xf32>
      %136 = arith.subf %113, %135 : vector<16x128xf32>
      %137 = math.exp %136 : vector<16x128xf32>
      %cst_43 = arith.constant 0.000000e+00 : f32
      %138 = vector.broadcast %cst_43 : f32 to vector<16x128xf32>
      %139 = arith.select %128, %137, %138 : vector<16x128xi1>, vector<16x128xf32>
      %cst_44 = arith.constant dense<0.000000e+00> : vector<128xf32>
      %140 = vector.multi_reduction <add>, %139, %cst_44 [0] : vector<16x128xf32> to vector<128xf32>
      %141 = vector.shape_cast %140 : vector<128xf32> to vector<1x128xf32>
      %cst_45 = arith.constant 0.000000e+00 : f32
      %142 = vector.broadcast %cst_45 : f32 to vector<1x128xf32>
      %143 = arith.cmpf ogt, %141, %142 : vector<1x128xf32>
      %cst_46 = arith.constant 1.000000e+00 : f32
      %144 = vector.broadcast %cst_46 : f32 to vector<1x128xf32>
      %145 = arith.select %143, %141, %144 : vector<1x128xi1>, vector<1x128xf32>
      %146 = tpu.reciprocal %145 {approx = true} : vector<1x128xf32> -> vector<1x128xf32>
      %147 = vector.broadcast %146 : vector<1x128xf32> to vector<16x128xf32>
      %148 = arith.mulf %139, %147 : vector<16x128xf32>
      %149 = arith.addf %118, %148 : vector<16x128xf32>
      %c1_47 = arith.constant 1 : index
      %150 = memref.load %arg1[%c1_47] : memref<3xi32, #tpu.memory_space<smem>>
      %c2 = arith.constant 2 : index
      %151 = memref.load %arg1[%c2] : memref<3xi32, #tpu.memory_space<smem>>
      %152 = vector.broadcast %150 : i32 to vector<16x1xi32>
      %153 = arith.cmpi sge, %114, %152 : vector<16x1xi32>
      %154 = vector.broadcast %151 : i32 to vector<16x1xi32>
      %155 = arith.cmpi slt, %114, %154 : vector<16x1xi32>
      %156 = arith.andi %153, %155 : vector<16x1xi1>
      %157 = vector.broadcast %156 : vector<16x1xi1> to vector<16x128xi1>
      %158 = vector.broadcast %117 : vector<1x128xi1> to vector<16x128xi1>
      %159 = arith.andi %157, %158 : vector<16x128xi1>
      %cst_48 = arith.constant 0xFF800000 : f32
      %160 = vector.broadcast %cst_48 : f32 to vector<16x128xf32>
      %161 = arith.select %159, %113, %160 : vector<16x128xi1>, vector<16x128xf32>
      %cst_49 = arith.constant dense<0xFF800000> : vector<128xf32>
      %162 = vector.multi_reduction <maximumf>, %161, %cst_49 [0] : vector<16x128xf32> to vector<128xf32>
      %163 = vector.shape_cast %162 : vector<128xf32> to vector<1x128xf32>
      %cst_50 = arith.constant -3.000000e+38 : f32
      %164 = vector.broadcast %cst_50 : f32 to vector<1x128xf32>
      %165 = arith.maximumf %163, %164 : vector<1x128xf32>
      %166 = vector.broadcast %165 : vector<1x128xf32> to vector<16x128xf32>
      %167 = arith.subf %113, %166 : vector<16x128xf32>
      %168 = math.exp %167 : vector<16x128xf32>
      %cst_51 = arith.constant 0.000000e+00 : f32
      %169 = vector.broadcast %cst_51 : f32 to vector<16x128xf32>
      %170 = arith.select %159, %168, %169 : vector<16x128xi1>, vector<16x128xf32>
      %cst_52 = arith.constant dense<0.000000e+00> : vector<128xf32>
      %171 = vector.multi_reduction <add>, %170, %cst_52 [0] : vector<16x128xf32> to vector<128xf32>
      %172 = vector.shape_cast %171 : vector<128xf32> to vector<1x128xf32>
      %cst_53 = arith.constant 0.000000e+00 : f32
      %173 = vector.broadcast %cst_53 : f32 to vector<1x128xf32>
      %174 = arith.cmpf ogt, %172, %173 : vector<1x128xf32>
      %cst_54 = arith.constant 1.000000e+00 : f32
      %175 = vector.broadcast %cst_54 : f32 to vector<1x128xf32>
      %176 = arith.select %174, %172, %175 : vector<1x128xi1>, vector<1x128xf32>
      %177 = tpu.reciprocal %176 {approx = true} : vector<1x128xf32> -> vector<1x128xf32>
      %178 = vector.broadcast %177 : vector<1x128xf32> to vector<16x128xf32>
      %179 = arith.mulf %170, %178 : vector<16x128xf32>
      %180 = arith.addf %149, %179 : vector<16x128xf32>
      %c0_55 = arith.constant 0 : index
      %c0_56 = arith.constant 0 : index
      %181 = vector.load %arg6[%c0_55, %c0_56] : memref<16x128xf32, #tpu.memory_space<vmem>>, vector<16x128xf32>
      tpu.vector_store %arg6[%c0_55, %c0_56], %180 {strides = array<i32>} : memref<16x128xf32, #tpu.memory_space<vmem>>, vector<16x128xf32>,
    } else {
    }
    return
  }
  func.func @transform_0(%arg0: i32, %arg1: memref<3xi32, #tpu.memory_space<smem>>) -> (i32, i32) {
    %c0_i32 = arith.constant 0 : i32
    %c0_i32_0 = arith.constant 0 : i32
    return %arg0, %c0_i32 : i32, i32
  }
  func.func @transform_1(%arg0: i32, %arg1: memref<3xi32, #tpu.memory_space<smem>>) -> (i32, i32) {
    %c0_i32 = arith.constant 0 : i32
    %c0_i32_0 = arith.constant 0 : i32
    %c0_i32_1 = arith.constant 0 : i32
    return %c0_i32, %c0_i32_0 : i32, i32
  }
  func.func @transform_2(%arg0: i32, %arg1: memref<3xi32, #tpu.memory_space<smem>>) -> (i32, i32) {
    %c0_i32 = arith.constant 0 : i32
    %c0_i32_0 = arith.constant 0 : i32
    %c0_i32_1 = arith.constant 0 : i32
    return %c0_i32, %c0_i32_0 : i32, i32
  }
  func.func @transform_3(%arg0: i32, %arg1: memref<3xi32, #tpu.memory_space<smem>>) -> (i32, i32) {
    %c0_i32 = arith.constant 0 : i32
    %c0_i32_0 = arith.constant 0 : i32
    return %arg0, %c0_i32 : i32, i32
  }
  func.func @transform_4(%arg0: i32, %arg1: memref<3xi32, #tpu.memory_space<smem>>) -> (i32, i32) {
    %c0_i32 = arith.constant 0 : i32
    %c0_i32_0 = arith.constant 0 : i32
    %c0_i32_1 = arith.constant 0 : i32
    return %c0_i32, %c0_i32_0 : i32, i32
  }
}

</mosaic_0001>

<bundles_post_ra>
// kernel: tpu_custom_call.1
= control target key start
LH: loop header
LB: loop body
LE: loop exit
PB: predicated region body
PF: predicated region fallthrough
CT: control target
= control target key end

     0   :  { %s7652_s0 = inlined_call_operand.hbm [shape: s32[3], index: 0, kind: input, shape index: {}]   ;;  %s7653_s1 = inlined_call_operand.hbm [shape: f32[16,2048], index: 1, kind: input, shape index: {}]   ;;  %s7654_s2 = inlined_call_operand.hbm [shape: f32[2048,1024], index: 2, kind: input, shape index: {}]   ;;  %s7655_s3 = inlined_call_operand.hbm [shape: f32[1,1024], index: 3, kind: input, shape index: {}]   ;;  %s7656_s4 = inlined_call_operand.hbm [shape: f32[16,1024], index: 4, kind: output, shape index: {0}]   ;;  %s7657_s5 = inlined_call_operand.hbm [shape: f32[16,128], index: 5, kind: output, shape index: {1}]  }
   0x1   :  { %s7166_s20 = scalar_lea.hbm %s7652_s0, 16 }
   0x2   :  { %p7167_p0 = scmp.ne.s32.totalorder %s7652_s0, %s7166_s20  ;;  %p7170_p1 = scmp.lt.u32.totalorder %s7166_s20, %s7652_s0 }
   0x4   :  { %p7172_p2 = pnand %p7170_p1, %p7167_p0 }
   0x6   :  { %7175 = shalt.err (!%p7172_p2)  }
   0x7   :  { %s7296_s25 = smov [#allocation3]  }
   0x8   :  { %12 = dma.hbm_to_smem %s7652_s0, 16, %s7296_s25, [#allocation2] }
   0x9   :  { %7286 = dma.done.wait [#allocation2], 16 }
   0xa   :  { %7287 = vsyncadd [#allocation2], 4294967280 }
   0xb   :  { %14 = sfence }
   0xc   :  { %15 = vsyncpa [#allocation5], 0 }
   0xd   :  { %16 = vsyncpa [#allocation8], 0 }
   0xe   :  { %17 = vsyncpa [#allocation6], 0 }
   0xf   :  { %18 = vsyncpa [#allocation12], 0  ;;  %s7297_s28 = smov [#allocation7]   ;;  %s7176_s7 = scalar_lea.hbm %s7654_s2, 262144 }
  0x10   :  { %s36_s29 = sshll.u32 %s7297_s28, 4  ;;  %p7177_p3 = scmp.ne.s32.totalorder %s7654_s2, %s7176_s7  ;;  %s37_s29 = int_to_ptr.vmem [resolvable:$true] %s36_s29 }
  0x11   :  { %p7180_p4 = scmp.lt.u32.totalorder %s7176_s7, %s7654_s2 }
  0x13   :  { %p7182_p5 = pnand %p7180_p4, %p7177_p3 }
  0x15   :  { %7185 = shalt.err (!%p7182_p5)
}
  0x16   :  { %s7186_s11 = scalar_lea.vmem %s37_s29, 262144  ;;  %p7191_p7 = scmp.lt.s32.totalorder %s37_s29, %s37_s29 }
  0x17   :  { %p7187_p6 = scmp.ne.s32.totalorder %s37_s29, %s7186_s11  ;;  %p7192_p8 = scmp.lt.s32.totalorder %s7186_s11, %s7186_s11 }
  0x19   :  { %p7193_p9 = por %p7192_p8, %p7191_p7 }
  0x1b   :  { %p7194_p10 = pnand %p7193_p9, %p7187_p6 }
  0x1d   :  { %7197 = shalt.err (!%p7194_p10)
}
  0x1e   :  { %s7298_s12 = smov 1024   ;;  %s7299_s13 = smov 64  }
  0x1f   :  { %42 = dma.hbm_to_vmem [thread:$0]  %s7654_s2, 262144, %s37_s29, [#allocation8], %s7298_s12, %s7298_s12, %s7299_s13  }
  0x20   :  { %s7300_s16 = smov [#allocation4]   ;;  %s7198_s20 = scalar_lea.hbm %s7653_s1, 4096 }
  0x21   :  { %s24_s17 = sshll.u32 %s7300_s16, 4  ;;  %p7199_p11 = scmp.ne.s32.totalorder %s7653_s1, %s7198_s20  ;;  %s25_s17 = int_to_ptr.vmem [resolvable:$true] %s24_s17 }
  0x22   :  { %p7202_p12 = scmp.lt.u32.totalorder %s7198_s20, %s7653_s1 }
  0x24   :  { %p7204_p13 = pnand %p7202_p12, %p7199_p11 }
  0x26   :  { %7207 = shalt.err (!%p7204_p13)
}
  0x27   :  { %s7208_s25 = scalar_lea.vmem %s25_s17, 4096  ;;  %p7213_p1 = scmp.lt.s32.totalorder %s25_s17, %s25_s17 }
  0x28   :  { %p7209_p0 = scmp.ne.s32.totalorder %s25_s17, %s7208_s25  ;;  %p7214_p2 = scmp.lt.s32.totalorder %s7208_s25, %s7208_s25 }
  0x2a   :  { %p7215_p3 = por %p7214_p2, %p7213_p1 }
  0x2c   :  { %p7216_p4 = pnand %p7215_p3, %p7209_p0 }
  0x2e   :  { %7219 = shalt.err (!%p7216_p4)
}
  0x2f   :  { %s7301_s2 = smov 2048   ;;  %s7302_s26 = smov 128  }
  0x30   :  { %30 = dma.hbm_to_vmem [thread:$0]  %s7653_s1, 4096, %s25_s17, [#allocation5], %s7301_s2, %s7301_s2, %s7302_s26  }
  0x31   :  { %s7303_s29 = smov [#allocation9]   ;;  %s7220_s8 = scalar_lea.hbm %s7655_s3, 128 }
  0x32   :  { %s49_s30 = sshll.u32 %s7303_s29, 4  ;;  %p7221_p5 = scmp.ne.s32.totalorder %s7655_s3, %s7220_s8  ;;  %s50_s30 = int_to_ptr.vmem [resolvable:$true] %s49_s30 }
  0x33   :  { %p7224_p6 = scmp.lt.u32.totalorder %s7220_s8, %s7655_s3 }
  0x35   :  { %p7226_p7 = pnand %p7224_p6, %p7221_p5 }
  0x37   :  { %7229 = shalt.err (!%p7226_p7)
}
  0x38   :  { %s7230_s14 = scalar_lea.vmem %s50_s30, 128  ;;  %p7235_p9 = scmp.lt.s32.totalorder %s50_s30, %s50_s30 }
  0x39   :  { %p7231_p8 = scmp.ne.s32.totalorder %s50_s30, %s7230_s14  ;;  %p7236_p10 = scmp.lt.s32.totalorder %s7230_s14, %s7230_s14 }
  0x3b   :  { %p7237_p11 = por %p7236_p10, %p7235_p9 }
  0x3d   :  { %p7238_p12 = pnand %p7237_p11, %p7231_p8 }
  0x3f   :  { %7241 = shalt.err (!%p7238_p12)
}
  0x40   :  { %52 = dma.hbm_to_vmem [thread:$0]  %s7655_s3, 128, %s50_s30, [#allocation8]  }
  0x41   :  { %7288 = dma.done.wait [#allocation5], 4096  }
  0x42   :  { %7289 = vsyncadd [#allocation5], 4294963200 }
  0x43   :  { %7290 = dma.done.wait [#allocation8], 262272  }
  0x44   :  { %7291 = vsyncadd [#allocation8], 4294705024  ;;  %v95_v0 = vld [vmem:[#allocation7 + $0x8] sm:$0xff]  ;;  %v97_v2 = vld [vmem:[#allocation7 + $0x18] sm:$0xff]  ;;  %s7391_s3 = sld [smem:[#allocation3]]  ;;  %s7393_s16 = sld [smem:[#allocation3 + $0x1]] }
  0x45   :  { %v103_v1 = vld [vmem:[#allocation7 + $0x48] sm:$0xff]  ;;  %v105_v4 = vld [vmem:[#allocation7 + $0x58] sm:$0xff]  ;;  %v94_v5 = vld [vmem:[#allocation7] sm:$0xff]  ;;  %s7403_s17 = sld [smem:[#allocation3 + $0x2]]  ;;  %s7304_s18 = smov [#allocation11]  }
  0x46   :  { %v4902_v3 = vpack.c.bf16 %v103_v1, %v95_v0  ;;  %v102_v6 = vld [vmem:[#allocation7 + $0x40] sm:$0xff]  ;;  %v5414_v7 = vpack.c.bf16 %v105_v4, %v97_v2  ;;  %v96_v9 = vld [vmem:[#allocation7 + $0x10] sm:$0xff]  ;;  %v111_v11 = vld [vmem:[#allocation7 + $0x88] sm:$0xff]  ;;  %s4883_s19 = sshll.u32 %s7304_s18, 4  ;;  %s4884_s19 = int_to_ptr.vmem [resolvable:$true] %s4883_s19 }
  0x47   :  { %v4904_v8 = vpack.c.bf16 %v102_v6, %v94_v5  ;;  %v104_v10 = vld [vmem:[#allocation7 + $0x50] sm:$0xff]  ;;  %v119_v13 = vld [vmem:[#allocation7 + $0xc8] sm:$0xff]  ;;  %v113_v14 = vld [vmem:[#allocation7 + $0x98] sm:$0xff]  ;;  %s7242_s20 = scalar_lea.vmem %s4884_s19, 256  ;;  %p7247_p0 = scmp.lt.s32.totalorder %s4884_s19, %s4884_s19 }
  0x48   :  { %4903 = vmatprep.subr.bf16.mxu0 %v4902_v3  ;;  %v5416_v12 = vpack.c.bf16 %v104_v10, %v96_v9  ;;  %v121_v15 = vld [vmem:[#allocation7 + $0xd8] sm:$0xff]  ;;  %5415 = vmatprep.subr.bf16.mxu1 %v5414_v7  ;;  %v4906_v16 = vpack.c.bf16 %v119_v13, %v111_v11  ;;  %v110_v18 = vld [vmem:[#allocation7 + $0x80] sm:$0xff]  ;;  %v112_v20 = vld [vmem:[#allocation7 + $0x90] sm:$0xff]  ;;  %p7243_p13 = scmp.ne.s32.totalorder %s4884_s19, %s7242_s20  ;;  %p7248_p1 = scmp.lt.s32.totalorder %s7242_s20, %s7242_s20 }
  0x49   :  { %4905 = vmatpush1.bf16.msra.mxu0 %v4904_v8  ;;  %v5418_v17 = vpack.c.bf16 %v121_v15, %v113_v14  ;;  %v118_v19 = vld [vmem:[#allocation7 + $0xc0] sm:$0xff]  ;;  %v120_v22 = vld [vmem:[#allocation7 + $0xd0] sm:$0xff]  ;;  %v127_v23 = vld [vmem:[#allocation7 + $0x108] sm:$0xff] }
  0x4a   :  { %5417 = vmatpush1.bf16.msra.mxu1 %v5416_v12  ;;  %v4908_v21 = vpack.c.bf16 %v118_v19, %v110_v18  ;;  %v135_v24 = vld [vmem:[#allocation7 + $0x148] sm:$0xff]  ;;  %4907 = vmatprep.subr.bf16.mxu0 %v4906_v16  ;;  %v5420_v25 = vpack.c.bf16 %v120_v22, %v112_v20  ;;  %v129_v27 = vld [vmem:[#allocation7 + $0x118] sm:$0xff]  ;;  %v126_v29 = vld [vmem:[#allocation7 + $0x100] sm:$0xff]  ;;  %p7249_p2 = por %p7248_p1, %p7247_p0 }
  0x4b   :  { %5419 = vmatprep.subr.bf16.mxu1 %v5418_v17  ;;  %v4910_v26 = vpack.c.bf16 %v135_v24, %v127_v23  ;;  %v137_v28 = vld [vmem:[#allocation7 + $0x158] sm:$0xff]  ;;  %v134_v31 = vld [vmem:[#allocation7 + $0x140] sm:$0xff]  ;;  %v128_v32 = vld [vmem:[#allocation7 + $0x110] sm:$0xff] }
  0x4c   :  { %v5422_v30 = vpack.c.bf16 %v137_v28, %v129_v27  ;;  %v136_v33 = vld [vmem:[#allocation7 + $0x150] sm:$0xff]  ;;  %v4912_v34 = vpack.c.bf16 %v134_v31, %v126_v29  ;;  %v143_v35 = vld [vmem:[#allocation7 + $0x188] sm:$0xff]  ;;  %v145_v37 = vld [vmem:[#allocation7 + $0x198] sm:$0xff]  ;;  %p7250_p3 = pnand %p7249_p2, %p7243_p13 }
  0x4d   :  { %4909 = vmatpush1.bf16.msra.mxu0 %v4908_v21  ;;  %v151_v36 = vld [vmem:[#allocation7 + $0x1c8] sm:$0xff]  ;;  %v5424_v38 = vpack.c.bf16 %v136_v33, %v128_v32  ;;  %v153_v40 = vld [vmem:[#allocation7 + $0x1d8] sm:$0xff]  ;;  %v142_v41 = vld [vmem:[#allocation7 + $0x180] sm:$0xff] }
  0x4e   :  { %5421 = vmatpush1.bf16.msra.mxu1 %v5420_v25  ;;  %4911 = vmatprep.subr.bf16.mxu0 %v4910_v26  ;;  %v4914_v39 = vpack.c.bf16 %v151_v36, %v143_v35  ;;  %v150_v42 = vld [vmem:[#allocation7 + $0x1c0] sm:$0xff]  ;;  %v5426_v43 = vpack.c.bf16 %v153_v40, %v145_v37  ;;  %v144_v44 = vld [vmem:[#allocation7 + $0x190] sm:$0xff]  ;;  %v159_v46 = vld [vmem:[#allocation7 + $0x208] sm:$0xff] }
  0x4f   :  { %5423 = vmatprep.subr.bf16.mxu1 %v5422_v30  ;;  %v152_v45 = vld [vmem:[#allocation7 + $0x1d0] sm:$0xff]  ;;  %v167_v47 = vld [vmem:[#allocation7 + $0x248] sm:$0xff]  ;;  %v161_v48 = vld [vmem:[#allocation7 + $0x218] sm:$0xff]  ;;  %v4916_v50 = vpack.c.bf16 %v150_v42, %v142_v41 }
  0x50   :  { %v169_v49 = vld [vmem:[#allocation7 + $0x258] sm:$0xff]  ;;  %v5428_v51 = vpack.c.bf16 %v152_v45, %v144_v44  ;;  %v4918_v52 = vpack.c.bf16 %v167_v47, %v159_v46  ;;  %v158_v53 = vld [vmem:[#allocation7 + $0x200] sm:$0xff]  ;;  %v160_v55 = vld [vmem:[#allocation7 + $0x210] sm:$0xff] }
  0x51   :  { %4913 = vmatpush1.bf16.msra.mxu0 %v4912_v34  ;;  %v166_v54 = vld [vmem:[#allocation7 + $0x240] sm:$0xff]  ;;  %v5430_v56 = vpack.c.bf16 %v169_v49, %v161_v48  ;;  %v168_v57 = vld [vmem:[#allocation7 + $0x250] sm:$0xff]  ;;  %v175_v58 = vld [vmem:[#allocation7 + $0x288] sm:$0xff] }
  0x52   :  { %5425 = vmatpush1.bf16.msra.mxu1 %v5424_v38  ;;  %4915 = vmatprep.subr.bf16.mxu0 %v4914_v39  ;;  %v183_v59 = vld [vmem:[#allocation7 + $0x2c8] sm:$0xff]  ;;  %v177_v60 = vld [vmem:[#allocation7 + $0x298] sm:$0xff]  ;;  %v4920_v62 = vpack.c.bf16 %v166_v54, %v158_v53  ;;  %v5432_v63 = vpack.c.bf16 %v168_v57, %v160_v55  ;;  %v174_v1 = vld [vmem:[#allocation7 + $0x280] sm:$0xff] }
  0x53   :  { %5427 = vmatprep.subr.bf16.mxu1 %v5426_v43  ;;  %v185_v61 = vld [vmem:[#allocation7 + $0x2d8] sm:$0xff]  ;;  %v4922_v0 = vpack.c.bf16 %v183_v59, %v175_v58  ;;  %v182_v2 = vld [vmem:[#allocation7 + $0x2c0] sm:$0xff]  ;;  %v176_v3 = vld [vmem:[#allocation7 + $0x290] sm:$0xff] }
  0x54   :  { %v5434_v4 = vpack.c.bf16 %v185_v61, %v177_v60  ;;  %v184_v5 = vld [vmem:[#allocation7 + $0x2d0] sm:$0xff]  ;;  %v191_v6 = vld [vmem:[#allocation7 + $0x308] sm:$0xff]  ;;  %v193_v8 = vld [vmem:[#allocation7 + $0x318] sm:$0xff]  ;;  %v4924_v10 = vpack.c.bf16 %v182_v2, %v174_v1 }
  0x55   :  { %4917 = vmatpush1.bf16.msra.mxu0 %v4916_v50  ;;  %v199_v7 = vld [vmem:[#allocation7 + $0x348] sm:$0xff]  ;;  %v201_v9 = vld [vmem:[#allocation7 + $0x358] sm:$0xff]  ;;  %v5436_v11 = vpack.c.bf16 %v184_v5, %v176_v3  ;;  %v190_v13 = vld [vmem:[#allocation7 + $0x300] sm:$0xff] }
  0x56   :  { %5429 = vmatpush1.bf16.msra.mxu1 %v5428_v51  ;;  %4919 = vmatprep.subr.bf16.mxu0 %v4918_v52  ;;  %v4926_v12 = vpack.c.bf16 %v199_v7, %v191_v6  ;;  %v198_v14 = vld [vmem:[#allocation7 + $0x340] sm:$0xff]  ;;  %v192_v15 = vld [vmem:[#allocation7 + $0x310] sm:$0xff]  ;;  %v5438_v16 = vpack.c.bf16 %v201_v9, %v193_v8  ;;  %v207_v18 = vld [vmem:[#allocation7 + $0x388] sm:$0xff] }
  0x57   :  { %5431 = vmatprep.subr.bf16.mxu1 %v5430_v56  ;;  %v200_v17 = vld [vmem:[#allocation7 + $0x350] sm:$0xff]  ;;  %v215_v19 = vld [vmem:[#allocation7 + $0x3c8] sm:$0xff]  ;;  %v209_v20 = vld [vmem:[#allocation7 + $0x398] sm:$0xff]  ;;  %v4928_v22 = vpack.c.bf16 %v198_v14, %v190_v13 }
  0x58   :  { %v217_v21 = vld [vmem:[#allocation7 + $0x3d8] sm:$0xff]  ;;  %v5440_v23 = vpack.c.bf16 %v200_v17, %v192_v15  ;;  %v4930_v24 = vpack.c.bf16 %v215_v19, %v207_v18  ;;  %v206_v25 = vld [vmem:[#allocation7 + $0x380] sm:$0xff]  ;;  %v208_v27 = vld [vmem:[#allocation7 + $0x390] sm:$0xff] }
  0x59   :  { %4921 = vmatpush1.bf16.msra.mxu0 %v4920_v62  ;;  %v214_v26 = vld [vmem:[#allocation7 + $0x3c0] sm:$0xff]  ;;  %v5442_v28 = vpack.c.bf16 %v217_v21, %v209_v20  ;;  %v216_v29 = vld [vmem:[#allocation7 + $0x3d0] sm:$0xff]  ;;  %v223_v30 = vld [vmem:[#allocation7 + $0x408] sm:$0xff] }
  0x5a   :  { %5433 = vmatpush1.bf16.msra.mxu1 %v5432_v63  ;;  %4923 = vmatprep.subr.bf16.mxu0 %v4922_v0  ;;  %v231_v31 = vld [vmem:[#allocation7 + $0x448] sm:$0xff]  ;;  %v225_v32 = vld [vmem:[#allocation7 + $0x418] sm:$0xff]  ;;  %v4932_v34 = vpack.c.bf16 %v214_v26, %v206_v25  ;;  %v5444_v35 = vpack.c.bf16 %v216_v29, %v208_v27  ;;  %v222_v37 = vld [vmem:[#allocation7 + $0x400] sm:$0xff] }
  0x5b   :  { %5435 = vmatprep.subr.bf16.mxu1 %v5434_v4  ;;  %v233_v33 = vld [vmem:[#allocation7 + $0x458] sm:$0xff]  ;;  %v4934_v36 = vpack.c.bf16 %v231_v31, %v223_v30  ;;  %v230_v38 = vld [vmem:[#allocation7 + $0x440] sm:$0xff]  ;;  %v224_v39 = vld [vmem:[#allocation7 + $0x410] sm:$0xff] }
  0x5c   :  { %v5446_v40 = vpack.c.bf16 %v233_v33, %v225_v32  ;;  %v232_v41 = vld [vmem:[#allocation7 + $0x450] sm:$0xff]  ;;  %v239_v42 = vld [vmem:[#allocation7 + $0x488] sm:$0xff]  ;;  %v241_v44 = vld [vmem:[#allocation7 + $0x498] sm:$0xff]  ;;  %v4936_v46 = vpack.c.bf16 %v230_v38, %v222_v37 }
  0x5d   :  { %4925 = vmatpush1.bf16.msra.mxu0 %v4924_v10  ;;  %v247_v43 = vld [vmem:[#allocation7 + $0x4c8] sm:$0xff]  ;;  %v249_v45 = vld [vmem:[#allocation7 + $0x4d8] sm:$0xff]  ;;  %v5448_v47 = vpack.c.bf16 %v232_v41, %v224_v39  ;;  %v238_v49 = vld [vmem:[#allocation7 + $0x480] sm:$0xff] }
  0x5e   :  { %5437 = vmatpush1.bf16.msra.mxu1 %v5436_v11  ;;  %4927 = vmatprep.subr.bf16.mxu0 %v4926_v12  ;;  %v4938_v48 = vpack.c.bf16 %v247_v43, %v239_v42  ;;  %v246_v50 = vld [vmem:[#allocation7 + $0x4c0] sm:$0xff]  ;;  %v240_v51 = vld [vmem:[#allocation7 + $0x490] sm:$0xff]  ;;  %v5450_v52 = vpack.c.bf16 %v249_v45, %v241_v44  ;;  %v255_v54 = vld [vmem:[#allocation7 + $0x508] sm:$0xff] }
  0x5f   :  { %5439 = vmatprep.subr.bf16.mxu1 %v5438_v16  ;;  %v248_v53 = vld [vmem:[#allocation7 + $0x4d0] sm:$0xff]  ;;  %v263_v55 = vld [vmem:[#allocation7 + $0x548] sm:$0xff]  ;;  %v257_v56 = vld [vmem:[#allocation7 + $0x518] sm:$0xff]  ;;  %v4940_v58 = vpack.c.bf16 %v246_v50, %v238_v49 }
  0x60   :  { %v265_v57 = vld [vmem:[#allocation7 + $0x558] sm:$0xff]  ;;  %v5452_v59 = vpack.c.bf16 %v248_v53, %v240_v51  ;;  %v4942_v60 = vpack.c.bf16 %v263_v55, %v255_v54  ;;  %v254_v61 = vld [vmem:[#allocation7 + $0x500] sm:$0xff]  ;;  %v256_v63 = vld [vmem:[#allocation7 + $0x510] sm:$0xff] }
  0x61   :  { %4929 = vmatpush1.bf16.msra.mxu0 %v4928_v22  ;;  %v262_v62 = vld [vmem:[#allocation7 + $0x540] sm:$0xff]  ;;  %v5454_v0 = vpack.c.bf16 %v265_v57, %v257_v56  ;;  %v264_v1 = vld [vmem:[#allocation7 + $0x550] sm:$0xff]  ;;  %v271_v2 = vld [vmem:[#allocation7 + $0x588] sm:$0xff] }
  0x62   :  { %5441 = vmatpush1.bf16.msra.mxu1 %v5440_v23  ;;  %4931 = vmatprep.subr.bf16.mxu0 %v4930_v24  ;;  %v279_v3 = vld [vmem:[#allocation7 + $0x5c8] sm:$0xff]  ;;  %v273_v4 = vld [vmem:[#allocation7 + $0x598] sm:$0xff]  ;;  %v4944_v6 = vpack.c.bf16 %v262_v62, %v254_v61  ;;  %v270_v7 = vld [vmem:[#allocation7 + $0x580] sm:$0xff]  ;;  %v5456_v8 = vpack.c.bf16 %v264_v1, %v256_v63 }
  0x63   :  { %5443 = vmatprep.subr.bf16.mxu1 %v5442_v28  ;;  %v281_v5 = vld [vmem:[#allocation7 + $0x5d8] sm:$0xff]  ;;  %v4946_v9 = vpack.c.bf16 %v279_v3, %v271_v2  ;;  %v278_v10 = vld [vmem:[#allocation7 + $0x5c0] sm:$0xff]  ;;  %v272_v11 = vld [vmem:[#allocation7 + $0x590] sm:$0xff] }
  0x64   :  { %v280_v12 = vld [vmem:[#allocation7 + $0x5d0] sm:$0xff]  ;;  %v5458_v13 = vpack.c.bf16 %v281_v5, %v273_v4  ;;  %v287_v14 = vld [vmem:[#allocation7 + $0x608] sm:$0xff]  ;;  %v289_v17 = vld [vmem:[#allocation7 + $0x618] sm:$0xff]  ;;  %v4948_v19 = vpack.c.bf16 %v278_v10, %v270_v7 }
  0x65   :  { %4933 = vmatpush1.bf16.msra.mxu0 %v4932_v34  ;;  %v295_v15 = vld [vmem:[#allocation7 + $0x648] sm:$0xff]  ;;  %v297_v18 = vld [vmem:[#allocation7 + $0x658] sm:$0xff]  ;;  %v5460_v20 = vpack.c.bf16 %v280_v12, %v272_v11  ;;  %v286_v22 = vld [vmem:[#allocation7 + $0x600] sm:$0xff] }
  0x66   :  { %5445 = vmatpush1.bf16.msra.mxu1 %v5444_v35  ;;  %4935 = vmatprep.subr.bf16.mxu0 %v4934_v36  ;;  %v63_v16 = vld [vmem:[#allocation4 + $0x8] sm:$0xff]  ;;  %v4950_v21 = vpack.c.bf16 %v295_v15, %v287_v14  ;;  %v294_v23 = vld [vmem:[#allocation7 + $0x640] sm:$0xff]  ;;  %v288_v24 = vld [vmem:[#allocation7 + $0x610] sm:$0xff]  ;;  %v5462_v25 = vpack.c.bf16 %v297_v18, %v289_v17 }
  0x67   :  { %5447 = vmatprep.subr.bf16.mxu1 %v5446_v40  ;;  %2248 = vmatprep.mubr.f32.mxu0 %v63_v16  ;;  %v296_v26 = vld [vmem:[#allocation7 + $0x650] sm:$0xff]  ;;  %v303_v27 = vld [vmem:[#allocation7 + $0x688] sm:$0xff]  ;;  %v305_v29 = vld [vmem:[#allocation7 + $0x698] sm:$0xff]  ;;  %v4952_v31 = vpack.c.bf16 %v294_v23, %v286_v22 }
  0x68   :  { %2864 = vmatprep.mubr.f32.mxu1 %v63_v16  ;;  %v311_v28 = vld [vmem:[#allocation7 + $0x6c8] sm:$0xff]  ;;  %v313_v30 = vld [vmem:[#allocation7 + $0x6d8] sm:$0xff]  ;;  %v5464_v32 = vpack.c.bf16 %v296_v26, %v288_v24  ;;  %v302_v34 = vld [vmem:[#allocation7 + $0x680] sm:$0xff] }
  0x69   :  { %4937 = vmatpush1.bf16.msra.mxu0 %v4936_v46  ;;  %v4954_v33 = vpack.c.bf16 %v311_v28, %v303_v27  ;;  %v310_v35 = vld [vmem:[#allocation7 + $0x6c0] sm:$0xff]  ;;  %v304_v36 = vld [vmem:[#allocation7 + $0x690] sm:$0xff]  ;;  %v5466_v37 = vpack.c.bf16 %v313_v30, %v305_v29  ;;  %v319_v39 = vld [vmem:[#allocation7 + $0x708] sm:$0xff] }
  0x6a   :  { %5449 = vmatpush1.bf16.msra.mxu1 %v5448_v47  ;;  %4939 = vmatprep.subr.bf16.mxu0 %v4938_v48  ;;  %v312_v38 = vld [vmem:[#allocation7 + $0x6d0] sm:$0xff]  ;;  %v327_v40 = vld [vmem:[#allocation7 + $0x748] sm:$0xff]  ;;  %v321_v41 = vld [vmem:[#allocation7 + $0x718] sm:$0xff]  ;;  %v4956_v43 = vpack.c.bf16 %v310_v35, %v302_v34 }
  0x6b   :  { %5451 = vmatprep.subr.bf16.mxu1 %v5450_v52  ;;  %v329_v42 = vld [vmem:[#allocation7 + $0x758] sm:$0xff]  ;;  %v5468_v44 = vpack.c.bf16 %v312_v38, %v304_v36  ;;  %v4958_v45 = vpack.c.bf16 %v327_v40, %v319_v39  ;;  %v318_v46 = vld [vmem:[#allocation7 + $0x700] sm:$0xff]  ;;  %v320_v48 = vld [vmem:[#allocation7 + $0x710] sm:$0xff] }
  0x6c   :  { %v326_v47 = vld [vmem:[#allocation7 + $0x740] sm:$0xff]  ;;  %v5470_v49 = vpack.c.bf16 %v329_v42, %v321_v41  ;;  %v328_v50 = vld [vmem:[#allocation7 + $0x750] sm:$0xff]  ;;  %v335_v51 = vld [vmem:[#allocation7 + $0x788] sm:$0xff] }
  0x6d   :  { %4941 = vmatpush1.bf16.msra.mxu0 %v4940_v58  ;;  %v343_v52 = vld [vmem:[#allocation7 + $0x7c8] sm:$0xff]  ;;  %v337_v53 = vld [vmem:[#allocation7 + $0x798] sm:$0xff]  ;;  %v4960_v55 = vpack.c.bf16 %v326_v47, %v318_v46  ;;  %v5472_v56 = vpack.c.bf16 %v328_v50, %v320_v48  ;;  %v334_v58 = vld [vmem:[#allocation7 + $0x780] sm:$0xff] }
  0x6e   :  { %5453 = vmatpush1.bf16.msra.mxu1 %v5452_v59  ;;  %4943 = vmatprep.subr.bf16.mxu0 %v4942_v60  ;;  %v345_v54 = vld [vmem:[#allocation7 + $0x7d8] sm:$0xff]  ;;  %v4962_v57 = vpack.c.bf16 %v343_v52, %v335_v51  ;;  %v342_v59 = vld [vmem:[#allocation7 + $0x7c0] sm:$0xff]  ;;  %v336_v60 = vld [vmem:[#allocation7 + $0x790] sm:$0xff] }
  0x6f   :  { %5455 = vmatprep.subr.bf16.mxu1 %v5454_v0  ;;  %v5474_v61 = vpack.c.bf16 %v345_v54, %v337_v53  ;;  %v344_v62 = vld [vmem:[#allocation7 + $0x7d0] sm:$0xff]  ;;  %v351_v63 = vld [vmem:[#allocation7 + $0x808] sm:$0xff]  ;;  %v353_v1 = vld [vmem:[#allocation7 + $0x818] sm:$0xff]  ;;  %v4964_v3 = vpack.c.bf16 %v342_v59, %v334_v58 }
  0x70   :  { %v359_v0 = vld [vmem:[#allocation7 + $0x848] sm:$0xff]  ;;  %v361_v2 = vld [vmem:[#allocation7 + $0x858] sm:$0xff]  ;;  %v5476_v4 = vpack.c.bf16 %v344_v62, %v336_v60  ;;  %v358_v7 = vld [vmem:[#allocation7 + $0x840] sm:$0xff] }
  0x71   :  { %4945 = vmatpush1.bf16.msra.mxu0 %v4944_v6  ;;  %v4966_v5 = vpack.c.bf16 %v359_v0, %v351_v63  ;;  %v350_v6 = vld [vmem:[#allocation7 + $0x800] sm:$0xff]  ;;  %v360_v10 = vld [vmem:[#allocation7 + $0x850] sm:$0xff]  ;;  %v367_v11 = vld [vmem:[#allocation7 + $0x888] sm:$0xff] }
  0x72   :  { %5457 = vmatpush1.bf16.msra.mxu1 %v5456_v8  ;;  %4947 = vmatprep.subr.bf16.mxu0 %v4946_v9  ;;  %v352_v8 = vld [vmem:[#allocation7 + $0x810] sm:$0xff]  ;;  %v5478_v9 = vpack.c.bf16 %v361_v2, %v353_v1  ;;  %v375_v12 = vld [vmem:[#allocation7 + $0x8c8] sm:$0xff]  ;;  %v377_v14 = vld [vmem:[#allocation7 + $0x8d8] sm:$0xff]  ;;  %v4968_v16 = vpack.c.bf16 %v358_v7, %v350_v6 }
  0x73   :  { %5459 = vmatprep.subr.bf16.mxu1 %v5458_v13  ;;  %v369_v13 = vld [vmem:[#allocation7 + $0x898] sm:$0xff]  ;;  %v62_v15 = vld [vmem:[#allocation4] sm:$0xff]  ;;  %v5480_v17 = vpack.c.bf16 %v360_v10, %v352_v8  ;;  %v4970_v18 = vpack.c.bf16 %v375_v12, %v367_v11  ;;  %v376_v23 = vld [vmem:[#allocation7 + $0x8d0] sm:$0xff] }
  0x74   :  { %v5482_v22 = vpack.c.bf16 %v377_v14, %v369_v13  ;;  %v383_v24 = vld [vmem:[#allocation7 + $0x908] sm:$0xff]  ;;  %v385_v26 = vld [vmem:[#allocation7 + $0x918] sm:$0xff]  ;;  %v392_v35 = vld [vmem:[#allocation7 + $0x950] sm:$0xff] }
  0x75   :  { %4949 = vmatpush1.bf16.msra.mxu0 %v4948_v19  ;;  %v366_v19 = vld [vmem:[#allocation7 + $0x880] sm:$0xff]  ;;  %v393_v27 = vld [vmem:[#allocation7 + $0x958] sm:$0xff]  ;;  %v399_v36 = vld [vmem:[#allocation7 + $0x988] sm:$0xff] }
  0x76   :  { %5461 = vmatpush1.bf16.msra.mxu1 %v5460_v20  ;;  %4951 = vmatprep.subr.bf16.mxu0 %v4950_v21  ;;  %v374_v20 = vld [vmem:[#allocation7 + $0x8c0] sm:$0xff]  ;;  %v368_v21 = vld [vmem:[#allocation7 + $0x890] sm:$0xff]  ;;  %v5486_v34 = vpack.c.bf16 %v393_v27, %v385_v26  ;;  %v401_v38 = vld [vmem:[#allocation7 + $0x998] sm:$0xff] }
  0x77   :  { %5463 = vmatprep.subr.bf16.mxu1 %v5462_v25  ;;  %v391_v25 = vld [vmem:[#allocation7 + $0x948] sm:$0xff]  ;;  %v4972_v28 = vpack.c.bf16 %v374_v20, %v366_v19  ;;  %v5484_v29 = vpack.c.bf16 %v376_v23, %v368_v21  ;;  %v409_v39 = vld [vmem:[#allocation7 + $0x9d8] sm:$0xff]  ;;  %v408_v47 = vld [vmem:[#allocation7 + $0x9d0] sm:$0xff] }
  0x78   :  { %v4974_v30 = vpack.c.bf16 %v391_v25, %v383_v24  ;;  %v5490_v46 = vpack.c.bf16 %v409_v39, %v401_v38  ;;  %v415_v48 = vld [vmem:[#allocation7 + $0xa08] sm:$0xff]  ;;  %v417_v50 = vld [vmem:[#allocation7 + $0xa18] sm:$0xff]  ;;  %v424_v59 = vld [vmem:[#allocation7 + $0xa50] sm:$0xff] }
  0x79   :  { %4953 = vmatpush1.bf16.msra.mxu0 %v4952_v31  ;;  %v382_v31 = vld [vmem:[#allocation7 + $0x900] sm:$0xff]  ;;  %v425_v51 = vld [vmem:[#allocation7 + $0xa58] sm:$0xff]  ;;  %v431_v60 = vld [vmem:[#allocation7 + $0xa88] sm:$0xff] }
  0x7a   :  { %5465 = vmatpush1.bf16.msra.mxu1 %v5464_v32  ;;  %4955 = vmatprep.subr.bf16.mxu0 %v4954_v33  ;;  %v390_v32 = vld [vmem:[#allocation7 + $0x940] sm:$0xff]  ;;  %v384_v33 = vld [vmem:[#allocation7 + $0x910] sm:$0xff]  ;;  %v5494_v58 = vpack.c.bf16 %v425_v51, %v417_v50  ;;  %v433_v62 = vld [vmem:[#allocation7 + $0xa98] sm:$0xff] }
  0x7b   :  { %5467 = vmatprep.subr.bf16.mxu1 %v5466_v37  ;;  %v407_v37 = vld [vmem:[#allocation7 + $0x9c8] sm:$0xff]  ;;  %v4976_v40 = vpack.c.bf16 %v390_v32, %v382_v31  ;;  %v5488_v41 = vpack.c.bf16 %v392_v35, %v384_v33  ;;  %v441_v63 = vld [vmem:[#allocation7 + $0xad8] sm:$0xff]  ;;  %v440_v7 = vld [vmem:[#allocation7 + $0xad0] sm:$0xff] }
  0x7c   :  { %v4978_v42 = vpack.c.bf16 %v407_v37, %v399_v36  ;;  %v5498_v6 = vpack.c.bf16 %v441_v63, %v433_v62  ;;  %v447_v8 = vld [vmem:[#allocation7 + $0xb08] sm:$0xff]  ;;  %v449_v10 = vld [vmem:[#allocation7 + $0xb18] sm:$0xff]  ;;  %v446_v14 = vld [vmem:[#allocation7 + $0xb00] sm:$0xff] }
  0x7d   :  { %4957 = vmatpush1.bf16.msra.mxu0 %v4956_v43  ;;  %v398_v43 = vld [vmem:[#allocation7 + $0x980] sm:$0xff]  ;;  %v457_v11 = vld [vmem:[#allocation7 + $0xb58] sm:$0xff]  ;;  %v79_v12 = vld [vmem:[#allocation4 + $0x88] sm:$0xff] }
  0x7e   :  { %5469 = vmatpush1.bf16.msra.mxu1 %v5468_v44  ;;  %4959 = vmatprep.subr.bf16.mxu0 %v4958_v45  ;;  %v406_v44 = vld [vmem:[#allocation7 + $0x9c0] sm:$0xff]  ;;  %v400_v45 = vld [vmem:[#allocation7 + $0x990] sm:$0xff]  ;;  %v5502_v21 = vpack.c.bf16 %v457_v11, %v449_v10  ;;  %v471_v23 = vld [vmem:[#allocation7 + $0xbc8] sm:$0xff] }
  0x7f   :  { %5471 = vmatprep.subr.bf16.mxu1 %v5470_v49  ;;  %v423_v49 = vld [vmem:[#allocation7 + $0xa48] sm:$0xff]  ;;  %v4980_v52 = vpack.c.bf16 %v406_v44, %v398_v43  ;;  %v5492_v53 = vpack.c.bf16 %v408_v47, %v400_v45  ;;  %v456_v19 = vld [vmem:[#allocation7 + $0xb50] sm:$0xff]  ;;  %v78_v20 = vld [vmem:[#allocation4 + $0x80] sm:$0xff] }
  0x80   :  { %v4982_v54 = vpack.c.bf16 %v423_v49, %v415_v48  ;;  %v65_v24 = vld [vmem:[#allocation4 + $0x18] sm:$0xff]  ;;  %v470_v31 = vld [vmem:[#allocation7 + $0xbc0] sm:$0xff]  ;;  %v464_v32 = vld [vmem:[#allocation7 + $0xb90] sm:$0xff] }
  0x81   :  { %4961 = vmatpush1.bf16.msra.mxu0 %v4960_v55  ;;  %v414_v55 = vld [vmem:[#allocation7 + $0xa00] sm:$0xff]  ;;  %v465_v25 = vld [vmem:[#allocation7 + $0xb98] sm:$0xff]  ;;  %v479_v35 = vld [vmem:[#allocation7 + $0xc08] sm:$0xff] }
  0x82   :  { %5473 = vmatpush1.bf16.msra.mxu1 %v5472_v56  ;;  %4963 = vmatprep.subr.bf16.mxu0 %v4962_v57  ;;  %v422_v56 = vld [vmem:[#allocation7 + $0xa40] sm:$0xff]  ;;  %v416_v57 = vld [vmem:[#allocation7 + $0xa10] sm:$0xff]  ;;  %v473_v26 = vld [vmem:[#allocation7 + $0xbd8] sm:$0xff] }
  0x83   :  { %5475 = vmatprep.subr.bf16.mxu1 %v5474_v61  ;;  %v439_v61 = vld [vmem:[#allocation7 + $0xac8] sm:$0xff]  ;;  %v4984_v0 = vpack.c.bf16 %v422_v56, %v414_v55  ;;  %v5496_v1 = vpack.c.bf16 %v424_v59, %v416_v57  ;;  %v5506_v33 = vpack.c.bf16 %v473_v26, %v465_v25  ;;  %v481_v37 = vld [vmem:[#allocation7 + $0xc18] sm:$0xff]  ;;  %v486_v43 = vld [vmem:[#allocation7 + $0xc40] sm:$0xff] }
  0x84   :  { %v4986_v2 = vpack.c.bf16 %v439_v61, %v431_v60  ;;  %v487_v36 = vld [vmem:[#allocation7 + $0xc48] sm:$0xff]  ;;  %v489_v38 = vld [vmem:[#allocation7 + $0xc58] sm:$0xff]  ;;  %v480_v44 = vld [vmem:[#allocation7 + $0xc10] sm:$0xff] }
  0x85   :  { %4965 = vmatpush1.bf16.msra.mxu0 %v4964_v3  ;;  %v430_v3 = vld [vmem:[#allocation7 + $0xa80] sm:$0xff]  ;;  %v5510_v45 = vpack.c.bf16 %v489_v38, %v481_v37  ;;  %v495_v47 = vld [vmem:[#allocation7 + $0xc88] sm:$0xff]  ;;  %v497_v49 = vld [vmem:[#allocation7 + $0xc98] sm:$0xff] }
  0x86   :  { %5477 = vmatpush1.bf16.msra.mxu1 %v5476_v4  ;;  %4967 = vmatprep.subr.bf16.mxu0 %v4966_v5  ;;  %v438_v4 = vld [vmem:[#allocation7 + $0xac0] sm:$0xff]  ;;  %v432_v5 = vld [vmem:[#allocation7 + $0xa90] sm:$0xff]  ;;  %v503_v48 = vld [vmem:[#allocation7 + $0xcc8] sm:$0xff] }
  0x87   :  { %5479 = vmatprep.subr.bf16.mxu1 %v5478_v9  ;;  %v455_v9 = vld [vmem:[#allocation7 + $0xb48] sm:$0xff]  ;;  %v4988_v13 = vpack.c.bf16 %v438_v4, %v430_v3  ;;  %v505_v50 = vld [vmem:[#allocation7 + $0xcd8] sm:$0xff]  ;;  %v502_v55 = vld [vmem:[#allocation7 + $0xcc0] sm:$0xff] }
  0x88   :  { %2249 = vmatmul.mubr.f32.vlgmr.msra.gmra.mrb[0].mxu0 %v62_v15  ;;  %v496_v56 = vld [vmem:[#allocation7 + $0xc90] sm:$0xff]  ;;  %v5514_v57 = vpack.c.bf16 %v505_v50, %v497_v49  ;;  %v511_v59 = vld [vmem:[#allocation7 + $0xd08] sm:$0xff]  ;;  %v513_v61 = vld [vmem:[#allocation7 + $0xd18] sm:$0xff] }
  0x89   :  { %4969 = vmatpush1.bf16.msra.mxu0 %v4968_v16  ;;  %2865 = vmatmul.mubr.f32.vlgmr.msra.gmra.mrb[0].mxu1 %v62_v15  ;;  %v454_v15 = vld [vmem:[#allocation7 + $0xb40] sm:$0xff]  ;;  %v5500_v16 = vpack.c.bf16 %v440_v7, %v432_v5  ;;  %v519_v60 = vld [vmem:[#allocation7 + $0xd48] sm:$0xff]  ;;  %v521_v62 = vld [vmem:[#allocation7 + $0xd58] sm:$0xff] }
  0x8a   :  { %5481 = vmatpush1.bf16.msra.mxu1 %v5480_v17  ;;  %4971 = vmatprep.subr.bf16.mxu0 %v4970_v18  ;;  %v4990_v17 = vpack.c.bf16 %v455_v9, %v447_v8  ;;  %v448_v18 = vld [vmem:[#allocation7 + $0xb10] sm:$0xff]  ;;  %v4992_v27 = vpack.c.bf16 %v454_v15, %v446_v14  ;;  %v518_v3 = vld [vmem:[#allocation7 + $0xd40] sm:$0xff]  ;;  %v5518_v5 = vpack.c.bf16 %v521_v62, %v513_v61  ;;  %v527_v7 = vld [vmem:[#allocation7 + $0xd88] sm:$0xff] }
  0x8b   :  { %5483 = vmatprep.subr.bf16.mxu1 %v5482_v22  ;;  %2254 = vmatprep.mubr.f32.mxu0 %v79_v12  ;;  %v463_v22 = vld [vmem:[#allocation7 + $0xb88] sm:$0xff]  ;;  %v512_v4 = vld [vmem:[#allocation7 + $0xd10] sm:$0xff]  ;;  %v529_v9 = vld [vmem:[#allocation7 + $0xd98] sm:$0xff] }
  0x8c   :  { %2870 = vmatprep.mubr.f32.mxu1 %v79_v12  ;;  %2255 = vmatmul.mubr.f32.gmra.mrb[2].mxu0 %v78_v20  ;;  %v535_v8 = vld [vmem:[#allocation7 + $0xdc8] sm:$0xff]  ;;  %v537_v10 = vld [vmem:[#allocation7 + $0xdd8] sm:$0xff]  ;;  %v526_v14 = vld [vmem:[#allocation7 + $0xd80] sm:$0xff] }
  0x8d   :  { %4973 = vmatpush1.bf16.msra.mxu0 %v4972_v28  ;;  %2871 = vmatmul.mubr.f32.gmra.mrb[2].mxu1 %v78_v20  ;;  %v5504_v28 = vpack.c.bf16 %v456_v19, %v448_v18  ;;  %v534_v15 = vld [vmem:[#allocation7 + $0xdc0] sm:$0xff]  ;;  %v536_v18 = vld [vmem:[#allocation7 + $0xdd0] sm:$0xff]  ;;  %v543_v19 = vld [vmem:[#allocation7 + $0xe08] sm:$0xff] }
  0x8e   :  { %5485 = vmatpush1.bf16.msra.mxu1 %v5484_v29  ;;  %4975 = vmatprep.subr.bf16.mxu0 %v4974_v30  ;;  %v4994_v29 = vpack.c.bf16 %v471_v23, %v463_v22  ;;  %v462_v30 = vld [vmem:[#allocation7 + $0xb80] sm:$0xff]  ;;  %v551_v20 = vld [vmem:[#allocation7 + $0xe48] sm:$0xff]  ;;  %v553_v22 = vld [vmem:[#allocation7 + $0xe58] sm:$0xff]  ;;  %v5012_v23 = vpack.c.bf16 %v534_v15, %v526_v14 }
  0x8f   :  { %5487 = vmatprep.subr.bf16.mxu1 %v5486_v34  ;;  %2325 = vmatprep.mubr.f32.mxu0 %v65_v24  ;;  %v472_v34 = vld [vmem:[#allocation7 + $0xbd0] sm:$0xff]  ;;  %v4996_v39 = vpack.c.bf16 %v470_v31, %v462_v30  ;;  %v5014_v25 = vpack.c.bf16 %v551_v20, %v543_v19  ;;  %v542_v26 = vld [vmem:[#allocation7 + $0xe00] sm:$0xff]  ;;  %v559_v31 = vld [vmem:[#allocation7 + $0xe88] sm:$0xff] }
  0x90   :  { %2941 = vmatprep.mubr.f32.mxu1 %v65_v24  ;;  %v552_v30 = vld [vmem:[#allocation7 + $0xe50] sm:$0xff]  ;;  %v558_v38 = vld [vmem:[#allocation7 + $0xe80] sm:$0xff]  ;;  %v623_v15 = vld [vmem:[#allocation7 + $0x1088] sm:$0xff] }
  0x91   :  { %4977 = vmatpush1.bf16.msra.mxu0 %v4976_v40  ;;  %v5508_v40 = vpack.c.bf16 %v472_v34, %v464_v32  ;;  %v567_v32 = vld [vmem:[#allocation7 + $0xec8] sm:$0xff]  ;;  %v569_v34 = vld [vmem:[#allocation7 + $0xed8] sm:$0xff]  ;;  %v574_v50 = vld [vmem:[#allocation7 + $0xf00] sm:$0xff] }
  0x92   :  { %5489 = vmatpush1.bf16.msra.mxu1 %v5488_v41  ;;  %4979 = vmatprep.subr.bf16.mxu0 %v4978_v42  ;;  %v4998_v41 = vpack.c.bf16 %v487_v36, %v479_v35  ;;  %v478_v42 = vld [vmem:[#allocation7 + $0xc00] sm:$0xff]  ;;  %v5018_v37 = vpack.c.bf16 %v567_v32, %v559_v31  ;;  %v616_v14 = vld [vmem:[#allocation7 + $0x1050] sm:$0xff]  ;;  %v649_v31 = vld [vmem:[#allocation7 + $0x1158] sm:$0xff] }
  0x93   :  { %5491 = vmatprep.subr.bf16.mxu1 %v5490_v46  ;;  %v488_v46 = vld [vmem:[#allocation7 + $0xc50] sm:$0xff]  ;;  %v5000_v51 = vpack.c.bf16 %v486_v43, %v478_v42  ;;  %v575_v43 = vld [vmem:[#allocation7 + $0xf08] sm:$0xff]  ;;  %v590_v62 = vld [vmem:[#allocation7 + $0xf80] sm:$0xff] }
  0x94   :  { %v568_v42 = vld [vmem:[#allocation7 + $0xed0] sm:$0xff]  ;;  %v81_v32 = vld [vmem:[#allocation4 + $0x98] sm:$0xff] }
  0x95   :  { %4981 = vmatpush1.bf16.msra.mxu0 %v4980_v52  ;;  %v5512_v52 = vpack.c.bf16 %v488_v46, %v480_v44  ;;  %v583_v44 = vld [vmem:[#allocation7 + $0xf48] sm:$0xff]  ;;  %v585_v46 = vld [vmem:[#allocation7 + $0xf58] sm:$0xff]  ;;  %v64_v19 = vld [vmem:[#allocation4 + $0x10] sm:$0xff] }
  0x96   :  { %5493 = vmatpush1.bf16.msra.mxu1 %v5492_v53  ;;  %4983 = vmatprep.subr.bf16.mxu0 %v4982_v54  ;;  %v5002_v53 = vpack.c.bf16 %v503_v48, %v495_v47  ;;  %v494_v54 = vld [vmem:[#allocation7 + $0xc80] sm:$0xff]  ;;  %v5022_v49 = vpack.c.bf16 %v583_v44, %v575_v43  ;;  %v663_v43 = vld [vmem:[#allocation7 + $0x11c8] sm:$0xff]  ;;  %v657_v44 = vld [vmem:[#allocation7 + $0x1198] sm:$0xff] }
  0x97   :  { %5495 = vmatprep.subr.bf16.mxu1 %v5494_v58  ;;  %v504_v58 = vld [vmem:[#allocation7 + $0xcd0] sm:$0xff]  ;;  %v5004_v63 = vpack.c.bf16 %v502_v55, %v494_v54  ;;  %v591_v55 = vld [vmem:[#allocation7 + $0xf88] sm:$0xff] }
  0x98   :  { %v584_v54 = vld [vmem:[#allocation7 + $0xf50] sm:$0xff] }
  0x99   :  { %4985 = vmatpush1.bf16.msra.mxu0 %v4984_v0  ;;  %v5516_v0 = vpack.c.bf16 %v504_v58, %v496_v56  ;;  %v599_v56 = vld [vmem:[#allocation7 + $0xfc8] sm:$0xff]  ;;  %v601_v58 = vld [vmem:[#allocation7 + $0xfd8] sm:$0xff] }
  0x9a   :  { %5497 = vmatpush1.bf16.msra.mxu1 %v5496_v1  ;;  %4987 = vmatprep.subr.bf16.mxu0 %v4986_v2  ;;  %v5006_v1 = vpack.c.bf16 %v519_v60, %v511_v59  ;;  %v510_v2 = vld [vmem:[#allocation7 + $0xd00] sm:$0xff]  ;;  %v5026_v61 = vpack.c.bf16 %v599_v56, %v591_v55  ;;  %v671_v55 = vld [vmem:[#allocation7 + $0x1208] sm:$0xff] }
  0x9b   :  { %5499 = vmatprep.subr.bf16.mxu1 %v5498_v6  ;;  %v520_v6 = vld [vmem:[#allocation7 + $0xd50] sm:$0xff]  ;;  %v5008_v11 = vpack.c.bf16 %v518_v3, %v510_v2  ;;  %v607_v3 = vld [vmem:[#allocation7 + $0x1008] sm:$0xff] }
  0x9c   :  { %v5520_v12 = vpack.c.bf16 %v520_v6, %v512_v4  ;;  %v600_v2 = vld [vmem:[#allocation7 + $0xfd0] sm:$0xff]  ;;  %v615_v4 = vld [vmem:[#allocation7 + $0x1048] sm:$0xff]  ;;  %v617_v6 = vld [vmem:[#allocation7 + $0x1058] sm:$0xff] }
  0x9d   :  { %4989 = vmatpush1.bf16.msra.mxu0 %v4988_v13  ;;  %v5010_v13 = vpack.c.bf16 %v535_v8, %v527_v7  ;;  %v679_v56 = vld [vmem:[#allocation7 + $0x1248] sm:$0xff] }
  0x9e   :  { %5501 = vmatpush1.bf16.msra.mxu1 %v5500_v16  ;;  %4991 = vmatprep.subr.bf16.mxu0 %v4990_v17  ;;  %v528_v16 = vld [vmem:[#allocation7 + $0xd90] sm:$0xff]  ;;  %v5522_v17 = vpack.c.bf16 %v537_v10, %v529_v9  ;;  %v5030_v9 = vpack.c.bf16 %v615_v4, %v607_v3  ;;  %v606_v10 = vld [vmem:[#allocation7 + $0x1000] sm:$0xff]  ;;  %v687_v3 = vld [vmem:[#allocation7 + $0x1288] sm:$0xff] }
  0x9f   :  { %5503 = vmatprep.subr.bf16.mxu1 %v5502_v21  ;;  %v545_v21 = vld [vmem:[#allocation7 + $0xe18] sm:$0xff]  ;;  %v5524_v24 = vpack.c.bf16 %v536_v18, %v528_v16  ;;  %v631_v16 = vld [vmem:[#allocation7 + $0x10c8] sm:$0xff] }
  0xa0   :  { %v633_v18 = vld [vmem:[#allocation7 + $0x10d8] sm:$0xff]  ;;  %v695_v4 = vld [vmem:[#allocation7 + $0x12c8] sm:$0xff] }
  0xa1   :  { %4993 = vmatpush1.bf16.msra.mxu0 %v4992_v27  ;;  %v550_v27 = vld [vmem:[#allocation7 + $0xe40] sm:$0xff] }
  0xa2   :  { %5505 = vmatpush1.bf16.msra.mxu1 %v5504_v28  ;;  %4995 = vmatprep.subr.bf16.mxu0 %v4994_v29  ;;  %v544_v28 = vld [vmem:[#allocation7 + $0xe10] sm:$0xff]  ;;  %v5526_v29 = vpack.c.bf16 %v553_v22, %v545_v21  ;;  %v5016_v35 = vpack.c.bf16 %v550_v27, %v542_v26  ;;  %v5034_v22 = vpack.c.bf16 %v631_v16, %v623_v15  ;;  %v703_v15 = vld [vmem:[#allocation7 + $0x1308] sm:$0xff] }
  0xa3   :  { %5507 = vmatprep.subr.bf16.mxu1 %v5506_v33  ;;  %v561_v33 = vld [vmem:[#allocation7 + $0xe98] sm:$0xff]  ;;  %v5528_v36 = vpack.c.bf16 %v552_v30, %v544_v28  ;;  %v632_v27 = vld [vmem:[#allocation7 + $0x10d0] sm:$0xff]  ;;  %v639_v28 = vld [vmem:[#allocation7 + $0x1108] sm:$0xff] }
  0xa4   :  { %v641_v30 = vld [vmem:[#allocation7 + $0x1118] sm:$0xff]  ;;  %v711_v16 = vld [vmem:[#allocation7 + $0x1348] sm:$0xff] }
  0xa5   :  { %4997 = vmatpush1.bf16.msra.mxu0 %v4996_v39  ;;  %v566_v39 = vld [vmem:[#allocation7 + $0xec0] sm:$0xff] }
  0xa6   :  { %5509 = vmatpush1.bf16.msra.mxu1 %v5508_v40  ;;  %4999 = vmatprep.subr.bf16.mxu0 %v4998_v41  ;;  %v560_v40 = vld [vmem:[#allocation7 + $0xe90] sm:$0xff]  ;;  %v5530_v41 = vpack.c.bf16 %v569_v34, %v561_v33  ;;  %v5020_v47 = vpack.c.bf16 %v566_v39, %v558_v38  ;;  %v646_v38 = vld [vmem:[#allocation7 + $0x1140] sm:$0xff] }
  0xa7   :  { %5511 = vmatprep.subr.bf16.mxu1 %v5510_v45  ;;  %v577_v45 = vld [vmem:[#allocation7 + $0xf18] sm:$0xff]  ;;  %v5532_v48 = vpack.c.bf16 %v568_v42, %v560_v40  ;;  %v80_v34 = vld [vmem:[#allocation4 + $0x90] sm:$0xff]  ;;  %v5550_v40 = vpack.c.bf16 %v649_v31, %v641_v30  ;;  %v655_v42 = vld [vmem:[#allocation7 + $0x1188] sm:$0xff] }
  0xa8   :  { %v640_v39 = vld [vmem:[#allocation7 + $0x1110] sm:$0xff]  ;;  %v729_v30 = vld [vmem:[#allocation7 + $0x13d8] sm:$0xff] }
  0xa9   :  { %5001 = vmatpush1.bf16.msra.mxu0 %v5000_v51  ;;  %v582_v51 = vld [vmem:[#allocation7 + $0xf40] sm:$0xff] }
  0xaa   :  { %5513 = vmatpush1.bf16.msra.mxu1 %v5512_v52  ;;  %5003 = vmatprep.subr.bf16.mxu0 %v5002_v53  ;;  %v576_v52 = vld [vmem:[#allocation7 + $0xf10] sm:$0xff]  ;;  %v5534_v53 = vpack.c.bf16 %v585_v46, %v577_v45  ;;  %v5024_v59 = vpack.c.bf16 %v582_v51, %v574_v50  ;;  %v665_v45 = vld [vmem:[#allocation7 + $0x11d8] sm:$0xff]  ;;  %v67_v46 = vld [vmem:[#allocation4 + $0x28] sm:$0xff] }
  0xab   :  { %5515 = vmatprep.subr.bf16.mxu1 %v5514_v57  ;;  %v593_v57 = vld [vmem:[#allocation7 + $0xf98] sm:$0xff]  ;;  %v5536_v60 = vpack.c.bf16 %v584_v54, %v576_v52  ;;  %v654_v50 = vld [vmem:[#allocation7 + $0x1180] sm:$0xff]  ;;  %v656_v52 = vld [vmem:[#allocation7 + $0x1190] sm:$0xff] }
  0xac   :  { %v662_v51 = vld [vmem:[#allocation7 + $0x11c0] sm:$0xff]  ;;  %v664_v54 = vld [vmem:[#allocation7 + $0x11d0] sm:$0xff] }
  0xad   :  { %5005 = vmatpush1.bf16.msra.mxu0 %v5004_v63  ;;  %v598_v63 = vld [vmem:[#allocation7 + $0xfc0] sm:$0xff] }
  0xae   :  { %5517 = vmatpush1.bf16.msra.mxu1 %v5516_v0  ;;  %5007 = vmatprep.subr.bf16.mxu0 %v5006_v1  ;;  %v592_v0 = vld [vmem:[#allocation7 + $0xf90] sm:$0xff]  ;;  %v5538_v1 = vpack.c.bf16 %v601_v58, %v593_v57  ;;  %v5028_v7 = vpack.c.bf16 %v598_v63, %v590_v62  ;;  %v673_v57 = vld [vmem:[#allocation7 + $0x1218] sm:$0xff]  ;;  %v670_v62 = vld [vmem:[#allocation7 + $0x1200] sm:$0xff] }
  0xaf   :  { %5519 = vmatprep.subr.bf16.mxu1 %v5518_v5  ;;  %v609_v5 = vld [vmem:[#allocation7 + $0x1018] sm:$0xff]  ;;  %v5540_v8 = vpack.c.bf16 %v600_v2, %v592_v0  ;;  %v678_v63 = vld [vmem:[#allocation7 + $0x1240] sm:$0xff]  ;;  %v672_v0 = vld [vmem:[#allocation7 + $0x1210] sm:$0xff] }
  0xb0   :  { %v681_v58 = vld [vmem:[#allocation7 + $0x1258] sm:$0xff]  ;;  %v680_v2 = vld [vmem:[#allocation7 + $0x1250] sm:$0xff] }
  0xb1   :  { %5009 = vmatpush1.bf16.msra.mxu0 %v5008_v11  ;;  %v614_v11 = vld [vmem:[#allocation7 + $0x1040] sm:$0xff] }
  0xb2   :  { %5521 = vmatpush1.bf16.msra.mxu1 %v5520_v12  ;;  %5011 = vmatprep.subr.bf16.mxu0 %v5010_v13  ;;  %v608_v12 = vld [vmem:[#allocation7 + $0x1010] sm:$0xff]  ;;  %v5542_v13 = vpack.c.bf16 %v617_v6, %v609_v5  ;;  %v5032_v20 = vpack.c.bf16 %v614_v11, %v606_v10  ;;  %v689_v5 = vld [vmem:[#allocation7 + $0x1298] sm:$0xff]  ;;  %v686_v10 = vld [vmem:[#allocation7 + $0x1280] sm:$0xff] }
  0xb3   :  { %5523 = vmatprep.subr.bf16.mxu1 %v5522_v17  ;;  %v625_v17 = vld [vmem:[#allocation7 + $0x1098] sm:$0xff]  ;;  %v5544_v21 = vpack.c.bf16 %v616_v14, %v608_v12  ;;  %v694_v11 = vld [vmem:[#allocation7 + $0x12c0] sm:$0xff]  ;;  %v688_v12 = vld [vmem:[#allocation7 + $0x1290] sm:$0xff] }
  0xb4   :  { %v5546_v26 = vpack.c.bf16 %v633_v18, %v625_v17  ;;  %v697_v6 = vld [vmem:[#allocation7 + $0x12d8] sm:$0xff]  ;;  %v696_v14 = vld [vmem:[#allocation7 + $0x12d0] sm:$0xff] }
  0xb5   :  { %5013 = vmatpush1.bf16.msra.mxu0 %v5012_v23  ;;  %v622_v23 = vld [vmem:[#allocation7 + $0x1080] sm:$0xff]  ;;  %v705_v17 = vld [vmem:[#allocation7 + $0x1318] sm:$0xff] }
  0xb6   :  { %5525 = vmatpush1.bf16.msra.mxu1 %v5524_v24  ;;  %5015 = vmatprep.subr.bf16.mxu0 %v5014_v25  ;;  %v630_v24 = vld [vmem:[#allocation7 + $0x10c0] sm:$0xff]  ;;  %v624_v25 = vld [vmem:[#allocation7 + $0x1090] sm:$0xff]  ;;  %v713_v18 = vld [vmem:[#allocation7 + $0x1358] sm:$0xff] }
  0xb7   :  { %5527 = vmatprep.subr.bf16.mxu1 %v5526_v29  ;;  %v647_v29 = vld [vmem:[#allocation7 + $0x1148] sm:$0xff]  ;;  %v5036_v33 = vpack.c.bf16 %v630_v24, %v622_v23  ;;  %v710_v23 = vld [vmem:[#allocation7 + $0x1340] sm:$0xff]  ;;  %v704_v24 = vld [vmem:[#allocation7 + $0x1310] sm:$0xff] }
  0xb9   :  { %5017 = vmatpush1.bf16.msra.mxu0 %v5016_v35  ;;  %v5548_v35 = vpack.c.bf16 %v632_v27, %v624_v25  ;;  %v5566_v25 = vpack.c.bf16 %v713_v18, %v705_v17  ;;  %v719_v27 = vld [vmem:[#allocation7 + $0x1388] sm:$0xff]  ;;  %v782_v18 = vld [vmem:[#allocation7 + $0x1580] sm:$0xff] }
  0xba   :  { %5529 = vmatpush1.bf16.msra.mxu1 %v5528_v36  ;;  %5019 = vmatprep.subr.bf16.mxu0 %v5018_v37  ;;  %v5038_v36 = vpack.c.bf16 %v647_v29, %v639_v28  ;;  %v638_v37 = vld [vmem:[#allocation7 + $0x1100] sm:$0xff]  ;;  %v727_v28 = vld [vmem:[#allocation7 + $0x13c8] sm:$0xff]  ;;  %v721_v29 = vld [vmem:[#allocation7 + $0x1398] sm:$0xff] }
  0xbb   :  { %5531 = vmatprep.subr.bf16.mxu1 %v5530_v41  ;;  %v648_v41 = vld [vmem:[#allocation7 + $0x1150] sm:$0xff] }
  0xbd   :  { %5021 = vmatpush1.bf16.msra.mxu0 %v5020_v47  ;;  %v5040_v47 = vpack.c.bf16 %v646_v38, %v638_v37  ;;  %v5570_v37 = vpack.c.bf16 %v729_v30, %v721_v29  ;;  %v728_v38 = vld [vmem:[#allocation7 + $0x13d0] sm:$0xff]  ;;  %v798_v30 = vld [vmem:[#allocation7 + $0x1600] sm:$0xff] }
  0xbe   :  { %5533 = vmatpush1.bf16.msra.mxu1 %v5532_v48  ;;  %5023 = vmatprep.subr.bf16.mxu0 %v5022_v49  ;;  %v5552_v48 = vpack.c.bf16 %v648_v41, %v640_v39  ;;  %v5042_v49 = vpack.c.bf16 %v663_v43, %v655_v42  ;;  %v735_v39 = vld [vmem:[#allocation7 + $0x1408] sm:$0xff]  ;;  %v737_v41 = vld [vmem:[#allocation7 + $0x1418] sm:$0xff] }
  0xbf   :  { %5535 = vmatprep.subr.bf16.mxu1 %v5534_v53  ;;  %v5554_v53 = vpack.c.bf16 %v665_v45, %v657_v44  ;;  %v745_v42 = vld [vmem:[#allocation7 + $0x1458] sm:$0xff] }
  0xc1   :  { %5025 = vmatpush1.bf16.msra.mxu0 %v5024_v59  ;;  %v5044_v59 = vpack.c.bf16 %v662_v51, %v654_v50  ;;  %v744_v50 = vld [vmem:[#allocation7 + $0x1450] sm:$0xff]  ;;  %v751_v51 = vld [vmem:[#allocation7 + $0x1488] sm:$0xff] }
  0xc2   :  { %5537 = vmatpush1.bf16.msra.mxu1 %v5536_v60  ;;  %5027 = vmatprep.subr.bf16.mxu0 %v5026_v61  ;;  %v5556_v60 = vpack.c.bf16 %v664_v54, %v656_v52  ;;  %v5046_v61 = vpack.c.bf16 %v679_v56, %v671_v55  ;;  %v759_v52 = vld [vmem:[#allocation7 + $0x14c8] sm:$0xff]  ;;  %v761_v54 = vld [vmem:[#allocation7 + $0x14d8] sm:$0xff] }
  0xc3   :  { %5539 = vmatprep.subr.bf16.mxu1 %v5538_v1  ;;  %v5558_v1 = vpack.c.bf16 %v681_v58, %v673_v57  ;;  %v5066_v57 = vpack.c.bf16 %v759_v52, %v751_v51  ;;  %v750_v58 = vld [vmem:[#allocation7 + $0x1480] sm:$0xff] }
  0xc5   :  { %5029 = vmatpush1.bf16.msra.mxu0 %v5028_v7  ;;  %v5048_v7 = vpack.c.bf16 %v678_v63, %v670_v62  ;;  %v760_v62 = vld [vmem:[#allocation7 + $0x14d0] sm:$0xff]  ;;  %v767_v63 = vld [vmem:[#allocation7 + $0x1508] sm:$0xff] }
  0xc6   :  { %5541 = vmatpush1.bf16.msra.mxu1 %v5540_v8  ;;  %5031 = vmatprep.subr.bf16.mxu0 %v5030_v9  ;;  %v5560_v8 = vpack.c.bf16 %v680_v2, %v672_v0  ;;  %v5050_v9 = vpack.c.bf16 %v695_v4, %v687_v3  ;;  %v775_v0 = vld [vmem:[#allocation7 + $0x1548] sm:$0xff]  ;;  %v777_v2 = vld [vmem:[#allocation7 + $0x1558] sm:$0xff] }
  0xc7   :  { %5543 = vmatprep.subr.bf16.mxu1 %v5542_v13  ;;  %v5562_v13 = vpack.c.bf16 %v697_v6, %v689_v5  ;;  %v5070_v5 = vpack.c.bf16 %v775_v0, %v767_v63  ;;  %v766_v6 = vld [vmem:[#allocation7 + $0x1500] sm:$0xff] }
  0xc8   :  { %2326 = vmatmul.mubr.f32.vlgmr.msra.gmra.mrb[0].mxu0 %v64_v19 }
  0xc9   :  { %5033 = vmatpush1.bf16.msra.mxu0 %v5032_v20  ;;  %2942 = vmatmul.mubr.f32.vlgmr.msra.gmra.mrb[0].mxu1 %v64_v19  ;;  %v5052_v19 = vpack.c.bf16 %v694_v11, %v686_v10  ;;  %v5564_v20 = vpack.c.bf16 %v696_v14, %v688_v12  ;;  %v776_v10 = vld [vmem:[#allocation7 + $0x1550] sm:$0xff]  ;;  %v783_v11 = vld [vmem:[#allocation7 + $0x1588] sm:$0xff]  ;;  %v793_v14 = vld [vmem:[#allocation7 + $0x15d8] sm:$0xff] }
  0xca   :  { %5545 = vmatpush1.bf16.msra.mxu1 %v5544_v21  ;;  %5035 = vmatprep.subr.bf16.mxu0 %v5034_v22  ;;  %v5054_v21 = vpack.c.bf16 %v711_v16, %v703_v15  ;;  %v702_v22 = vld [vmem:[#allocation7 + $0x1300] sm:$0xff]  ;;  %v791_v12 = vld [vmem:[#allocation7 + $0x15c8] sm:$0xff] }
  0xcb   :  { %5547 = vmatprep.subr.bf16.mxu1 %v5546_v26  ;;  %2331 = vmatprep.mubr.f32.mxu0 %v81_v32  ;;  %v712_v26 = vld [vmem:[#allocation7 + $0x1350] sm:$0xff]  ;;  %v5056_v31 = vpack.c.bf16 %v710_v23, %v702_v22  ;;  %v5074_v17 = vpack.c.bf16 %v791_v12, %v783_v11  ;;  %v799_v23 = vld [vmem:[#allocation7 + $0x1608] sm:$0xff] }
  0xcc   :  { %2947 = vmatprep.mubr.f32.mxu1 %v81_v32  ;;  %2332 = vmatmul.mubr.f32.gmra.mrb[2].mxu0 %v80_v34  ;;  %v5568_v32 = vpack.c.bf16 %v712_v26, %v704_v24  ;;  %v792_v22 = vld [vmem:[#allocation7 + $0x15d0] sm:$0xff]  ;;  %v807_v24 = vld [vmem:[#allocation7 + $0x1648] sm:$0xff]  ;;  %v809_v26 = vld [vmem:[#allocation7 + $0x1658] sm:$0xff] }
  0xcd   :  { %5037 = vmatpush1.bf16.msra.mxu0 %v5036_v33  ;;  %2948 = vmatmul.mubr.f32.gmra.mrb[2].mxu1 %v80_v34  ;;  %v5058_v33 = vpack.c.bf16 %v727_v28, %v719_v27  ;;  %v718_v34 = vld [vmem:[#allocation7 + $0x1380] sm:$0xff]  ;;  %v5078_v29 = vpack.c.bf16 %v807_v24, %v799_v23 }
  0xce   :  { %5549 = vmatpush1.bf16.msra.mxu1 %v5548_v35  ;;  %5039 = vmatprep.subr.bf16.mxu0 %v5038_v36  ;;  %v726_v35 = vld [vmem:[#allocation7 + $0x13c0] sm:$0xff]  ;;  %v720_v36 = vld [vmem:[#allocation7 + $0x1390] sm:$0xff] }
  0xcf   :  { %5551 = vmatprep.subr.bf16.mxu1 %v5550_v40  ;;  %2402 = vmatprep.mubr.f32.mxu0 %v67_v46  ;;  %v743_v40 = vld [vmem:[#allocation7 + $0x1448] sm:$0xff]  ;;  %v5060_v43 = vpack.c.bf16 %v726_v35, %v718_v34  ;;  %v5572_v44 = vpack.c.bf16 %v728_v38, %v720_v36  ;;  %v808_v34 = vld [vmem:[#allocation7 + $0x1650] sm:$0xff]  ;;  %v825_v38 = vld [vmem:[#allocation7 + $0x16d8] sm:$0xff] }
  0xd0   :  { %3018 = vmatprep.mubr.f32.mxu1 %v67_v46  ;;  %v5062_v45 = vpack.c.bf16 %v743_v40, %v735_v39  ;;  %v734_v46 = vld [vmem:[#allocation7 + $0x1400] sm:$0xff]  ;;  %v815_v35 = vld [vmem:[#allocation7 + $0x1688] sm:$0xff] }
  0xd1   :  { %5041 = vmatpush1.bf16.msra.mxu0 %v5040_v47  ;;  %v742_v47 = vld [vmem:[#allocation7 + $0x1440] sm:$0xff]  ;;  %v823_v36 = vld [vmem:[#allocation7 + $0x16c8] sm:$0xff] }
  0xd2   :  { %5553 = vmatpush1.bf16.msra.mxu1 %v5552_v48  ;;  %5043 = vmatprep.subr.bf16.mxu0 %v5042_v49  ;;  %v736_v48 = vld [vmem:[#allocation7 + $0x1410] sm:$0xff]  ;;  %v5574_v49 = vpack.c.bf16 %v745_v42, %v737_v41  ;;  %v5064_v55 = vpack.c.bf16 %v742_v47, %v734_v46  ;;  %v5082_v41 = vpack.c.bf16 %v823_v36, %v815_v35  ;;  %v814_v42 = vld [vmem:[#allocation7 + $0x1680] sm:$0xff]  ;;  %v831_v47 = vld [vmem:[#allocation7 + $0x1708] sm:$0xff] }
  0xd3   :  { %5555 = vmatprep.subr.bf16.mxu1 %v5554_v53  ;;  %v753_v53 = vld [vmem:[#allocation7 + $0x1498] sm:$0xff]  ;;  %v5576_v56 = vpack.c.bf16 %v744_v50, %v736_v48  ;;  %v824_v46 = vld [vmem:[#allocation7 + $0x16d0] sm:$0xff]  ;;  %v839_v48 = vld [vmem:[#allocation7 + $0x1748] sm:$0xff] }
  0xd4   :  { %v841_v50 = vld [vmem:[#allocation7 + $0x1758] sm:$0xff]  ;;  %v66_v23 = vld [vmem:[#allocation4 + $0x20] sm:$0xff]  ;;  %v83_v36 = vld [vmem:[#allocation4 + $0xa8] sm:$0xff] }
  0xd5   :  { %5045 = vmatpush1.bf16.msra.mxu0 %v5044_v59  ;;  %v758_v59 = vld [vmem:[#allocation7 + $0x14c0] sm:$0xff]  ;;  %v905_v35 = vld [vmem:[#allocation7 + $0x1958] sm:$0xff] }
  0xd6   :  { %5557 = vmatpush1.bf16.msra.mxu1 %v5556_v60  ;;  %5047 = vmatprep.subr.bf16.mxu0 %v5046_v61  ;;  %v752_v60 = vld [vmem:[#allocation7 + $0x1490] sm:$0xff]  ;;  %v5578_v61 = vpack.c.bf16 %v761_v54, %v753_v53  ;;  %v5068_v3 = vpack.c.bf16 %v758_v59, %v750_v58  ;;  %v5086_v53 = vpack.c.bf16 %v839_v48, %v831_v47  ;;  %v830_v54 = vld [vmem:[#allocation7 + $0x1700] sm:$0xff]  ;;  %v847_v59 = vld [vmem:[#allocation7 + $0x1788] sm:$0xff] }
  0xd7   :  { %5559 = vmatprep.subr.bf16.mxu1 %v5558_v1  ;;  %v769_v1 = vld [vmem:[#allocation7 + $0x1518] sm:$0xff]  ;;  %v5580_v4 = vpack.c.bf16 %v760_v62, %v752_v60  ;;  %v840_v58 = vld [vmem:[#allocation7 + $0x1750] sm:$0xff]  ;;  %v855_v60 = vld [vmem:[#allocation7 + $0x17c8] sm:$0xff] }
  0xd8   :  { %v857_v62 = vld [vmem:[#allocation7 + $0x17d8] sm:$0xff]  ;;  %v919_v47 = vld [vmem:[#allocation7 + $0x19c8] sm:$0xff] }
  0xd9   :  { %5049 = vmatpush1.bf16.msra.mxu0 %v5048_v7  ;;  %v774_v7 = vld [vmem:[#allocation7 + $0x1540] sm:$0xff]  ;;  %v913_v48 = vld [vmem:[#allocation7 + $0x1998] sm:$0xff] }
  0xda   :  { %5561 = vmatpush1.bf16.msra.mxu1 %v5560_v8  ;;  %5051 = vmatprep.subr.bf16.mxu0 %v5050_v9  ;;  %v768_v8 = vld [vmem:[#allocation7 + $0x1510] sm:$0xff]  ;;  %v5582_v9 = vpack.c.bf16 %v777_v2, %v769_v1  ;;  %v5072_v15 = vpack.c.bf16 %v774_v7, %v766_v6  ;;  %v5090_v1 = vpack.c.bf16 %v855_v60, %v847_v59  ;;  %v846_v2 = vld [vmem:[#allocation7 + $0x1780] sm:$0xff]  ;;  %v863_v7 = vld [vmem:[#allocation7 + $0x1808] sm:$0xff] }
  0xdb   :  { %5563 = vmatprep.subr.bf16.mxu1 %v5562_v13  ;;  %v785_v13 = vld [vmem:[#allocation7 + $0x1598] sm:$0xff]  ;;  %v5584_v16 = vpack.c.bf16 %v776_v10, %v768_v8  ;;  %v856_v6 = vld [vmem:[#allocation7 + $0x17d0] sm:$0xff]  ;;  %v871_v8 = vld [vmem:[#allocation7 + $0x1848] sm:$0xff] }
  0xdc   :  { %v873_v10 = vld [vmem:[#allocation7 + $0x1858] sm:$0xff]  ;;  %v927_v59 = vld [vmem:[#allocation7 + $0x1a08] sm:$0xff] }
  0xdd   :  { %5053 = vmatpush1.bf16.msra.mxu0 %v5052_v19  ;;  %v790_v19 = vld [vmem:[#allocation7 + $0x15c0] sm:$0xff]  ;;  %v935_v60 = vld [vmem:[#allocation7 + $0x1a48] sm:$0xff] }
  0xde   :  { %5565 = vmatpush1.bf16.msra.mxu1 %v5564_v20  ;;  %5055 = vmatprep.subr.bf16.mxu0 %v5054_v21  ;;  %v784_v20 = vld [vmem:[#allocation7 + $0x1590] sm:$0xff]  ;;  %v5586_v21 = vpack.c.bf16 %v793_v14, %v785_v13  ;;  %v5076_v27 = vpack.c.bf16 %v790_v19, %v782_v18  ;;  %v5094_v13 = vpack.c.bf16 %v871_v8, %v863_v7  ;;  %v862_v14 = vld [vmem:[#allocation7 + $0x1800] sm:$0xff]  ;;  %v879_v19 = vld [vmem:[#allocation7 + $0x1888] sm:$0xff] }
  0xdf   :  { %5567 = vmatprep.subr.bf16.mxu1 %v5566_v25  ;;  %v801_v25 = vld [vmem:[#allocation7 + $0x1618] sm:$0xff]  ;;  %v5588_v28 = vpack.c.bf16 %v792_v22, %v784_v20  ;;  %v872_v18 = vld [vmem:[#allocation7 + $0x1850] sm:$0xff]  ;;  %v887_v20 = vld [vmem:[#allocation7 + $0x18c8] sm:$0xff] }
  0xe0   :  { %v889_v22 = vld [vmem:[#allocation7 + $0x18d8] sm:$0xff]  ;;  %v943_v7 = vld [vmem:[#allocation7 + $0x1a88] sm:$0xff] }
  0xe1   :  { %5057 = vmatpush1.bf16.msra.mxu0 %v5056_v31  ;;  %v806_v31 = vld [vmem:[#allocation7 + $0x1640] sm:$0xff]  ;;  %v951_v8 = vld [vmem:[#allocation7 + $0x1ac8] sm:$0xff] }
  0xe2   :  { %5569 = vmatpush1.bf16.msra.mxu1 %v5568_v32  ;;  %5059 = vmatprep.subr.bf16.mxu0 %v5058_v33  ;;  %v800_v32 = vld [vmem:[#allocation7 + $0x1610] sm:$0xff]  ;;  %v5590_v33 = vpack.c.bf16 %v809_v26, %v801_v25  ;;  %v5080_v39 = vpack.c.bf16 %v806_v31, %v798_v30  ;;  %v5098_v26 = vpack.c.bf16 %v887_v20, %v879_v19  ;;  %v959_v19 = vld [vmem:[#allocation7 + $0x1b08] sm:$0xff] }
  0xe3   :  { %5571 = vmatprep.subr.bf16.mxu1 %v5570_v37  ;;  %v817_v37 = vld [vmem:[#allocation7 + $0x1698] sm:$0xff]  ;;  %v5592_v40 = vpack.c.bf16 %v808_v34, %v800_v32  ;;  %v888_v31 = vld [vmem:[#allocation7 + $0x18d0] sm:$0xff]  ;;  %v895_v32 = vld [vmem:[#allocation7 + $0x1908] sm:$0xff] }
  0xe4   :  { %v897_v34 = vld [vmem:[#allocation7 + $0x1918] sm:$0xff]  ;;  %v967_v20 = vld [vmem:[#allocation7 + $0x1b48] sm:$0xff] }
  0xe5   :  { %5061 = vmatpush1.bf16.msra.mxu0 %v5060_v43  ;;  %v822_v43 = vld [vmem:[#allocation7 + $0x16c0] sm:$0xff] }
  0xe6   :  { %5573 = vmatpush1.bf16.msra.mxu1 %v5572_v44  ;;  %5063 = vmatprep.subr.bf16.mxu0 %v5062_v45  ;;  %v816_v44 = vld [vmem:[#allocation7 + $0x1690] sm:$0xff]  ;;  %v5594_v45 = vpack.c.bf16 %v825_v38, %v817_v37  ;;  %v5084_v51 = vpack.c.bf16 %v822_v43, %v814_v42  ;;  %v82_v38 = vld [vmem:[#allocation4 + $0xa0] sm:$0xff] }
  0xe7   :  { %5575 = vmatprep.subr.bf16.mxu1 %v5574_v49  ;;  %v833_v49 = vld [vmem:[#allocation7 + $0x1718] sm:$0xff]  ;;  %v5596_v52 = vpack.c.bf16 %v824_v46, %v816_v44  ;;  %v902_v42 = vld [vmem:[#allocation7 + $0x1940] sm:$0xff]  ;;  %v896_v43 = vld [vmem:[#allocation7 + $0x1910] sm:$0xff]  ;;  %v5614_v44 = vpack.c.bf16 %v905_v35, %v897_v34 }
  0xe8   :  { %v911_v46 = vld [vmem:[#allocation7 + $0x1988] sm:$0xff]  ;;  %v985_v34 = vld [vmem:[#allocation7 + $0x1bd8] sm:$0xff] }
  0xe9   :  { %5065 = vmatpush1.bf16.msra.mxu0 %v5064_v55  ;;  %v838_v55 = vld [vmem:[#allocation7 + $0x1740] sm:$0xff] }
  0xea   :  { %5577 = vmatpush1.bf16.msra.mxu1 %v5576_v56  ;;  %5067 = vmatprep.subr.bf16.mxu0 %v5066_v57  ;;  %v832_v56 = vld [vmem:[#allocation7 + $0x1710] sm:$0xff]  ;;  %v5598_v57 = vpack.c.bf16 %v841_v50, %v833_v49  ;;  %v5088_v63 = vpack.c.bf16 %v838_v55, %v830_v54  ;;  %v921_v49 = vld [vmem:[#allocation7 + $0x19d8] sm:$0xff]  ;;  %v910_v54 = vld [vmem:[#allocation7 + $0x1980] sm:$0xff] }
  0xeb   :  { %5579 = vmatprep.subr.bf16.mxu1 %v5578_v61  ;;  %v849_v61 = vld [vmem:[#allocation7 + $0x1798] sm:$0xff]  ;;  %v5600_v0 = vpack.c.bf16 %v840_v58, %v832_v56  ;;  %v918_v55 = vld [vmem:[#allocation7 + $0x19c0] sm:$0xff]  ;;  %v912_v56 = vld [vmem:[#allocation7 + $0x1990] sm:$0xff] }
  0xec   :  { %v69_v50 = vld [vmem:[#allocation4 + $0x38] sm:$0xff]  ;;  %v920_v58 = vld [vmem:[#allocation7 + $0x19d0] sm:$0xff] }
  0xed   :  { %5069 = vmatpush1.bf16.msra.mxu0 %v5068_v3  ;;  %v854_v3 = vld [vmem:[#allocation7 + $0x17c0] sm:$0xff] }
  0xee   :  { %5581 = vmatpush1.bf16.msra.mxu1 %v5580_v4  ;;  %5071 = vmatprep.subr.bf16.mxu0 %v5070_v5  ;;  %v848_v4 = vld [vmem:[#allocation7 + $0x1790] sm:$0xff]  ;;  %v5602_v5 = vpack.c.bf16 %v857_v62, %v849_v61  ;;  %v5092_v11 = vpack.c.bf16 %v854_v3, %v846_v2  ;;  %v929_v61 = vld [vmem:[#allocation7 + $0x1a18] sm:$0xff]  ;;  %v926_v2 = vld [vmem:[#allocation7 + $0x1a00] sm:$0xff] }
  0xef   :  { %5583 = vmatprep.subr.bf16.mxu1 %v5582_v9  ;;  %v865_v9 = vld [vmem:[#allocation7 + $0x1818] sm:$0xff]  ;;  %v5604_v12 = vpack.c.bf16 %v856_v6, %v848_v4  ;;  %v934_v3 = vld [vmem:[#allocation7 + $0x1a40] sm:$0xff]  ;;  %v928_v4 = vld [vmem:[#allocation7 + $0x1a10] sm:$0xff] }
  0xf0   :  { %v937_v62 = vld [vmem:[#allocation7 + $0x1a58] sm:$0xff]  ;;  %v936_v6 = vld [vmem:[#allocation7 + $0x1a50] sm:$0xff] }
  0xf1   :  { %5073 = vmatpush1.bf16.msra.mxu0 %v5072_v15  ;;  %v870_v15 = vld [vmem:[#allocation7 + $0x1840] sm:$0xff] }
  0xf2   :  { %5585 = vmatpush1.bf16.msra.mxu1 %v5584_v16  ;;  %5075 = vmatprep.subr.bf16.mxu0 %v5074_v17  ;;  %v864_v16 = vld [vmem:[#allocation7 + $0x1810] sm:$0xff]  ;;  %v5606_v17 = vpack.c.bf16 %v873_v10, %v865_v9  ;;  %v5096_v24 = vpack.c.bf16 %v870_v15, %v862_v14  ;;  %v945_v9 = vld [vmem:[#allocation7 + $0x1a98] sm:$0xff]  ;;  %v942_v14 = vld [vmem:[#allocation7 + $0x1a80] sm:$0xff] }
  0xf3   :  { %5587 = vmatprep.subr.bf16.mxu1 %v5586_v21  ;;  %v881_v21 = vld [vmem:[#allocation7 + $0x1898] sm:$0xff]  ;;  %v5608_v25 = vpack.c.bf16 %v872_v18, %v864_v16  ;;  %v950_v15 = vld [vmem:[#allocation7 + $0x1ac0] sm:$0xff]  ;;  %v944_v16 = vld [vmem:[#allocation7 + $0x1a90] sm:$0xff] }
  0xf4   :  { %v5610_v30 = vpack.c.bf16 %v889_v22, %v881_v21  ;;  %v953_v10 = vld [vmem:[#allocation7 + $0x1ad8] sm:$0xff]  ;;  %v952_v18 = vld [vmem:[#allocation7 + $0x1ad0] sm:$0xff] }
  0xf5   :  { %5077 = vmatpush1.bf16.msra.mxu0 %v5076_v27  ;;  %v878_v27 = vld [vmem:[#allocation7 + $0x1880] sm:$0xff]  ;;  %v961_v21 = vld [vmem:[#allocation7 + $0x1b18] sm:$0xff] }
  0xf6   :  { %5589 = vmatpush1.bf16.msra.mxu1 %v5588_v28  ;;  %5079 = vmatprep.subr.bf16.mxu0 %v5078_v29  ;;  %v886_v28 = vld [vmem:[#allocation7 + $0x18c0] sm:$0xff]  ;;  %v880_v29 = vld [vmem:[#allocation7 + $0x1890] sm:$0xff]  ;;  %v969_v22 = vld [vmem:[#allocation7 + $0x1b58] sm:$0xff] }
  0xf7   :  { %5591 = vmatprep.subr.bf16.mxu1 %v5590_v33  ;;  %v903_v33 = vld [vmem:[#allocation7 + $0x1948] sm:$0xff]  ;;  %v5100_v37 = vpack.c.bf16 %v886_v28, %v878_v27  ;;  %v966_v27 = vld [vmem:[#allocation7 + $0x1b40] sm:$0xff]  ;;  %v960_v28 = vld [vmem:[#allocation7 + $0x1b10] sm:$0xff] }
  0xf9   :  { %5081 = vmatpush1.bf16.msra.mxu0 %v5080_v39  ;;  %v5612_v39 = vpack.c.bf16 %v888_v31, %v880_v29  ;;  %v5630_v29 = vpack.c.bf16 %v969_v22, %v961_v21  ;;  %v975_v31 = vld [vmem:[#allocation7 + $0x1b88] sm:$0xff]  ;;  %v1038_v22 = vld [vmem:[#allocation7 + $0x1d80] sm:$0xff] }
  0xfa   :  { %5593 = vmatpush1.bf16.msra.mxu1 %v5592_v40  ;;  %5083 = vmatprep.subr.bf16.mxu0 %v5082_v41  ;;  %v5102_v40 = vpack.c.bf16 %v903_v33, %v895_v32  ;;  %v894_v41 = vld [vmem:[#allocation7 + $0x1900] sm:$0xff]  ;;  %v983_v32 = vld [vmem:[#allocation7 + $0x1bc8] sm:$0xff]  ;;  %v977_v33 = vld [vmem:[#allocation7 + $0x1b98] sm:$0xff] }
  0xfb   :  { %5595 = vmatprep.subr.bf16.mxu1 %v5594_v45  ;;  %v904_v45 = vld [vmem:[#allocation7 + $0x1950] sm:$0xff] }
  0xfd   :  { %5085 = vmatpush1.bf16.msra.mxu0 %v5084_v51  ;;  %v5104_v51 = vpack.c.bf16 %v902_v42, %v894_v41  ;;  %v5634_v41 = vpack.c.bf16 %v985_v34, %v977_v33  ;;  %v984_v42 = vld [vmem:[#allocation7 + $0x1bd0] sm:$0xff]  ;;  %v1054_v34 = vld [vmem:[#allocation7 + $0x1e00] sm:$0xff] }
  0xfe   :  { %5597 = vmatpush1.bf16.msra.mxu1 %v5596_v52  ;;  %5087 = vmatprep.subr.bf16.mxu0 %v5086_v53  ;;  %v5616_v52 = vpack.c.bf16 %v904_v45, %v896_v43  ;;  %v5106_v53 = vpack.c.bf16 %v919_v47, %v911_v46  ;;  %v991_v43 = vld [vmem:[#allocation7 + $0x1c08] sm:$0xff]  ;;  %v993_v45 = vld [vmem:[#allocation7 + $0x1c18] sm:$0xff] }
  0xff   :  { %5599 = vmatprep.subr.bf16.mxu1 %v5598_v57  ;;  %v5618_v57 = vpack.c.bf16 %v921_v49, %v913_v48  ;;  %v1001_v46 = vld [vmem:[#allocation7 + $0x1c58] sm:$0xff] }
 0x101   :  { %5089 = vmatpush1.bf16.msra.mxu0 %v5088_v63  ;;  %v5108_v63 = vpack.c.bf16 %v918_v55, %v910_v54  ;;  %v1000_v54 = vld [vmem:[#allocation7 + $0x1c50] sm:$0xff]  ;;  %v1007_v55 = vld [vmem:[#allocation7 + $0x1c88] sm:$0xff] }
 0x102   :  { %5601 = vmatpush1.bf16.msra.mxu1 %v5600_v0  ;;  %5091 = vmatprep.subr.bf16.mxu0 %v5090_v1  ;;  %v5620_v0 = vpack.c.bf16 %v920_v58, %v912_v56  ;;  %v5110_v1 = vpack.c.bf16 %v935_v60, %v927_v59  ;;  %v1015_v56 = vld [vmem:[#allocation7 + $0x1cc8] sm:$0xff]  ;;  %v1017_v58 = vld [vmem:[#allocation7 + $0x1cd8] sm:$0xff] }
 0x103   :  { %5603 = vmatprep.subr.bf16.mxu1 %v5602_v5  ;;  %v5622_v5 = vpack.c.bf16 %v937_v62, %v929_v61  ;;  %v5130_v61 = vpack.c.bf16 %v1015_v56, %v1007_v55  ;;  %v1006_v62 = vld [vmem:[#allocation7 + $0x1c80] sm:$0xff] }
 0x105   :  { %5093 = vmatpush1.bf16.msra.mxu0 %v5092_v11  ;;  %v5112_v11 = vpack.c.bf16 %v934_v3, %v926_v2  ;;  %v1016_v2 = vld [vmem:[#allocation7 + $0x1cd0] sm:$0xff]  ;;  %v1023_v3 = vld [vmem:[#allocation7 + $0x1d08] sm:$0xff] }
 0x106   :  { %5605 = vmatpush1.bf16.msra.mxu1 %v5604_v12  ;;  %5095 = vmatprep.subr.bf16.mxu0 %v5094_v13  ;;  %v5624_v12 = vpack.c.bf16 %v936_v6, %v928_v4  ;;  %v5114_v13 = vpack.c.bf16 %v951_v8, %v943_v7  ;;  %v1031_v4 = vld [vmem:[#allocation7 + $0x1d48] sm:$0xff]  ;;  %v1033_v6 = vld [vmem:[#allocation7 + $0x1d58] sm:$0xff] }
 0x107   :  { %5607 = vmatprep.subr.bf16.mxu1 %v5606_v17  ;;  %v5626_v17 = vpack.c.bf16 %v953_v10, %v945_v9  ;;  %v5134_v9 = vpack.c.bf16 %v1031_v4, %v1023_v3  ;;  %v1022_v10 = vld [vmem:[#allocation7 + $0x1d00] sm:$0xff] }
 0x108   :  { %2403 = vmatmul.mubr.f32.vlgmr.msra.gmra.mrb[0].mxu0 %v66_v23 }
 0x109   :  { %5097 = vmatpush1.bf16.msra.mxu0 %v5096_v24  ;;  %3019 = vmatmul.mubr.f32.vlgmr.msra.gmra.mrb[0].mxu1 %v66_v23  ;;  %v5116_v23 = vpack.c.bf16 %v950_v15, %v942_v14  ;;  %v5628_v24 = vpack.c.bf16 %v952_v18, %v944_v16  ;;  %v1032_v14 = vld [vmem:[#allocation7 + $0x1d50] sm:$0xff]  ;;  %v1039_v15 = vld [vmem:[#allocation7 + $0x1d88] sm:$0xff]  ;;  %v1049_v18 = vld [vmem:[#allocation7 + $0x1dd8] sm:$0xff] }
 0x10a   :  { %5609 = vmatpush1.bf16.msra.mxu1 %v5608_v25  ;;  %5099 = vmatprep.subr.bf16.mxu0 %v5098_v26  ;;  %v5118_v25 = vpack.c.bf16 %v967_v20, %v959_v19  ;;  %v958_v26 = vld [vmem:[#allocation7 + $0x1b00] sm:$0xff]  ;;  %v1047_v16 = vld [vmem:[#allocation7 + $0x1dc8] sm:$0xff] }
 0x10b   :  { %5611 = vmatprep.subr.bf16.mxu1 %v5610_v30  ;;  %2408 = vmatprep.mubr.f32.mxu0 %v83_v36  ;;  %v968_v30 = vld [vmem:[#allocation7 + $0x1b50] sm:$0xff]  ;;  %v5120_v35 = vpack.c.bf16 %v966_v27, %v958_v26  ;;  %v5138_v21 = vpack.c.bf16 %v1047_v16, %v1039_v15  ;;  %v1055_v27 = vld [vmem:[#allocation7 + $0x1e08] sm:$0xff] }
 0x10c   :  { %3024 = vmatprep.mubr.f32.mxu1 %v83_v36  ;;  %2409 = vmatmul.mubr.f32.gmra.mrb[2].mxu0 %v82_v38  ;;  %v5632_v36 = vpack.c.bf16 %v968_v30, %v960_v28  ;;  %v1048_v26 = vld [vmem:[#allocation7 + $0x1dd0] sm:$0xff]  ;;  %v1063_v28 = vld [vmem:[#allocation7 + $0x1e48] sm:$0xff]  ;;  %v1065_v30 = vld [vmem:[#allocation7 + $0x1e58] sm:$0xff] }
 0x10d   :  { %5101 = vmatpush1.bf16.msra.mxu0 %v5100_v37  ;;  %3025 = vmatmul.mubr.f32.gmra.mrb[2].mxu1 %v82_v38  ;;  %v5122_v37 = vpack.c.bf16 %v983_v32, %v975_v31  ;;  %v974_v38 = vld [vmem:[#allocation7 + $0x1b80] sm:$0xff]  ;;  %v5142_v33 = vpack.c.bf16 %v1063_v28, %v1055_v27  ;;  %v68_v27 = vld [vmem:[#allocation4 + $0x30] sm:$0xff] }
 0x10e   :  { %5613 = vmatpush1.bf16.msra.mxu1 %v5612_v39  ;;  %5103 = vmatprep.subr.bf16.mxu0 %v5102_v40  ;;  %v982_v39 = vld [vmem:[#allocation7 + $0x1bc0] sm:$0xff]  ;;  %v976_v40 = vld [vmem:[#allocation7 + $0x1b90] sm:$0xff] }
 0x10f   :  { %5615 = vmatprep.subr.bf16.mxu1 %v5614_v44  ;;  %2479 = vmatprep.mubr.f32.mxu0 %v69_v50  ;;  %v999_v44 = vld [vmem:[#allocation7 + $0x1c48] sm:$0xff]  ;;  %v5124_v47 = vpack.c.bf16 %v982_v39, %v974_v38  ;;  %v5636_v48 = vpack.c.bf16 %v984_v42, %v976_v40  ;;  %v1064_v38 = vld [vmem:[#allocation7 + $0x1e50] sm:$0xff]  ;;  %v1081_v42 = vld [vmem:[#allocation7 + $0x1ed8] sm:$0xff] }
 0x110   :  { %3095 = vmatprep.mubr.f32.mxu1 %v69_v50  ;;  %v5126_v49 = vpack.c.bf16 %v999_v44, %v991_v43  ;;  %v990_v50 = vld [vmem:[#allocation7 + $0x1c00] sm:$0xff]  ;;  %v1071_v39 = vld [vmem:[#allocation7 + $0x1e88] sm:$0xff] }
 0x111   :  { %5105 = vmatpush1.bf16.msra.mxu0 %v5104_v51  ;;  %v998_v51 = vld [vmem:[#allocation7 + $0x1c40] sm:$0xff]  ;;  %v1079_v40 = vld [vmem:[#allocation7 + $0x1ec8] sm:$0xff] }
 0x112   :  { %5617 = vmatpush1.bf16.msra.mxu1 %v5616_v52  ;;  %5107 = vmatprep.subr.bf16.mxu0 %v5106_v53  ;;  %v992_v52 = vld [vmem:[#allocation7 + $0x1c10] sm:$0xff]  ;;  %v5638_v53 = vpack.c.bf16 %v1001_v46, %v993_v45  ;;  %v5128_v59 = vpack.c.bf16 %v998_v51, %v990_v50  ;;  %v5146_v45 = vpack.c.bf16 %v1079_v40, %v1071_v39  ;;  %v1070_v46 = vld [vmem:[#allocation7 + $0x1e80] sm:$0xff]  ;;  %v1087_v51 = vld [vmem:[#allocation7 + $0x1f08] sm:$0xff] }
 0x113   :  { %5619 = vmatprep.subr.bf16.mxu1 %v5618_v57  ;;  %v1009_v57 = vld [vmem:[#allocation7 + $0x1c98] sm:$0xff]  ;;  %v5640_v60 = vpack.c.bf16 %v1000_v54, %v992_v52  ;;  %v1080_v50 = vld [vmem:[#allocation7 + $0x1ed0] sm:$0xff]  ;;  %v1095_v52 = vld [vmem:[#allocation7 + $0x1f48] sm:$0xff] }
 0x114   :  { %v1097_v54 = vld [vmem:[#allocation7 + $0x1f58] sm:$0xff] }
 0x115   :  { %5109 = vmatpush1.bf16.msra.mxu0 %v5108_v63  ;;  %v1014_v63 = vld [vmem:[#allocation7 + $0x1cc0] sm:$0xff]  ;;  %v1161_v39 = vld [vmem:[#allocation7 + $0x2158] sm:$0xff] }
 0x116   :  { %5621 = vmatpush1.bf16.msra.mxu1 %v5620_v0  ;;  %5111 = vmatprep.subr.bf16.mxu0 %v5110_v1  ;;  %v1008_v0 = vld [vmem:[#allocation7 + $0x1c90] sm:$0xff]  ;;  %v5642_v1 = vpack.c.bf16 %v1017_v58, %v1009_v57  ;;  %v5132_v7 = vpack.c.bf16 %v1014_v63, %v1006_v62  ;;  %v5150_v57 = vpack.c.bf16 %v1095_v52, %v1087_v51  ;;  %v1086_v58 = vld [vmem:[#allocation7 + $0x1f00] sm:$0xff]  ;;  %v1103_v63 = vld [vmem:[#allocation7 + $0x1f88] sm:$0xff] }
 0x117   :  { %5623 = vmatprep.subr.bf16.mxu1 %v5622_v5  ;;  %v1025_v5 = vld [vmem:[#allocation7 + $0x1d18] sm:$0xff]  ;;  %v5644_v8 = vpack.c.bf16 %v1016_v2, %v1008_v0  ;;  %v1096_v62 = vld [vmem:[#allocation7 + $0x1f50] sm:$0xff]  ;;  %v1111_v0 = vld [vmem:[#allocation7 + $0x1fc8] sm:$0xff] }
 0x118   :  { %v1113_v2 = vld [vmem:[#allocation7 + $0x1fd8] sm:$0xff]  ;;  %v1175_v51 = vld [vmem:[#allocation7 + $0x21c8] sm:$0xff] }
 0x119   :  { %5113 = vmatpush1.bf16.msra.mxu0 %v5112_v11  ;;  %v1030_v11 = vld [vmem:[#allocation7 + $0x1d40] sm:$0xff]  ;;  %v85_v40 = vld [vmem:[#allocation4 + $0xb8] sm:$0xff] }
 0x11a   :  { %5625 = vmatpush1.bf16.msra.mxu1 %v5624_v12  ;;  %5115 = vmatprep.subr.bf16.mxu0 %v5114_v13  ;;  %v1024_v12 = vld [vmem:[#allocation7 + $0x1d10] sm:$0xff]  ;;  %v5646_v13 = vpack.c.bf16 %v1033_v6, %v1025_v5  ;;  %v5136_v19 = vpack.c.bf16 %v1030_v11, %v1022_v10  ;;  %v5154_v5 = vpack.c.bf16 %v1111_v0, %v1103_v63  ;;  %v1102_v6 = vld [vmem:[#allocation7 + $0x1f80] sm:$0xff]  ;;  %v1119_v11 = vld [vmem:[#allocation7 + $0x2008] sm:$0xff] }
 0x11b   :  { %5627 = vmatprep.subr.bf16.mxu1 %v5626_v17  ;;  %v1041_v17 = vld [vmem:[#allocation7 + $0x1d98] sm:$0xff]  ;;  %v5648_v20 = vpack.c.bf16 %v1032_v14, %v1024_v12  ;;  %v1112_v10 = vld [vmem:[#allocation7 + $0x1fd0] sm:$0xff]  ;;  %v1127_v12 = vld [vmem:[#allocation7 + $0x2048] sm:$0xff] }
 0x11c   :  { %v1129_v14 = vld [vmem:[#allocation7 + $0x2058] sm:$0xff]  ;;  %v1183_v63 = vld [vmem:[#allocation7 + $0x2208] sm:$0xff] }
 0x11d   :  { %5117 = vmatpush1.bf16.msra.mxu0 %v5116_v23  ;;  %v1046_v23 = vld [vmem:[#allocation7 + $0x1dc0] sm:$0xff]  ;;  %v1169_v52 = vld [vmem:[#allocation7 + $0x2198] sm:$0xff]  ;;  %v1191_v0 = vld [vmem:[#allocation7 + $0x2248] sm:$0xff] }
 0x11e   :  { %5629 = vmatpush1.bf16.msra.mxu1 %v5628_v24  ;;  %5119 = vmatprep.subr.bf16.mxu0 %v5118_v25  ;;  %v1040_v24 = vld [vmem:[#allocation7 + $0x1d90] sm:$0xff]  ;;  %v5650_v25 = vpack.c.bf16 %v1049_v18, %v1041_v17  ;;  %v5140_v31 = vpack.c.bf16 %v1046_v23, %v1038_v22  ;;  %v5158_v17 = vpack.c.bf16 %v1127_v12, %v1119_v11  ;;  %v1118_v18 = vld [vmem:[#allocation7 + $0x2000] sm:$0xff]  ;;  %v1135_v23 = vld [vmem:[#allocation7 + $0x2088] sm:$0xff] }
 0x11f   :  { %5631 = vmatprep.subr.bf16.mxu1 %v5630_v29  ;;  %v1057_v29 = vld [vmem:[#allocation7 + $0x1e18] sm:$0xff]  ;;  %v5652_v32 = vpack.c.bf16 %v1048_v26, %v1040_v24  ;;  %v1128_v22 = vld [vmem:[#allocation7 + $0x2050] sm:$0xff]  ;;  %v1143_v24 = vld [vmem:[#allocation7 + $0x20c8] sm:$0xff] }
 0x120   :  { %v1145_v26 = vld [vmem:[#allocation7 + $0x20d8] sm:$0xff]  ;;  %v1199_v11 = vld [vmem:[#allocation7 + $0x2288] sm:$0xff] }
 0x121   :  { %5121 = vmatpush1.bf16.msra.mxu0 %v5120_v35  ;;  %v1062_v35 = vld [vmem:[#allocation7 + $0x1e40] sm:$0xff]  ;;  %v1207_v12 = vld [vmem:[#allocation7 + $0x22c8] sm:$0xff] }
 0x122   :  { %5633 = vmatpush1.bf16.msra.mxu1 %v5632_v36  ;;  %5123 = vmatprep.subr.bf16.mxu0 %v5122_v37  ;;  %v1056_v36 = vld [vmem:[#allocation7 + $0x1e10] sm:$0xff]  ;;  %v5654_v37 = vpack.c.bf16 %v1065_v30, %v1057_v29  ;;  %v5144_v43 = vpack.c.bf16 %v1062_v35, %v1054_v34  ;;  %v5162_v30 = vpack.c.bf16 %v1143_v24, %v1135_v23  ;;  %v1215_v23 = vld [vmem:[#allocation7 + $0x2308] sm:$0xff] }
 0x123   :  { %5635 = vmatprep.subr.bf16.mxu1 %v5634_v41  ;;  %v1073_v41 = vld [vmem:[#allocation7 + $0x1e98] sm:$0xff]  ;;  %v5656_v44 = vpack.c.bf16 %v1064_v38, %v1056_v36  ;;  %v1144_v35 = vld [vmem:[#allocation7 + $0x20d0] sm:$0xff]  ;;  %v1151_v36 = vld [vmem:[#allocation7 + $0x2108] sm:$0xff] }
 0x124   :  { %v1153_v38 = vld [vmem:[#allocation7 + $0x2118] sm:$0xff]  ;;  %v1223_v24 = vld [vmem:[#allocation7 + $0x2348] sm:$0xff] }
 0x125   :  { %5125 = vmatpush1.bf16.msra.mxu0 %v5124_v47  ;;  %v1078_v47 = vld [vmem:[#allocation7 + $0x1ec0] sm:$0xff] }
 0x126   :  { %5637 = vmatpush1.bf16.msra.mxu1 %v5636_v48  ;;  %5127 = vmatprep.subr.bf16.mxu0 %v5126_v49  ;;  %v1072_v48 = vld [vmem:[#allocation7 + $0x1e90] sm:$0xff]  ;;  %v5658_v49 = vpack.c.bf16 %v1081_v42, %v1073_v41  ;;  %v5148_v55 = vpack.c.bf16 %v1078_v47, %v1070_v46  ;;  %v1158_v46 = vld [vmem:[#allocation7 + $0x2140] sm:$0xff] }
 0x127   :  { %5639 = vmatprep.subr.bf16.mxu1 %v5638_v53  ;;  %v1089_v53 = vld [vmem:[#allocation7 + $0x1f18] sm:$0xff]  ;;  %v5660_v56 = vpack.c.bf16 %v1080_v50, %v1072_v48  ;;  %v84_v42 = vld [vmem:[#allocation4 + $0xb0] sm:$0xff]  ;;  %v5678_v48 = vpack.c.bf16 %v1161_v39, %v1153_v38  ;;  %v1167_v50 = vld [vmem:[#allocation7 + $0x2188] sm:$0xff] }
 0x128   :  { %v1152_v47 = vld [vmem:[#allocation7 + $0x2110] sm:$0xff]  ;;  %v1241_v38 = vld [vmem:[#allocation7 + $0x23d8] sm:$0xff] }
 0x129   :  { %5129 = vmatpush1.bf16.msra.mxu0 %v5128_v59  ;;  %v1094_v59 = vld [vmem:[#allocation7 + $0x1f40] sm:$0xff] }
 0x12a   :  { %5641 = vmatpush1.bf16.msra.mxu1 %v5640_v60  ;;  %5131 = vmatprep.subr.bf16.mxu0 %v5130_v61  ;;  %v1088_v60 = vld [vmem:[#allocation7 + $0x1f10] sm:$0xff]  ;;  %v5662_v61 = vpack.c.bf16 %v1097_v54, %v1089_v53  ;;  %v5152_v3 = vpack.c.bf16 %v1094_v59, %v1086_v58  ;;  %v1177_v53 = vld [vmem:[#allocation7 + $0x21d8] sm:$0xff]  ;;  %v71_v54 = vld [vmem:[#allocation4 + $0x48] sm:$0xff] }
 0x12b   :  { %5643 = vmatprep.subr.bf16.mxu1 %v5642_v1  ;;  %v1105_v1 = vld [vmem:[#allocation7 + $0x1f98] sm:$0xff]  ;;  %v5664_v4 = vpack.c.bf16 %v1096_v62, %v1088_v60  ;;  %v1166_v58 = vld [vmem:[#allocation7 + $0x2180] sm:$0xff]  ;;  %v1168_v60 = vld [vmem:[#allocation7 + $0x2190] sm:$0xff] }
 0x12c   :  { %v1174_v59 = vld [vmem:[#allocation7 + $0x21c0] sm:$0xff]  ;;  %v1176_v62 = vld [vmem:[#allocation7 + $0x21d0] sm:$0xff] }
 0x12d   :  { %5133 = vmatpush1.bf16.msra.mxu0 %v5132_v7  ;;  %v1110_v7 = vld [vmem:[#allocation7 + $0x1fc0] sm:$0xff] }
 0x12e   :  { %5645 = vmatpush1.bf16.msra.mxu1 %v5644_v8  ;;  %5135 = vmatprep.subr.bf16.mxu0 %v5134_v9  ;;  %v1104_v8 = vld [vmem:[#allocation7 + $0x1f90] sm:$0xff]  ;;  %v5666_v9 = vpack.c.bf16 %v1113_v2, %v1105_v1  ;;  %v5156_v15 = vpack.c.bf16 %v1110_v7, %v1102_v6  ;;  %v1185_v1 = vld [vmem:[#allocation7 + $0x2218] sm:$0xff]  ;;  %v1182_v6 = vld [vmem:[#allocation7 + $0x2200] sm:$0xff] }
 0x12f   :  { %5647 = vmatprep.subr.bf16.mxu1 %v5646_v13  ;;  %v1121_v13 = vld [vmem:[#allocation7 + $0x2018] sm:$0xff]  ;;  %v5668_v16 = vpack.c.bf16 %v1112_v10, %v1104_v8  ;;  %v1190_v7 = vld [vmem:[#allocation7 + $0x2240] sm:$0xff]  ;;  %v1184_v8 = vld [vmem:[#allocation7 + $0x2210] sm:$0xff] }
 0x130   :  { %v1193_v2 = vld [vmem:[#allocation7 + $0x2258] sm:$0xff]  ;;  %v1192_v10 = vld [vmem:[#allocation7 + $0x2250] sm:$0xff] }
 0x131   :  { %5137 = vmatpush1.bf16.msra.mxu0 %v5136_v19  ;;  %v1126_v19 = vld [vmem:[#allocation7 + $0x2040] sm:$0xff] }
 0x132   :  { %5649 = vmatpush1.bf16.msra.mxu1 %v5648_v20  ;;  %5139 = vmatprep.subr.bf16.mxu0 %v5138_v21  ;;  %v1120_v20 = vld [vmem:[#allocation7 + $0x2010] sm:$0xff]  ;;  %v5670_v21 = vpack.c.bf16 %v1129_v14, %v1121_v13  ;;  %v5160_v28 = vpack.c.bf16 %v1126_v19, %v1118_v18  ;;  %v1201_v13 = vld [vmem:[#allocation7 + $0x2298] sm:$0xff]  ;;  %v1198_v18 = vld [vmem:[#allocation7 + $0x2280] sm:$0xff] }
 0x133   :  { %5651 = vmatprep.subr.bf16.mxu1 %v5650_v25  ;;  %v1137_v25 = vld [vmem:[#allocation7 + $0x2098] sm:$0xff]  ;;  %v5672_v29 = vpack.c.bf16 %v1128_v22, %v1120_v20  ;;  %v1206_v19 = vld [vmem:[#allocation7 + $0x22c0] sm:$0xff]  ;;  %v1200_v20 = vld [vmem:[#allocation7 + $0x2290] sm:$0xff] }
 0x134   :  { %v5674_v34 = vpack.c.bf16 %v1145_v26, %v1137_v25  ;;  %v1209_v14 = vld [vmem:[#allocation7 + $0x22d8] sm:$0xff]  ;;  %v1208_v22 = vld [vmem:[#allocation7 + $0x22d0] sm:$0xff] }
 0x135   :  { %5141 = vmatpush1.bf16.msra.mxu0 %v5140_v31  ;;  %v1134_v31 = vld [vmem:[#allocation7 + $0x2080] sm:$0xff]  ;;  %v1217_v25 = vld [vmem:[#allocation7 + $0x2318] sm:$0xff] }
 0x136   :  { %5653 = vmatpush1.bf16.msra.mxu1 %v5652_v32  ;;  %5143 = vmatprep.subr.bf16.mxu0 %v5142_v33  ;;  %v1142_v32 = vld [vmem:[#allocation7 + $0x20c0] sm:$0xff]  ;;  %v1136_v33 = vld [vmem:[#allocation7 + $0x2090] sm:$0xff]  ;;  %v1225_v26 = vld [vmem:[#allocation7 + $0x2358] sm:$0xff] }
 0x137   :  { %5655 = vmatprep.subr.bf16.mxu1 %v5654_v37  ;;  %v1159_v37 = vld [vmem:[#allocation7 + $0x2148] sm:$0xff]  ;;  %v5164_v41 = vpack.c.bf16 %v1142_v32, %v1134_v31  ;;  %v1222_v31 = vld [vmem:[#allocation7 + $0x2340] sm:$0xff]  ;;  %v1216_v32 = vld [vmem:[#allocation7 + $0x2310] sm:$0xff] }
 0x139   :  { %5145 = vmatpush1.bf16.msra.mxu0 %v5144_v43  ;;  %v5676_v43 = vpack.c.bf16 %v1144_v35, %v1136_v33  ;;  %v5694_v33 = vpack.c.bf16 %v1225_v26, %v1217_v25  ;;  %v1231_v35 = vld [vmem:[#allocation7 + $0x2388] sm:$0xff]  ;;  %v1294_v26 = vld [vmem:[#allocation7 + $0x2580] sm:$0xff] }
 0x13a   :  { %5657 = vmatpush1.bf16.msra.mxu1 %v5656_v44  ;;  %5147 = vmatprep.subr.bf16.mxu0 %v5146_v45  ;;  %v5166_v44 = vpack.c.bf16 %v1159_v37, %v1151_v36  ;;  %v1150_v45 = vld [vmem:[#allocation7 + $0x2100] sm:$0xff]  ;;  %v1239_v36 = vld [vmem:[#allocation7 + $0x23c8] sm:$0xff]  ;;  %v1233_v37 = vld [vmem:[#allocation7 + $0x2398] sm:$0xff] }
 0x13b   :  { %5659 = vmatprep.subr.bf16.mxu1 %v5658_v49  ;;  %v1160_v49 = vld [vmem:[#allocation7 + $0x2150] sm:$0xff] }
 0x13d   :  { %5149 = vmatpush1.bf16.msra.mxu0 %v5148_v55  ;;  %v5168_v55 = vpack.c.bf16 %v1158_v46, %v1150_v45  ;;  %v5698_v45 = vpack.c.bf16 %v1241_v38, %v1233_v37  ;;  %v1240_v46 = vld [vmem:[#allocation7 + $0x23d0] sm:$0xff]  ;;  %v1310_v38 = vld [vmem:[#allocation7 + $0x2600] sm:$0xff] }
 0x13e   :  { %5661 = vmatpush1.bf16.msra.mxu1 %v5660_v56  ;;  %5151 = vmatprep.subr.bf16.mxu0 %v5150_v57  ;;  %v5680_v56 = vpack.c.bf16 %v1160_v49, %v1152_v47  ;;  %v5170_v57 = vpack.c.bf16 %v1175_v51, %v1167_v50  ;;  %v1247_v47 = vld [vmem:[#allocation7 + $0x2408] sm:$0xff]  ;;  %v1249_v49 = vld [vmem:[#allocation7 + $0x2418] sm:$0xff] }
 0x13f   :  { %5663 = vmatprep.subr.bf16.mxu1 %v5662_v61  ;;  %v5682_v61 = vpack.c.bf16 %v1177_v53, %v1169_v52  ;;  %v1257_v50 = vld [vmem:[#allocation7 + $0x2458] sm:$0xff] }
 0x141   :  { %5153 = vmatpush1.bf16.msra.mxu0 %v5152_v3  ;;  %v5172_v3 = vpack.c.bf16 %v1174_v59, %v1166_v58  ;;  %v1256_v58 = vld [vmem:[#allocation7 + $0x2450] sm:$0xff]  ;;  %v1263_v59 = vld [vmem:[#allocation7 + $0x2488] sm:$0xff] }
 0x142   :  { %5665 = vmatpush1.bf16.msra.mxu1 %v5664_v4  ;;  %5155 = vmatprep.subr.bf16.mxu0 %v5154_v5  ;;  %v5684_v4 = vpack.c.bf16 %v1176_v62, %v1168_v60  ;;  %v5174_v5 = vpack.c.bf16 %v1191_v0, %v1183_v63  ;;  %v1271_v60 = vld [vmem:[#allocation7 + $0x24c8] sm:$0xff]  ;;  %v1273_v62 = vld [vmem:[#allocation7 + $0x24d8] sm:$0xff] }
 0x143   :  { %5667 = vmatprep.subr.bf16.mxu1 %v5666_v9  ;;  %v5686_v9 = vpack.c.bf16 %v1193_v2, %v1185_v1  ;;  %v5194_v1 = vpack.c.bf16 %v1271_v60, %v1263_v59  ;;  %v1262_v2 = vld [vmem:[#allocation7 + $0x2480] sm:$0xff] }
 0x145   :  { %5157 = vmatpush1.bf16.msra.mxu0 %v5156_v15  ;;  %v5176_v15 = vpack.c.bf16 %v1190_v7, %v1182_v6  ;;  %v1272_v6 = vld [vmem:[#allocation7 + $0x24d0] sm:$0xff]  ;;  %v1279_v7 = vld [vmem:[#allocation7 + $0x2508] sm:$0xff] }
 0x146   :  { %5669 = vmatpush1.bf16.msra.mxu1 %v5668_v16  ;;  %5159 = vmatprep.subr.bf16.mxu0 %v5158_v17  ;;  %v5688_v16 = vpack.c.bf16 %v1192_v10, %v1184_v8  ;;  %v5178_v17 = vpack.c.bf16 %v1207_v12, %v1199_v11  ;;  %v1287_v8 = vld [vmem:[#allocation7 + $0x2548] sm:$0xff]  ;;  %v1289_v10 = vld [vmem:[#allocation7 + $0x2558] sm:$0xff] }
 0x147   :  { %5671 = vmatprep.subr.bf16.mxu1 %v5670_v21  ;;  %v5690_v21 = vpack.c.bf16 %v1209_v14, %v1201_v13  ;;  %v5198_v13 = vpack.c.bf16 %v1287_v8, %v1279_v7  ;;  %v1278_v14 = vld [vmem:[#allocation7 + $0x2500] sm:$0xff] }
 0x148   :  { %2480 = vmatmul.mubr.f32.vlgmr.msra.gmra.mrb[0].mxu0 %v68_v27 }
 0x149   :  { %5161 = vmatpush1.bf16.msra.mxu0 %v5160_v28  ;;  %3096 = vmatmul.mubr.f32.vlgmr.msra.gmra.mrb[0].mxu1 %v68_v27  ;;  %v5180_v27 = vpack.c.bf16 %v1206_v19, %v1198_v18  ;;  %v5692_v28 = vpack.c.bf16 %v1208_v22, %v1200_v20  ;;  %v1288_v18 = vld [vmem:[#allocation7 + $0x2550] sm:$0xff]  ;;  %v1295_v19 = vld [vmem:[#allocation7 + $0x2588] sm:$0xff]  ;;  %v1305_v22 = vld [vmem:[#allocation7 + $0x25d8] sm:$0xff] }
 0x14a   :  { %5673 = vmatpush1.bf16.msra.mxu1 %v5672_v29  ;;  %5163 = vmatprep.subr.bf16.mxu0 %v5162_v30  ;;  %v5182_v29 = vpack.c.bf16 %v1223_v24, %v1215_v23  ;;  %v1214_v30 = vld [vmem:[#allocation7 + $0x2300] sm:$0xff]  ;;  %v1303_v20 = vld [vmem:[#allocation7 + $0x25c8] sm:$0xff] }
 0x14b   :  { %5675 = vmatprep.subr.bf16.mxu1 %v5674_v34  ;;  %2485 = vmatprep.mubr.f32.mxu0 %v85_v40  ;;  %v1224_v34 = vld [vmem:[#allocation7 + $0x2350] sm:$0xff]  ;;  %v5184_v39 = vpack.c.bf16 %v1222_v31, %v1214_v30  ;;  %v5202_v25 = vpack.c.bf16 %v1303_v20, %v1295_v19  ;;  %v1311_v31 = vld [vmem:[#allocation7 + $0x2608] sm:$0xff] }
 0x14c   :  { %3101 = vmatprep.mubr.f32.mxu1 %v85_v40  ;;  %2486 = vmatmul.mubr.f32.gmra.mrb[2].mxu0 %v84_v42  ;;  %v5696_v40 = vpack.c.bf16 %v1224_v34, %v1216_v32  ;;  %v1304_v30 = vld [vmem:[#allocation7 + $0x25d0] sm:$0xff]  ;;  %v1319_v32 = vld [vmem:[#allocation7 + $0x2648] sm:$0xff]  ;;  %v1321_v34 = vld [vmem:[#allocation7 + $0x2658] sm:$0xff] }
 0x14d   :  { %5165 = vmatpush1.bf16.msra.mxu0 %v5164_v41  ;;  %3102 = vmatmul.mubr.f32.gmra.mrb[2].mxu1 %v84_v42  ;;  %v5186_v41 = vpack.c.bf16 %v1239_v36, %v1231_v35  ;;  %v1230_v42 = vld [vmem:[#allocation7 + $0x2380] sm:$0xff]  ;;  %v5206_v37 = vpack.c.bf16 %v1319_v32, %v1311_v31 }
 0x14e   :  { %5677 = vmatpush1.bf16.msra.mxu1 %v5676_v43  ;;  %5167 = vmatprep.subr.bf16.mxu0 %v5166_v44  ;;  %v1238_v43 = vld [vmem:[#allocation7 + $0x23c0] sm:$0xff]  ;;  %v1232_v44 = vld [vmem:[#allocation7 + $0x2390] sm:$0xff] }
 0x14f   :  { %5679 = vmatprep.subr.bf16.mxu1 %v5678_v48  ;;  %2556 = vmatprep.mubr.f32.mxu0 %v71_v54  ;;  %v1255_v48 = vld [vmem:[#allocation7 + $0x2448] sm:$0xff]  ;;  %v5188_v51 = vpack.c.bf16 %v1238_v43, %v1230_v42  ;;  %v5700_v52 = vpack.c.bf16 %v1240_v46, %v1232_v44  ;;  %v1320_v42 = vld [vmem:[#allocation7 + $0x2650] sm:$0xff]  ;;  %v1337_v46 = vld [vmem:[#allocation7 + $0x26d8] sm:$0xff] }
 0x150   :  { %3172 = vmatprep.mubr.f32.mxu1 %v71_v54  ;;  %v5190_v53 = vpack.c.bf16 %v1255_v48, %v1247_v47  ;;  %v1246_v54 = vld [vmem:[#allocation7 + $0x2400] sm:$0xff]  ;;  %v1327_v43 = vld [vmem:[#allocation7 + $0x2688] sm:$0xff] }
 0x151   :  { %5169 = vmatpush1.bf16.msra.mxu0 %v5168_v55  ;;  %v1254_v55 = vld [vmem:[#allocation7 + $0x2440] sm:$0xff]  ;;  %v1335_v44 = vld [vmem:[#allocation7 + $0x26c8] sm:$0xff] }
 0x152   :  { %5681 = vmatpush1.bf16.msra.mxu1 %v5680_v56  ;;  %5171 = vmatprep.subr.bf16.mxu0 %v5170_v57  ;;  %v1248_v56 = vld [vmem:[#allocation7 + $0x2410] sm:$0xff]  ;;  %v5702_v57 = vpack.c.bf16 %v1257_v50, %v1249_v49  ;;  %v5192_v63 = vpack.c.bf16 %v1254_v55, %v1246_v54  ;;  %v5210_v49 = vpack.c.bf16 %v1335_v44, %v1327_v43  ;;  %v1326_v50 = vld [vmem:[#allocation7 + $0x2680] sm:$0xff]  ;;  %v1343_v55 = vld [vmem:[#allocation7 + $0x2708] sm:$0xff] }
 0x153   :  { %5683 = vmatprep.subr.bf16.mxu1 %v5682_v61  ;;  %v1265_v61 = vld [vmem:[#allocation7 + $0x2498] sm:$0xff]  ;;  %v5704_v0 = vpack.c.bf16 %v1256_v58, %v1248_v56  ;;  %v1336_v54 = vld [vmem:[#allocation7 + $0x26d0] sm:$0xff]  ;;  %v1351_v56 = vld [vmem:[#allocation7 + $0x2748] sm:$0xff] }
 0x154   :  { %v1353_v58 = vld [vmem:[#allocation7 + $0x2758] sm:$0xff]  ;;  %v70_v31 = vld [vmem:[#allocation4 + $0x40] sm:$0xff]  ;;  %v87_v44 = vld [vmem:[#allocation4 + $0xc8] sm:$0xff] }
 0x155   :  { %5173 = vmatpush1.bf16.msra.mxu0 %v5172_v3  ;;  %v1270_v3 = vld [vmem:[#allocation7 + $0x24c0] sm:$0xff]  ;;  %v1417_v43 = vld [vmem:[#allocation7 + $0x2958] sm:$0xff] }
 0x156   :  { %5685 = vmatpush1.bf16.msra.mxu1 %v5684_v4  ;;  %5175 = vmatprep.subr.bf16.mxu0 %v5174_v5  ;;  %v1264_v4 = vld [vmem:[#allocation7 + $0x2490] sm:$0xff]  ;;  %v5706_v5 = vpack.c.bf16 %v1273_v62, %v1265_v61  ;;  %v5196_v11 = vpack.c.bf16 %v1270_v3, %v1262_v2  ;;  %v5214_v61 = vpack.c.bf16 %v1351_v56, %v1343_v55  ;;  %v1342_v62 = vld [vmem:[#allocation7 + $0x2700] sm:$0xff]  ;;  %v1359_v3 = vld [vmem:[#allocation7 + $0x2788] sm:$0xff] }
 0x157   :  { %5687 = vmatprep.subr.bf16.mxu1 %v5686_v9  ;;  %v1281_v9 = vld [vmem:[#allocation7 + $0x2518] sm:$0xff]  ;;  %v5708_v12 = vpack.c.bf16 %v1272_v6, %v1264_v4  ;;  %v1352_v2 = vld [vmem:[#allocation7 + $0x2750] sm:$0xff]  ;;  %v1367_v4 = vld [vmem:[#allocation7 + $0x27c8] sm:$0xff] }
 0x158   :  { %v1369_v6 = vld [vmem:[#allocation7 + $0x27d8] sm:$0xff]  ;;  %v1431_v55 = vld [vmem:[#allocation7 + $0x29c8] sm:$0xff] }
 0x159   :  { %5177 = vmatpush1.bf16.msra.mxu0 %v5176_v15  ;;  %v1286_v15 = vld [vmem:[#allocation7 + $0x2540] sm:$0xff]  ;;  %v1425_v56 = vld [vmem:[#allocation7 + $0x2998] sm:$0xff] }
 0x15a   :  { %5689 = vmatpush1.bf16.msra.mxu1 %v5688_v16  ;;  %5179 = vmatprep.subr.bf16.mxu0 %v5178_v17  ;;  %v1280_v16 = vld [vmem:[#allocation7 + $0x2510] sm:$0xff]  ;;  %v5710_v17 = vpack.c.bf16 %v1289_v10, %v1281_v9  ;;  %v5200_v23 = vpack.c.bf16 %v1286_v15, %v1278_v14  ;;  %v5218_v9 = vpack.c.bf16 %v1367_v4, %v1359_v3  ;;  %v1358_v10 = vld [vmem:[#allocation7 + $0x2780] sm:$0xff]  ;;  %v1375_v15 = vld [vmem:[#allocation7 + $0x2808] sm:$0xff] }
 0x15b   :  { %5691 = vmatprep.subr.bf16.mxu1 %v5690_v21  ;;  %v1297_v21 = vld [vmem:[#allocation7 + $0x2598] sm:$0xff]  ;;  %v5712_v24 = vpack.c.bf16 %v1288_v18, %v1280_v16  ;;  %v1368_v14 = vld [vmem:[#allocation7 + $0x27d0] sm:$0xff]  ;;  %v1383_v16 = vld [vmem:[#allocation7 + $0x2848] sm:$0xff] }
 0x15c   :  { %v1385_v18 = vld [vmem:[#allocation7 + $0x2858] sm:$0xff]  ;;  %v1439_v3 = vld [vmem:[#allocation7 + $0x2a08] sm:$0xff] }
 0x15d   :  { %5181 = vmatpush1.bf16.msra.mxu0 %v5180_v27  ;;  %v1302_v27 = vld [vmem:[#allocation7 + $0x25c0] sm:$0xff]  ;;  %v1447_v4 = vld [vmem:[#allocation7 + $0x2a48] sm:$0xff] }
 0x15e   :  { %5693 = vmatpush1.bf16.msra.mxu1 %v5692_v28  ;;  %5183 = vmatprep.subr.bf16.mxu0 %v5182_v29  ;;  %v1296_v28 = vld [vmem:[#allocation7 + $0x2590] sm:$0xff]  ;;  %v5714_v29 = vpack.c.bf16 %v1305_v22, %v1297_v21  ;;  %v5204_v35 = vpack.c.bf16 %v1302_v27, %v1294_v26  ;;  %v5222_v21 = vpack.c.bf16 %v1383_v16, %v1375_v15  ;;  %v1374_v22 = vld [vmem:[#allocation7 + $0x2800] sm:$0xff]  ;;  %v1391_v27 = vld [vmem:[#allocation7 + $0x2888] sm:$0xff] }
 0x15f   :  { %5695 = vmatprep.subr.bf16.mxu1 %v5694_v33  ;;  %v1313_v33 = vld [vmem:[#allocation7 + $0x2618] sm:$0xff]  ;;  %v5716_v36 = vpack.c.bf16 %v1304_v30, %v1296_v28  ;;  %v1384_v26 = vld [vmem:[#allocation7 + $0x2850] sm:$0xff]  ;;  %v1399_v28 = vld [vmem:[#allocation7 + $0x28c8] sm:$0xff] }
 0x160   :  { %v1401_v30 = vld [vmem:[#allocation7 + $0x28d8] sm:$0xff]  ;;  %v1455_v15 = vld [vmem:[#allocation7 + $0x2a88] sm:$0xff] }
 0x161   :  { %5185 = vmatpush1.bf16.msra.mxu0 %v5184_v39  ;;  %v1318_v39 = vld [vmem:[#allocation7 + $0x2640] sm:$0xff]  ;;  %v1463_v16 = vld [vmem:[#allocation7 + $0x2ac8] sm:$0xff] }
 0x162   :  { %5697 = vmatpush1.bf16.msra.mxu1 %v5696_v40  ;;  %5187 = vmatprep.subr.bf16.mxu0 %v5186_v41  ;;  %v1312_v40 = vld [vmem:[#allocation7 + $0x2610] sm:$0xff]  ;;  %v5718_v41 = vpack.c.bf16 %v1321_v34, %v1313_v33  ;;  %v5208_v47 = vpack.c.bf16 %v1318_v39, %v1310_v38  ;;  %v5226_v34 = vpack.c.bf16 %v1399_v28, %v1391_v27  ;;  %v1471_v27 = vld [vmem:[#allocation7 + $0x2b08] sm:$0xff] }
 0x163   :  { %5699 = vmatprep.subr.bf16.mxu1 %v5698_v45  ;;  %v1329_v45 = vld [vmem:[#allocation7 + $0x2698] sm:$0xff]  ;;  %v5720_v48 = vpack.c.bf16 %v1320_v42, %v1312_v40  ;;  %v1400_v39 = vld [vmem:[#allocation7 + $0x28d0] sm:$0xff]  ;;  %v1407_v40 = vld [vmem:[#allocation7 + $0x2908] sm:$0xff] }
 0x164   :  { %v1409_v42 = vld [vmem:[#allocation7 + $0x2918] sm:$0xff]  ;;  %v1479_v28 = vld [vmem:[#allocation7 + $0x2b48] sm:$0xff] }
 0x165   :  { %5189 = vmatpush1.bf16.msra.mxu0 %v5188_v51  ;;  %v1334_v51 = vld [vmem:[#allocation7 + $0x26c0] sm:$0xff] }
 0x166   :  { %5701 = vmatpush1.bf16.msra.mxu1 %v5700_v52  ;;  %5191 = vmatprep.subr.bf16.mxu0 %v5190_v53  ;;  %v1328_v52 = vld [vmem:[#allocation7 + $0x2690] sm:$0xff]  ;;  %v5722_v53 = vpack.c.bf16 %v1337_v46, %v1329_v45  ;;  %v5212_v59 = vpack.c.bf16 %v1334_v51, %v1326_v50  ;;  %v86_v46 = vld [vmem:[#allocation4 + $0xc0] sm:$0xff] }
 0x167   :  { %5703 = vmatprep.subr.bf16.mxu1 %v5702_v57  ;;  %v1345_v57 = vld [vmem:[#allocation7 + $0x2718] sm:$0xff]  ;;  %v5724_v60 = vpack.c.bf16 %v1336_v54, %v1328_v52  ;;  %v1414_v50 = vld [vmem:[#allocation7 + $0x2940] sm:$0xff]  ;;  %v1408_v51 = vld [vmem:[#allocation7 + $0x2910] sm:$0xff]  ;;  %v5742_v52 = vpack.c.bf16 %v1417_v43, %v1409_v42 }
 0x168   :  { %v1423_v54 = vld [vmem:[#allocation7 + $0x2988] sm:$0xff]  ;;  %v1497_v42 = vld [vmem:[#allocation7 + $0x2bd8] sm:$0xff] }
 0x169   :  { %5193 = vmatpush1.bf16.msra.mxu0 %v5192_v63  ;;  %v1350_v63 = vld [vmem:[#allocation7 + $0x2740] sm:$0xff] }
 0x16a   :  { %5705 = vmatpush1.bf16.msra.mxu1 %v5704_v0  ;;  %5195 = vmatprep.subr.bf16.mxu0 %v5194_v1  ;;  %v1344_v0 = vld [vmem:[#allocation7 + $0x2710] sm:$0xff]  ;;  %v5726_v1 = vpack.c.bf16 %v1353_v58, %v1345_v57  ;;  %v5216_v7 = vpack.c.bf16 %v1350_v63, %v1342_v62  ;;  %v1433_v57 = vld [vmem:[#allocation7 + $0x29d8] sm:$0xff]  ;;  %v1422_v62 = vld [vmem:[#allocation7 + $0x2980] sm:$0xff] }
 0x16b   :  { %5707 = vmatprep.subr.bf16.mxu1 %v5706_v5  ;;  %v1361_v5 = vld [vmem:[#allocation7 + $0x2798] sm:$0xff]  ;;  %v5728_v8 = vpack.c.bf16 %v1352_v2, %v1344_v0  ;;  %v1430_v63 = vld [vmem:[#allocation7 + $0x29c0] sm:$0xff]  ;;  %v1424_v0 = vld [vmem:[#allocation7 + $0x2990] sm:$0xff] }
 0x16c   :  { %v73_v58 = vld [vmem:[#allocation4 + $0x58] sm:$0xff]  ;;  %v1432_v2 = vld [vmem:[#allocation7 + $0x29d0] sm:$0xff] }
 0x16d   :  { %5197 = vmatpush1.bf16.msra.mxu0 %v5196_v11  ;;  %v1366_v11 = vld [vmem:[#allocation7 + $0x27c0] sm:$0xff] }
 0x16e   :  { %5709 = vmatpush1.bf16.msra.mxu1 %v5708_v12  ;;  %5199 = vmatprep.subr.bf16.mxu0 %v5198_v13  ;;  %v1360_v12 = vld [vmem:[#allocation7 + $0x2790] sm:$0xff]  ;;  %v5730_v13 = vpack.c.bf16 %v1369_v6, %v1361_v5  ;;  %v5220_v19 = vpack.c.bf16 %v1366_v11, %v1358_v10  ;;  %v1441_v5 = vld [vmem:[#allocation7 + $0x2a18] sm:$0xff]  ;;  %v1438_v10 = vld [vmem:[#allocation7 + $0x2a00] sm:$0xff] }
 0x16f   :  { %5711 = vmatprep.subr.bf16.mxu1 %v5710_v17  ;;  %v1377_v17 = vld [vmem:[#allocation7 + $0x2818] sm:$0xff]  ;;  %v5732_v20 = vpack.c.bf16 %v1368_v14, %v1360_v12  ;;  %v1446_v11 = vld [vmem:[#allocation7 + $0x2a40] sm:$0xff]  ;;  %v1440_v12 = vld [vmem:[#allocation7 + $0x2a10] sm:$0xff] }
 0x170   :  { %v1449_v6 = vld [vmem:[#allocation7 + $0x2a58] sm:$0xff]  ;;  %v1448_v14 = vld [vmem:[#allocation7 + $0x2a50] sm:$0xff] }
 0x171   :  { %5201 = vmatpush1.bf16.msra.mxu0 %v5200_v23  ;;  %v1382_v23 = vld [vmem:[#allocation7 + $0x2840] sm:$0xff] }
 0x172   :  { %5713 = vmatpush1.bf16.msra.mxu1 %v5712_v24  ;;  %5203 = vmatprep.subr.bf16.mxu0 %v5202_v25  ;;  %v1376_v24 = vld [vmem:[#allocation7 + $0x2810] sm:$0xff]  ;;  %v5734_v25 = vpack.c.bf16 %v1385_v18, %v1377_v17  ;;  %v5224_v32 = vpack.c.bf16 %v1382_v23, %v1374_v22  ;;  %v1457_v17 = vld [vmem:[#allocation7 + $0x2a98] sm:$0xff]  ;;  %v1454_v22 = vld [vmem:[#allocation7 + $0x2a80] sm:$0xff] }
 0x173   :  { %5715 = vmatprep.subr.bf16.mxu1 %v5714_v29  ;;  %v1393_v29 = vld [vmem:[#allocation7 + $0x2898] sm:$0xff]  ;;  %v5736_v33 = vpack.c.bf16 %v1384_v26, %v1376_v24  ;;  %v1462_v23 = vld [vmem:[#allocation7 + $0x2ac0] sm:$0xff]  ;;  %v1456_v24 = vld [vmem:[#allocation7 + $0x2a90] sm:$0xff] }
 0x174   :  { %v5738_v38 = vpack.c.bf16 %v1401_v30, %v1393_v29  ;;  %v1465_v18 = vld [vmem:[#allocation7 + $0x2ad8] sm:$0xff]  ;;  %v1464_v26 = vld [vmem:[#allocation7 + $0x2ad0] sm:$0xff] }
 0x175   :  { %5205 = vmatpush1.bf16.msra.mxu0 %v5204_v35  ;;  %v1390_v35 = vld [vmem:[#allocation7 + $0x2880] sm:$0xff]  ;;  %v1473_v29 = vld [vmem:[#allocation7 + $0x2b18] sm:$0xff] }
 0x176   :  { %5717 = vmatpush1.bf16.msra.mxu1 %v5716_v36  ;;  %5207 = vmatprep.subr.bf16.mxu0 %v5206_v37  ;;  %v1398_v36 = vld [vmem:[#allocation7 + $0x28c0] sm:$0xff]  ;;  %v1392_v37 = vld [vmem:[#allocation7 + $0x2890] sm:$0xff]  ;;  %v1481_v30 = vld [vmem:[#allocation7 + $0x2b58] sm:$0xff] }
 0x177   :  { %5719 = vmatprep.subr.bf16.mxu1 %v5718_v41  ;;  %v1415_v41 = vld [vmem:[#allocation7 + $0x2948] sm:$0xff]  ;;  %v5228_v45 = vpack.c.bf16 %v1398_v36, %v1390_v35  ;;  %v1478_v35 = vld [vmem:[#allocation7 + $0x2b40] sm:$0xff]  ;;  %v1472_v36 = vld [vmem:[#allocation7 + $0x2b10] sm:$0xff] }
 0x179   :  { %5209 = vmatpush1.bf16.msra.mxu0 %v5208_v47  ;;  %v5740_v47 = vpack.c.bf16 %v1400_v39, %v1392_v37  ;;  %v5758_v37 = vpack.c.bf16 %v1481_v30, %v1473_v29  ;;  %v1487_v39 = vld [vmem:[#allocation7 + $0x2b88] sm:$0xff]  ;;  %v1550_v30 = vld [vmem:[#allocation7 + $0x2d80] sm:$0xff] }
 0x17a   :  { %5721 = vmatpush1.bf16.msra.mxu1 %v5720_v48  ;;  %5211 = vmatprep.subr.bf16.mxu0 %v5210_v49  ;;  %v5230_v48 = vpack.c.bf16 %v1415_v41, %v1407_v40  ;;  %v1406_v49 = vld [vmem:[#allocation7 + $0x2900] sm:$0xff]  ;;  %v1495_v40 = vld [vmem:[#allocation7 + $0x2bc8] sm:$0xff]  ;;  %v1489_v41 = vld [vmem:[#allocation7 + $0x2b98] sm:$0xff] }
 0x17b   :  { %5723 = vmatprep.subr.bf16.mxu1 %v5722_v53  ;;  %v1416_v53 = vld [vmem:[#allocation7 + $0x2950] sm:$0xff] }
 0x17d   :  { %5213 = vmatpush1.bf16.msra.mxu0 %v5212_v59  ;;  %v5232_v59 = vpack.c.bf16 %v1414_v50, %v1406_v49  ;;  %v5762_v49 = vpack.c.bf16 %v1497_v42, %v1489_v41  ;;  %v1496_v50 = vld [vmem:[#allocation7 + $0x2bd0] sm:$0xff]  ;;  %v1566_v42 = vld [vmem:[#allocation7 + $0x2e00] sm:$0xff] }
 0x17e   :  { %5725 = vmatpush1.bf16.msra.mxu1 %v5724_v60  ;;  %5215 = vmatprep.subr.bf16.mxu0 %v5214_v61  ;;  %v5744_v60 = vpack.c.bf16 %v1416_v53, %v1408_v51  ;;  %v5234_v61 = vpack.c.bf16 %v1431_v55, %v1423_v54  ;;  %v1503_v51 = vld [vmem:[#allocation7 + $0x2c08] sm:$0xff]  ;;  %v1505_v53 = vld [vmem:[#allocation7 + $0x2c18] sm:$0xff] }
 0x17f   :  { %5727 = vmatprep.subr.bf16.mxu1 %v5726_v1  ;;  %v5746_v1 = vpack.c.bf16 %v1433_v57, %v1425_v56  ;;  %v1513_v54 = vld [vmem:[#allocation7 + $0x2c58] sm:$0xff] }
 0x181   :  { %5217 = vmatpush1.bf16.msra.mxu0 %v5216_v7  ;;  %v5236_v7 = vpack.c.bf16 %v1430_v63, %v1422_v62  ;;  %v1512_v62 = vld [vmem:[#allocation7 + $0x2c50] sm:$0xff]  ;;  %v1519_v63 = vld [vmem:[#allocation7 + $0x2c88] sm:$0xff] }
 0x182   :  { %5729 = vmatpush1.bf16.msra.mxu1 %v5728_v8  ;;  %5219 = vmatprep.subr.bf16.mxu0 %v5218_v9  ;;  %v5748_v8 = vpack.c.bf16 %v1432_v2, %v1424_v0  ;;  %v5238_v9 = vpack.c.bf16 %v1447_v4, %v1439_v3  ;;  %v1527_v0 = vld [vmem:[#allocation7 + $0x2cc8] sm:$0xff]  ;;  %v1529_v2 = vld [vmem:[#allocation7 + $0x2cd8] sm:$0xff] }
 0x183   :  { %5731 = vmatprep.subr.bf16.mxu1 %v5730_v13  ;;  %v5750_v13 = vpack.c.bf16 %v1449_v6, %v1441_v5  ;;  %v5258_v5 = vpack.c.bf16 %v1527_v0, %v1519_v63  ;;  %v1518_v6 = vld [vmem:[#allocation7 + $0x2c80] sm:$0xff] }
 0x185   :  { %5221 = vmatpush1.bf16.msra.mxu0 %v5220_v19  ;;  %v5240_v19 = vpack.c.bf16 %v1446_v11, %v1438_v10  ;;  %v1528_v10 = vld [vmem:[#allocation7 + $0x2cd0] sm:$0xff]  ;;  %v1535_v11 = vld [vmem:[#allocation7 + $0x2d08] sm:$0xff] }
 0x186   :  { %5733 = vmatpush1.bf16.msra.mxu1 %v5732_v20  ;;  %5223 = vmatprep.subr.bf16.mxu0 %v5222_v21  ;;  %v5752_v20 = vpack.c.bf16 %v1448_v14, %v1440_v12  ;;  %v5242_v21 = vpack.c.bf16 %v1463_v16, %v1455_v15  ;;  %v1543_v12 = vld [vmem:[#allocation7 + $0x2d48] sm:$0xff]  ;;  %v1545_v14 = vld [vmem:[#allocation7 + $0x2d58] sm:$0xff] }
 0x187   :  { %5735 = vmatprep.subr.bf16.mxu1 %v5734_v25  ;;  %v5754_v25 = vpack.c.bf16 %v1465_v18, %v1457_v17  ;;  %v5262_v17 = vpack.c.bf16 %v1543_v12, %v1535_v11  ;;  %v1534_v18 = vld [vmem:[#allocation7 + $0x2d00] sm:$0xff] }
 0x188   :  { %2557 = vmatmul.mubr.f32.vlgmr.msra.gmra.mrb[0].mxu0 %v70_v31 }
 0x189   :  { %5225 = vmatpush1.bf16.msra.mxu0 %v5224_v32  ;;  %3173 = vmatmul.mubr.f32.vlgmr.msra.gmra.mrb[0].mxu1 %v70_v31  ;;  %v5244_v31 = vpack.c.bf16 %v1462_v23, %v1454_v22  ;;  %v5756_v32 = vpack.c.bf16 %v1464_v26, %v1456_v24  ;;  %v1544_v22 = vld [vmem:[#allocation7 + $0x2d50] sm:$0xff]  ;;  %v1551_v23 = vld [vmem:[#allocation7 + $0x2d88] sm:$0xff]  ;;  %v1561_v26 = vld [vmem:[#allocation7 + $0x2dd8] sm:$0xff] }
 0x18a   :  { %5737 = vmatpush1.bf16.msra.mxu1 %v5736_v33  ;;  %5227 = vmatprep.subr.bf16.mxu0 %v5226_v34  ;;  %v5246_v33 = vpack.c.bf16 %v1479_v28, %v1471_v27  ;;  %v1470_v34 = vld [vmem:[#allocation7 + $0x2b00] sm:$0xff]  ;;  %v1559_v24 = vld [vmem:[#allocation7 + $0x2dc8] sm:$0xff] }
 0x18b   :  { %5739 = vmatprep.subr.bf16.mxu1 %v5738_v38  ;;  %2562 = vmatprep.mubr.f32.mxu0 %v87_v44  ;;  %v1480_v38 = vld [vmem:[#allocation7 + $0x2b50] sm:$0xff]  ;;  %v5248_v43 = vpack.c.bf16 %v1478_v35, %v1470_v34  ;;  %v5266_v29 = vpack.c.bf16 %v1559_v24, %v1551_v23  ;;  %v1567_v35 = vld [vmem:[#allocation7 + $0x2e08] sm:$0xff] }
 0x18c   :  { %3178 = vmatprep.mubr.f32.mxu1 %v87_v44  ;;  %2563 = vmatmul.mubr.f32.gmra.mrb[2].mxu0 %v86_v46  ;;  %v5760_v44 = vpack.c.bf16 %v1480_v38, %v1472_v36  ;;  %v1560_v34 = vld [vmem:[#allocation7 + $0x2dd0] sm:$0xff]  ;;  %v1575_v36 = vld [vmem:[#allocation7 + $0x2e48] sm:$0xff]  ;;  %v1577_v38 = vld [vmem:[#allocation7 + $0x2e58] sm:$0xff] }
 0x18d   :  { %5229 = vmatpush1.bf16.msra.mxu0 %v5228_v45  ;;  %3179 = vmatmul.mubr.f32.gmra.mrb[2].mxu1 %v86_v46  ;;  %v5250_v45 = vpack.c.bf16 %v1495_v40, %v1487_v39  ;;  %v1486_v46 = vld [vmem:[#allocation7 + $0x2b80] sm:$0xff]  ;;  %v5270_v41 = vpack.c.bf16 %v1575_v36, %v1567_v35  ;;  %v72_v35 = vld [vmem:[#allocation4 + $0x50] sm:$0xff] }
 0x18e   :  { %5741 = vmatpush1.bf16.msra.mxu1 %v5740_v47  ;;  %5231 = vmatprep.subr.bf16.mxu0 %v5230_v48  ;;  %v1494_v47 = vld [vmem:[#allocation7 + $0x2bc0] sm:$0xff]  ;;  %v1488_v48 = vld [vmem:[#allocation7 + $0x2b90] sm:$0xff] }
 0x18f   :  { %5743 = vmatprep.subr.bf16.mxu1 %v5742_v52  ;;  %2633 = vmatprep.mubr.f32.mxu0 %v73_v58  ;;  %v1511_v52 = vld [vmem:[#allocation7 + $0x2c48] sm:$0xff]  ;;  %v5252_v55 = vpack.c.bf16 %v1494_v47, %v1486_v46  ;;  %v5764_v56 = vpack.c.bf16 %v1496_v50, %v1488_v48  ;;  %v1576_v46 = vld [vmem:[#allocation7 + $0x2e50] sm:$0xff]  ;;  %v1593_v50 = vld [vmem:[#allocation7 + $0x2ed8] sm:$0xff] }
 0x190   :  { %3249 = vmatprep.mubr.f32.mxu1 %v73_v58  ;;  %v5254_v57 = vpack.c.bf16 %v1511_v52, %v1503_v51  ;;  %v1502_v58 = vld [vmem:[#allocation7 + $0x2c00] sm:$0xff]  ;;  %v1583_v47 = vld [vmem:[#allocation7 + $0x2e88] sm:$0xff] }
 0x191   :  { %5233 = vmatpush1.bf16.msra.mxu0 %v5232_v59  ;;  %v1510_v59 = vld [vmem:[#allocation7 + $0x2c40] sm:$0xff]  ;;  %v1591_v48 = vld [vmem:[#allocation7 + $0x2ec8] sm:$0xff] }
 0x192   :  { %5745 = vmatpush1.bf16.msra.mxu1 %v5744_v60  ;;  %5235 = vmatprep.subr.bf16.mxu0 %v5234_v61  ;;  %v1504_v60 = vld [vmem:[#allocation7 + $0x2c10] sm:$0xff]  ;;  %v5766_v61 = vpack.c.bf16 %v1513_v54, %v1505_v53  ;;  %v5256_v3 = vpack.c.bf16 %v1510_v59, %v1502_v58  ;;  %v5274_v53 = vpack.c.bf16 %v1591_v48, %v1583_v47  ;;  %v1582_v54 = vld [vmem:[#allocation7 + $0x2e80] sm:$0xff]  ;;  %v1599_v59 = vld [vmem:[#allocation7 + $0x2f08] sm:$0xff] }
 0x193   :  { %5747 = vmatprep.subr.bf16.mxu1 %v5746_v1  ;;  %v1521_v1 = vld [vmem:[#allocation7 + $0x2c98] sm:$0xff]  ;;  %v5768_v4 = vpack.c.bf16 %v1512_v62, %v1504_v60  ;;  %v1592_v58 = vld [vmem:[#allocation7 + $0x2ed0] sm:$0xff]  ;;  %v1607_v60 = vld [vmem:[#allocation7 + $0x2f48] sm:$0xff] }
 0x194   :  { %v1609_v62 = vld [vmem:[#allocation7 + $0x2f58] sm:$0xff] }
 0x195   :  { %5237 = vmatpush1.bf16.msra.mxu0 %v5236_v7  ;;  %v1526_v7 = vld [vmem:[#allocation7 + $0x2cc0] sm:$0xff]  ;;  %v1673_v47 = vld [vmem:[#allocation7 + $0x3158] sm:$0xff] }
 0x196   :  { %5749 = vmatpush1.bf16.msra.mxu1 %v5748_v8  ;;  %5239 = vmatprep.subr.bf16.mxu0 %v5238_v9  ;;  %v1520_v8 = vld [vmem:[#allocation7 + $0x2c90] sm:$0xff]  ;;  %v5770_v9 = vpack.c.bf16 %v1529_v2, %v1521_v1  ;;  %v5260_v15 = vpack.c.bf16 %v1526_v7, %v1518_v6  ;;  %v5278_v1 = vpack.c.bf16 %v1607_v60, %v1599_v59  ;;  %v1598_v2 = vld [vmem:[#allocation7 + $0x2f00] sm:$0xff]  ;;  %v1615_v7 = vld [vmem:[#allocation7 + $0x2f88] sm:$0xff] }
 0x197   :  { %5751 = vmatprep.subr.bf16.mxu1 %v5750_v13  ;;  %v1537_v13 = vld [vmem:[#allocation7 + $0x2d18] sm:$0xff]  ;;  %v5772_v16 = vpack.c.bf16 %v1528_v10, %v1520_v8  ;;  %v1608_v6 = vld [vmem:[#allocation7 + $0x2f50] sm:$0xff]  ;;  %v1623_v8 = vld [vmem:[#allocation7 + $0x2fc8] sm:$0xff] }
 0x198   :  { %v1625_v10 = vld [vmem:[#allocation7 + $0x2fd8] sm:$0xff]  ;;  %v1687_v59 = vld [vmem:[#allocation7 + $0x31c8] sm:$0xff] }
 0x199   :  { %5241 = vmatpush1.bf16.msra.mxu0 %v5240_v19  ;;  %v1542_v19 = vld [vmem:[#allocation7 + $0x2d40] sm:$0xff]  ;;  %v89_v48 = vld [vmem:[#allocation4 + $0xd8] sm:$0xff] }
 0x19a   :  { %5753 = vmatpush1.bf16.msra.mxu1 %v5752_v20  ;;  %5243 = vmatprep.subr.bf16.mxu0 %v5242_v21  ;;  %v1536_v20 = vld [vmem:[#allocation7 + $0x2d10] sm:$0xff]  ;;  %v5774_v21 = vpack.c.bf16 %v1545_v14, %v1537_v13  ;;  %v5264_v27 = vpack.c.bf16 %v1542_v19, %v1534_v18  ;;  %v5282_v13 = vpack.c.bf16 %v1623_v8, %v1615_v7  ;;  %v1614_v14 = vld [vmem:[#allocation7 + $0x2f80] sm:$0xff]  ;;  %v1631_v19 = vld [vmem:[#allocation7 + $0x3008] sm:$0xff] }
 0x19b   :  { %5755 = vmatprep.subr.bf16.mxu1 %v5754_v25  ;;  %v1553_v25 = vld [vmem:[#allocation7 + $0x2d98] sm:$0xff]  ;;  %v5776_v28 = vpack.c.bf16 %v1544_v22, %v1536_v20  ;;  %v1624_v18 = vld [vmem:[#allocation7 + $0x2fd0] sm:$0xff]  ;;  %v1639_v20 = vld [vmem:[#allocation7 + $0x3048] sm:$0xff] }
 0x19c   :  { %v1641_v22 = vld [vmem:[#allocation7 + $0x3058] sm:$0xff]  ;;  %v1695_v7 = vld [vmem:[#allocation7 + $0x3208] sm:$0xff] }
 0x19d   :  { %5245 = vmatpush1.bf16.msra.mxu0 %v5244_v31  ;;  %v1558_v31 = vld [vmem:[#allocation7 + $0x2dc0] sm:$0xff]  ;;  %v1681_v60 = vld [vmem:[#allocation7 + $0x3198] sm:$0xff]  ;;  %v1703_v8 = vld [vmem:[#allocation7 + $0x3248] sm:$0xff] }
 0x19e   :  { %5757 = vmatpush1.bf16.msra.mxu1 %v5756_v32  ;;  %5247 = vmatprep.subr.bf16.mxu0 %v5246_v33  ;;  %v1552_v32 = vld [vmem:[#allocation7 + $0x2d90] sm:$0xff]  ;;  %v5778_v33 = vpack.c.bf16 %v1561_v26, %v1553_v25  ;;  %v5268_v39 = vpack.c.bf16 %v1558_v31, %v1550_v30  ;;  %v5286_v25 = vpack.c.bf16 %v1639_v20, %v1631_v19  ;;  %v1630_v26 = vld [vmem:[#allocation7 + $0x3000] sm:$0xff]  ;;  %v1647_v31 = vld [vmem:[#allocation7 + $0x3088] sm:$0xff] }
 0x19f   :  { %5759 = vmatprep.subr.bf16.mxu1 %v5758_v37  ;;  %v1569_v37 = vld [vmem:[#allocation7 + $0x2e18] sm:$0xff]  ;;  %v5780_v40 = vpack.c.bf16 %v1560_v34, %v1552_v32  ;;  %v1640_v30 = vld [vmem:[#allocation7 + $0x3050] sm:$0xff]  ;;  %v1655_v32 = vld [vmem:[#allocation7 + $0x30c8] sm:$0xff] }
 0x1a0   :  { %v1657_v34 = vld [vmem:[#allocation7 + $0x30d8] sm:$0xff]  ;;  %v1711_v19 = vld [vmem:[#allocation7 + $0x3288] sm:$0xff] }
 0x1a1   :  { %5249 = vmatpush1.bf16.msra.mxu0 %v5248_v43  ;;  %v1574_v43 = vld [vmem:[#allocation7 + $0x2e40] sm:$0xff]  ;;  %v1719_v20 = vld [vmem:[#allocation7 + $0x32c8] sm:$0xff] }
 0x1a2   :  { %5761 = vmatpush1.bf16.msra.mxu1 %v5760_v44  ;;  %5251 = vmatprep.subr.bf16.mxu0 %v5250_v45  ;;  %v1568_v44 = vld [vmem:[#allocation7 + $0x2e10] sm:$0xff]  ;;  %v5782_v45 = vpack.c.bf16 %v1577_v38, %v1569_v37  ;;  %v5272_v51 = vpack.c.bf16 %v1574_v43, %v1566_v42  ;;  %v5290_v38 = vpack.c.bf16 %v1655_v32, %v1647_v31  ;;  %v1727_v31 = vld [vmem:[#allocation7 + $0x3308] sm:$0xff] }
 0x1a3   :  { %5763 = vmatprep.subr.bf16.mxu1 %v5762_v49  ;;  %v1585_v49 = vld [vmem:[#allocation7 + $0x2e98] sm:$0xff]  ;;  %v5784_v52 = vpack.c.bf16 %v1576_v46, %v1568_v44  ;;  %v1656_v43 = vld [vmem:[#allocation7 + $0x30d0] sm:$0xff]  ;;  %v1663_v44 = vld [vmem:[#allocation7 + $0x3108] sm:$0xff] }
 0x1a4   :  { %v1665_v46 = vld [vmem:[#allocation7 + $0x3118] sm:$0xff]  ;;  %v1735_v32 = vld [vmem:[#allocation7 + $0x3348] sm:$0xff] }
 0x1a5   :  { %5253 = vmatpush1.bf16.msra.mxu0 %v5252_v55  ;;  %v1590_v55 = vld [vmem:[#allocation7 + $0x2ec0] sm:$0xff] }
 0x1a6   :  { %5765 = vmatpush1.bf16.msra.mxu1 %v5764_v56  ;;  %5255 = vmatprep.subr.bf16.mxu0 %v5254_v57  ;;  %v1584_v56 = vld [vmem:[#allocation7 + $0x2e90] sm:$0xff]  ;;  %v5786_v57 = vpack.c.bf16 %v1593_v50, %v1585_v49  ;;  %v5276_v63 = vpack.c.bf16 %v1590_v55, %v1582_v54  ;;  %v1670_v54 = vld [vmem:[#allocation7 + $0x3140] sm:$0xff] }
 0x1a7   :  { %5767 = vmatprep.subr.bf16.mxu1 %v5766_v61  ;;  %v1601_v61 = vld [vmem:[#allocation7 + $0x2f18] sm:$0xff]  ;;  %v5788_v0 = vpack.c.bf16 %v1592_v58, %v1584_v56  ;;  %v88_v50 = vld [vmem:[#allocation4 + $0xd0] sm:$0xff]  ;;  %v5806_v56 = vpack.c.bf16 %v1673_v47, %v1665_v46  ;;  %v1679_v58 = vld [vmem:[#allocation7 + $0x3188] sm:$0xff] }
 0x1a8   :  { %v1664_v55 = vld [vmem:[#allocation7 + $0x3110] sm:$0xff]  ;;  %v1753_v46 = vld [vmem:[#allocation7 + $0x33d8] sm:$0xff] }
 0x1a9   :  { %5257 = vmatpush1.bf16.msra.mxu0 %v5256_v3  ;;  %v1606_v3 = vld [vmem:[#allocation7 + $0x2f40] sm:$0xff] }
 0x1aa   :  { %5769 = vmatpush1.bf16.msra.mxu1 %v5768_v4  ;;  %5259 = vmatprep.subr.bf16.mxu0 %v5258_v5  ;;  %v1600_v4 = vld [vmem:[#allocation7 + $0x2f10] sm:$0xff]  ;;  %v5790_v5 = vpack.c.bf16 %v1609_v62, %v1601_v61  ;;  %v5280_v11 = vpack.c.bf16 %v1606_v3, %v1598_v2  ;;  %v1689_v61 = vld [vmem:[#allocation7 + $0x31d8] sm:$0xff]  ;;  %v75_v62 = vld [vmem:[#allocation4 + $0x68] sm:$0xff] }
 0x1ab   :  { %5771 = vmatprep.subr.bf16.mxu1 %v5770_v9  ;;  %v1617_v9 = vld [vmem:[#allocation7 + $0x2f98] sm:$0xff]  ;;  %v5792_v12 = vpack.c.bf16 %v1608_v6, %v1600_v4  ;;  %v1678_v2 = vld [vmem:[#allocation7 + $0x3180] sm:$0xff]  ;;  %v1680_v4 = vld [vmem:[#allocation7 + $0x3190] sm:$0xff] }
 0x1ac   :  { %v1686_v3 = vld [vmem:[#allocation7 + $0x31c0] sm:$0xff]  ;;  %v1688_v6 = vld [vmem:[#allocation7 + $0x31d0] sm:$0xff] }
 0x1ad   :  { %5261 = vmatpush1.bf16.msra.mxu0 %v5260_v15  ;;  %v1622_v15 = vld [vmem:[#allocation7 + $0x2fc0] sm:$0xff] }
 0x1ae   :  { %5773 = vmatpush1.bf16.msra.mxu1 %v5772_v16  ;;  %5263 = vmatprep.subr.bf16.mxu0 %v5262_v17  ;;  %v1616_v16 = vld [vmem:[#allocation7 + $0x2f90] sm:$0xff]  ;;  %v5794_v17 = vpack.c.bf16 %v1625_v10, %v1617_v9  ;;  %v5284_v23 = vpack.c.bf16 %v1622_v15, %v1614_v14  ;;  %v1697_v9 = vld [vmem:[#allocation7 + $0x3218] sm:$0xff]  ;;  %v1694_v14 = vld [vmem:[#allocation7 + $0x3200] sm:$0xff] }
 0x1af   :  { %5775 = vmatprep.subr.bf16.mxu1 %v5774_v21  ;;  %v1633_v21 = vld [vmem:[#allocation7 + $0x3018] sm:$0xff]  ;;  %v5796_v24 = vpack.c.bf16 %v1624_v18, %v1616_v16  ;;  %v1702_v15 = vld [vmem:[#allocation7 + $0x3240] sm:$0xff]  ;;  %v1696_v16 = vld [vmem:[#allocation7 + $0x3210] sm:$0xff] }
 0x1b0   :  { %v1705_v10 = vld [vmem:[#allocation7 + $0x3258] sm:$0xff]  ;;  %v1704_v18 = vld [vmem:[#allocation7 + $0x3250] sm:$0xff] }
 0x1b1   :  { %5265 = vmatpush1.bf16.msra.mxu0 %v5264_v27  ;;  %v1638_v27 = vld [vmem:[#allocation7 + $0x3040] sm:$0xff] }
 0x1b2   :  { %5777 = vmatpush1.bf16.msra.mxu1 %v5776_v28  ;;  %5267 = vmatprep.subr.bf16.mxu0 %v5266_v29  ;;  %v1632_v28 = vld [vmem:[#allocation7 + $0x3010] sm:$0xff]  ;;  %v5798_v29 = vpack.c.bf16 %v1641_v22, %v1633_v21  ;;  %v5288_v36 = vpack.c.bf16 %v1638_v27, %v1630_v26  ;;  %v1713_v21 = vld [vmem:[#allocation7 + $0x3298] sm:$0xff]  ;;  %v1710_v26 = vld [vmem:[#allocation7 + $0x3280] sm:$0xff] }
 0x1b3   :  { %5779 = vmatprep.subr.bf16.mxu1 %v5778_v33  ;;  %v1649_v33 = vld [vmem:[#allocation7 + $0x3098] sm:$0xff]  ;;  %v5800_v37 = vpack.c.bf16 %v1640_v30, %v1632_v28  ;;  %v1718_v27 = vld [vmem:[#allocation7 + $0x32c0] sm:$0xff]  ;;  %v1712_v28 = vld [vmem:[#allocation7 + $0x3290] sm:$0xff] }
 0x1b4   :  { %v5802_v42 = vpack.c.bf16 %v1657_v34, %v1649_v33  ;;  %v1721_v22 = vld [vmem:[#allocation7 + $0x32d8] sm:$0xff]  ;;  %v1720_v30 = vld [vmem:[#allocation7 + $0x32d0] sm:$0xff] }
 0x1b5   :  { %5269 = vmatpush1.bf16.msra.mxu0 %v5268_v39  ;;  %v1646_v39 = vld [vmem:[#allocation7 + $0x3080] sm:$0xff]  ;;  %v1729_v33 = vld [vmem:[#allocation7 + $0x3318] sm:$0xff] }
 0x1b6   :  { %5781 = vmatpush1.bf16.msra.mxu1 %v5780_v40  ;;  %5271 = vmatprep.subr.bf16.mxu0 %v5270_v41  ;;  %v1654_v40 = vld [vmem:[#allocation7 + $0x30c0] sm:$0xff]  ;;  %v1648_v41 = vld [vmem:[#allocation7 + $0x3090] sm:$0xff]  ;;  %v1737_v34 = vld [vmem:[#allocation7 + $0x3358] sm:$0xff] }
 0x1b7   :  { %5783 = vmatprep.subr.bf16.mxu1 %v5782_v45  ;;  %v1671_v45 = vld [vmem:[#allocation7 + $0x3148] sm:$0xff]  ;;  %v5292_v49 = vpack.c.bf16 %v1654_v40, %v1646_v39  ;;  %v1734_v39 = vld [vmem:[#allocation7 + $0x3340] sm:$0xff]  ;;  %v1728_v40 = vld [vmem:[#allocation7 + $0x3310] sm:$0xff] }
 0x1b9   :  { %5273 = vmatpush1.bf16.msra.mxu0 %v5272_v51  ;;  %v5804_v51 = vpack.c.bf16 %v1656_v43, %v1648_v41  ;;  %v5822_v41 = vpack.c.bf16 %v1737_v34, %v1729_v33  ;;  %v1743_v43 = vld [vmem:[#allocation7 + $0x3388] sm:$0xff]  ;;  %v1806_v34 = vld [vmem:[#allocation7 + $0x3580] sm:$0xff] }
 0x1ba   :  { %5785 = vmatpush1.bf16.msra.mxu1 %v5784_v52  ;;  %5275 = vmatprep.subr.bf16.mxu0 %v5274_v53  ;;  %v5294_v52 = vpack.c.bf16 %v1671_v45, %v1663_v44  ;;  %v1662_v53 = vld [vmem:[#allocation7 + $0x3100] sm:$0xff]  ;;  %v1751_v44 = vld [vmem:[#allocation7 + $0x33c8] sm:$0xff]  ;;  %v1745_v45 = vld [vmem:[#allocation7 + $0x3398] sm:$0xff] }
 0x1bb   :  { %5787 = vmatprep.subr.bf16.mxu1 %v5786_v57  ;;  %v1672_v57 = vld [vmem:[#allocation7 + $0x3150] sm:$0xff] }
 0x1bd   :  { %5277 = vmatpush1.bf16.msra.mxu0 %v5276_v63  ;;  %v5296_v63 = vpack.c.bf16 %v1670_v54, %v1662_v53  ;;  %v5826_v53 = vpack.c.bf16 %v1753_v46, %v1745_v45  ;;  %v1752_v54 = vld [vmem:[#allocation7 + $0x33d0] sm:$0xff]  ;;  %v1822_v46 = vld [vmem:[#allocation7 + $0x3600] sm:$0xff] }
 0x1be   :  { %5789 = vmatpush1.bf16.msra.mxu1 %v5788_v0  ;;  %5279 = vmatprep.subr.bf16.mxu0 %v5278_v1  ;;  %v5808_v0 = vpack.c.bf16 %v1672_v57, %v1664_v55  ;;  %v5298_v1 = vpack.c.bf16 %v1687_v59, %v1679_v58  ;;  %v1759_v55 = vld [vmem:[#allocation7 + $0x3408] sm:$0xff]  ;;  %v1761_v57 = vld [vmem:[#allocation7 + $0x3418] sm:$0xff] }
 0x1bf   :  { %5791 = vmatprep.subr.bf16.mxu1 %v5790_v5  ;;  %v5810_v5 = vpack.c.bf16 %v1689_v61, %v1681_v60  ;;  %v1769_v58 = vld [vmem:[#allocation7 + $0x3458] sm:$0xff] }
 0x1c1   :  { %5281 = vmatpush1.bf16.msra.mxu0 %v5280_v11  ;;  %v5300_v11 = vpack.c.bf16 %v1686_v3, %v1678_v2  ;;  %v1768_v2 = vld [vmem:[#allocation7 + $0x3450] sm:$0xff]  ;;  %v1775_v3 = vld [vmem:[#allocation7 + $0x3488] sm:$0xff] }
 0x1c2   :  { %5793 = vmatpush1.bf16.msra.mxu1 %v5792_v12  ;;  %5283 = vmatprep.subr.bf16.mxu0 %v5282_v13  ;;  %v5812_v12 = vpack.c.bf16 %v1688_v6, %v1680_v4  ;;  %v5302_v13 = vpack.c.bf16 %v1703_v8, %v1695_v7  ;;  %v1783_v4 = vld [vmem:[#allocation7 + $0x34c8] sm:$0xff]  ;;  %v1785_v6 = vld [vmem:[#allocation7 + $0x34d8] sm:$0xff] }
 0x1c3   :  { %5795 = vmatprep.subr.bf16.mxu1 %v5794_v17  ;;  %v5814_v17 = vpack.c.bf16 %v1705_v10, %v1697_v9  ;;  %v5322_v9 = vpack.c.bf16 %v1783_v4, %v1775_v3  ;;  %v1774_v10 = vld [vmem:[#allocation7 + $0x3480] sm:$0xff] }
 0x1c5   :  { %5285 = vmatpush1.bf16.msra.mxu0 %v5284_v23  ;;  %v5304_v23 = vpack.c.bf16 %v1702_v15, %v1694_v14  ;;  %v1784_v14 = vld [vmem:[#allocation7 + $0x34d0] sm:$0xff]  ;;  %v1791_v15 = vld [vmem:[#allocation7 + $0x3508] sm:$0xff] }
 0x1c6   :  { %5797 = vmatpush1.bf16.msra.mxu1 %v5796_v24  ;;  %5287 = vmatprep.subr.bf16.mxu0 %v5286_v25  ;;  %v5816_v24 = vpack.c.bf16 %v1704_v18, %v1696_v16  ;;  %v5306_v25 = vpack.c.bf16 %v1719_v20, %v1711_v19  ;;  %v1799_v16 = vld [vmem:[#allocation7 + $0x3548] sm:$0xff]  ;;  %v1801_v18 = vld [vmem:[#allocation7 + $0x3558] sm:$0xff] }
 0x1c7   :  { %5799 = vmatprep.subr.bf16.mxu1 %v5798_v29  ;;  %v5818_v29 = vpack.c.bf16 %v1721_v22, %v1713_v21  ;;  %v5326_v21 = vpack.c.bf16 %v1799_v16, %v1791_v15  ;;  %v1790_v22 = vld [vmem:[#allocation7 + $0x3500] sm:$0xff] }
 0x1c8   :  { %2634 = vmatmul.mubr.f32.vlgmr.msra.gmra.mrb[0].mxu0 %v72_v35 }
 0x1c9   :  { %5289 = vmatpush1.bf16.msra.mxu0 %v5288_v36  ;;  %3250 = vmatmul.mubr.f32.vlgmr.msra.gmra.mrb[0].mxu1 %v72_v35  ;;  %v5308_v35 = vpack.c.bf16 %v1718_v27, %v1710_v26  ;;  %v5820_v36 = vpack.c.bf16 %v1720_v30, %v1712_v28  ;;  %v1800_v26 = vld [vmem:[#allocation7 + $0x3550] sm:$0xff]  ;;  %v1807_v27 = vld [vmem:[#allocation7 + $0x3588] sm:$0xff]  ;;  %v1817_v30 = vld [vmem:[#allocation7 + $0x35d8] sm:$0xff] }
 0x1ca   :  { %5801 = vmatpush1.bf16.msra.mxu1 %v5800_v37  ;;  %5291 = vmatprep.subr.bf16.mxu0 %v5290_v38  ;;  %v5310_v37 = vpack.c.bf16 %v1735_v32, %v1727_v31  ;;  %v1726_v38 = vld [vmem:[#allocation7 + $0x3300] sm:$0xff]  ;;  %v1815_v28 = vld [vmem:[#allocation7 + $0x35c8] sm:$0xff] }
 0x1cb   :  { %5803 = vmatprep.subr.bf16.mxu1 %v5802_v42  ;;  %2639 = vmatprep.mubr.f32.mxu0 %v89_v48  ;;  %v1736_v42 = vld [vmem:[#allocation7 + $0x3350] sm:$0xff]  ;;  %v5312_v47 = vpack.c.bf16 %v1734_v39, %v1726_v38  ;;  %v5330_v33 = vpack.c.bf16 %v1815_v28, %v1807_v27  ;;  %v1823_v39 = vld [vmem:[#allocation7 + $0x3608] sm:$0xff] }
 0x1cc   :  { %3255 = vmatprep.mubr.f32.mxu1 %v89_v48  ;;  %2640 = vmatmul.mubr.f32.gmra.mrb[2].mxu0 %v88_v50  ;;  %v5824_v48 = vpack.c.bf16 %v1736_v42, %v1728_v40  ;;  %v1816_v38 = vld [vmem:[#allocation7 + $0x35d0] sm:$0xff]  ;;  %v1831_v40 = vld [vmem:[#allocation7 + $0x3648] sm:$0xff]  ;;  %v1833_v42 = vld [vmem:[#allocation7 + $0x3658] sm:$0xff] }
 0x1cd   :  { %5293 = vmatpush1.bf16.msra.mxu0 %v5292_v49  ;;  %3256 = vmatmul.mubr.f32.gmra.mrb[2].mxu1 %v88_v50  ;;  %v5314_v49 = vpack.c.bf16 %v1751_v44, %v1743_v43  ;;  %v1742_v50 = vld [vmem:[#allocation7 + $0x3380] sm:$0xff]  ;;  %v5334_v45 = vpack.c.bf16 %v1831_v40, %v1823_v39 }
 0x1ce   :  { %5805 = vmatpush1.bf16.msra.mxu1 %v5804_v51  ;;  %5295 = vmatprep.subr.bf16.mxu0 %v5294_v52  ;;  %v1750_v51 = vld [vmem:[#allocation7 + $0x33c0] sm:$0xff]  ;;  %v1744_v52 = vld [vmem:[#allocation7 + $0x3390] sm:$0xff] }
 0x1cf   :  { %5807 = vmatprep.subr.bf16.mxu1 %v5806_v56  ;;  %2710 = vmatprep.mubr.f32.mxu0 %v75_v62  ;;  %v1767_v56 = vld [vmem:[#allocation7 + $0x3448] sm:$0xff]  ;;  %v5316_v59 = vpack.c.bf16 %v1750_v51, %v1742_v50  ;;  %v5828_v60 = vpack.c.bf16 %v1752_v54, %v1744_v52  ;;  %v1832_v50 = vld [vmem:[#allocation7 + $0x3650] sm:$0xff]  ;;  %v1849_v54 = vld [vmem:[#allocation7 + $0x36d8] sm:$0xff] }
 0x1d0   :  { %3326 = vmatprep.mubr.f32.mxu1 %v75_v62  ;;  %v5318_v61 = vpack.c.bf16 %v1767_v56, %v1759_v55  ;;  %v1758_v62 = vld [vmem:[#allocation7 + $0x3400] sm:$0xff]  ;;  %v1839_v51 = vld [vmem:[#allocation7 + $0x3688] sm:$0xff] }
 0x1d1   :  { %5297 = vmatpush1.bf16.msra.mxu0 %v5296_v63  ;;  %v1766_v63 = vld [vmem:[#allocation7 + $0x3440] sm:$0xff]  ;;  %v1847_v52 = vld [vmem:[#allocation7 + $0x36c8] sm:$0xff] }
 0x1d2   :  { %5809 = vmatpush1.bf16.msra.mxu1 %v5808_v0  ;;  %5299 = vmatprep.subr.bf16.mxu0 %v5298_v1  ;;  %v1760_v0 = vld [vmem:[#allocation7 + $0x3410] sm:$0xff]  ;;  %v5830_v1 = vpack.c.bf16 %v1769_v58, %v1761_v57  ;;  %v5320_v7 = vpack.c.bf16 %v1766_v63, %v1758_v62  ;;  %v5338_v57 = vpack.c.bf16 %v1847_v52, %v1839_v51  ;;  %v1838_v58 = vld [vmem:[#allocation7 + $0x3680] sm:$0xff]  ;;  %v1855_v63 = vld [vmem:[#allocation7 + $0x3708] sm:$0xff] }
 0x1d3   :  { %5811 = vmatprep.subr.bf16.mxu1 %v5810_v5  ;;  %v1777_v5 = vld [vmem:[#allocation7 + $0x3498] sm:$0xff]  ;;  %v5832_v8 = vpack.c.bf16 %v1768_v2, %v1760_v0  ;;  %v1848_v62 = vld [vmem:[#allocation7 + $0x36d0] sm:$0xff]  ;;  %v1863_v0 = vld [vmem:[#allocation7 + $0x3748] sm:$0xff] }
 0x1d4   :  { %v1865_v2 = vld [vmem:[#allocation7 + $0x3758] sm:$0xff]  ;;  %v74_v39 = vld [vmem:[#allocation4 + $0x60] sm:$0xff]  ;;  %v91_v52 = vld [vmem:[#allocation4 + $0xe8] sm:$0xff] }
 0x1d5   :  { %5301 = vmatpush1.bf16.msra.mxu0 %v5300_v11  ;;  %v1782_v11 = vld [vmem:[#allocation7 + $0x34c0] sm:$0xff]  ;;  %v1929_v51 = vld [vmem:[#allocation7 + $0x3958] sm:$0xff] }
 0x1d6   :  { %5813 = vmatpush1.bf16.msra.mxu1 %v5812_v12  ;;  %5303 = vmatprep.subr.bf16.mxu0 %v5302_v13  ;;  %v1776_v12 = vld [vmem:[#allocation7 + $0x3490] sm:$0xff]  ;;  %v5834_v13 = vpack.c.bf16 %v1785_v6, %v1777_v5  ;;  %v5324_v19 = vpack.c.bf16 %v1782_v11, %v1774_v10  ;;  %v5342_v5 = vpack.c.bf16 %v1863_v0, %v1855_v63  ;;  %v1854_v6 = vld [vmem:[#allocation7 + $0x3700] sm:$0xff]  ;;  %v1871_v11 = vld [vmem:[#allocation7 + $0x3788] sm:$0xff] }
 0x1d7   :  { %5815 = vmatprep.subr.bf16.mxu1 %v5814_v17  ;;  %v1793_v17 = vld [vmem:[#allocation7 + $0x3518] sm:$0xff]  ;;  %v5836_v20 = vpack.c.bf16 %v1784_v14, %v1776_v12  ;;  %v1864_v10 = vld [vmem:[#allocation7 + $0x3750] sm:$0xff]  ;;  %v1879_v12 = vld [vmem:[#allocation7 + $0x37c8] sm:$0xff] }
 0x1d8   :  { %v1881_v14 = vld [vmem:[#allocation7 + $0x37d8] sm:$0xff]  ;;  %v1943_v63 = vld [vmem:[#allocation7 + $0x39c8] sm:$0xff] }
 0x1d9   :  { %5305 = vmatpush1.bf16.msra.mxu0 %v5304_v23  ;;  %v1798_v23 = vld [vmem:[#allocation7 + $0x3540] sm:$0xff]  ;;  %v1937_v0 = vld [vmem:[#allocation7 + $0x3998] sm:$0xff] }
 0x1da   :  { %5817 = vmatpush1.bf16.msra.mxu1 %v5816_v24  ;;  %5307 = vmatprep.subr.bf16.mxu0 %v5306_v25  ;;  %v1792_v24 = vld [vmem:[#allocation7 + $0x3510] sm:$0xff]  ;;  %v5838_v25 = vpack.c.bf16 %v1801_v18, %v1793_v17  ;;  %v5328_v31 = vpack.c.bf16 %v1798_v23, %v1790_v22  ;;  %v5346_v17 = vpack.c.bf16 %v1879_v12, %v1871_v11  ;;  %v1870_v18 = vld [vmem:[#allocation7 + $0x3780] sm:$0xff]  ;;  %v1887_v23 = vld [vmem:[#allocation7 + $0x3808] sm:$0xff] }
 0x1db   :  { %5819 = vmatprep.subr.bf16.mxu1 %v5818_v29  ;;  %v1809_v29 = vld [vmem:[#allocation7 + $0x3598] sm:$0xff]  ;;  %v5840_v32 = vpack.c.bf16 %v1800_v26, %v1792_v24  ;;  %v1880_v22 = vld [vmem:[#allocation7 + $0x37d0] sm:$0xff]  ;;  %v1895_v24 = vld [vmem:[#allocation7 + $0x3848] sm:$0xff] }
 0x1dc   :  { %v1897_v26 = vld [vmem:[#allocation7 + $0x3858] sm:$0xff]  ;;  %v1951_v11 = vld [vmem:[#allocation7 + $0x3a08] sm:$0xff] }
 0x1dd   :  { %5309 = vmatpush1.bf16.msra.mxu0 %v5308_v35  ;;  %v1814_v35 = vld [vmem:[#allocation7 + $0x35c0] sm:$0xff]  ;;  %v1959_v12 = vld [vmem:[#allocation7 + $0x3a48] sm:$0xff] }
 0x1de   :  { %5821 = vmatpush1.bf16.msra.mxu1 %v5820_v36  ;;  %5311 = vmatprep.subr.bf16.mxu0 %v5310_v37  ;;  %v1808_v36 = vld [vmem:[#allocation7 + $0x3590] sm:$0xff]  ;;  %v5842_v37 = vpack.c.bf16 %v1817_v30, %v1809_v29  ;;  %v5332_v43 = vpack.c.bf16 %v1814_v35, %v1806_v34  ;;  %v5350_v29 = vpack.c.bf16 %v1895_v24, %v1887_v23  ;;  %v1886_v30 = vld [vmem:[#allocation7 + $0x3800] sm:$0xff]  ;;  %v1903_v35 = vld [vmem:[#allocation7 + $0x3888] sm:$0xff] }
 0x1df   :  { %5823 = vmatprep.subr.bf16.mxu1 %v5822_v41  ;;  %v1825_v41 = vld [vmem:[#allocation7 + $0x3618] sm:$0xff]  ;;  %v5844_v44 = vpack.c.bf16 %v1816_v38, %v1808_v36  ;;  %v1896_v34 = vld [vmem:[#allocation7 + $0x3850] sm:$0xff]  ;;  %v1911_v36 = vld [vmem:[#allocation7 + $0x38c8] sm:$0xff] }
 0x1e0   :  { %v1913_v38 = vld [vmem:[#allocation7 + $0x38d8] sm:$0xff]  ;;  %v1967_v23 = vld [vmem:[#allocation7 + $0x3a88] sm:$0xff] }
 0x1e1   :  { %5313 = vmatpush1.bf16.msra.mxu0 %v5312_v47  ;;  %v1830_v47 = vld [vmem:[#allocation7 + $0x3640] sm:$0xff]  ;;  %v1975_v24 = vld [vmem:[#allocation7 + $0x3ac8] sm:$0xff] }
 0x1e2   :  { %5825 = vmatpush1.bf16.msra.mxu1 %v5824_v48  ;;  %5315 = vmatprep.subr.bf16.mxu0 %v5314_v49  ;;  %v1824_v48 = vld [vmem:[#allocation7 + $0x3610] sm:$0xff]  ;;  %v5846_v49 = vpack.c.bf16 %v1833_v42, %v1825_v41  ;;  %v5336_v55 = vpack.c.bf16 %v1830_v47, %v1822_v46  ;;  %v5354_v42 = vpack.c.bf16 %v1911_v36, %v1903_v35  ;;  %v1983_v35 = vld [vmem:[#allocation7 + $0x3b08] sm:$0xff] }
 0x1e3   :  { %5827 = vmatprep.subr.bf16.mxu1 %v5826_v53  ;;  %v1841_v53 = vld [vmem:[#allocation7 + $0x3698] sm:$0xff]  ;;  %v5848_v56 = vpack.c.bf16 %v1832_v50, %v1824_v48  ;;  %v1912_v47 = vld [vmem:[#allocation7 + $0x38d0] sm:$0xff]  ;;  %v1919_v48 = vld [vmem:[#allocation7 + $0x3908] sm:$0xff] }
 0x1e4   :  { %v1921_v50 = vld [vmem:[#allocation7 + $0x3918] sm:$0xff]  ;;  %v1991_v36 = vld [vmem:[#allocation7 + $0x3b48] sm:$0xff] }
 0x1e5   :  { %5317 = vmatpush1.bf16.msra.mxu0 %v5316_v59  ;;  %v1846_v59 = vld [vmem:[#allocation7 + $0x36c0] sm:$0xff] }
 0x1e6   :  { %5829 = vmatpush1.bf16.msra.mxu1 %v5828_v60  ;;  %5319 = vmatprep.subr.bf16.mxu0 %v5318_v61  ;;  %v1840_v60 = vld [vmem:[#allocation7 + $0x3690] sm:$0xff]  ;;  %v5850_v61 = vpack.c.bf16 %v1849_v54, %v1841_v53  ;;  %v5340_v3 = vpack.c.bf16 %v1846_v59, %v1838_v58  ;;  %v90_v54 = vld [vmem:[#allocation4 + $0xe0] sm:$0xff] }
 0x1e7   :  { %5831 = vmatprep.subr.bf16.mxu1 %v5830_v1  ;;  %v1857_v1 = vld [vmem:[#allocation7 + $0x3718] sm:$0xff]  ;;  %v5852_v4 = vpack.c.bf16 %v1848_v62, %v1840_v60  ;;  %v1926_v58 = vld [vmem:[#allocation7 + $0x3940] sm:$0xff]  ;;  %v1920_v59 = vld [vmem:[#allocation7 + $0x3910] sm:$0xff]  ;;  %v5870_v60 = vpack.c.bf16 %v1929_v51, %v1921_v50 }
 0x1e8   :  { %v1935_v62 = vld [vmem:[#allocation7 + $0x3988] sm:$0xff]  ;;  %v2009_v50 = vld [vmem:[#allocation7 + $0x3bd8] sm:$0xff] }
 0x1e9   :  { %5321 = vmatpush1.bf16.msra.mxu0 %v5320_v7  ;;  %v1862_v7 = vld [vmem:[#allocation7 + $0x3740] sm:$0xff] }
 0x1ea   :  { %5833 = vmatpush1.bf16.msra.mxu1 %v5832_v8  ;;  %5323 = vmatprep.subr.bf16.mxu0 %v5322_v9  ;;  %v1856_v8 = vld [vmem:[#allocation7 + $0x3710] sm:$0xff]  ;;  %v5854_v9 = vpack.c.bf16 %v1865_v2, %v1857_v1  ;;  %v5344_v15 = vpack.c.bf16 %v1862_v7, %v1854_v6  ;;  %v1945_v1 = vld [vmem:[#allocation7 + $0x39d8] sm:$0xff]  ;;  %v1934_v6 = vld [vmem:[#allocation7 + $0x3980] sm:$0xff] }
 0x1eb   :  { %5835 = vmatprep.subr.bf16.mxu1 %v5834_v13  ;;  %v1873_v13 = vld [vmem:[#allocation7 + $0x3798] sm:$0xff]  ;;  %v5856_v16 = vpack.c.bf16 %v1864_v10, %v1856_v8  ;;  %v1942_v7 = vld [vmem:[#allocation7 + $0x39c0] sm:$0xff]  ;;  %v1936_v8 = vld [vmem:[#allocation7 + $0x3990] sm:$0xff] }
 0x1ec   :  { %v77_v2 = vld [vmem:[#allocation4 + $0x78] sm:$0xff]  ;;  %v1944_v10 = vld [vmem:[#allocation7 + $0x39d0] sm:$0xff] }
 0x1ed   :  { %5325 = vmatpush1.bf16.msra.mxu0 %v5324_v19  ;;  %v1878_v19 = vld [vmem:[#allocation7 + $0x37c0] sm:$0xff] }
 0x1ee   :  { %5837 = vmatpush1.bf16.msra.mxu1 %v5836_v20  ;;  %5327 = vmatprep.subr.bf16.mxu0 %v5326_v21  ;;  %v1872_v20 = vld [vmem:[#allocation7 + $0x3790] sm:$0xff]  ;;  %v5858_v21 = vpack.c.bf16 %v1881_v14, %v1873_v13  ;;  %v5348_v27 = vpack.c.bf16 %v1878_v19, %v1870_v18  ;;  %v1953_v13 = vld [vmem:[#allocation7 + $0x3a18] sm:$0xff]  ;;  %v1950_v18 = vld [vmem:[#allocation7 + $0x3a00] sm:$0xff] }
 0x1ef   :  { %5839 = vmatprep.subr.bf16.mxu1 %v5838_v25  ;;  %v1889_v25 = vld [vmem:[#allocation7 + $0x3818] sm:$0xff]  ;;  %v5860_v28 = vpack.c.bf16 %v1880_v22, %v1872_v20  ;;  %v1958_v19 = vld [vmem:[#allocation7 + $0x3a40] sm:$0xff]  ;;  %v1952_v20 = vld [vmem:[#allocation7 + $0x3a10] sm:$0xff] }
 0x1f0   :  { %v1961_v14 = vld [vmem:[#allocation7 + $0x3a58] sm:$0xff]  ;;  %v1960_v22 = vld [vmem:[#allocation7 + $0x3a50] sm:$0xff] }
 0x1f1   :  { %5329 = vmatpush1.bf16.msra.mxu0 %v5328_v31  ;;  %v1894_v31 = vld [vmem:[#allocation7 + $0x3840] sm:$0xff] }
 0x1f2   :  { %5841 = vmatpush1.bf16.msra.mxu1 %v5840_v32  ;;  %5331 = vmatprep.subr.bf16.mxu0 %v5330_v33  ;;  %v1888_v32 = vld [vmem:[#allocation7 + $0x3810] sm:$0xff]  ;;  %v5862_v33 = vpack.c.bf16 %v1897_v26, %v1889_v25  ;;  %v5352_v40 = vpack.c.bf16 %v1894_v31, %v1886_v30  ;;  %v1969_v25 = vld [vmem:[#allocation7 + $0x3a98] sm:$0xff]  ;;  %v1966_v30 = vld [vmem:[#allocation7 + $0x3a80] sm:$0xff] }
 0x1f3   :  { %5843 = vmatprep.subr.bf16.mxu1 %v5842_v37  ;;  %v1905_v37 = vld [vmem:[#allocation7 + $0x3898] sm:$0xff]  ;;  %v5864_v41 = vpack.c.bf16 %v1896_v34, %v1888_v32  ;;  %v1974_v31 = vld [vmem:[#allocation7 + $0x3ac0] sm:$0xff]  ;;  %v1968_v32 = vld [vmem:[#allocation7 + $0x3a90] sm:$0xff] }
 0x1f4   :  { %v5866_v46 = vpack.c.bf16 %v1913_v38, %v1905_v37  ;;  %v1977_v26 = vld [vmem:[#allocation7 + $0x3ad8] sm:$0xff]  ;;  %v1976_v34 = vld [vmem:[#allocation7 + $0x3ad0] sm:$0xff] }
 0x1f5   :  { %5333 = vmatpush1.bf16.msra.mxu0 %v5332_v43  ;;  %v1902_v43 = vld [vmem:[#allocation7 + $0x3880] sm:$0xff]  ;;  %v1985_v37 = vld [vmem:[#allocation7 + $0x3b18] sm:$0xff] }
 0x1f6   :  { %5845 = vmatpush1.bf16.msra.mxu1 %v5844_v44  ;;  %5335 = vmatprep.subr.bf16.mxu0 %v5334_v45  ;;  %v1910_v44 = vld [vmem:[#allocation7 + $0x38c0] sm:$0xff]  ;;  %v1904_v45 = vld [vmem:[#allocation7 + $0x3890] sm:$0xff]  ;;  %v1993_v38 = vld [vmem:[#allocation7 + $0x3b58] sm:$0xff] }
 0x1f7   :  { %5847 = vmatprep.subr.bf16.mxu1 %v5846_v49  ;;  %v1927_v49 = vld [vmem:[#allocation7 + $0x3948] sm:$0xff]  ;;  %v5356_v53 = vpack.c.bf16 %v1910_v44, %v1902_v43  ;;  %v1990_v43 = vld [vmem:[#allocation7 + $0x3b40] sm:$0xff]  ;;  %v1984_v44 = vld [vmem:[#allocation7 + $0x3b10] sm:$0xff] }
 0x1f9   :  { %5337 = vmatpush1.bf16.msra.mxu0 %v5336_v55  ;;  %v5868_v55 = vpack.c.bf16 %v1912_v47, %v1904_v45  ;;  %v5886_v45 = vpack.c.bf16 %v1993_v38, %v1985_v37  ;;  %v1999_v47 = vld [vmem:[#allocation7 + $0x3b88] sm:$0xff]  ;;  %v2062_v38 = vld [vmem:[#allocation7 + $0x3d80] sm:$0xff] }
 0x1fa   :  { %5849 = vmatpush1.bf16.msra.mxu1 %v5848_v56  ;;  %5339 = vmatprep.subr.bf16.mxu0 %v5338_v57  ;;  %v5358_v56 = vpack.c.bf16 %v1927_v49, %v1919_v48  ;;  %v1918_v57 = vld [vmem:[#allocation7 + $0x3900] sm:$0xff]  ;;  %v2007_v48 = vld [vmem:[#allocation7 + $0x3bc8] sm:$0xff]  ;;  %v2001_v49 = vld [vmem:[#allocation7 + $0x3b98] sm:$0xff] }
 0x1fb   :  { %5851 = vmatprep.subr.bf16.mxu1 %v5850_v61  ;;  %v1928_v61 = vld [vmem:[#allocation7 + $0x3950] sm:$0xff] }
 0x1fd   :  { %5341 = vmatpush1.bf16.msra.mxu0 %v5340_v3  ;;  %v5360_v3 = vpack.c.bf16 %v1926_v58, %v1918_v57  ;;  %v5890_v57 = vpack.c.bf16 %v2009_v50, %v2001_v49  ;;  %v2008_v58 = vld [vmem:[#allocation7 + $0x3bd0] sm:$0xff]  ;;  %v2078_v50 = vld [vmem:[#allocation7 + $0x3e00] sm:$0xff] }
 0x1fe   :  { %5853 = vmatpush1.bf16.msra.mxu1 %v5852_v4  ;;  %5343 = vmatprep.subr.bf16.mxu0 %v5342_v5  ;;  %v5872_v4 = vpack.c.bf16 %v1928_v61, %v1920_v59  ;;  %v5362_v5 = vpack.c.bf16 %v1943_v63, %v1935_v62  ;;  %v2015_v59 = vld [vmem:[#allocation7 + $0x3c08] sm:$0xff]  ;;  %v2017_v61 = vld [vmem:[#allocation7 + $0x3c18] sm:$0xff] }
 0x1ff   :  { %5855 = vmatprep.subr.bf16.mxu1 %v5854_v9  ;;  %v5874_v9 = vpack.c.bf16 %v1945_v1, %v1937_v0  ;;  %v2025_v62 = vld [vmem:[#allocation7 + $0x3c58] sm:$0xff] }
 0x201   :  { %5345 = vmatpush1.bf16.msra.mxu0 %v5344_v15  ;;  %v5364_v15 = vpack.c.bf16 %v1942_v7, %v1934_v6  ;;  %v2024_v6 = vld [vmem:[#allocation7 + $0x3c50] sm:$0xff]  ;;  %v2031_v7 = vld [vmem:[#allocation7 + $0x3c88] sm:$0xff] }
 0x202   :  { %5857 = vmatpush1.bf16.msra.mxu1 %v5856_v16  ;;  %5347 = vmatprep.subr.bf16.mxu0 %v5346_v17  ;;  %v5876_v16 = vpack.c.bf16 %v1944_v10, %v1936_v8  ;;  %v5366_v17 = vpack.c.bf16 %v1959_v12, %v1951_v11  ;;  %v2039_v8 = vld [vmem:[#allocation7 + $0x3cc8] sm:$0xff]  ;;  %v2041_v10 = vld [vmem:[#allocation7 + $0x3cd8] sm:$0xff] }
 0x203   :  { %5859 = vmatprep.subr.bf16.mxu1 %v5858_v21  ;;  %v5878_v21 = vpack.c.bf16 %v1961_v14, %v1953_v13  ;;  %v5386_v13 = vpack.c.bf16 %v2039_v8, %v2031_v7  ;;  %v2030_v14 = vld [vmem:[#allocation7 + $0x3c80] sm:$0xff] }
 0x205   :  { %5349 = vmatpush1.bf16.msra.mxu0 %v5348_v27  ;;  %v5368_v27 = vpack.c.bf16 %v1958_v19, %v1950_v18  ;;  %v2040_v18 = vld [vmem:[#allocation7 + $0x3cd0] sm:$0xff]  ;;  %v2047_v19 = vld [vmem:[#allocation7 + $0x3d08] sm:$0xff] }
 0x206   :  { %5861 = vmatpush1.bf16.msra.mxu1 %v5860_v28  ;;  %5351 = vmatprep.subr.bf16.mxu0 %v5350_v29  ;;  %v5880_v28 = vpack.c.bf16 %v1960_v22, %v1952_v20  ;;  %v5370_v29 = vpack.c.bf16 %v1975_v24, %v1967_v23  ;;  %v2055_v20 = vld [vmem:[#allocation7 + $0x3d48] sm:$0xff]  ;;  %v2057_v22 = vld [vmem:[#allocation7 + $0x3d58] sm:$0xff] }
 0x207   :  { %5863 = vmatprep.subr.bf16.mxu1 %v5862_v33  ;;  %v5882_v33 = vpack.c.bf16 %v1977_v26, %v1969_v25  ;;  %v5390_v25 = vpack.c.bf16 %v2055_v20, %v2047_v19  ;;  %v2046_v26 = vld [vmem:[#allocation7 + $0x3d00] sm:$0xff] }
 0x208   :  { %2711 = vmatmul.mubr.f32.vlgmr.msra.gmra.mrb[0].mxu0 %v74_v39 }
 0x209   :  { %5353 = vmatpush1.bf16.msra.mxu0 %v5352_v40  ;;  %3327 = vmatmul.mubr.f32.vlgmr.msra.gmra.mrb[0].mxu1 %v74_v39  ;;  %v5372_v39 = vpack.c.bf16 %v1974_v31, %v1966_v30  ;;  %v5884_v40 = vpack.c.bf16 %v1976_v34, %v1968_v32  ;;  %v2056_v30 = vld [vmem:[#allocation7 + $0x3d50] sm:$0xff]  ;;  %v2063_v31 = vld [vmem:[#allocation7 + $0x3d88] sm:$0xff]  ;;  %v2073_v34 = vld [vmem:[#allocation7 + $0x3dd8] sm:$0xff] }
 0x20a   :  { %5865 = vmatpush1.bf16.msra.mxu1 %v5864_v41  ;;  %5355 = vmatprep.subr.bf16.mxu0 %v5354_v42  ;;  %v5374_v41 = vpack.c.bf16 %v1991_v36, %v1983_v35  ;;  %v1982_v42 = vld [vmem:[#allocation7 + $0x3b00] sm:$0xff]  ;;  %v2071_v32 = vld [vmem:[#allocation7 + $0x3dc8] sm:$0xff] }
 0x20b   :  { %5867 = vmatprep.subr.bf16.mxu1 %v5866_v46  ;;  %2716 = vmatprep.mubr.f32.mxu0 %v91_v52  ;;  %v1992_v46 = vld [vmem:[#allocation7 + $0x3b50] sm:$0xff]  ;;  %v5376_v51 = vpack.c.bf16 %v1990_v43, %v1982_v42  ;;  %v5394_v37 = vpack.c.bf16 %v2071_v32, %v2063_v31  ;;  %v2079_v43 = vld [vmem:[#allocation7 + $0x3e08] sm:$0xff] }
 0x20c   :  { %3332 = vmatprep.mubr.f32.mxu1 %v91_v52  ;;  %2717 = vmatmul.mubr.f32.gmra.mrb[2].mxu0 %v90_v54  ;;  %v5888_v52 = vpack.c.bf16 %v1992_v46, %v1984_v44  ;;  %v2072_v42 = vld [vmem:[#allocation7 + $0x3dd0] sm:$0xff]  ;;  %v2087_v44 = vld [vmem:[#allocation7 + $0x3e48] sm:$0xff]  ;;  %v2089_v46 = vld [vmem:[#allocation7 + $0x3e58] sm:$0xff] }
 0x20d   :  { %5357 = vmatpush1.bf16.msra.mxu0 %v5356_v53  ;;  %3333 = vmatmul.mubr.f32.gmra.mrb[2].mxu1 %v90_v54  ;;  %v5378_v53 = vpack.c.bf16 %v2007_v48, %v1999_v47  ;;  %v1998_v54 = vld [vmem:[#allocation7 + $0x3b80] sm:$0xff]  ;;  %v5398_v49 = vpack.c.bf16 %v2087_v44, %v2079_v43  ;;  %v93_v43 = vld [vmem:[#allocation4 + $0xf8] sm:$0xff] }
 0x20e   :  { %5869 = vmatpush1.bf16.msra.mxu1 %v5868_v55  ;;  %5359 = vmatprep.subr.bf16.mxu0 %v5358_v56  ;;  %v2006_v55 = vld [vmem:[#allocation7 + $0x3bc0] sm:$0xff]  ;;  %v2000_v56 = vld [vmem:[#allocation7 + $0x3b90] sm:$0xff]  ;;  %v117_v44 = vld [vmem:[#allocation7 + $0xb8] sm:$0xff] }
 0x20f   :  { %5871 = vmatprep.subr.bf16.mxu1 %v5870_v60  ;;  %2787 = vmatprep.mubr.f32.mxu0 %v77_v2  ;;  %v2023_v60 = vld [vmem:[#allocation7 + $0x3c48] sm:$0xff]  ;;  %v5380_v63 = vpack.c.bf16 %v2006_v55, %v1998_v54  ;;  %v5892_v0 = vpack.c.bf16 %v2008_v58, %v2000_v56  ;;  %v2088_v54 = vld [vmem:[#allocation7 + $0x3e50] sm:$0xff]  ;;  %v2105_v58 = vld [vmem:[#allocation7 + $0x3ed8] sm:$0xff] }
 0x210   :  { %3403 = vmatprep.mubr.f32.mxu1 %v77_v2  ;;  %v5382_v1 = vpack.c.bf16 %v2023_v60, %v2015_v59  ;;  %v2014_v2 = vld [vmem:[#allocation7 + $0x3c00] sm:$0xff]  ;;  %v2095_v55 = vld [vmem:[#allocation7 + $0x3e88] sm:$0xff] }
 0x211   :  { %5361 = vmatpush1.bf16.msra.mxu0 %v5360_v3  ;;  %v2022_v3 = vld [vmem:[#allocation7 + $0x3c40] sm:$0xff]  ;;  %v2103_v56 = vld [vmem:[#allocation7 + $0x3ec8] sm:$0xff] }
 0x212   :  { %5873 = vmatpush1.bf16.msra.mxu1 %v5872_v4  ;;  %5363 = vmatprep.subr.bf16.mxu0 %v5362_v5  ;;  %v2016_v4 = vld [vmem:[#allocation7 + $0x3c10] sm:$0xff]  ;;  %v5894_v5 = vpack.c.bf16 %v2025_v62, %v2017_v61  ;;  %v5384_v11 = vpack.c.bf16 %v2022_v3, %v2014_v2  ;;  %v5402_v61 = vpack.c.bf16 %v2103_v56, %v2095_v55  ;;  %v2094_v62 = vld [vmem:[#allocation7 + $0x3e80] sm:$0xff]  ;;  %v2111_v3 = vld [vmem:[#allocation7 + $0x3f08] sm:$0xff] }
 0x213   :  { %5875 = vmatprep.subr.bf16.mxu1 %v5874_v9  ;;  %v2033_v9 = vld [vmem:[#allocation7 + $0x3c98] sm:$0xff]  ;;  %v5896_v12 = vpack.c.bf16 %v2024_v6, %v2016_v4  ;;  %v2104_v2 = vld [vmem:[#allocation7 + $0x3ed0] sm:$0xff]  ;;  %v2119_v4 = vld [vmem:[#allocation7 + $0x3f48] sm:$0xff] }
 0x214   :  { %v2121_v6 = vld [vmem:[#allocation7 + $0x3f58] sm:$0xff] }
 0x215   :  { %5365 = vmatpush1.bf16.msra.mxu0 %v5364_v15  ;;  %v2038_v15 = vld [vmem:[#allocation7 + $0x3cc0] sm:$0xff]  ;;  %v133_v55 = vld [vmem:[#allocation7 + $0x138] sm:$0xff] }
 0x216   :  { %5877 = vmatpush1.bf16.msra.mxu1 %v5876_v16  ;;  %5367 = vmatprep.subr.bf16.mxu0 %v5366_v17  ;;  %v2032_v16 = vld [vmem:[#allocation7 + $0x3c90] sm:$0xff]  ;;  %v5898_v17 = vpack.c.bf16 %v2041_v10, %v2033_v9  ;;  %v5388_v23 = vpack.c.bf16 %v2038_v15, %v2030_v14  ;;  %v5406_v9 = vpack.c.bf16 %v2119_v4, %v2111_v3  ;;  %v2110_v10 = vld [vmem:[#allocation7 + $0x3f00] sm:$0xff]  ;;  %v2127_v15 = vld [vmem:[#allocation7 + $0x3f88] sm:$0xff] }
 0x217   :  { %5879 = vmatprep.subr.bf16.mxu1 %v5878_v21  ;;  %v2049_v21 = vld [vmem:[#allocation7 + $0x3d18] sm:$0xff]  ;;  %v5900_v24 = vpack.c.bf16 %v2040_v18, %v2032_v16  ;;  %v2120_v14 = vld [vmem:[#allocation7 + $0x3f50] sm:$0xff]  ;;  %v2135_v16 = vld [vmem:[#allocation7 + $0x3fc8] sm:$0xff] }
 0x218   :  { %v2137_v18 = vld [vmem:[#allocation7 + $0x3fd8] sm:$0xff]  ;;  %v155_v3 = vld [vmem:[#allocation7 + $0x1e8] sm:$0xff] }
 0x219   :  { %5369 = vmatpush1.bf16.msra.mxu0 %v5368_v27  ;;  %v2054_v27 = vld [vmem:[#allocation7 + $0x3d40] sm:$0xff]  ;;  %v141_v56 = vld [vmem:[#allocation7 + $0x178] sm:$0xff] }
 0x21a   :  { %5881 = vmatpush1.bf16.msra.mxu1 %v5880_v28  ;;  %5371 = vmatprep.subr.bf16.mxu0 %v5370_v29  ;;  %v2048_v28 = vld [vmem:[#allocation7 + $0x3d10] sm:$0xff]  ;;  %v5902_v29 = vpack.c.bf16 %v2057_v22, %v2049_v21  ;;  %v5392_v35 = vpack.c.bf16 %v2054_v27, %v2046_v26  ;;  %v5410_v21 = vpack.c.bf16 %v2135_v16, %v2127_v15  ;;  %v2126_v22 = vld [vmem:[#allocation7 + $0x3f80] sm:$0xff]  ;;  %v99_v27 = vld [vmem:[#allocation7 + $0x28] sm:$0xff] }
 0x21b   :  { %5883 = vmatprep.subr.bf16.mxu1 %v5882_v33  ;;  %v2065_v33 = vld [vmem:[#allocation7 + $0x3d98] sm:$0xff]  ;;  %v5904_v36 = vpack.c.bf16 %v2056_v30, %v2048_v28  ;;  %v2136_v26 = vld [vmem:[#allocation7 + $0x3fd0] sm:$0xff]  ;;  %v107_v28 = vld [vmem:[#allocation7 + $0x68] sm:$0xff] }
 0x21c   :  { %v109_v30 = vld [vmem:[#allocation7 + $0x78] sm:$0xff]  ;;  %v171_v15 = vld [vmem:[#allocation7 + $0x268] sm:$0xff] }
 0x21d   :  { %5373 = vmatpush1.bf16.msra.mxu0 %v5372_v39  ;;  %v2070_v39 = vld [vmem:[#allocation7 + $0x3dc0] sm:$0xff]  ;;  %v149_v4 = vld [vmem:[#allocation7 + $0x1b8] sm:$0xff]  ;;  %v7133_v16 = vld [vmem:[#allocation4 + $0x8] sm:$0xff] }
 0x21e   :  { %5885 = vmatpush1.bf16.msra.mxu1 %v5884_v40  ;;  %5375 = vmatprep.subr.bf16.mxu0 %v5374_v41  ;;  %v2064_v40 = vld [vmem:[#allocation7 + $0x3d90] sm:$0xff]  ;;  %v5906_v41 = vpack.c.bf16 %v2073_v34, %v2065_v33  ;;  %v5396_v47 = vpack.c.bf16 %v2070_v39, %v2062_v38  ;;  %v5926_v33 = vpack.c.bf16 %v107_v28, %v99_v27  ;;  %v98_v34 = vld [vmem:[#allocation7 + $0x20] sm:$0xff]  ;;  %v179_v27 = vld [vmem:[#allocation7 + $0x2a8] sm:$0xff] }
 0x21f   :  { %5887 = vmatprep.subr.bf16.mxu1 %v5886_v45  ;;  %v2081_v45 = vld [vmem:[#allocation7 + $0x3e18] sm:$0xff]  ;;  %v5908_v48 = vpack.c.bf16 %v2072_v42, %v2064_v40  ;;  %v108_v38 = vld [vmem:[#allocation7 + $0x70] sm:$0xff]  ;;  %v115_v40 = vld [vmem:[#allocation7 + $0xa8] sm:$0xff] }
 0x220   :  { %v76_v39 = vld [vmem:[#allocation4 + $0x70] sm:$0xff]  ;;  %v187_v28 = vld [vmem:[#allocation7 + $0x2e8] sm:$0xff] }
 0x221   :  { %5377 = vmatpush1.bf16.msra.mxu0 %v5376_v51  ;;  %v2086_v51 = vld [vmem:[#allocation7 + $0x3e40] sm:$0xff] }
 0x222   :  { %5889 = vmatpush1.bf16.msra.mxu1 %v5888_v52  ;;  %5379 = vmatprep.subr.bf16.mxu0 %v5378_v53  ;;  %v2080_v52 = vld [vmem:[#allocation7 + $0x3e10] sm:$0xff]  ;;  %v5910_v53 = vpack.c.bf16 %v2089_v46, %v2081_v45  ;;  %v5400_v59 = vpack.c.bf16 %v2086_v51, %v2078_v50  ;;  %v125_v45 = vld [vmem:[#allocation7 + $0xf8] sm:$0xff] }
 0x223   :  { %5891 = vmatprep.subr.bf16.mxu1 %v5890_v57  ;;  %v2097_v57 = vld [vmem:[#allocation7 + $0x3e98] sm:$0xff]  ;;  %v5912_v60 = vpack.c.bf16 %v2088_v54, %v2080_v52  ;;  %v124_v51 = vld [vmem:[#allocation7 + $0xf0] sm:$0xff]  ;;  %v131_v52 = vld [vmem:[#allocation7 + $0x128] sm:$0xff]  ;;  %v6442_v54 = vpack.c.bf16 %v125_v45, %v117_v44 }
 0x225   :  { %5381 = vmatpush1.bf16.msra.mxu0 %v5380_v63  ;;  %v2102_v63 = vld [vmem:[#allocation7 + $0x3ec0] sm:$0xff] }
 0x226   :  { %5893 = vmatpush1.bf16.msra.mxu1 %v5892_v0  ;;  %5383 = vmatprep.subr.bf16.mxu0 %v5382_v1  ;;  %v2096_v0 = vld [vmem:[#allocation7 + $0x3e90] sm:$0xff]  ;;  %v5914_v1 = vpack.c.bf16 %v2105_v58, %v2097_v57  ;;  %v5404_v7 = vpack.c.bf16 %v2102_v63, %v2094_v62  ;;  %v138_v62 = vld [vmem:[#allocation7 + $0x160] sm:$0xff] }
 0x227   :  { %5895 = vmatprep.subr.bf16.mxu1 %v5894_v5  ;;  %v2113_v5 = vld [vmem:[#allocation7 + $0x3f18] sm:$0xff]  ;;  %v5916_v8 = vpack.c.bf16 %v2104_v2, %v2096_v0  ;;  %v92_v57 = vld [vmem:[#allocation4 + $0xf0] sm:$0xff]  ;;  %v6446_v0 = vpack.c.bf16 %v141_v56, %v133_v55  ;;  %v147_v2 = vld [vmem:[#allocation7 + $0x1a8] sm:$0xff] }
 0x228   :  { %v132_v63 = vld [vmem:[#allocation7 + $0x130] sm:$0xff] }
 0x229   :  { %5385 = vmatpush1.bf16.msra.mxu0 %v5384_v11  ;;  %v2118_v11 = vld [vmem:[#allocation7 + $0x3f40] sm:$0xff] }
 0x22a   :  { %5897 = vmatpush1.bf16.msra.mxu1 %v5896_v12  ;;  %5387 = vmatprep.subr.bf16.mxu0 %v5386_v13  ;;  %v2112_v12 = vld [vmem:[#allocation7 + $0x3f10] sm:$0xff]  ;;  %v5918_v13 = vpack.c.bf16 %v2121_v6, %v2113_v5  ;;  %v5408_v19 = vpack.c.bf16 %v2118_v11, %v2110_v10  ;;  %v157_v5 = vld [vmem:[#allocation7 + $0x1f8] sm:$0xff]  ;;  %v154_v10 = vld [vmem:[#allocation7 + $0x1e0] sm:$0xff] }
 0x22b   :  { %5899 = vmatprep.subr.bf16.mxu1 %v5898_v17  ;;  %v2129_v17 = vld [vmem:[#allocation7 + $0x3f98] sm:$0xff]  ;;  %v5920_v20 = vpack.c.bf16 %v2120_v14, %v2112_v12  ;;  %v148_v11 = vld [vmem:[#allocation7 + $0x1b0] sm:$0xff]  ;;  %v6450_v12 = vpack.c.bf16 %v157_v5, %v149_v4  ;;  %v163_v14 = vld [vmem:[#allocation7 + $0x228] sm:$0xff] }
 0x22d   :  { %5389 = vmatpush1.bf16.msra.mxu0 %v5388_v23  ;;  %v2134_v23 = vld [vmem:[#allocation7 + $0x3fc0] sm:$0xff] }
 0x22e   :  { %5901 = vmatpush1.bf16.msra.mxu1 %v5900_v24  ;;  %5391 = vmatprep.subr.bf16.mxu0 %v5390_v25  ;;  %v2128_v24 = vld [vmem:[#allocation7 + $0x3f90] sm:$0xff]  ;;  %v5922_v25 = vpack.c.bf16 %v2137_v18, %v2129_v17  ;;  %v5412_v31 = vpack.c.bf16 %v2134_v23, %v2126_v22  ;;  %v165_v17 = vld [vmem:[#allocation7 + $0x238] sm:$0xff]  ;;  %v162_v22 = vld [vmem:[#allocation7 + $0x220] sm:$0xff] }
 0x22f   :  { %5903 = vmatprep.subr.bf16.mxu1 %v5902_v29  ;;  %v101_v29 = vld [vmem:[#allocation7 + $0x38] sm:$0xff]  ;;  %v5924_v32 = vpack.c.bf16 %v2136_v26, %v2128_v24  ;;  %v170_v23 = vld [vmem:[#allocation7 + $0x260] sm:$0xff]  ;;  %v164_v24 = vld [vmem:[#allocation7 + $0x230] sm:$0xff] }
 0x230   :  { %v173_v18 = vld [vmem:[#allocation7 + $0x278] sm:$0xff]  ;;  %v172_v26 = vld [vmem:[#allocation7 + $0x270] sm:$0xff] }
 0x231   :  { %5393 = vmatpush1.bf16.msra.mxu0 %v5392_v35  ;;  %v106_v35 = vld [vmem:[#allocation7 + $0x60] sm:$0xff] }
 0x232   :  { %5905 = vmatpush1.bf16.msra.mxu1 %v5904_v36  ;;  %5395 = vmatprep.subr.bf16.mxu0 %v5394_v37  ;;  %v6438_v36 = vpack.c.bf16 %v109_v30, %v101_v29  ;;  %v100_v37 = vld [vmem:[#allocation7 + $0x30] sm:$0xff]  ;;  %v5928_v42 = vpack.c.bf16 %v106_v35, %v98_v34  ;;  %v181_v29 = vld [vmem:[#allocation7 + $0x2b8] sm:$0xff]  ;;  %v178_v34 = vld [vmem:[#allocation7 + $0x2a0] sm:$0xff] }
 0x233   :  { %5907 = vmatprep.subr.bf16.mxu1 %v5906_v41  ;;  %v123_v41 = vld [vmem:[#allocation7 + $0xe8] sm:$0xff]  ;;  %v6440_v46 = vpack.c.bf16 %v108_v38, %v100_v37  ;;  %v189_v30 = vld [vmem:[#allocation7 + $0x2f8] sm:$0xff]  ;;  %v186_v35 = vld [vmem:[#allocation7 + $0x2e0] sm:$0xff] }
 0x234   :  { %v5930_v50 = vpack.c.bf16 %v123_v41, %v115_v40  ;;  %v6458_v37 = vpack.c.bf16 %v189_v30, %v181_v29  ;;  %v188_v38 = vld [vmem:[#allocation7 + $0x2f0] sm:$0xff]  ;;  %v203_v40 = vld [vmem:[#allocation7 + $0x368] sm:$0xff]  ;;  %v197_v41 = vld [vmem:[#allocation7 + $0x338] sm:$0xff] }
 0x235   :  { %5397 = vmatpush1.bf16.msra.mxu0 %v5396_v47  ;;  %v114_v47 = vld [vmem:[#allocation7 + $0xa0] sm:$0xff] }
 0x236   :  { %5909 = vmatpush1.bf16.msra.mxu1 %v5908_v48  ;;  %5399 = vmatprep.subr.bf16.mxu0 %v5398_v49  ;;  %v122_v48 = vld [vmem:[#allocation7 + $0xe0] sm:$0xff]  ;;  %v116_v49 = vld [vmem:[#allocation7 + $0xb0] sm:$0xff] }
 0x237   :  { %5911 = vmatprep.subr.bf16.mxu1 %v5910_v53  ;;  %v139_v53 = vld [vmem:[#allocation7 + $0x168] sm:$0xff]  ;;  %v5932_v58 = vpack.c.bf16 %v122_v48, %v114_v47  ;;  %v202_v47 = vld [vmem:[#allocation7 + $0x360] sm:$0xff]  ;;  %v196_v48 = vld [vmem:[#allocation7 + $0x330] sm:$0xff] }
 0x238   :  { %v258_v30 = vld [vmem:[#allocation7 + $0x520] sm:$0xff] }
 0x239   :  { %5401 = vmatpush1.bf16.msra.mxu0 %v5400_v59  ;;  %v6444_v59 = vpack.c.bf16 %v124_v51, %v116_v49  ;;  %v211_v51 = vld [vmem:[#allocation7 + $0x3a8] sm:$0xff] }
 0x23a   :  { %5913 = vmatpush1.bf16.msra.mxu1 %v5912_v60  ;;  %5403 = vmatprep.subr.bf16.mxu0 %v5402_v61  ;;  %v5934_v60 = vpack.c.bf16 %v139_v53, %v131_v52  ;;  %v130_v61 = vld [vmem:[#allocation7 + $0x120] sm:$0xff]  ;;  %v219_v52 = vld [vmem:[#allocation7 + $0x3e8] sm:$0xff]  ;;  %v213_v53 = vld [vmem:[#allocation7 + $0x3b8] sm:$0xff] }
 0x23b   :  { %5915 = vmatprep.subr.bf16.mxu1 %v5914_v1  ;;  %v140_v1 = vld [vmem:[#allocation7 + $0x170] sm:$0xff]  ;;  %v5936_v6 = vpack.c.bf16 %v138_v62, %v130_v61 }
 0x23c   :  { %v220_v62 = vld [vmem:[#allocation7 + $0x3f0] sm:$0xff] }
 0x23d   :  { %5405 = vmatpush1.bf16.msra.mxu0 %v5404_v7  ;;  %v6448_v7 = vpack.c.bf16 %v140_v1, %v132_v63  ;;  %v227_v63 = vld [vmem:[#allocation7 + $0x428] sm:$0xff]  ;;  %v229_v1 = vld [vmem:[#allocation7 + $0x438] sm:$0xff] }
 0x23e   :  { %5917 = vmatpush1.bf16.msra.mxu1 %v5916_v8  ;;  %5407 = vmatprep.subr.bf16.mxu0 %v5406_v9  ;;  %v5938_v8 = vpack.c.bf16 %v155_v3, %v147_v2  ;;  %v146_v9 = vld [vmem:[#allocation7 + $0x1a0] sm:$0xff]  ;;  %v237_v2 = vld [vmem:[#allocation7 + $0x478] sm:$0xff] }
 0x23f   :  { %5919 = vmatprep.subr.bf16.mxu1 %v5918_v13  ;;  %v156_v13 = vld [vmem:[#allocation7 + $0x1f0] sm:$0xff] }
 0x241   :  { %5409 = vmatpush1.bf16.msra.mxu0 %v5408_v19  ;;  %v5940_v19 = vpack.c.bf16 %v154_v10, %v146_v9  ;;  %v6470_v9 = vpack.c.bf16 %v237_v2, %v229_v1  ;;  %v236_v10 = vld [vmem:[#allocation7 + $0x470] sm:$0xff]  ;;  %v306_v2 = vld [vmem:[#allocation7 + $0x6a0] sm:$0xff] }
 0x242   :  { %5921 = vmatpush1.bf16.msra.mxu1 %v5920_v20  ;;  %5411 = vmatprep.subr.bf16.mxu0 %v5410_v21  ;;  %v6452_v20 = vpack.c.bf16 %v156_v13, %v148_v11  ;;  %v5942_v21 = vpack.c.bf16 %v171_v15, %v163_v14  ;;  %v243_v11 = vld [vmem:[#allocation7 + $0x4a8] sm:$0xff]  ;;  %v245_v13 = vld [vmem:[#allocation7 + $0x4b8] sm:$0xff] }
 0x243   :  { %5923 = vmatprep.subr.bf16.mxu1 %v5922_v25  ;;  %v6454_v25 = vpack.c.bf16 %v173_v18, %v165_v17  ;;  %v253_v14 = vld [vmem:[#allocation7 + $0x4f8] sm:$0xff]  ;;  %v242_v18 = vld [vmem:[#allocation7 + $0x4a0] sm:$0xff] }
 0x245   :  { %5413 = vmatpush1.bf16.msra.mxu0 %v5412_v31  ;;  %v5944_v31 = vpack.c.bf16 %v170_v23, %v162_v22  ;;  %v252_v22 = vld [vmem:[#allocation7 + $0x4f0] sm:$0xff]  ;;  %v259_v23 = vld [vmem:[#allocation7 + $0x528] sm:$0xff] }
 0x246   :  { %5925 = vmatpush1.bf16.msra.mxu1 %v5924_v32  ;;  %5927 = vmatprep.subr.bf16.mxu0 %v5926_v33  ;;  %v6456_v32 = vpack.c.bf16 %v172_v26, %v164_v24  ;;  %v5946_v33 = vpack.c.bf16 %v187_v28, %v179_v27  ;;  %v267_v24 = vld [vmem:[#allocation7 + $0x568] sm:$0xff]  ;;  %v269_v26 = vld [vmem:[#allocation7 + $0x578] sm:$0xff] }
 0x247   :  { %6439 = vmatprep.subr.bf16.mxu1 %v6438_v36  ;;  %v180_v36 = vld [vmem:[#allocation7 + $0x2b0] sm:$0xff]  ;;  %v5966_v29 = vpack.c.bf16 %v267_v24, %v259_v23 }
 0x248   :  { %2788 = vmatmul.mubr.f32.vlgmr.msra.gmra.mrb[0].mxu0 %v76_v39  ;;  %v6460_v44 = vpack.c.bf16 %v188_v38, %v180_v36  ;;  %v283_v36 = vld [vmem:[#allocation7 + $0x5e8] sm:$0xff]  ;;  %v285_v38 = vld [vmem:[#allocation7 + $0x5f8] sm:$0xff] }
 0x249   :  { %3404 = vmatmul.mubr.f32.vlgmr.msra.gmra.mrb[0].mxu1 %v76_v39  ;;  %5929 = vmatpush1.bf16.msra.mxu0 %v5928_v42  ;;  %v195_v39 = vld [vmem:[#allocation7 + $0x328] sm:$0xff]  ;;  %v205_v42 = vld [vmem:[#allocation7 + $0x378] sm:$0xff] }
 0x24a   :  { %6441 = vmatpush1.bf16.msra.mxu1 %v6440_v46  ;;  %2793 = vmatprep.mubr.f32.mxu0 %v93_v43  ;;  %v5950_v45 = vpack.c.bf16 %v203_v40, %v195_v39  ;;  %v194_v46 = vld [vmem:[#allocation7 + $0x320] sm:$0xff]  ;;  %v6462_v49 = vpack.c.bf16 %v205_v42, %v197_v41 }
 0x24b   :  { %3409 = vmatprep.mubr.f32.mxu1 %v93_v43  ;;  %5931 = vmatprep.subr.bf16.mxu0 %v5930_v50  ;;  %v5948_v43 = vpack.c.bf16 %v186_v35, %v178_v34  ;;  %v204_v50 = vld [vmem:[#allocation7 + $0x370] sm:$0xff]  ;;  %v5952_v55 = vpack.c.bf16 %v202_v47, %v194_v46  ;;  %v275_v35 = vld [vmem:[#allocation7 + $0x5a8] sm:$0xff]  ;;  %v274_v42 = vld [vmem:[#allocation7 + $0x5a0] sm:$0xff] }
 0x24c   :  { %2794 = vmatmul.mubr.f32.gmra.mrb[2].mxu0 %v92_v57  ;;  %6443 = vmatprep.subr.bf16.mxu1 %v6442_v54  ;;  %v221_v54 = vld [vmem:[#allocation7 + $0x3f8] sm:$0xff]  ;;  %v6464_v56 = vpack.c.bf16 %v204_v50, %v196_v48  ;;  %v268_v34 = vld [vmem:[#allocation7 + $0x570] sm:$0xff]  ;;  %v5970_v41 = vpack.c.bf16 %v283_v36, %v275_v35  ;;  %v291_v47 = vld [vmem:[#allocation7 + $0x628] sm:$0xff] }
 0x24d   :  { %3410 = vmatmul.mubr.f32.gmra.mrb[2].mxu1 %v92_v57  ;;  %5933 = vmatpush1.bf16.msra.mxu0 %v5932_v58  ;;  %v5954_v57 = vpack.c.bf16 %v219_v52, %v211_v51  ;;  %v210_v58 = vld [vmem:[#allocation7 + $0x3a0] sm:$0xff]  ;;  %v6466_v61 = vpack.c.bf16 %v221_v54, %v213_v53  ;;  %v284_v46 = vld [vmem:[#allocation7 + $0x5f0] sm:$0xff]  ;;  %v299_v48 = vld [vmem:[#allocation7 + $0x668] sm:$0xff] }
 0x24e   :  { %6445 = vmatpush1.bf16.msra.mxu1 %v6444_v59  ;;  %5935 = vmatprep.subr.bf16.mxu0 %v5934_v60  ;;  %v218_v59 = vld [vmem:[#allocation7 + $0x3e0] sm:$0xff]  ;;  %v212_v60 = vld [vmem:[#allocation7 + $0x3b0] sm:$0xff]  ;;  %v301_v50 = vld [vmem:[#allocation7 + $0x678] sm:$0xff]  ;;  %v5974_v53 = vpack.c.bf16 %v299_v48, %v291_v47 }
 0x24f   :  { %6447 = vmatprep.subr.bf16.mxu1 %v6446_v0  ;;  %3480 = vmatprep.mubr.f32.mxu0 %v7133_v16  ;;  %v235_v0 = vld [vmem:[#allocation7 + $0x468] sm:$0xff]  ;;  %v5956_v3 = vpack.c.bf16 %v218_v59, %v210_v58  ;;  %v6468_v4 = vpack.c.bf16 %v220_v62, %v212_v60  ;;  %v290_v54 = vld [vmem:[#allocation7 + $0x620] sm:$0xff]  ;;  %v300_v58 = vld [vmem:[#allocation7 + $0x670] sm:$0xff] }
 0x250   :  { %4096 = vmatprep.mubr.f32.mxu1 %v7133_v16  ;;  %v5958_v5 = vpack.c.bf16 %v235_v0, %v227_v63  ;;  %v307_v59 = vld [vmem:[#allocation7 + $0x6a8] sm:$0xff]  ;;  %v317_v62 = vld [vmem:[#allocation7 + $0x6f8] sm:$0xff] }
 0x251   :  { %5937 = vmatpush1.bf16.msra.mxu0 %v5936_v6  ;;  %v226_v6 = vld [vmem:[#allocation7 + $0x420] sm:$0xff]  ;;  %v315_v60 = vld [vmem:[#allocation7 + $0x6e8] sm:$0xff] }
 0x252   :  { %6449 = vmatpush1.bf16.msra.mxu1 %v6448_v7  ;;  %5939 = vmatprep.subr.bf16.mxu0 %v5938_v8  ;;  %v234_v7 = vld [vmem:[#allocation7 + $0x460] sm:$0xff]  ;;  %v228_v8 = vld [vmem:[#allocation7 + $0x430] sm:$0xff]  ;;  %v5978_v1 = vpack.c.bf16 %v315_v60, %v307_v59  ;;  %v397_v59 = vld [vmem:[#allocation7 + $0x978] sm:$0xff] }
 0x253   :  { %6451 = vmatprep.subr.bf16.mxu1 %v6450_v12  ;;  %v251_v12 = vld [vmem:[#allocation7 + $0x4e8] sm:$0xff]  ;;  %v5960_v15 = vpack.c.bf16 %v234_v7, %v226_v6  ;;  %v6472_v16 = vpack.c.bf16 %v236_v10, %v228_v8  ;;  %v316_v6 = vld [vmem:[#allocation7 + $0x6f0] sm:$0xff]  ;;  %v333_v10 = vld [vmem:[#allocation7 + $0x778] sm:$0xff] }
 0x254   :  { %v5962_v17 = vpack.c.bf16 %v251_v12, %v243_v11  ;;  %v323_v7 = vld [vmem:[#allocation7 + $0x728] sm:$0xff] }
 0x255   :  { %5941 = vmatpush1.bf16.msra.mxu0 %v5940_v19  ;;  %v250_v19 = vld [vmem:[#allocation7 + $0x4e0] sm:$0xff]  ;;  %v331_v8 = vld [vmem:[#allocation7 + $0x768] sm:$0xff] }
 0x256   :  { %6453 = vmatpush1.bf16.msra.mxu1 %v6452_v20  ;;  %5943 = vmatprep.subr.bf16.mxu0 %v5942_v21  ;;  %v244_v20 = vld [vmem:[#allocation7 + $0x4b0] sm:$0xff]  ;;  %v6474_v21 = vpack.c.bf16 %v253_v14, %v245_v13  ;;  %v5964_v27 = vpack.c.bf16 %v250_v19, %v242_v18  ;;  %v5982_v13 = vpack.c.bf16 %v331_v8, %v323_v7  ;;  %v322_v14 = vld [vmem:[#allocation7 + $0x720] sm:$0xff]  ;;  %v339_v19 = vld [vmem:[#allocation7 + $0x7a8] sm:$0xff] }
 0x257   :  { %6455 = vmatprep.subr.bf16.mxu1 %v6454_v25  ;;  %v261_v25 = vld [vmem:[#allocation7 + $0x538] sm:$0xff]  ;;  %v6476_v28 = vpack.c.bf16 %v252_v22, %v244_v20  ;;  %v332_v18 = vld [vmem:[#allocation7 + $0x770] sm:$0xff]  ;;  %v347_v20 = vld [vmem:[#allocation7 + $0x7e8] sm:$0xff] }
 0x258   :  { %v349_v22 = vld [vmem:[#allocation7 + $0x7f8] sm:$0xff] }
 0x259   :  { %5945 = vmatpush1.bf16.msra.mxu0 %v5944_v31  ;;  %v266_v31 = vld [vmem:[#allocation7 + $0x560] sm:$0xff]  ;;  %v405_v7 = vld [vmem:[#allocation7 + $0x9b8] sm:$0xff] }
 0x25a   :  { %6457 = vmatpush1.bf16.msra.mxu1 %v6456_v32  ;;  %5947 = vmatprep.subr.bf16.mxu0 %v5946_v33  ;;  %v260_v32 = vld [vmem:[#allocation7 + $0x530] sm:$0xff]  ;;  %v6478_v33 = vpack.c.bf16 %v269_v26, %v261_v25  ;;  %v5968_v39 = vpack.c.bf16 %v266_v31, %v258_v30  ;;  %v5986_v25 = vpack.c.bf16 %v347_v20, %v339_v19  ;;  %v338_v26 = vld [vmem:[#allocation7 + $0x7a0] sm:$0xff]  ;;  %v355_v31 = vld [vmem:[#allocation7 + $0x828] sm:$0xff] }
 0x25b   :  { %6459 = vmatprep.subr.bf16.mxu1 %v6458_v37  ;;  %v277_v37 = vld [vmem:[#allocation7 + $0x5b8] sm:$0xff]  ;;  %v6480_v40 = vpack.c.bf16 %v268_v34, %v260_v32  ;;  %v348_v30 = vld [vmem:[#allocation7 + $0x7f0] sm:$0xff]  ;;  %v363_v32 = vld [vmem:[#allocation7 + $0x868] sm:$0xff] }
 0x25c   :  { %v365_v34 = vld [vmem:[#allocation7 + $0x878] sm:$0xff]  ;;  %v427_v19 = vld [vmem:[#allocation7 + $0xa68] sm:$0xff] }
 0x25d   :  { %5949 = vmatpush1.bf16.msra.mxu0 %v5948_v43  ;;  %v282_v43 = vld [vmem:[#allocation7 + $0x5e0] sm:$0xff]  ;;  %v413_v8 = vld [vmem:[#allocation7 + $0x9f8] sm:$0xff] }
 0x25e   :  { %6461 = vmatpush1.bf16.msra.mxu1 %v6460_v44  ;;  %5951 = vmatprep.subr.bf16.mxu0 %v5950_v45  ;;  %v276_v44 = vld [vmem:[#allocation7 + $0x5b0] sm:$0xff]  ;;  %v6482_v45 = vpack.c.bf16 %v285_v38, %v277_v37  ;;  %v5972_v51 = vpack.c.bf16 %v282_v43, %v274_v42  ;;  %v5990_v37 = vpack.c.bf16 %v363_v32, %v355_v31  ;;  %v354_v38 = vld [vmem:[#allocation7 + $0x820] sm:$0xff]  ;;  %v371_v43 = vld [vmem:[#allocation7 + $0x8a8] sm:$0xff] }
 0x25f   :  { %6463 = vmatprep.subr.bf16.mxu1 %v6462_v49  ;;  %v293_v49 = vld [vmem:[#allocation7 + $0x638] sm:$0xff]  ;;  %v6484_v52 = vpack.c.bf16 %v284_v46, %v276_v44  ;;  %v364_v42 = vld [vmem:[#allocation7 + $0x870] sm:$0xff]  ;;  %v379_v44 = vld [vmem:[#allocation7 + $0x8e8] sm:$0xff] }
 0x260   :  { %v381_v46 = vld [vmem:[#allocation7 + $0x8f8] sm:$0xff]  ;;  %v435_v31 = vld [vmem:[#allocation7 + $0xaa8] sm:$0xff] }
 0x261   :  { %5953 = vmatpush1.bf16.msra.mxu0 %v5952_v55  ;;  %v298_v55 = vld [vmem:[#allocation7 + $0x660] sm:$0xff]  ;;  %v7137_v20 = vld [vmem:[#allocation4 + $0x18] sm:$0xff]  ;;  %v443_v32 = vld [vmem:[#allocation7 + $0xae8] sm:$0xff] }
 0x262   :  { %6465 = vmatpush1.bf16.msra.mxu1 %v6464_v56  ;;  %5955 = vmatprep.subr.bf16.mxu0 %v5954_v57  ;;  %v292_v56 = vld [vmem:[#allocation7 + $0x630] sm:$0xff]  ;;  %v6486_v57 = vpack.c.bf16 %v301_v50, %v293_v49  ;;  %v5976_v63 = vpack.c.bf16 %v298_v55, %v290_v54  ;;  %v5994_v49 = vpack.c.bf16 %v379_v44, %v371_v43  ;;  %v370_v50 = vld [vmem:[#allocation7 + $0x8a0] sm:$0xff]  ;;  %v387_v55 = vld [vmem:[#allocation7 + $0x928] sm:$0xff] }
 0x263   :  { %6467 = vmatprep.subr.bf16.mxu1 %v6466_v61  ;;  %v309_v61 = vld [vmem:[#allocation7 + $0x6b8] sm:$0xff]  ;;  %v6488_v0 = vpack.c.bf16 %v300_v58, %v292_v56  ;;  %v380_v54 = vld [vmem:[#allocation7 + $0x8f0] sm:$0xff]  ;;  %v395_v56 = vld [vmem:[#allocation7 + $0x968] sm:$0xff] }
 0x264   :  { %v389_v58 = vld [vmem:[#allocation7 + $0x938] sm:$0xff]  ;;  %v451_v43 = vld [vmem:[#allocation7 + $0xb28] sm:$0xff] }
 0x265   :  { %5957 = vmatpush1.bf16.msra.mxu0 %v5956_v3  ;;  %v314_v3 = vld [vmem:[#allocation7 + $0x6e0] sm:$0xff]  ;;  %v459_v44 = vld [vmem:[#allocation7 + $0xb68] sm:$0xff] }
 0x266   :  { %6469 = vmatpush1.bf16.msra.mxu1 %v6468_v4  ;;  %5959 = vmatprep.subr.bf16.mxu0 %v5958_v5  ;;  %v308_v4 = vld [vmem:[#allocation7 + $0x6b0] sm:$0xff]  ;;  %v6490_v5 = vpack.c.bf16 %v317_v62, %v309_v61  ;;  %v5980_v11 = vpack.c.bf16 %v314_v3, %v306_v2  ;;  %v5998_v62 = vpack.c.bf16 %v395_v56, %v387_v55  ;;  %v467_v55 = vld [vmem:[#allocation7 + $0xba8] sm:$0xff] }
 0x267   :  { %6471 = vmatprep.subr.bf16.mxu1 %v6470_v9  ;;  %v325_v9 = vld [vmem:[#allocation7 + $0x738] sm:$0xff]  ;;  %v6492_v12 = vpack.c.bf16 %v316_v6, %v308_v4  ;;  %v6510_v2 = vpack.c.bf16 %v397_v59, %v389_v58  ;;  %v396_v3 = vld [vmem:[#allocation7 + $0x970] sm:$0xff]  ;;  %v403_v4 = vld [vmem:[#allocation7 + $0x9a8] sm:$0xff] }
 0x268   :  { %v7135_v6 = vld [vmem:[#allocation4 + $0x88] sm:$0xff]  ;;  %v477_v58 = vld [vmem:[#allocation7 + $0xbf8] sm:$0xff] }
 0x269   :  { %5961 = vmatpush1.bf16.msra.mxu0 %v5960_v15  ;;  %v330_v15 = vld [vmem:[#allocation7 + $0x760] sm:$0xff]  ;;  %v475_v56 = vld [vmem:[#allocation7 + $0xbe8] sm:$0xff] }
 0x26a   :  { %6473 = vmatpush1.bf16.msra.mxu1 %v6472_v16  ;;  %5963 = vmatprep.subr.bf16.mxu0 %v5962_v17  ;;  %v324_v16 = vld [vmem:[#allocation7 + $0x730] sm:$0xff]  ;;  %v6494_v17 = vpack.c.bf16 %v333_v10, %v325_v9  ;;  %v5984_v23 = vpack.c.bf16 %v330_v15, %v322_v14  ;;  %v7136_v9 = vld [vmem:[#allocation4 + $0x80] sm:$0xff] }
 0x26b   :  { %6475 = vmatprep.subr.bf16.mxu1 %v6474_v21  ;;  %v341_v21 = vld [vmem:[#allocation7 + $0x7b8] sm:$0xff]  ;;  %v6496_v24 = vpack.c.bf16 %v332_v18, %v324_v16  ;;  %v410_v14 = vld [vmem:[#allocation7 + $0x9e0] sm:$0xff]  ;;  %v404_v15 = vld [vmem:[#allocation7 + $0x9b0] sm:$0xff]  ;;  %v6514_v16 = vpack.c.bf16 %v413_v8, %v405_v7 }
 0x26c   :  { %v419_v18 = vld [vmem:[#allocation7 + $0xa28] sm:$0xff] }
 0x26d   :  { %5965 = vmatpush1.bf16.msra.mxu0 %v5964_v27  ;;  %v346_v27 = vld [vmem:[#allocation7 + $0x7e0] sm:$0xff] }
 0x26e   :  { %6477 = vmatpush1.bf16.msra.mxu1 %v6476_v28  ;;  %5967 = vmatprep.subr.bf16.mxu0 %v5966_v29  ;;  %v340_v28 = vld [vmem:[#allocation7 + $0x7b0] sm:$0xff]  ;;  %v6498_v29 = vpack.c.bf16 %v349_v22, %v341_v21  ;;  %v5988_v35 = vpack.c.bf16 %v346_v27, %v338_v26  ;;  %v421_v21 = vld [vmem:[#allocation7 + $0xa38] sm:$0xff]  ;;  %v418_v26 = vld [vmem:[#allocation7 + $0xa20] sm:$0xff] }
 0x26f   :  { %6479 = vmatprep.subr.bf16.mxu1 %v6478_v33  ;;  %v357_v33 = vld [vmem:[#allocation7 + $0x838] sm:$0xff]  ;;  %v6500_v36 = vpack.c.bf16 %v348_v30, %v340_v28  ;;  %v426_v27 = vld [vmem:[#allocation7 + $0xa60] sm:$0xff]  ;;  %v420_v28 = vld [vmem:[#allocation7 + $0xa30] sm:$0xff] }
 0x270   :  { %v429_v22 = vld [vmem:[#allocation7 + $0xa78] sm:$0xff]  ;;  %v428_v30 = vld [vmem:[#allocation7 + $0xa70] sm:$0xff] }
 0x271   :  { %5969 = vmatpush1.bf16.msra.mxu0 %v5968_v39  ;;  %v362_v39 = vld [vmem:[#allocation7 + $0x860] sm:$0xff] }
 0x272   :  { %6481 = vmatpush1.bf16.msra.mxu1 %v6480_v40  ;;  %5971 = vmatprep.subr.bf16.mxu0 %v5970_v41  ;;  %v356_v40 = vld [vmem:[#allocation7 + $0x830] sm:$0xff]  ;;  %v6502_v41 = vpack.c.bf16 %v365_v34, %v357_v33  ;;  %v5992_v47 = vpack.c.bf16 %v362_v39, %v354_v38  ;;  %v437_v33 = vld [vmem:[#allocation7 + $0xab8] sm:$0xff]  ;;  %v434_v38 = vld [vmem:[#allocation7 + $0xaa0] sm:$0xff] }
 0x273   :  { %6483 = vmatprep.subr.bf16.mxu1 %v6482_v45  ;;  %v373_v45 = vld [vmem:[#allocation7 + $0x8b8] sm:$0xff]  ;;  %v6504_v48 = vpack.c.bf16 %v364_v42, %v356_v40  ;;  %v442_v39 = vld [vmem:[#allocation7 + $0xae0] sm:$0xff]  ;;  %v436_v40 = vld [vmem:[#allocation7 + $0xab0] sm:$0xff] }
 0x274   :  { %v445_v34 = vld [vmem:[#allocation7 + $0xaf8] sm:$0xff]  ;;  %v444_v42 = vld [vmem:[#allocation7 + $0xaf0] sm:$0xff] }
 0x275   :  { %5973 = vmatpush1.bf16.msra.mxu0 %v5972_v51  ;;  %v378_v51 = vld [vmem:[#allocation7 + $0x8e0] sm:$0xff] }
 0x276   :  { %6485 = vmatpush1.bf16.msra.mxu1 %v6484_v52  ;;  %5975 = vmatprep.subr.bf16.mxu0 %v5974_v53  ;;  %v372_v52 = vld [vmem:[#allocation7 + $0x8b0] sm:$0xff]  ;;  %v6506_v53 = vpack.c.bf16 %v381_v46, %v373_v45  ;;  %v5996_v60 = vpack.c.bf16 %v378_v51, %v370_v50  ;;  %v453_v45 = vld [vmem:[#allocation7 + $0xb38] sm:$0xff]  ;;  %v450_v50 = vld [vmem:[#allocation7 + $0xb20] sm:$0xff] }
 0x277   :  { %6487 = vmatprep.subr.bf16.mxu1 %v6486_v57  ;;  %v7134_v57 = vld [vmem:[#allocation4] sm:$0xff]  ;;  %v6508_v61 = vpack.c.bf16 %v380_v54, %v372_v52  ;;  %v461_v46 = vld [vmem:[#allocation7 + $0xb78] sm:$0xff]  ;;  %v452_v52 = vld [vmem:[#allocation7 + $0xb30] sm:$0xff] }
 0x278   :  { %v458_v51 = vld [vmem:[#allocation7 + $0xb60] sm:$0xff]  ;;  %v460_v54 = vld [vmem:[#allocation7 + $0xb70] sm:$0xff] }
 0x279   :  { %5977 = vmatpush1.bf16.msra.mxu0 %v5976_v63  ;;  %v386_v63 = vld [vmem:[#allocation7 + $0x920] sm:$0xff]  ;;  %v6016_v59 = vpack.c.bf16 %v458_v51, %v450_v50  ;;  %v540_v50 = vld [vmem:[#allocation7 + $0xdf0] sm:$0xff]  ;;  %v547_v51 = vld [vmem:[#allocation7 + $0xe28] sm:$0xff] }
 0x27a   :  { %6489 = vmatpush1.bf16.msra.mxu1 %v6488_v0  ;;  %5979 = vmatprep.subr.bf16.mxu0 %v5978_v1  ;;  %v394_v0 = vld [vmem:[#allocation7 + $0x960] sm:$0xff]  ;;  %v388_v1 = vld [vmem:[#allocation7 + $0x930] sm:$0xff] }
 0x27b   :  { %6491 = vmatprep.subr.bf16.mxu1 %v6490_v5  ;;  %v411_v5 = vld [vmem:[#allocation7 + $0x9e8] sm:$0xff]  ;;  %v6000_v10 = vpack.c.bf16 %v394_v0, %v386_v63  ;;  %v474_v63 = vld [vmem:[#allocation7 + $0xbe0] sm:$0xff]  ;;  %v468_v0 = vld [vmem:[#allocation7 + $0xbb0] sm:$0xff] }
 0x27d   :  { %5981 = vmatpush1.bf16.msra.mxu0 %v5980_v11  ;;  %v6512_v11 = vpack.c.bf16 %v396_v3, %v388_v1  ;;  %v483_v3 = vld [vmem:[#allocation7 + $0xc28] sm:$0xff] }
 0x27e   :  { %6493 = vmatpush1.bf16.msra.mxu1 %v6492_v12  ;;  %5983 = vmatprep.subr.bf16.mxu0 %v5982_v13  ;;  %v6002_v12 = vpack.c.bf16 %v411_v5, %v403_v4  ;;  %v402_v13 = vld [vmem:[#allocation7 + $0x9a0] sm:$0xff]  ;;  %v491_v4 = vld [vmem:[#allocation7 + $0xc68] sm:$0xff]  ;;  %v485_v5 = vld [vmem:[#allocation7 + $0xc38] sm:$0xff] }
 0x27f   :  { %6495 = vmatprep.subr.bf16.mxu1 %v6494_v17  ;;  %v412_v17 = vld [vmem:[#allocation7 + $0x9f0] sm:$0xff] }
 0x281   :  { %5985 = vmatpush1.bf16.msra.mxu0 %v5984_v23  ;;  %v6004_v23 = vpack.c.bf16 %v410_v14, %v402_v13  ;;  %v492_v14 = vld [vmem:[#allocation7 + $0xc70] sm:$0xff] }
 0x282   :  { %6497 = vmatpush1.bf16.msra.mxu1 %v6496_v24  ;;  %5987 = vmatprep.subr.bf16.mxu0 %v5986_v25  ;;  %v6516_v24 = vpack.c.bf16 %v412_v17, %v404_v15  ;;  %v6006_v25 = vpack.c.bf16 %v427_v19, %v419_v18  ;;  %v499_v15 = vld [vmem:[#allocation7 + $0xca8] sm:$0xff]  ;;  %v501_v17 = vld [vmem:[#allocation7 + $0xcb8] sm:$0xff] }
 0x283   :  { %6499 = vmatprep.subr.bf16.mxu1 %v6498_v29  ;;  %v6518_v29 = vpack.c.bf16 %v429_v22, %v421_v21  ;;  %v509_v18 = vld [vmem:[#allocation7 + $0xcf8] sm:$0xff]  ;;  %v498_v22 = vld [vmem:[#allocation7 + $0xca0] sm:$0xff] }
 0x285   :  { %5989 = vmatpush1.bf16.msra.mxu0 %v5988_v35  ;;  %v6008_v35 = vpack.c.bf16 %v426_v27, %v418_v26  ;;  %v508_v26 = vld [vmem:[#allocation7 + $0xcf0] sm:$0xff]  ;;  %v515_v27 = vld [vmem:[#allocation7 + $0xd28] sm:$0xff] }
 0x286   :  { %6501 = vmatpush1.bf16.msra.mxu1 %v6500_v36  ;;  %5991 = vmatprep.subr.bf16.mxu0 %v5990_v37  ;;  %v6520_v36 = vpack.c.bf16 %v428_v30, %v420_v28  ;;  %v6010_v37 = vpack.c.bf16 %v443_v32, %v435_v31  ;;  %v523_v28 = vld [vmem:[#allocation7 + $0xd68] sm:$0xff]  ;;  %v525_v30 = vld [vmem:[#allocation7 + $0xd78] sm:$0xff] }
 0x287   :  { %6503 = vmatprep.subr.bf16.mxu1 %v6502_v41  ;;  %v6522_v41 = vpack.c.bf16 %v445_v34, %v437_v33  ;;  %v6030_v33 = vpack.c.bf16 %v523_v28, %v515_v27  ;;  %v514_v34 = vld [vmem:[#allocation7 + $0xd20] sm:$0xff] }
 0x288   :  { %3481 = vmatmul.mubr.f32.vlgmr.msra.gmra.mrb[4].mxu0 %v7134_v57 }
 0x289   :  { %5993 = vmatpush1.bf16.msra.mxu0 %v5992_v47  ;;  %4097 = vmatmul.mubr.f32.vlgmr.msra.gmra.mrb[4].mxu1 %v7134_v57  ;;  %v6012_v47 = vpack.c.bf16 %v442_v39, %v434_v38  ;;  %v469_v57 = vld [vmem:[#allocation7 + $0xbb8] sm:$0xff]  ;;  %v524_v38 = vld [vmem:[#allocation7 + $0xd70] sm:$0xff]  ;;  %v531_v39 = vld [vmem:[#allocation7 + $0xda8] sm:$0xff] }
 0x28a   :  { %6505 = vmatpush1.bf16.msra.mxu1 %v6504_v48  ;;  %5995 = vmatprep.subr.bf16.mxu0 %v5994_v49  ;;  %v6524_v48 = vpack.c.bf16 %v444_v42, %v436_v40  ;;  %v6014_v49 = vpack.c.bf16 %v459_v44, %v451_v43  ;;  %v6530_v1 = vpack.c.bf16 %v477_v58, %v469_v57  ;;  %v539_v40 = vld [vmem:[#allocation7 + $0xde8] sm:$0xff]  ;;  %v541_v42 = vld [vmem:[#allocation7 + $0xdf8] sm:$0xff]  ;;  %v546_v58 = vld [vmem:[#allocation7 + $0xe20] sm:$0xff] }
 0x28b   :  { %6507 = vmatprep.subr.bf16.mxu1 %v6506_v53  ;;  %3486 = vmatprep.mubr.f32.mxu0 %v7135_v6  ;;  %v6526_v53 = vpack.c.bf16 %v461_v46, %v453_v45  ;;  %v6034_v45 = vpack.c.bf16 %v539_v40, %v531_v39  ;;  %v530_v46 = vld [vmem:[#allocation7 + $0xda0] sm:$0xff] }
 0x28c   :  { %4102 = vmatprep.mubr.f32.mxu1 %v7135_v6  ;;  %3487 = vmatmul.mubr.f32.gmra.mrb[6].mxu0 %v7136_v9  ;;  %v493_v6 = vld [vmem:[#allocation7 + $0xc78] sm:$0xff] }
 0x28d   :  { %5997 = vmatpush1.bf16.msra.mxu0 %v5996_v60  ;;  %4103 = vmatmul.mubr.f32.gmra.mrb[6].mxu1 %v7136_v9  ;;  %v6528_v60 = vpack.c.bf16 %v460_v54, %v452_v52  ;;  %v6022_v9 = vpack.c.bf16 %v491_v4, %v483_v3  ;;  %v6534_v13 = vpack.c.bf16 %v493_v6, %v485_v5  ;;  %v555_v52 = vld [vmem:[#allocation7 + $0xe68] sm:$0xff]  ;;  %v557_v54 = vld [vmem:[#allocation7 + $0xe78] sm:$0xff]  ;;  %v562_v6 = vld [vmem:[#allocation7 + $0xea0] sm:$0xff] }
 0x28e   :  { %6509 = vmatpush1.bf16.msra.mxu1 %v6508_v61  ;;  %5999 = vmatprep.subr.bf16.mxu0 %v5998_v62  ;;  %v6018_v61 = vpack.c.bf16 %v475_v56, %v467_v55  ;;  %v466_v62 = vld [vmem:[#allocation7 + $0xba0] sm:$0xff]  ;;  %v6038_v57 = vpack.c.bf16 %v555_v52, %v547_v51 }
 0x28f   :  { %6511 = vmatprep.subr.bf16.mxu1 %v6510_v2  ;;  %3557 = vmatprep.mubr.f32.mxu0 %v7137_v20  ;;  %v476_v2 = vld [vmem:[#allocation7 + $0xbf0] sm:$0xff]  ;;  %v6020_v7 = vpack.c.bf16 %v474_v63, %v466_v62  ;;  %v563_v63 = vld [vmem:[#allocation7 + $0xea8] sm:$0xff] }
 0x290   :  { %4173 = vmatprep.mubr.f32.mxu1 %v7137_v20  ;;  %v6532_v8 = vpack.c.bf16 %v476_v2, %v468_v0  ;;  %v556_v62 = vld [vmem:[#allocation7 + $0xe70] sm:$0xff]  ;;  %v571_v0 = vld [vmem:[#allocation7 + $0xee8] sm:$0xff]  ;;  %v573_v2 = vld [vmem:[#allocation7 + $0xef8] sm:$0xff] }
 0x291   :  { %6001 = vmatpush1.bf16.msra.mxu0 %v6000_v10  ;;  %v482_v10 = vld [vmem:[#allocation7 + $0xc20] sm:$0xff]  ;;  %v6042_v5 = vpack.c.bf16 %v571_v0, %v563_v63  ;;  %v653_v63 = vld [vmem:[#allocation7 + $0x1178] sm:$0xff] }
 0x292   :  { %6513 = vmatpush1.bf16.msra.mxu1 %v6512_v11  ;;  %6003 = vmatprep.subr.bf16.mxu0 %v6002_v12  ;;  %v490_v11 = vld [vmem:[#allocation7 + $0xc60] sm:$0xff]  ;;  %v484_v12 = vld [vmem:[#allocation7 + $0xc30] sm:$0xff] }
 0x293   :  { %6515 = vmatprep.subr.bf16.mxu1 %v6514_v16  ;;  %v507_v16 = vld [vmem:[#allocation7 + $0xce8] sm:$0xff]  ;;  %v6024_v19 = vpack.c.bf16 %v490_v11, %v482_v10  ;;  %v6536_v20 = vpack.c.bf16 %v492_v14, %v484_v12  ;;  %v572_v10 = vld [vmem:[#allocation7 + $0xef0] sm:$0xff]  ;;  %v589_v14 = vld [vmem:[#allocation7 + $0xf78] sm:$0xff] }
 0x294   :  { %v6026_v21 = vpack.c.bf16 %v507_v16, %v499_v15  ;;  %v579_v11 = vld [vmem:[#allocation7 + $0xf28] sm:$0xff] }
 0x295   :  { %6005 = vmatpush1.bf16.msra.mxu0 %v6004_v23  ;;  %v506_v23 = vld [vmem:[#allocation7 + $0xce0] sm:$0xff]  ;;  %v587_v12 = vld [vmem:[#allocation7 + $0xf68] sm:$0xff] }
 0x296   :  { %6517 = vmatpush1.bf16.msra.mxu1 %v6516_v24  ;;  %6007 = vmatprep.subr.bf16.mxu0 %v6006_v25  ;;  %v500_v24 = vld [vmem:[#allocation7 + $0xcb0] sm:$0xff]  ;;  %v6538_v25 = vpack.c.bf16 %v509_v18, %v501_v17  ;;  %v6028_v31 = vpack.c.bf16 %v506_v23, %v498_v22  ;;  %v6046_v17 = vpack.c.bf16 %v587_v12, %v579_v11  ;;  %v578_v18 = vld [vmem:[#allocation7 + $0xf20] sm:$0xff]  ;;  %v595_v23 = vld [vmem:[#allocation7 + $0xfa8] sm:$0xff] }
 0x297   :  { %6519 = vmatprep.subr.bf16.mxu1 %v6518_v29  ;;  %v517_v29 = vld [vmem:[#allocation7 + $0xd38] sm:$0xff]  ;;  %v6540_v32 = vpack.c.bf16 %v508_v26, %v500_v24  ;;  %v588_v22 = vld [vmem:[#allocation7 + $0xf70] sm:$0xff]  ;;  %v603_v24 = vld [vmem:[#allocation7 + $0xfe8] sm:$0xff] }
 0x298   :  { %v605_v26 = vld [vmem:[#allocation7 + $0xff8] sm:$0xff] }
 0x299   :  { %6009 = vmatpush1.bf16.msra.mxu0 %v6008_v35  ;;  %v522_v35 = vld [vmem:[#allocation7 + $0xd60] sm:$0xff]  ;;  %v661_v11 = vld [vmem:[#allocation7 + $0x11b8] sm:$0xff] }
 0x29a   :  { %6521 = vmatpush1.bf16.msra.mxu1 %v6520_v36  ;;  %6011 = vmatprep.subr.bf16.mxu0 %v6010_v37  ;;  %v516_v36 = vld [vmem:[#allocation7 + $0xd30] sm:$0xff]  ;;  %v6542_v37 = vpack.c.bf16 %v525_v30, %v517_v29  ;;  %v6032_v43 = vpack.c.bf16 %v522_v35, %v514_v34  ;;  %v6050_v29 = vpack.c.bf16 %v603_v24, %v595_v23  ;;  %v594_v30 = vld [vmem:[#allocation7 + $0xfa0] sm:$0xff]  ;;  %v611_v35 = vld [vmem:[#allocation7 + $0x1028] sm:$0xff] }
 0x29b   :  { %6523 = vmatprep.subr.bf16.mxu1 %v6522_v41  ;;  %v533_v41 = vld [vmem:[#allocation7 + $0xdb8] sm:$0xff]  ;;  %v6544_v44 = vpack.c.bf16 %v524_v38, %v516_v36  ;;  %v604_v34 = vld [vmem:[#allocation7 + $0xff0] sm:$0xff]  ;;  %v619_v36 = vld [vmem:[#allocation7 + $0x1068] sm:$0xff] }
 0x29c   :  { %v621_v38 = vld [vmem:[#allocation7 + $0x1078] sm:$0xff]  ;;  %v683_v23 = vld [vmem:[#allocation7 + $0x1268] sm:$0xff] }
 0x29d   :  { %6013 = vmatpush1.bf16.msra.mxu0 %v6012_v47  ;;  %v538_v47 = vld [vmem:[#allocation7 + $0xde0] sm:$0xff]  ;;  %v669_v12 = vld [vmem:[#allocation7 + $0x11f8] sm:$0xff]  ;;  %v7141_v24 = vld [vmem:[#allocation4 + $0x28] sm:$0xff] }
 0x29e   :  { %6525 = vmatpush1.bf16.msra.mxu1 %v6524_v48  ;;  %6015 = vmatprep.subr.bf16.mxu0 %v6014_v49  ;;  %v532_v48 = vld [vmem:[#allocation7 + $0xdb0] sm:$0xff]  ;;  %v6546_v49 = vpack.c.bf16 %v541_v42, %v533_v41  ;;  %v6036_v55 = vpack.c.bf16 %v538_v47, %v530_v46  ;;  %v6054_v41 = vpack.c.bf16 %v619_v36, %v611_v35  ;;  %v610_v42 = vld [vmem:[#allocation7 + $0x1020] sm:$0xff]  ;;  %v627_v47 = vld [vmem:[#allocation7 + $0x10a8] sm:$0xff] }
 0x29f   :  { %6527 = vmatprep.subr.bf16.mxu1 %v6526_v53  ;;  %v549_v53 = vld [vmem:[#allocation7 + $0xe38] sm:$0xff]  ;;  %v6548_v56 = vpack.c.bf16 %v540_v50, %v532_v48  ;;  %v620_v46 = vld [vmem:[#allocation7 + $0x1070] sm:$0xff]  ;;  %v635_v48 = vld [vmem:[#allocation7 + $0x10e8] sm:$0xff] }
 0x2a0   :  { %v637_v50 = vld [vmem:[#allocation7 + $0x10f8] sm:$0xff]  ;;  %v691_v35 = vld [vmem:[#allocation7 + $0x12a8] sm:$0xff] }
 0x2a1   :  { %6017 = vmatpush1.bf16.msra.mxu0 %v6016_v59  ;;  %v554_v59 = vld [vmem:[#allocation7 + $0xe60] sm:$0xff]  ;;  %v699_v36 = vld [vmem:[#allocation7 + $0x12e8] sm:$0xff] }
 0x2a2   :  { %6529 = vmatpush1.bf16.msra.mxu1 %v6528_v60  ;;  %6019 = vmatprep.subr.bf16.mxu0 %v6018_v61  ;;  %v548_v60 = vld [vmem:[#allocation7 + $0xe30] sm:$0xff]  ;;  %v6550_v61 = vpack.c.bf16 %v557_v54, %v549_v53  ;;  %v6040_v3 = vpack.c.bf16 %v554_v59, %v546_v58  ;;  %v6058_v53 = vpack.c.bf16 %v635_v48, %v627_v47  ;;  %v626_v54 = vld [vmem:[#allocation7 + $0x10a0] sm:$0xff]  ;;  %v643_v59 = vld [vmem:[#allocation7 + $0x1128] sm:$0xff] }
 0x2a3   :  { %6531 = vmatprep.subr.bf16.mxu1 %v6530_v1  ;;  %v565_v1 = vld [vmem:[#allocation7 + $0xeb8] sm:$0xff]  ;;  %v6552_v4 = vpack.c.bf16 %v556_v62, %v548_v60  ;;  %v636_v58 = vld [vmem:[#allocation7 + $0x10f0] sm:$0xff]  ;;  %v651_v60 = vld [vmem:[#allocation7 + $0x1168] sm:$0xff] }
 0x2a4   :  { %v645_v62 = vld [vmem:[#allocation7 + $0x1138] sm:$0xff]  ;;  %v707_v47 = vld [vmem:[#allocation7 + $0x1328] sm:$0xff] }
 0x2a5   :  { %6021 = vmatpush1.bf16.msra.mxu0 %v6020_v7  ;;  %v570_v7 = vld [vmem:[#allocation7 + $0xee0] sm:$0xff]  ;;  %v715_v48 = vld [vmem:[#allocation7 + $0x1368] sm:$0xff] }
 0x2a6   :  { %6533 = vmatpush1.bf16.msra.mxu1 %v6532_v8  ;;  %6023 = vmatprep.subr.bf16.mxu0 %v6022_v9  ;;  %v564_v8 = vld [vmem:[#allocation7 + $0xeb0] sm:$0xff]  ;;  %v6554_v9 = vpack.c.bf16 %v573_v2, %v565_v1  ;;  %v6044_v15 = vpack.c.bf16 %v570_v7, %v562_v6  ;;  %v6062_v2 = vpack.c.bf16 %v651_v60, %v643_v59  ;;  %v723_v59 = vld [vmem:[#allocation7 + $0x13a8] sm:$0xff] }
 0x2a7   :  { %6535 = vmatprep.subr.bf16.mxu1 %v6534_v13  ;;  %v581_v13 = vld [vmem:[#allocation7 + $0xf38] sm:$0xff]  ;;  %v6556_v16 = vpack.c.bf16 %v572_v10, %v564_v8  ;;  %v6574_v6 = vpack.c.bf16 %v653_v63, %v645_v62  ;;  %v652_v7 = vld [vmem:[#allocation7 + $0x1170] sm:$0xff]  ;;  %v659_v8 = vld [vmem:[#allocation7 + $0x11a8] sm:$0xff] }
 0x2a8   :  { %v7139_v10 = vld [vmem:[#allocation4 + $0x98] sm:$0xff]  ;;  %v731_v60 = vld [vmem:[#allocation7 + $0x13e8] sm:$0xff] }
 0x2a9   :  { %6025 = vmatpush1.bf16.msra.mxu0 %v6024_v19  ;;  %v586_v19 = vld [vmem:[#allocation7 + $0xf60] sm:$0xff]  ;;  %v733_v62 = vld [vmem:[#allocation7 + $0x13f8] sm:$0xff] }
 0x2aa   :  { %6537 = vmatpush1.bf16.msra.mxu1 %v6536_v20  ;;  %6027 = vmatprep.subr.bf16.mxu0 %v6026_v21  ;;  %v580_v20 = vld [vmem:[#allocation7 + $0xf30] sm:$0xff]  ;;  %v6558_v21 = vpack.c.bf16 %v589_v14, %v581_v13  ;;  %v6048_v27 = vpack.c.bf16 %v586_v19, %v578_v18  ;;  %v666_v18 = vld [vmem:[#allocation7 + $0x11e0] sm:$0xff] }
 0x2ab   :  { %6539 = vmatprep.subr.bf16.mxu1 %v6538_v25  ;;  %v597_v25 = vld [vmem:[#allocation7 + $0xfb8] sm:$0xff]  ;;  %v6560_v28 = vpack.c.bf16 %v588_v22, %v580_v20  ;;  %v7140_v13 = vld [vmem:[#allocation4 + $0x90] sm:$0xff]  ;;  %v6578_v20 = vpack.c.bf16 %v669_v12, %v661_v11  ;;  %v675_v22 = vld [vmem:[#allocation7 + $0x1228] sm:$0xff] }
 0x2ac   :  { %v660_v19 = vld [vmem:[#allocation7 + $0x11b0] sm:$0xff] }
 0x2ad   :  { %6029 = vmatpush1.bf16.msra.mxu0 %v6028_v31  ;;  %v602_v31 = vld [vmem:[#allocation7 + $0xfe0] sm:$0xff] }
 0x2ae   :  { %6541 = vmatpush1.bf16.msra.mxu1 %v6540_v32  ;;  %6031 = vmatprep.subr.bf16.mxu0 %v6030_v33  ;;  %v596_v32 = vld [vmem:[#allocation7 + $0xfb0] sm:$0xff]  ;;  %v6562_v33 = vpack.c.bf16 %v605_v26, %v597_v25  ;;  %v6052_v39 = vpack.c.bf16 %v602_v31, %v594_v30  ;;  %v677_v25 = vld [vmem:[#allocation7 + $0x1238] sm:$0xff]  ;;  %v674_v30 = vld [vmem:[#allocation7 + $0x1220] sm:$0xff] }
 0x2af   :  { %6543 = vmatprep.subr.bf16.mxu1 %v6542_v37  ;;  %v613_v37 = vld [vmem:[#allocation7 + $0x1038] sm:$0xff]  ;;  %v6564_v40 = vpack.c.bf16 %v604_v34, %v596_v32  ;;  %v682_v31 = vld [vmem:[#allocation7 + $0x1260] sm:$0xff]  ;;  %v676_v32 = vld [vmem:[#allocation7 + $0x1230] sm:$0xff] }
 0x2b0   :  { %v685_v26 = vld [vmem:[#allocation7 + $0x1278] sm:$0xff]  ;;  %v684_v34 = vld [vmem:[#allocation7 + $0x1270] sm:$0xff] }
 0x2b1   :  { %6033 = vmatpush1.bf16.msra.mxu0 %v6032_v43  ;;  %v618_v43 = vld [vmem:[#allocation7 + $0x1060] sm:$0xff] }
 0x2b2   :  { %6545 = vmatpush1.bf16.msra.mxu1 %v6544_v44  ;;  %6035 = vmatprep.subr.bf16.mxu0 %v6034_v45  ;;  %v612_v44 = vld [vmem:[#allocation7 + $0x1030] sm:$0xff]  ;;  %v6566_v45 = vpack.c.bf16 %v621_v38, %v613_v37  ;;  %v6056_v51 = vpack.c.bf16 %v618_v43, %v610_v42  ;;  %v693_v37 = vld [vmem:[#allocation7 + $0x12b8] sm:$0xff]  ;;  %v690_v42 = vld [vmem:[#allocation7 + $0x12a0] sm:$0xff] }
 0x2b3   :  { %6547 = vmatprep.subr.bf16.mxu1 %v6546_v49  ;;  %v629_v49 = vld [vmem:[#allocation7 + $0x10b8] sm:$0xff]  ;;  %v6568_v52 = vpack.c.bf16 %v620_v46, %v612_v44  ;;  %v698_v43 = vld [vmem:[#allocation7 + $0x12e0] sm:$0xff]  ;;  %v692_v44 = vld [vmem:[#allocation7 + $0x12b0] sm:$0xff] }
 0x2b4   :  { %v701_v38 = vld [vmem:[#allocation7 + $0x12f8] sm:$0xff]  ;;  %v700_v46 = vld [vmem:[#allocation7 + $0x12f0] sm:$0xff] }
 0x2b5   :  { %6037 = vmatpush1.bf16.msra.mxu0 %v6036_v55  ;;  %v634_v55 = vld [vmem:[#allocation7 + $0x10e0] sm:$0xff] }
 0x2b6   :  { %6549 = vmatpush1.bf16.msra.mxu1 %v6548_v56  ;;  %6039 = vmatprep.subr.bf16.mxu0 %v6038_v57  ;;  %v628_v56 = vld [vmem:[#allocation7 + $0x10b0] sm:$0xff]  ;;  %v6570_v57 = vpack.c.bf16 %v637_v50, %v629_v49  ;;  %v6060_v0 = vpack.c.bf16 %v634_v55, %v626_v54  ;;  %v709_v49 = vld [vmem:[#allocation7 + $0x1338] sm:$0xff]  ;;  %v706_v54 = vld [vmem:[#allocation7 + $0x1320] sm:$0xff] }
 0x2b7   :  { %6551 = vmatprep.subr.bf16.mxu1 %v6550_v61  ;;  %v7138_v61 = vld [vmem:[#allocation4 + $0x10] sm:$0xff]  ;;  %v6572_v1 = vpack.c.bf16 %v636_v58, %v628_v56  ;;  %v717_v50 = vld [vmem:[#allocation7 + $0x1378] sm:$0xff]  ;;  %v714_v55 = vld [vmem:[#allocation7 + $0x1360] sm:$0xff] }
 0x2b8   :  { %v708_v56 = vld [vmem:[#allocation7 + $0x1330] sm:$0xff]  ;;  %v6080_v63 = vpack.c.bf16 %v714_v55, %v706_v54  ;;  %v803_v55 = vld [vmem:[#allocation7 + $0x1628] sm:$0xff] }
 0x2b9   :  { %6041 = vmatpush1.bf16.msra.mxu0 %v6040_v3  ;;  %v642_v3 = vld [vmem:[#allocation7 + $0x1120] sm:$0xff]  ;;  %v716_v58 = vld [vmem:[#allocation7 + $0x1370] sm:$0xff] }
 0x2ba   :  { %6553 = vmatpush1.bf16.msra.mxu1 %v6552_v4  ;;  %6043 = vmatprep.subr.bf16.mxu0 %v6042_v5  ;;  %v650_v4 = vld [vmem:[#allocation7 + $0x1160] sm:$0xff]  ;;  %v644_v5 = vld [vmem:[#allocation7 + $0x1130] sm:$0xff] }
 0x2bb   :  { %6555 = vmatprep.subr.bf16.mxu1 %v6554_v9  ;;  %v667_v9 = vld [vmem:[#allocation7 + $0x11e8] sm:$0xff]  ;;  %v6064_v14 = vpack.c.bf16 %v650_v4, %v642_v3  ;;  %v730_v3 = vld [vmem:[#allocation7 + $0x13e0] sm:$0xff]  ;;  %v724_v4 = vld [vmem:[#allocation7 + $0x13b0] sm:$0xff] }
 0x2bc   :  { %v796_v54 = vld [vmem:[#allocation7 + $0x15f0] sm:$0xff] }
 0x2bd   :  { %6045 = vmatpush1.bf16.msra.mxu0 %v6044_v15  ;;  %v6576_v15 = vpack.c.bf16 %v652_v7, %v644_v5  ;;  %v739_v7 = vld [vmem:[#allocation7 + $0x1428] sm:$0xff] }
 0x2be   :  { %6557 = vmatpush1.bf16.msra.mxu1 %v6556_v16  ;;  %6047 = vmatprep.subr.bf16.mxu0 %v6046_v17  ;;  %v6066_v16 = vpack.c.bf16 %v667_v9, %v659_v8  ;;  %v658_v17 = vld [vmem:[#allocation7 + $0x11a0] sm:$0xff]  ;;  %v747_v8 = vld [vmem:[#allocation7 + $0x1468] sm:$0xff]  ;;  %v741_v9 = vld [vmem:[#allocation7 + $0x1438] sm:$0xff] }
 0x2bf   :  { %6559 = vmatprep.subr.bf16.mxu1 %v6558_v21  ;;  %v668_v21 = vld [vmem:[#allocation7 + $0x11f0] sm:$0xff] }
 0x2c1   :  { %6049 = vmatpush1.bf16.msra.mxu0 %v6048_v27  ;;  %v6068_v27 = vpack.c.bf16 %v666_v18, %v658_v17  ;;  %v748_v18 = vld [vmem:[#allocation7 + $0x1470] sm:$0xff] }
 0x2c2   :  { %6561 = vmatpush1.bf16.msra.mxu1 %v6560_v28  ;;  %6051 = vmatprep.subr.bf16.mxu0 %v6050_v29  ;;  %v6580_v28 = vpack.c.bf16 %v668_v21, %v660_v19  ;;  %v6070_v29 = vpack.c.bf16 %v683_v23, %v675_v22  ;;  %v755_v19 = vld [vmem:[#allocation7 + $0x14a8] sm:$0xff]  ;;  %v757_v21 = vld [vmem:[#allocation7 + $0x14b8] sm:$0xff] }
 0x2c3   :  { %6563 = vmatprep.subr.bf16.mxu1 %v6562_v33  ;;  %v6582_v33 = vpack.c.bf16 %v685_v26, %v677_v25  ;;  %v765_v22 = vld [vmem:[#allocation7 + $0x14f8] sm:$0xff]  ;;  %v754_v26 = vld [vmem:[#allocation7 + $0x14a0] sm:$0xff] }
 0x2c5   :  { %6053 = vmatpush1.bf16.msra.mxu0 %v6052_v39  ;;  %v6072_v39 = vpack.c.bf16 %v682_v31, %v674_v30  ;;  %v764_v30 = vld [vmem:[#allocation7 + $0x14f0] sm:$0xff]  ;;  %v771_v31 = vld [vmem:[#allocation7 + $0x1528] sm:$0xff] }
 0x2c6   :  { %6565 = vmatpush1.bf16.msra.mxu1 %v6564_v40  ;;  %6055 = vmatprep.subr.bf16.mxu0 %v6054_v41  ;;  %v6584_v40 = vpack.c.bf16 %v684_v34, %v676_v32  ;;  %v6074_v41 = vpack.c.bf16 %v699_v36, %v691_v35  ;;  %v779_v32 = vld [vmem:[#allocation7 + $0x1568] sm:$0xff]  ;;  %v781_v34 = vld [vmem:[#allocation7 + $0x1578] sm:$0xff] }
 0x2c7   :  { %6567 = vmatprep.subr.bf16.mxu1 %v6566_v45  ;;  %v6586_v45 = vpack.c.bf16 %v701_v38, %v693_v37  ;;  %v6094_v37 = vpack.c.bf16 %v779_v32, %v771_v31  ;;  %v770_v38 = vld [vmem:[#allocation7 + $0x1520] sm:$0xff] }
 0x2c8   :  { %3558 = vmatmul.mubr.f32.vlgmr.msra.gmra.mrb[4].mxu0 %v7138_v61 }
 0x2c9   :  { %6057 = vmatpush1.bf16.msra.mxu0 %v6056_v51  ;;  %4174 = vmatmul.mubr.f32.vlgmr.msra.gmra.mrb[4].mxu1 %v7138_v61  ;;  %v6076_v51 = vpack.c.bf16 %v698_v43, %v690_v42  ;;  %v725_v61 = vld [vmem:[#allocation7 + $0x13b8] sm:$0xff]  ;;  %v780_v42 = vld [vmem:[#allocation7 + $0x1570] sm:$0xff]  ;;  %v787_v43 = vld [vmem:[#allocation7 + $0x15a8] sm:$0xff] }
 0x2ca   :  { %6569 = vmatpush1.bf16.msra.mxu1 %v6568_v52  ;;  %6059 = vmatprep.subr.bf16.mxu0 %v6058_v53  ;;  %v6588_v52 = vpack.c.bf16 %v700_v46, %v692_v44  ;;  %v6078_v53 = vpack.c.bf16 %v715_v48, %v707_v47  ;;  %v6594_v5 = vpack.c.bf16 %v733_v62, %v725_v61  ;;  %v795_v44 = vld [vmem:[#allocation7 + $0x15e8] sm:$0xff]  ;;  %v797_v46 = vld [vmem:[#allocation7 + $0x15f8] sm:$0xff]  ;;  %v802_v62 = vld [vmem:[#allocation7 + $0x1620] sm:$0xff] }
 0x2cb   :  { %6571 = vmatprep.subr.bf16.mxu1 %v6570_v57  ;;  %3563 = vmatprep.mubr.f32.mxu0 %v7139_v10  ;;  %v6590_v57 = vpack.c.bf16 %v717_v50, %v709_v49  ;;  %v6098_v49 = vpack.c.bf16 %v795_v44, %v787_v43  ;;  %v786_v50 = vld [vmem:[#allocation7 + $0x15a0] sm:$0xff] }
 0x2cc   :  { %4179 = vmatprep.mubr.f32.mxu1 %v7139_v10  ;;  %3564 = vmatmul.mubr.f32.gmra.mrb[6].mxu0 %v7140_v13  ;;  %v749_v10 = vld [vmem:[#allocation7 + $0x1478] sm:$0xff] }
 0x2cd   :  { %6061 = vmatpush1.bf16.msra.mxu0 %v6060_v0  ;;  %4180 = vmatmul.mubr.f32.gmra.mrb[6].mxu1 %v7140_v13  ;;  %v6592_v0 = vpack.c.bf16 %v716_v58, %v708_v56  ;;  %v6086_v13 = vpack.c.bf16 %v747_v8, %v739_v7  ;;  %v6598_v17 = vpack.c.bf16 %v749_v10, %v741_v9  ;;  %v811_v56 = vld [vmem:[#allocation7 + $0x1668] sm:$0xff]  ;;  %v813_v58 = vld [vmem:[#allocation7 + $0x1678] sm:$0xff]  ;;  %v818_v10 = vld [vmem:[#allocation7 + $0x16a0] sm:$0xff] }
 0x2ce   :  { %6573 = vmatpush1.bf16.msra.mxu1 %v6572_v1  ;;  %6063 = vmatprep.subr.bf16.mxu0 %v6062_v2  ;;  %v6082_v1 = vpack.c.bf16 %v731_v60, %v723_v59  ;;  %v722_v2 = vld [vmem:[#allocation7 + $0x13a0] sm:$0xff]  ;;  %v6102_v61 = vpack.c.bf16 %v811_v56, %v803_v55 }
 0x2cf   :  { %6575 = vmatprep.subr.bf16.mxu1 %v6574_v6  ;;  %3634 = vmatprep.mubr.f32.mxu0 %v7141_v24  ;;  %v732_v6 = vld [vmem:[#allocation7 + $0x13f0] sm:$0xff]  ;;  %v6084_v11 = vpack.c.bf16 %v730_v3, %v722_v2  ;;  %v819_v3 = vld [vmem:[#allocation7 + $0x16a8] sm:$0xff] }
 0x2d0   :  { %4250 = vmatprep.mubr.f32.mxu1 %v7141_v24  ;;  %v6596_v12 = vpack.c.bf16 %v732_v6, %v724_v4  ;;  %v812_v2 = vld [vmem:[#allocation7 + $0x1670] sm:$0xff]  ;;  %v827_v4 = vld [vmem:[#allocation7 + $0x16e8] sm:$0xff]  ;;  %v829_v6 = vld [vmem:[#allocation7 + $0x16f8] sm:$0xff] }
 0x2d1   :  { %6065 = vmatpush1.bf16.msra.mxu0 %v6064_v14  ;;  %v738_v14 = vld [vmem:[#allocation7 + $0x1420] sm:$0xff]  ;;  %v6106_v9 = vpack.c.bf16 %v827_v4, %v819_v3  ;;  %v909_v3 = vld [vmem:[#allocation7 + $0x1978] sm:$0xff] }
 0x2d2   :  { %6577 = vmatpush1.bf16.msra.mxu1 %v6576_v15  ;;  %6067 = vmatprep.subr.bf16.mxu0 %v6066_v16  ;;  %v746_v15 = vld [vmem:[#allocation7 + $0x1460] sm:$0xff]  ;;  %v740_v16 = vld [vmem:[#allocation7 + $0x1430] sm:$0xff] }
 0x2d3   :  { %6579 = vmatprep.subr.bf16.mxu1 %v6578_v20  ;;  %v763_v20 = vld [vmem:[#allocation7 + $0x14e8] sm:$0xff]  ;;  %v6088_v23 = vpack.c.bf16 %v746_v15, %v738_v14  ;;  %v6600_v24 = vpack.c.bf16 %v748_v18, %v740_v16  ;;  %v828_v14 = vld [vmem:[#allocation7 + $0x16f0] sm:$0xff]  ;;  %v845_v18 = vld [vmem:[#allocation7 + $0x1778] sm:$0xff] }
 0x2d4   :  { %v6090_v25 = vpack.c.bf16 %v763_v20, %v755_v19  ;;  %v835_v15 = vld [vmem:[#allocation7 + $0x1728] sm:$0xff] }
 0x2d5   :  { %6069 = vmatpush1.bf16.msra.mxu0 %v6068_v27  ;;  %v762_v27 = vld [vmem:[#allocation7 + $0x14e0] sm:$0xff]  ;;  %v843_v16 = vld [vmem:[#allocation7 + $0x1768] sm:$0xff] }
 0x2d6   :  { %6581 = vmatpush1.bf16.msra.mxu1 %v6580_v28  ;;  %6071 = vmatprep.subr.bf16.mxu0 %v6070_v29  ;;  %v756_v28 = vld [vmem:[#allocation7 + $0x14b0] sm:$0xff]  ;;  %v6602_v29 = vpack.c.bf16 %v765_v22, %v757_v21  ;;  %v6092_v35 = vpack.c.bf16 %v762_v27, %v754_v26  ;;  %v6110_v21 = vpack.c.bf16 %v843_v16, %v835_v15  ;;  %v834_v22 = vld [vmem:[#allocation7 + $0x1720] sm:$0xff]  ;;  %v851_v27 = vld [vmem:[#allocation7 + $0x17a8] sm:$0xff] }
 0x2d7   :  { %6583 = vmatprep.subr.bf16.mxu1 %v6582_v33  ;;  %v773_v33 = vld [vmem:[#allocation7 + $0x1538] sm:$0xff]  ;;  %v6604_v36 = vpack.c.bf16 %v764_v30, %v756_v28  ;;  %v844_v26 = vld [vmem:[#allocation7 + $0x1770] sm:$0xff]  ;;  %v859_v28 = vld [vmem:[#allocation7 + $0x17e8] sm:$0xff] }
 0x2d8   :  { %v861_v30 = vld [vmem:[#allocation7 + $0x17f8] sm:$0xff] }
 0x2d9   :  { %6073 = vmatpush1.bf16.msra.mxu0 %v6072_v39  ;;  %v778_v39 = vld [vmem:[#allocation7 + $0x1560] sm:$0xff]  ;;  %v917_v15 = vld [vmem:[#allocation7 + $0x19b8] sm:$0xff] }
 0x2da   :  { %6585 = vmatpush1.bf16.msra.mxu1 %v6584_v40  ;;  %6075 = vmatprep.subr.bf16.mxu0 %v6074_v41  ;;  %v772_v40 = vld [vmem:[#allocation7 + $0x1530] sm:$0xff]  ;;  %v6606_v41 = vpack.c.bf16 %v781_v34, %v773_v33  ;;  %v6096_v47 = vpack.c.bf16 %v778_v39, %v770_v38  ;;  %v6114_v33 = vpack.c.bf16 %v859_v28, %v851_v27  ;;  %v850_v34 = vld [vmem:[#allocation7 + $0x17a0] sm:$0xff]  ;;  %v867_v39 = vld [vmem:[#allocation7 + $0x1828] sm:$0xff] }
 0x2db   :  { %6587 = vmatprep.subr.bf16.mxu1 %v6586_v45  ;;  %v789_v45 = vld [vmem:[#allocation7 + $0x15b8] sm:$0xff]  ;;  %v6608_v48 = vpack.c.bf16 %v780_v42, %v772_v40  ;;  %v860_v38 = vld [vmem:[#allocation7 + $0x17f0] sm:$0xff]  ;;  %v875_v40 = vld [vmem:[#allocation7 + $0x1868] sm:$0xff] }
 0x2dc   :  { %v877_v42 = vld [vmem:[#allocation7 + $0x1878] sm:$0xff]  ;;  %v931_v27 = vld [vmem:[#allocation7 + $0x1a28] sm:$0xff] }
 0x2dd   :  { %6077 = vmatpush1.bf16.msra.mxu0 %v6076_v51  ;;  %v794_v51 = vld [vmem:[#allocation7 + $0x15e0] sm:$0xff]  ;;  %v925_v16 = vld [vmem:[#allocation7 + $0x19f8] sm:$0xff]  ;;  %v939_v28 = vld [vmem:[#allocation7 + $0x1a68] sm:$0xff] }
 0x2de   :  { %6589 = vmatpush1.bf16.msra.mxu1 %v6588_v52  ;;  %6079 = vmatprep.subr.bf16.mxu0 %v6078_v53  ;;  %v788_v52 = vld [vmem:[#allocation7 + $0x15b0] sm:$0xff]  ;;  %v6610_v53 = vpack.c.bf16 %v797_v46, %v789_v45  ;;  %v6100_v59 = vpack.c.bf16 %v794_v51, %v786_v50  ;;  %v6118_v45 = vpack.c.bf16 %v875_v40, %v867_v39  ;;  %v866_v46 = vld [vmem:[#allocation7 + $0x1820] sm:$0xff]  ;;  %v883_v51 = vld [vmem:[#allocation7 + $0x18a8] sm:$0xff] }
 0x2df   :  { %6591 = vmatprep.subr.bf16.mxu1 %v6590_v57  ;;  %v805_v57 = vld [vmem:[#allocation7 + $0x1638] sm:$0xff]  ;;  %v6612_v60 = vpack.c.bf16 %v796_v54, %v788_v52  ;;  %v876_v50 = vld [vmem:[#allocation7 + $0x1870] sm:$0xff]  ;;  %v891_v52 = vld [vmem:[#allocation7 + $0x18e8] sm:$0xff] }
 0x2e0   :  { %v893_v54 = vld [vmem:[#allocation7 + $0x18f8] sm:$0xff]  ;;  %v940_v40 = vld [vmem:[#allocation7 + $0x1a70] sm:$0xff] }
 0x2e1   :  { %6081 = vmatpush1.bf16.msra.mxu0 %v6080_v63  ;;  %v810_v63 = vld [vmem:[#allocation7 + $0x1660] sm:$0xff] }
 0x2e2   :  { %6593 = vmatpush1.bf16.msra.mxu1 %v6592_v0  ;;  %6083 = vmatprep.subr.bf16.mxu0 %v6082_v1  ;;  %v804_v0 = vld [vmem:[#allocation7 + $0x1630] sm:$0xff]  ;;  %v6614_v1 = vpack.c.bf16 %v813_v58, %v805_v57  ;;  %v6104_v7 = vpack.c.bf16 %v810_v63, %v802_v62  ;;  %v6122_v57 = vpack.c.bf16 %v891_v52, %v883_v51  ;;  %v882_v58 = vld [vmem:[#allocation7 + $0x18a0] sm:$0xff]  ;;  %v899_v63 = vld [vmem:[#allocation7 + $0x1928] sm:$0xff] }
 0x2e3   :  { %6595 = vmatprep.subr.bf16.mxu1 %v6594_v5  ;;  %v821_v5 = vld [vmem:[#allocation7 + $0x16b8] sm:$0xff]  ;;  %v6616_v8 = vpack.c.bf16 %v812_v2, %v804_v0  ;;  %v892_v62 = vld [vmem:[#allocation7 + $0x18f0] sm:$0xff]  ;;  %v907_v0 = vld [vmem:[#allocation7 + $0x1968] sm:$0xff] }
 0x2e4   :  { %v901_v2 = vld [vmem:[#allocation7 + $0x1938] sm:$0xff] }
 0x2e5   :  { %6085 = vmatpush1.bf16.msra.mxu0 %v6084_v11  ;;  %v826_v11 = vld [vmem:[#allocation7 + $0x16e0] sm:$0xff] }
 0x2e6   :  { %6597 = vmatpush1.bf16.msra.mxu1 %v6596_v12  ;;  %6087 = vmatprep.subr.bf16.mxu0 %v6086_v13  ;;  %v820_v12 = vld [vmem:[#allocation7 + $0x16b0] sm:$0xff]  ;;  %v6618_v13 = vpack.c.bf16 %v829_v6, %v821_v5  ;;  %v6108_v19 = vpack.c.bf16 %v826_v11, %v818_v10  ;;  %v6126_v6 = vpack.c.bf16 %v907_v0, %v899_v63  ;;  %v973_v63 = vld [vmem:[#allocation7 + $0x1b78] sm:$0xff] }
 0x2e7   :  { %6599 = vmatprep.subr.bf16.mxu1 %v6598_v17  ;;  %v837_v17 = vld [vmem:[#allocation7 + $0x1738] sm:$0xff]  ;;  %v6620_v20 = vpack.c.bf16 %v828_v14, %v820_v12  ;;  %v6638_v10 = vpack.c.bf16 %v909_v3, %v901_v2  ;;  %v908_v11 = vld [vmem:[#allocation7 + $0x1970] sm:$0xff]  ;;  %v915_v12 = vld [vmem:[#allocation7 + $0x19a8] sm:$0xff] }
 0x2e8   :  { %v7143_v14 = vld [vmem:[#allocation4 + $0xa8] sm:$0xff] }
 0x2e9   :  { %6089 = vmatpush1.bf16.msra.mxu0 %v6088_v23  ;;  %v842_v23 = vld [vmem:[#allocation7 + $0x1760] sm:$0xff] }
 0x2ea   :  { %6601 = vmatpush1.bf16.msra.mxu1 %v6600_v24  ;;  %6091 = vmatprep.subr.bf16.mxu0 %v6090_v25  ;;  %v836_v24 = vld [vmem:[#allocation7 + $0x1730] sm:$0xff]  ;;  %v6622_v25 = vpack.c.bf16 %v845_v18, %v837_v17  ;;  %v6112_v31 = vpack.c.bf16 %v842_v23, %v834_v22  ;;  %v2144_v17 = vlaneseq  ;;  %v7144_v18 = vld [vmem:[#allocation4 + $0xa0] sm:$0xff] }
 0x2eb   :  { %6603 = vmatprep.subr.bf16.mxu1 %v6602_v29  ;;  %v853_v29 = vld [vmem:[#allocation7 + $0x17b8] sm:$0xff]  ;;  %v6624_v32 = vpack.c.bf16 %v844_v26, %v836_v24  ;;  %v914_v22 = vld [vmem:[#allocation7 + $0x19a0] sm:$0xff]  ;;  %v916_v24 = vld [vmem:[#allocation7 + $0x19b0] sm:$0xff] }
 0x2ec   :  { %v922_v23 = vld [vmem:[#allocation7 + $0x19e0] sm:$0xff]  ;;  %v924_v26 = vld [vmem:[#allocation7 + $0x19f0] sm:$0xff] }
 0x2ed   :  { %6093 = vmatpush1.bf16.msra.mxu0 %v6092_v35  ;;  %v858_v35 = vld [vmem:[#allocation7 + $0x17e0] sm:$0xff] }
 0x2ee   :  { %6605 = vmatpush1.bf16.msra.mxu1 %v6604_v36  ;;  %6095 = vmatprep.subr.bf16.mxu0 %v6094_v37  ;;  %v852_v36 = vld [vmem:[#allocation7 + $0x17b0] sm:$0xff]  ;;  %v6626_v37 = vpack.c.bf16 %v861_v30, %v853_v29  ;;  %v6116_v43 = vpack.c.bf16 %v858_v35, %v850_v34  ;;  %v7145_v29 = vld [vmem:[#allocation4 + $0x38] sm:$0xff]  ;;  %v930_v34 = vld [vmem:[#allocation7 + $0x1a20] sm:$0xff]  ;;  %v6644_v35 = vpack.c.bf16 %v924_v26, %v916_v24 }
 0x2ef   :  { %6607 = vmatprep.subr.bf16.mxu1 %v6606_v41  ;;  %v869_v41 = vld [vmem:[#allocation7 + $0x1838] sm:$0xff]  ;;  %v6628_v44 = vpack.c.bf16 %v860_v38, %v852_v36  ;;  %v6134_v36 = vpack.c.bf16 %v939_v28, %v931_v27  ;;  %v932_v38 = vld [vmem:[#allocation7 + $0x1a30] sm:$0xff]  ;;  %v7420_v26 = vld [vmem:[#allocation7 + $0x1ba0] sm:$0xff] }
 0x2f0   :  { %v933_v30 = vld [vmem:[#allocation7 + $0x1a38] sm:$0xff]  ;;  %v6648_v51 = vpack.c.bf16 %v940_v40, %v932_v38  ;;  %v1003_v40 = vld [vmem:[#allocation7 + $0x1c68] sm:$0xff] }
 0x2f1   :  { %6097 = vmatpush1.bf16.msra.mxu0 %v6096_v47  ;;  %v874_v47 = vld [vmem:[#allocation7 + $0x1860] sm:$0xff] }
 0x2f2   :  { %6609 = vmatpush1.bf16.msra.mxu1 %v6608_v48  ;;  %6099 = vmatprep.subr.bf16.mxu0 %v6098_v49  ;;  %v868_v48 = vld [vmem:[#allocation7 + $0x1830] sm:$0xff]  ;;  %v6630_v49 = vpack.c.bf16 %v877_v42, %v869_v41  ;;  %v6120_v55 = vpack.c.bf16 %v874_v47, %v866_v46  ;;  %v947_v41 = vld [vmem:[#allocation7 + $0x1aa8] sm:$0xff]  ;;  %v2142_v47 = vld [vmem:[#allocation9] sm:$0xff] }
 0x2f3   :  { %6611 = vmatprep.subr.bf16.mxu1 %v6610_v53  ;;  %v885_v53 = vld [vmem:[#allocation7 + $0x18b8] sm:$0xff]  ;;  %v6632_v56 = vpack.c.bf16 %v876_v50, %v868_v48  ;;  %v955_v42 = vld [vmem:[#allocation7 + $0x1ae8] sm:$0xff] }
 0x2f4   :  { %v6138_v52 = vpack.c.bf16 %v955_v42, %v947_v41  ;;  %v1051_v41 = vld [vmem:[#allocation7 + $0x1de8] sm:$0xff] }
 0x2f5   :  { %6101 = vmatpush1.bf16.msra.mxu0 %v6100_v59  ;;  %v890_v59 = vld [vmem:[#allocation7 + $0x18e0] sm:$0xff] }
 0x2f6   :  { %6613 = vmatpush1.bf16.msra.mxu1 %v6612_v60  ;;  %6103 = vmatprep.subr.bf16.mxu0 %v6102_v61  ;;  %v884_v60 = vld [vmem:[#allocation7 + $0x18b0] sm:$0xff]  ;;  %v6634_v61 = vpack.c.bf16 %v893_v54, %v885_v53  ;;  %v6124_v4 = vpack.c.bf16 %v890_v59, %v882_v58  ;;  %v946_v53 = vld [vmem:[#allocation7 + $0x1aa0] sm:$0xff]  ;;  %v963_v59 = vld [vmem:[#allocation7 + $0x1b28] sm:$0xff] }
 0x2f7   :  { %6615 = vmatprep.subr.bf16.mxu1 %v6614_v1  ;;  %v7142_v1 = vld [vmem:[#allocation4 + $0x20] sm:$0xff]  ;;  %v6636_v5 = vpack.c.bf16 %v892_v62, %v884_v60  ;;  %v956_v58 = vld [vmem:[#allocation7 + $0x1af0] sm:$0xff]  ;;  %v971_v60 = vld [vmem:[#allocation7 + $0x1b68] sm:$0xff] }
 0x2f8   :  { %v954_v54 = vld [vmem:[#allocation7 + $0x1ae0] sm:$0xff]  ;;  %v965_v62 = vld [vmem:[#allocation7 + $0x1b38] sm:$0xff] }
 0x2f9   :  { %6105 = vmatpush1.bf16.msra.mxu0 %v6104_v7  ;;  %v898_v7 = vld [vmem:[#allocation7 + $0x1920] sm:$0xff]  ;;  %v6140_v3 = vpack.c.bf16 %v954_v54, %v946_v53 }
 0x2fa   :  { %6617 = vmatpush1.bf16.msra.mxu1 %v6616_v8  ;;  %6107 = vmatprep.subr.bf16.mxu0 %v6106_v9  ;;  %v906_v8 = vld [vmem:[#allocation7 + $0x1960] sm:$0xff]  ;;  %v900_v9 = vld [vmem:[#allocation7 + $0x1930] sm:$0xff] }
 0x2fb   :  { %6619 = vmatprep.subr.bf16.mxu1 %v6618_v13  ;;  %v923_v13 = vld [vmem:[#allocation7 + $0x19e8] sm:$0xff]  ;;  %v994_v53 = vld [vmem:[#allocation7 + $0x1c20] sm:$0xff] }
 0x2fc   :  { %v1002_v54 = vld [vmem:[#allocation7 + $0x1c60] sm:$0xff] }
 0x2fd   :  { %6109 = vmatpush1.bf16.msra.mxu0 %v6108_v19  ;;  %v6128_v19 = vpack.c.bf16 %v906_v8, %v898_v7  ;;  %v6142_v7 = vpack.c.bf16 %v971_v60, %v963_v59  ;;  %v964_v8 = vld [vmem:[#allocation7 + $0x1b30] sm:$0xff] }
 0x2fe   :  { %6621 = vmatpush1.bf16.msra.mxu1 %v6620_v20  ;;  %6111 = vmatprep.subr.bf16.mxu0 %v6110_v21  ;;  %v6640_v20 = vpack.c.bf16 %v908_v11, %v900_v9  ;;  %v6130_v21 = vpack.c.bf16 %v923_v13, %v915_v12  ;;  %v4772_v9 = vstv %s7391_s3  ;;  %v6654_v12 = vpack.c.bf16 %v973_v63, %v965_v62  ;;  %v972_v13 = vld [vmem:[#allocation7 + $0x1b70] sm:$0xff] }
 0x2ff   :  { %6623 = vmatprep.subr.bf16.mxu1 %v6622_v25  ;;  %v6642_v25 = vpack.c.bf16 %v925_v16, %v917_v15  ;;  %v987_v15 = vld [vmem:[#allocation7 + $0x1be8] sm:$0xff]  ;;  %v996_v59 = vld [vmem:[#allocation7 + $0x1c30] sm:$0xff] }
 0x300   :  { %v1004_v60 = vld [vmem:[#allocation7 + $0x1c70] sm:$0xff] }
 0x301   :  { %6113 = vmatpush1.bf16.msra.mxu0 %v6112_v31  ;;  %v941_v31 = vld [vmem:[#allocation7 + $0x1a78] sm:$0xff] }
 0x302   :  { %6625 = vmatpush1.bf16.msra.mxu1 %v6624_v32  ;;  %6115 = vmatprep.subr.bf16.mxu0 %v6114_v33  ;;  %v7389_v32 = vshrl.u32 %v2144_v17, 7  ;;  %v6132_v33 = vpack.c.bf16 %v922_v23, %v914_v22  ;;  %v6646_v39 = vpack.c.bf16 %v941_v31, %v933_v30  ;;  %v989_v22 = vld [vmem:[#allocation7 + $0x1bf8] sm:$0xff]  ;;  %v6656_v30 = vpack.c.bf16 %v972_v13, %v964_v8  ;;  %v1058_v8 = vld [vmem:[#allocation7 + $0x1e20] sm:$0xff] }
 0x303   :  { %6627 = vmatprep.subr.bf16.mxu1 %v6626_v37  ;;  %v938_v37 = vld [vmem:[#allocation7 + $0x1a60] sm:$0xff] }
 0x304   :  { %v6136_v46 = vpack.c.bf16 %v938_v37, %v930_v34  ;;  %v2154_v48 = vsub.s32 2, %v7389_v32  ;;  %v2158_v50 = vsub.s32 3, %v7389_v32  ;;  %v7413_v16 = vadd.s32 8, %v7389_v32  ;;  %v980_v34 = vld [vmem:[#allocation7 + $0x1bb0] sm:$0xff] }
 0x305   :  { %6117 = vmatpush1.bf16.msra.mxu0 %v6116_v43  ;;  %v2146_v43 = vsub.s32 0, %v7389_v32  ;;  %vm7423_vm1 = vcmp.ge.s32.totalorder %v7389_v32, %v4772_v9 }
 0x306   :  { %6629 = vmatpush1.bf16.msra.mxu1 %v6628_v44  ;;  %6119 = vmatprep.subr.bf16.mxu0 %v6118_v45  ;;  %v949_v44 = vld [vmem:[#allocation7 + $0x1ab8] sm:$0xff]  ;;  %v2155_v0 = vrot.slane %v2142_v47, %v2154_v48  ;;  %v7405_v2 = vrot.slane %v2142_v47, %v2158_v50  ;;  %vm7439_vm3 = vcmp.ge.s32.totalorder %v7413_v16, %v4772_v9 }
 0x307   :  { %6631 = vmatprep.subr.bf16.mxu1 %v6630_v49  ;;  %v957_v45 = vld [vmem:[#allocation7 + $0x1af8] sm:$0xff]  ;;  %v2150_v49 = vsub.s32 1, %v7389_v32  ;;  %v6152_v9 = vpack.c.bf16 %v1002_v54, %v994_v53  ;;  %v1050_v54 = vld [vmem:[#allocation7 + $0x1de0] sm:$0xff] }
 0x308   :  { %3635 = vmatmul.mubr.f32.vlgmr.msra.gmra.mrb[4].mxu0 %v7142_v1 }
 0x309   :  { %6121 = vmatpush1.bf16.msra.mxu0 %v6120_v55  ;;  %4251 = vmatmul.mubr.f32.vlgmr.msra.gmra.mrb[4].mxu1 %v7142_v1  ;;  %v948_v55 = vld [vmem:[#allocation7 + $0x1ab0] sm:$0xff]  ;;  %v2151_v1 = vrot.slane %v2142_v47, %v2150_v49 }
 0x30a   :  { %6633 = vmatpush1.bf16.msra.mxu1 %v6632_v56  ;;  %6123 = vmatprep.subr.bf16.mxu0 %v6122_v57  ;;  %v7399_v56 = vand.u32 127, %v2144_v17  ;;  %v6650_v57 = vpack.c.bf16 %v957_v45, %v949_v44  ;;  %v997_v44 = vld [vmem:[#allocation7 + $0x1c38] sm:$0xff] }
 0x30b   :  { %6635 = vmatprep.subr.bf16.mxu1 %v6634_v61  ;;  %3640 = vmatprep.mubr.f32.mxu0 %v7143_v14  ;;  %v7401_v61 = vrot.slane %v2142_v47, %v2146_v43  ;;  %v1005_v45 = vld [vmem:[#allocation7 + $0x1c78] sm:$0xff]  ;;  %v4821_v47 = vstv %s7403_s17 }
 0x30c   :  { %4256 = vmatprep.mubr.f32.mxu1 %v7143_v14  ;;  %3641 = vmatmul.mubr.f32.gmra.mrb[6].mxu0 %v7144_v18  ;;  %vm4650_vm0 = vcmp.lt.s32.totalorder %v7399_v56, 21  ;;  %v979_v14 = vld [vmem:[#allocation7 + $0x1ba8] sm:$0xff]  ;;  %vm7490_vm9 = vcmp.lt.s32.totalorder %v7389_v32, %v4821_v47  ;;  %vm7497_vm11 = vcmp.lt.s32.totalorder %v7413_v16, %v4821_v47  ;;  %v1042_v47 = vld [vmem:[#allocation7 + $0x1da0] sm:$0xff] }
 0x30d   :  { %6125 = vmatpush1.bf16.msra.mxu0 %v6124_v4  ;;  %4257 = vmatmul.mubr.f32.gmra.mrb[6].mxu1 %v7144_v18  ;;  %v962_v4 = vld [vmem:[#allocation7 + $0x1b20] sm:$0xff]  ;;  %v6146_v31 = vpack.c.bf16 %v987_v15, %v979_v14  ;;  %v6664_v15 = vpack.c.bf16 %v1004_v60, %v996_v59 }
 0x30e   :  { %6637 = vmatpush1.bf16.msra.mxu1 %v6636_v5  ;;  %6127 = vmatprep.subr.bf16.mxu0 %v6126_v6  ;;  %v970_v5 = vld [vmem:[#allocation7 + $0x1b60] sm:$0xff]  ;;  %v6652_v6 = vpack.c.bf16 %v956_v58, %v948_v55 }
 0x30f   :  { %6639 = vmatprep.subr.bf16.mxu1 %v6638_v10  ;;  %3711 = vmatprep.mubr.f32.mxu0 %v7145_v29  ;;  %v7409_v10 = vstv %s7393_s16 }
 0x310   :  { %4327 = vmatprep.mubr.f32.mxu1 %v7145_v29  ;;  %vm4776_vm2 = vcmp.lt.s32.totalorder %v7389_v32, %v7409_v10  ;;  %vm4777_vm4 = vcmp.lt.s32.totalorder %v7413_v16, %v7409_v10  ;;  %vm4819_vm7 = vcmp.ge.s32.totalorder %v7389_v32, %v7409_v10  ;;  %vm4820_vm10 = vcmp.ge.s32.totalorder %v7413_v16, %v7409_v10 }
 0x311   :  { %6129 = vmatpush1.bf16.msra.mxu0 %v6128_v19  ;;  %vm7450_vm5 = vmand %vm7423_vm1, %vm4776_vm2 }
 0x312   :  { %6641 = vmatpush1.bf16.msra.mxu1 %v6640_v20  ;;  %6131 = vmatprep.subr.bf16.mxu0 %v6130_v21  ;;  %v6144_v20 = vpack.c.bf16 %v970_v5, %v962_v4  ;;  %v981_v21 = vld [vmem:[#allocation7 + $0x1bb8] sm:$0xff]  ;;  %vm7469_vm6 = vmand %vm7439_vm3, %vm4777_vm4  ;;  %v1195_v4 = vld [vmem:[#allocation7 + $0x2268] sm:$0xff] }
 0x313   :  { %6643 = vmatprep.subr.bf16.mxu1 %v6642_v25  ;;  %v6658_v38 = vpack.c.bf16 %v989_v22, %v981_v21  ;;  %vm7485_vm8 = vmand %vm7450_vm5, %vm4650_vm0  ;;  %v1013_v5 = vld [vmem:[#allocation7 + $0x1cb8] sm:$0xff]  ;;  %v1083_v21 = vld [vmem:[#allocation7 + $0x1ee8] sm:$0xff] }
 0x314   :  { %vm7505_vm12 = vmand %vm7469_vm6, %vm4650_vm0 }
 0x315   :  { %6133 = vmatpush1.bf16.msra.mxu0 %v6132_v33  ;;  %v986_v33 = vld [vmem:[#allocation7 + $0x1be0] sm:$0xff]  ;;  %vm7517_vm13 = vmand %vm4819_vm7, %vm7490_vm9 }
 0x316   :  { %6645 = vmatpush1.bf16.msra.mxu1 %v6644_v35  ;;  %6135 = vmatprep.subr.bf16.mxu0 %v6134_v36  ;;  %v988_v35 = vld [vmem:[#allocation7 + $0x1bf0] sm:$0xff]  ;;  %vm7529_vm14 = vmand %vm4820_vm10, %vm7497_vm11 }
 0x317   :  { %6647 = vmatprep.subr.bf16.mxu1 %v6646_v39  ;;  %v995_v39 = vld [vmem:[#allocation7 + $0x1c28] sm:$0xff]  ;;  %vm7537_vm15 = vmand %vm7517_vm13, %vm4650_vm0 }
 0x318   :  { %v6150_v58 = vpack.c.bf16 %v1003_v40, %v995_v39  ;;  %vm7547_vm1 = vmand %vm7529_vm14, %vm4650_vm0  ;;  %v1043_v40 = vld [vmem:[#allocation7 + $0x1da8] sm:$0xff] }
 0x319   :  { %6137 = vmatpush1.bf16.msra.mxu0 %v6136_v46  ;;  %v6162_v53 = vpack.c.bf16 %v1051_v41, %v1043_v40  ;;  %v1091_v40 = vld [vmem:[#allocation7 + $0x1f28] sm:$0xff] }
 0x31a   :  { %6649 = vmatpush1.bf16.msra.mxu1 %v6648_v51  ;;  %6139 = vmatprep.subr.bf16.mxu0 %v6138_v52  ;;  %v6148_v51 = vpack.c.bf16 %v986_v33, %v7420_v26  ;;  %v6660_v52 = vpack.c.bf16 %v988_v35, %v980_v34  ;;  %v1029_v26 = vld [vmem:[#allocation7 + $0x1d38] sm:$0xff]  ;;  %v1028_v34 = vld [vmem:[#allocation7 + $0x1d30] sm:$0xff]  ;;  %v1099_v41 = vld [vmem:[#allocation7 + $0x1f68] sm:$0xff] }
 0x31b   :  { %v2789_v11 = vpop.f32.mrb[0].mxu0  ;;  %6651 = vmatprep.subr.bf16.mxu1 %v6650_v57  ;;  %v1036_v35 = vld [vmem:[#allocation7 + $0x1d70] sm:$0xff] }
 0x31c   :  { %v7416_v17 = vadd.f32 %v2789_v11, %v7401_v61  ;;  %v3405_v18 = vpop.f32.mrb[0].mxu1  ;;  %v2791_v19 = vpop.f32.mrb[1].mxu0  ;;  %v1018_v11 = vld [vmem:[#allocation7 + $0x1ce0] sm:$0xff] }
 0x31d   :  { %v7418_v23 = vadd.f32 %v3405_v18, %v2155_v0  ;;  %v6951_v24 = vadd.f32 %v2791_v19, %v2151_v1  ;;  %v3407_v25 = vpop.f32.mrb[1].mxu1  ;;  %6141 = vmatpush1.bf16.msra.mxu0 %v6140_v3  ;;  %v1019_v3 = vld [vmem:[#allocation7 + $0x1ce8] sm:$0xff]  ;;  %v1020_v19 = vld [vmem:[#allocation7 + $0x1cf0] sm:$0xff] }
 0x31e   :  { %v7430_v28 = vadd.f32 %v3407_v25, %v7405_v2  ;;  %6653 = vmatpush1.bf16.msra.mxu1 %v6652_v6  ;;  %v4653_v29 = vsel %vm4650_vm0, %v7416_v17, -inf  ;;  %6143 = vmatprep.subr.bf16.mxu0 %v6142_v7  ;;  %v1021_v6 = vld [vmem:[#allocation7 + $0x1cf8] sm:$0xff]  ;;  %v1010_v7 = vld [vmem:[#allocation7 + $0x1ca0] sm:$0xff]  ;;  %v1035_v25 = vld [vmem:[#allocation7 + $0x1d68] sm:$0xff] }
 0x31f   :  { %4677 = vst [vmem:[#allocation10 + $0x8] sm:$0xff] %v6951_v24  ;;  %4681 = vst [vmem:[#allocation11] sm:$0xff] %v6951_v24  ;;  %v4683_v36 = vsel %vm4650_vm0, %v7418_v23, -inf  ;;  %v2795_v37 = vpop.f32.mrb[2].mxu0  ;;  %4655 = vmax.xlane.f32.xlu0 %v4653_v29  ;;  %6655 = vmatprep.subr.bf16.mxu1 %v6654_v12  ;;  %v1012_v12 = vld [vmem:[#allocation7 + $0x1cb0] sm:$0xff]  ;;  %v6666_v24 = vpack.c.bf16 %v1021_v6, %v1013_v5  ;;  %v1037_v29 = vld [vmem:[#allocation7 + $0x1d78] sm:$0xff]  ;;  %v6156_v33 = vpack.c.bf16 %v1018_v11, %v1010_v7 }
 0x320   :  { %v3411_v42 = vpop.f32.mrb[2].mxu1  ;;  %4685 = vmax.xlane.f32.xlu1 %v4683_v36  ;;  %v2797_v43 = vpop.f32.mrb[3].mxu0  ;;  %v7459_v55 = vadd.f32 %v2795_v37, %v7401_v61  ;;  %v4707_v57 = vsel %vm4650_vm0, %v7430_v28, -inf  ;;  %v6668_v10 = vpack.c.bf16 %v1020_v19, %v1012_v12  ;;  %v6670_v39 = vpack.c.bf16 %v1037_v29, %v1029_v26  ;;  %v1066_v11 = vld [vmem:[#allocation7 + $0x1e60] sm:$0xff]  ;;  %v1060_v12 = vld [vmem:[#allocation7 + $0x1e30] sm:$0xff] }
 0x321   :  { %v7455_v48 = vadd.f32 %v3411_v42, %v2155_v0  ;;  %v6953_v49 = vadd.f32 %v2797_v43, %v2151_v1  ;;  %v3413_v50 = vpop.f32.mrb[3].mxu1  ;;  %6145 = vmatpush1.bf16.msra.mxu0 %v6144_v20  ;;  %v6662_v0 = vpack.c.bf16 %v1005_v45, %v997_v44  ;;  %v1011_v1 = vld [vmem:[#allocation7 + $0x1ca8] sm:$0xff]  ;;  %v6672_v43 = vpack.c.bf16 %v1036_v35, %v1028_v34  ;;  %v1045_v44 = vld [vmem:[#allocation7 + $0x1db8] sm:$0xff]  ;;  %v1076_v34 = vld [vmem:[#allocation7 + $0x1eb0] sm:$0xff] }
 0x322   :  { %6657 = vmatpush1.bf16.msra.mxu1 %v6656_v30  ;;  %6147 = vmatprep.subr.bf16.mxu0 %v6146_v31  ;;  %v7476_v61 = vadd.f32 %v3413_v50, %v7405_v2  ;;  %v4654_v14 = vsel %vm4650_vm0, %v7459_v55, -inf  ;;  %v6154_v18 = vpack.c.bf16 %v1019_v3, %v1011_v1  ;;  %v1027_v20 = vld [vmem:[#allocation7 + $0x1d28] sm:$0xff]  ;;  %v1026_v30 = vld [vmem:[#allocation7 + $0x1d20] sm:$0xff]  ;;  %v1053_v45 = vld [vmem:[#allocation7 + $0x1df8] sm:$0xff]  ;;  %v6164_v6 = vpack.c.bf16 %v1050_v54, %v1042_v47 }
 0x323   :  { %4678 = vst [vmem:[#allocation10 + $0x48] sm:$0xff] %v6953_v49  ;;  %4682 = vst [vmem:[#allocation11 + $0x8] sm:$0xff] %v6953_v49  ;;  %v4684_v63 = vsel %vm4650_vm0, %v7455_v48, -inf  ;;  %4709 = vmax.xlane.f32.xlu0 %v4707_v57  ;;  %6659 = vmatprep.subr.bf16.mxu1 %v6658_v38  ;;  %v1034_v31 = vld [vmem:[#allocation7 + $0x1d60] sm:$0xff]  ;;  %v6158_v16 = vpack.c.bf16 %v1035_v25, %v1027_v20  ;;  %v1044_v57 = vld [vmem:[#allocation7 + $0x1db0] sm:$0xff]  ;;  %v6674_v62 = vpack.c.bf16 %v1053_v45, %v1045_v44 }
 0x324   :  { %4687 = vmax.xlane.f32.xlu1 %v4684_v63  ;;  %v4708_v22 = vsel %vm4650_vm0, %v7476_v61, -inf  ;;  %v6160_v42 = vpack.c.bf16 %v1034_v31, %v1026_v30  ;;  %v1059_v63 = vld [vmem:[#allocation7 + $0x1e28] sm:$0xff]  ;;  %v1061_v1 = vld [vmem:[#allocation7 + $0x1e38] sm:$0xff]  ;;  %v6168_v27 = vpack.c.bf16 %v1066_v11, %v1058_v8  ;;  %v1074_v30 = vld [vmem:[#allocation7 + $0x1ea0] sm:$0xff] }
 0x325   :  { %6149 = vmatpush1.bf16.msra.mxu0 %v6148_v51  ;;  %v1069_v3 = vld [vmem:[#allocation7 + $0x1e78] sm:$0xff]  ;;  %v1075_v20 = vld [vmem:[#allocation7 + $0x1ea8] sm:$0xff]  ;;  %v1084_v35 = vld [vmem:[#allocation7 + $0x1ef0] sm:$0xff] }
 0x326   :  { %6661 = vmatpush1.bf16.msra.mxu1 %v6660_v52  ;;  %6151 = vmatprep.subr.bf16.mxu0 %v6150_v58  ;;  %v7541_v37 = vld [vmem:[#allocation11] sm:$0xff]  ;;  %v1052_v58 = vld [vmem:[#allocation7 + $0x1df0] sm:$0xff]  ;;  %v6678_v19 = vpack.c.bf16 %v1069_v3, %v1061_v1  ;;  %v6170_v31 = vpack.c.bf16 %v1083_v21, %v1075_v20  ;;  %v1114_v8 = vld [vmem:[#allocation7 + $0x1fe0] sm:$0xff] }
 0x327   :  { %4657 = vmax.xlane.f32.xlu0 %v4654_v14  ;;  %6663 = vmatprep.subr.bf16.mxu1 %v6662_v0  ;;  %v4786_v49 = vsel %vm7485_vm8, %v7541_v37, -inf  ;;  %v4832_v51 = vsel %vm7537_vm15, %v7541_v37, -inf  ;;  %v1067_v0 = vld [vmem:[#allocation7 + $0x1e68] sm:$0xff]  ;;  %v6676_v7 = vpack.c.bf16 %v1052_v58, %v1044_v57  ;;  %v1068_v14 = vld [vmem:[#allocation7 + $0x1e70] sm:$0xff]  ;;  %v1186_v36 = vld [vmem:[#allocation7 + $0x2220] sm:$0xff] }
 0x328   :  { %4711 = vmax.xlane.f32.xlu1 %v4708_v22  ;;  %v1077_v22 = vld [vmem:[#allocation7 + $0x1eb8] sm:$0xff]  ;;  %v6680_v29 = vpack.c.bf16 %v1068_v14, %v1060_v12  ;;  %v1100_v54 = vld [vmem:[#allocation7 + $0x1f70] sm:$0xff]  ;;  %v1107_v57 = vld [vmem:[#allocation7 + $0x1fa8] sm:$0xff] }
 0x329   :  { %6153 = vmatpush1.bf16.msra.mxu0 %v6152_v9  ;;  %v6166_v9 = vpack.c.bf16 %v1067_v0, %v1059_v63  ;;  %v1115_v58 = vld [vmem:[#allocation7 + $0x1fe8] sm:$0xff]  ;;  %v1109_v63 = vld [vmem:[#allocation7 + $0x1fb8] sm:$0xff] }
 0x32a   :  { %6665 = vmatpush1.bf16.msra.mxu1 %v6664_v15  ;;  %6155 = vmatprep.subr.bf16.mxu0 %v6154_v18  ;;  %v7551_v46 = vld [vmem:[#allocation11 + $0x8] sm:$0xff]  ;;  %v1117_v0 = vld [vmem:[#allocation7 + $0x1ff8] sm:$0xff]  ;;  %v1131_v20 = vld [vmem:[#allocation7 + $0x2068] sm:$0xff] }
 0x32b   :  { %6667 = vmatprep.subr.bf16.mxu1 %v6666_v24  ;;  %v4787_v50 = vsel %vm7505_vm12, %v7551_v46, -inf  ;;  %v4833_v52 = vsel %vm7547_vm1, %v7551_v46, -inf  ;;  %v1085_v24 = vld [vmem:[#allocation7 + $0x1ef8] sm:$0xff]  ;;  %v1211_v38 = vld [vmem:[#allocation7 + $0x22e8] sm:$0xff] }
 0x32c   :  { %v4788_v59 = vmax.f32 %v4786_v49, %v4787_v50  ;;  %v4834_v60 = vmax.f32 %v4832_v51, %v4833_v52  ;;  %v6684_v49 = vpack.c.bf16 %v1084_v35, %v1076_v34  ;;  %v1090_v50 = vld [vmem:[#allocation7 + $0x1f20] sm:$0xff]  ;;  %v1092_v52 = vld [vmem:[#allocation7 + $0x1f30] sm:$0xff] }
 0x32d   :  { %6157 = vmatpush1.bf16.msra.mxu0 %v6156_v33  ;;  %v1082_v33 = vld [vmem:[#allocation7 + $0x1ee0] sm:$0xff]  ;;  %v1124_v35 = vld [vmem:[#allocation7 + $0x2030] sm:$0xff] }
 0x32e   :  { %6669 = vmatpush1.bf16.msra.mxu1 %v6668_v10  ;;  %6159 = vmatprep.subr.bf16.mxu0 %v6158_v16  ;;  %v4789_v2 = vrot.slane %v4788_v59, 4  ;;  %v4835_v5 = vrot.slane %v4834_v60, 4  ;;  %v6172_v47 = vpack.c.bf16 %v1082_v33, %v1074_v30  ;;  %v1098_v51 = vld [vmem:[#allocation7 + $0x1f60] sm:$0xff] }
 0x32f   :  { %6671 = vmatprep.subr.bf16.mxu1 %v6670_v39  ;;  %v6682_v39 = vpack.c.bf16 %v1085_v24, %v1077_v22  ;;  %v1125_v22 = vld [vmem:[#allocation7 + $0x2038] sm:$0xff]  ;;  %v1130_v34 = vld [vmem:[#allocation7 + $0x2060] sm:$0xff] }
 0x330   :  { %v4790_v15 = vmax.f32 %v4788_v59, %v4789_v2  ;;  %v4836_v18 = vmax.f32 %v4834_v60, %v4835_v5  ;;  %v6176_v2 = vpack.c.bf16 %v1098_v51, %v1090_v50  ;;  %v6688_v5 = vpack.c.bf16 %v1100_v54, %v1092_v52  ;;  %v1133_v24 = vld [vmem:[#allocation7 + $0x2078] sm:$0xff]  ;;  %v1148_v51 = vld [vmem:[#allocation7 + $0x20f0] sm:$0xff]  ;;  %v1155_v52 = vld [vmem:[#allocation7 + $0x2128] sm:$0xff] }
 0x331   :  { %6161 = vmatpush1.bf16.msra.mxu0 %v6160_v42  ;;  %v1093_v42 = vld [vmem:[#allocation7 + $0x1f38] sm:$0xff]  ;;  %v7146_v54 = vld [vmem:[#allocation4 + $0x30] sm:$0xff] }
 0x332   :  { %6673 = vmatpush1.bf16.msra.mxu1 %v6672_v43  ;;  %6163 = vmatprep.subr.bf16.mxu0 %v6162_v53  ;;  %v4791_v25 = vrot.slane %v4790_v15, 2  ;;  %v4837_v26 = vrot.slane %v4836_v18, 2  ;;  %v1101_v43 = vld [vmem:[#allocation7 + $0x1f78] sm:$0xff]  ;;  %v6174_v53 = vpack.c.bf16 %v1099_v41, %v1091_v40 }
 0x333   :  { %6675 = vmatprep.subr.bf16.mxu1 %v6674_v62  ;;  %v6686_v62 = vpack.c.bf16 %v1101_v43, %v1093_v42  ;;  %v1141_v40 = vld [vmem:[#allocation7 + $0x20b8] sm:$0xff] }
 0x334   :  { %v4792_v10 = vmax.f32 %v4790_v15, %v4791_v25  ;;  %v4838_v16 = vmax.f32 %v4836_v18, %v4837_v26  ;;  %v6690_v15 = vpack.c.bf16 %v1117_v0, %v1109_v63  ;;  %v1116_v18 = vld [vmem:[#allocation7 + $0x1ff0] sm:$0xff]  ;;  %v1149_v41 = vld [vmem:[#allocation7 + $0x20f8] sm:$0xff]  ;;  %v1154_v63 = vld [vmem:[#allocation7 + $0x2120] sm:$0xff] }
 0x335   :  { %6165 = vmatpush1.bf16.msra.mxu0 %v6164_v6  ;;  %v6178_v6 = vpack.c.bf16 %v1115_v58, %v1107_v57  ;;  %v6698_v50 = vpack.c.bf16 %v1149_v41, %v1141_v40  ;;  %v1157_v57 = vld [vmem:[#allocation7 + $0x2138] sm:$0xff]  ;;  %v1162_v0 = vld [vmem:[#allocation7 + $0x2160] sm:$0xff] }
 0x336   :  { %6677 = vmatpush1.bf16.msra.mxu1 %v6676_v7  ;;  %6167 = vmatprep.subr.bf16.mxu0 %v6166_v9  ;;  %v4793_v44 = vrot.slane %v4792_v10, 1  ;;  %v4839_v45 = vrot.slane %v4838_v16, 1  ;;  %v1106_v7 = vld [vmem:[#allocation7 + $0x1fa0] sm:$0xff]  ;;  %v1108_v9 = vld [vmem:[#allocation7 + $0x1fb0] sm:$0xff]  ;;  %v1165_v58 = vld [vmem:[#allocation7 + $0x2178] sm:$0xff] }
 0x337   :  { %6679 = vmatprep.subr.bf16.mxu1 %v6678_v19  ;;  %v1123_v19 = vld [vmem:[#allocation7 + $0x2028] sm:$0xff] }
 0x338   :  { %v4794_v59 = vmax.f32 %v4792_v10, %v4793_v44  ;;  %v4840_v60 = vmax.f32 %v4838_v16, %v4839_v45  ;;  %v6182_v33 = vpack.c.bf16 %v1131_v20, %v1123_v19  ;;  %v6694_v10 = vpack.c.bf16 %v1133_v24, %v1125_v22  ;;  %v1132_v16 = vld [vmem:[#allocation7 + $0x2070] sm:$0xff]  ;;  %v1138_v45 = vld [vmem:[#allocation7 + $0x20a0] sm:$0xff] }
 0x339   :  { %6169 = vmatpush1.bf16.msra.mxu0 %v6168_v27  ;;  %v6180_v27 = vpack.c.bf16 %v1114_v8, %v1106_v7  ;;  %v6696_v43 = vpack.c.bf16 %v1132_v16, %v1124_v35  ;;  %v7147_v7 = vld [vmem:[#allocation4 + $0xb8] sm:$0xff]  ;;  %v1170_v22 = vld [vmem:[#allocation7 + $0x21a0] sm:$0xff] }
 0x33a   :  { %6681 = vmatpush1.bf16.msra.mxu1 %v6680_v29  ;;  %6171 = vmatprep.subr.bf16.mxu0 %v6170_v31  ;;  %v4795_v1 = vmax.f32 %v4794_v59, -3e+38  ;;  %v4841_v3 = vmax.f32 %v4840_v60, -3e+38  ;;  %v6692_v31 = vpack.c.bf16 %v1116_v18, %v1108_v9  ;;  %v1173_v9 = vld [vmem:[#allocation7 + $0x21b8] sm:$0xff]  ;;  %v1178_v24 = vld [vmem:[#allocation7 + $0x21e0] sm:$0xff] }
 0x33b   :  { %6683 = vmatprep.subr.bf16.mxu1 %v6682_v39  ;;  %v1147_v39 = vld [vmem:[#allocation7 + $0x20e8] sm:$0xff]  ;;  %v1189_v35 = vld [vmem:[#allocation7 + $0x2238] sm:$0xff]  ;;  %v6196_v16 = vpack.c.bf16 %v1178_v24, %v1170_v22  ;;  %v1228_v24 = vld [vmem:[#allocation7 + $0x2370] sm:$0xff] }
 0x33c   :  { %v4796_v11 = vsub.f32 %v7541_v37, %v4795_v1  ;;  %v4797_v12 = vsub.f32 %v7551_v46, %v4795_v1  ;;  %v4842_v14 = vsub.f32 %v7541_v37, %v4841_v3  ;;  %v4843_v21 = vsub.f32 %v7551_v46, %v4841_v3  ;;  %v1122_v37 = vld [vmem:[#allocation7 + $0x2020] sm:$0xff]  ;;  %v1139_v46 = vld [vmem:[#allocation7 + $0x20a8] sm:$0xff]  ;;  %v1156_v1 = vld [vmem:[#allocation7 + $0x2130] sm:$0xff] }
 0x33d   :  { %6173 = vmatpush1.bf16.msra.mxu0 %v6172_v47  ;;  %v6184_v42 = vpack.c.bf16 %v1130_v34, %v1122_v37  ;;  %v6186_v44 = vpack.c.bf16 %v1147_v39, %v1139_v46  ;;  %v1146_v47 = vld [vmem:[#allocation7 + $0x20e0] sm:$0xff]  ;;  %v6702_v3 = vpack.c.bf16 %v1165_v58, %v1157_v57 }
 0x33e   :  { %6685 = vmatpush1.bf16.msra.mxu1 %v6684_v49  ;;  %6175 = vmatprep.subr.bf16.mxu0 %v6174_v53  ;;  %v4798_v25 = vmul.f32 1.442695, %v4796_v11  ;;  %v4800_v26 = vmul.f32 1.442695, %v4797_v12  ;;  %v4844_v29 = vmul.f32 1.442695, %v4842_v14  ;;  %v6188_v59 = vpack.c.bf16 %v1146_v47, %v1138_v45 }
 0x33f   :  { %6687 = vmatprep.subr.bf16.mxu1 %v6686_v62  ;;  %v4846_v30 = vmul.f32 1.442695, %v4843_v21  ;;  %v1140_v49 = vld [vmem:[#allocation7 + $0x20b0] sm:$0xff]  ;;  %v1163_v53 = vld [vmem:[#allocation7 + $0x2168] sm:$0xff]  ;;  %v1181_v11 = vld [vmem:[#allocation7 + $0x21f8] sm:$0xff] }
 0x340   :  { %7089 = vpow2.f32 %v4798_v25  ;;  %v6700_v60 = vpack.c.bf16 %v1148_v51, %v1140_v49  ;;  %v6190_v62 = vpack.c.bf16 %v1163_v53, %v1155_v52  ;;  %v7148_v12 = vld [vmem:[#allocation4 + $0xb0] sm:$0xff]  ;;  %v1203_v47 = vld [vmem:[#allocation7 + $0x22a8] sm:$0xff]  ;;  %v1205_v51 = vld [vmem:[#allocation7 + $0x22b8] sm:$0xff] }
 0x341   :  { %6177 = vmatpush1.bf16.msra.mxu0 %v6176_v2  ;;  %7091 = vpow2.f32 %v4800_v26  ;;  %v1164_v2 = vld [vmem:[#allocation7 + $0x2170] sm:$0xff]  ;;  %v1213_v52 = vld [vmem:[#allocation7 + $0x22f8] sm:$0xff] }
 0x342   :  { %6689 = vmatpush1.bf16.msra.mxu1 %v6688_v5  ;;  %6179 = vmatprep.subr.bf16.mxu0 %v6178_v6  ;;  %7093 = vpow2.f32 %v4844_v29  ;;  %v1171_v5 = vld [vmem:[#allocation7 + $0x21a8] sm:$0xff]  ;;  %v6704_v20 = vpack.c.bf16 %v1164_v2, %v1156_v1  ;;  %v1172_v25 = vld [vmem:[#allocation7 + $0x21b0] sm:$0xff]  ;;  %v6706_v29 = vpack.c.bf16 %v1181_v11, %v1173_v9 }
 0x343   :  { %6691 = vmatprep.subr.bf16.mxu1 %v6690_v15  ;;  %7095 = vpow2.f32 %v4846_v30  ;;  %v1179_v6 = vld [vmem:[#allocation7 + $0x21e8] sm:$0xff]  ;;  %v6192_v15 = vpack.c.bf16 %v1162_v0, %v1154_v63  ;;  %v1180_v30 = vld [vmem:[#allocation7 + $0x21f0] sm:$0xff]  ;;  %v6714_v0 = vpack.c.bf16 %v1213_v52, %v1205_v51  ;;  %v1250_v51 = vld [vmem:[#allocation7 + $0x2420] sm:$0xff] }
 0x344   :  { %v6194_v21 = vpack.c.bf16 %v1179_v6, %v1171_v5  ;;  %v6708_v40 = vpack.c.bf16 %v1180_v30, %v1172_v25  ;;  %v1196_v45 = vld [vmem:[#allocation7 + $0x2270] sm:$0xff]  ;;  %v1227_v2 = vld [vmem:[#allocation7 + $0x2368] sm:$0xff]  ;;  %v1258_v52 = vld [vmem:[#allocation7 + $0x2460] sm:$0xff] }
 0x345   :  { %6181 = vmatpush1.bf16.msra.mxu0 %v6180_v27  ;;  %v1204_v63 = vld [vmem:[#allocation7 + $0x22b0] sm:$0xff]  ;;  %v1235_v25 = vld [vmem:[#allocation7 + $0x23a8] sm:$0xff] }
 0x346   :  { %6693 = vmatpush1.bf16.msra.mxu1 %v6692_v31  ;;  %6183 = vmatprep.subr.bf16.mxu0 %v6182_v33  ;;  %v1187_v31 = vld [vmem:[#allocation7 + $0x2228] sm:$0xff]  ;;  %v1212_v1 = vld [vmem:[#allocation7 + $0x22f0] sm:$0xff] }
 0x347   :  { %6695 = vmatprep.subr.bf16.mxu1 %v6694_v10  ;;  %v7149_v33 = vld [vmem:[#allocation4 + $0x48] sm:$0xff]  ;;  %v1197_v10 = vld [vmem:[#allocation7 + $0x2278] sm:$0xff]  ;;  %v6198_v41 = vpack.c.bf16 %v1195_v4, %v1187_v31 }
 0x348   :  { %3712 = vmatmul.mubr.f32.vlgmr.msra.gmra.mrb[4].mxu0 %v7146_v54  ;;  %v1237_v31 = vld [vmem:[#allocation7 + $0x23b8] sm:$0xff] }
 0x349   :  { %6185 = vmatpush1.bf16.msra.mxu0 %v6184_v42  ;;  %4328 = vmatmul.mubr.f32.vlgmr.msra.gmra.mrb[4].mxu1 %v7146_v54  ;;  %v1194_v42 = vld [vmem:[#allocation7 + $0x2260] sm:$0xff]  ;;  %v1245_v4 = vld [vmem:[#allocation7 + $0x23f8] sm:$0xff] }
 0x34a   :  { %6697 = vmatpush1.bf16.msra.mxu1 %v6696_v43  ;;  %6187 = vmatprep.subr.bf16.mxu0 %v6186_v44  ;;  %v7090_v8 = vpop.eup %7089  ;;  %v1188_v43 = vld [vmem:[#allocation7 + $0x2230] sm:$0xff]  ;;  %v6710_v44 = vpack.c.bf16 %v1197_v10, %v1189_v35  ;;  %v6200_v53 = vpack.c.bf16 %v1194_v42, %v1186_v36  ;;  %v1251_v42 = vld [vmem:[#allocation7 + $0x2428] sm:$0xff] }
 0x34b   :  { %6699 = vmatprep.subr.bf16.mxu1 %v6698_v50  ;;  %3717 = vmatprep.mubr.f32.mxu0 %v7147_v7  ;;  %v7092_v14 = vpop.eup %7091  ;;  %v7571_v18 = vsel %vm7485_vm8, %v7090_v8, 0.0  ;;  %v6712_v58 = vpack.c.bf16 %v1196_v45, %v1188_v43  ;;  %v1229_v8 = vld [vmem:[#allocation7 + $0x2378] sm:$0xff]  ;;  %v1244_v36 = vld [vmem:[#allocation7 + $0x23f0] sm:$0xff]  ;;  %v1259_v43 = vld [vmem:[#allocation7 + $0x2468] sm:$0xff] }
 0x34c   :  { %4333 = vmatprep.mubr.f32.mxu1 %v7147_v7  ;;  %3718 = vmatmul.mubr.f32.gmra.mrb[6].mxu0 %v7148_v12  ;;  %v7094_v19 = vpop.eup %7093  ;;  %v7575_v26 = vsel %vm7505_vm12, %v7092_v14, 0.0  ;;  %v1221_v7 = vld [vmem:[#allocation7 + $0x2338] sm:$0xff]  ;;  %v6716_v14 = vpack.c.bf16 %v1212_v1, %v1204_v63  ;;  %v6216_v63 = vpack.c.bf16 %v1258_v52, %v1250_v51  ;;  %v1314_v51 = vld [vmem:[#allocation7 + $0x2620] sm:$0xff] }
 0x34d   :  { %6189 = vmatpush1.bf16.msra.mxu0 %v6188_v59  ;;  %4334 = vmatmul.mubr.f32.gmra.mrb[6].mxu1 %v7148_v12  ;;  %v7096_v27 = vpop.eup %7095  ;;  %v4804_v37 = vadd.f32 %v7575_v26, %v7571_v18  ;;  %v7581_v34 = vsel %vm7537_vm15, %v7094_v19, 0.0  ;;  %v6202_v59 = vpack.c.bf16 %v1211_v38, %v1203_v47  ;;  %v1218_v19 = vld [vmem:[#allocation7 + $0x2320] sm:$0xff]  ;;  %v6718_v22 = vpack.c.bf16 %v1229_v8, %v1221_v7  ;;  %v1261_v45 = vld [vmem:[#allocation7 + $0x2478] sm:$0xff]  ;;  %v1283_v8 = vld [vmem:[#allocation7 + $0x2528] sm:$0xff] }
 0x34e   :  { %6701 = vmatpush1.bf16.msra.mxu1 %v6700_v60  ;;  %6191 = vmatprep.subr.bf16.mxu0 %v6190_v62  ;;  %v7585_v13 = vsel %vm7547_vm1, %v7096_v27, 0.0  ;;  %v1202_v60 = vld [vmem:[#allocation7 + $0x22a0] sm:$0xff]  ;;  %v1243_v27 = vld [vmem:[#allocation7 + $0x23e8] sm:$0xff] }
 0x34f   :  { %6703 = vmatprep.subr.bf16.mxu1 %v6702_v3  ;;  %3788 = vmatprep.mubr.f32.mxu0 %v7149_v33  ;;  %v4805_v46 = vrot.slane %v4804_v37, 4  ;;  %v4850_v39 = vadd.f32 %v7585_v13, %v7581_v34  ;;  %v1210_v62 = vld [vmem:[#allocation7 + $0x22e0] sm:$0xff]  ;;  %v1219_v3 = vld [vmem:[#allocation7 + $0x2328] sm:$0xff]  ;;  %v6210_v10 = vpack.c.bf16 %v1243_v27, %v1235_v25  ;;  %v1292_v25 = vld [vmem:[#allocation7 + $0x2570] sm:$0xff] }
 0x350   :  { %4404 = vmatprep.mubr.f32.mxu1 %v7149_v33  ;;  %v6204_v9 = vpack.c.bf16 %v1210_v62, %v1202_v60  ;;  %v1269_v60 = vld [vmem:[#allocation7 + $0x24b8] sm:$0xff]  ;;  %v1322_v52 = vld [vmem:[#allocation7 + $0x2660] sm:$0xff] }
 0x351   :  { %6193 = vmatpush1.bf16.msra.mxu0 %v6192_v15  ;;  %v4806_v49 = vadd.f32 %v4805_v46, %v4804_v37  ;;  %v4851_v50 = vrot.slane %v4850_v39, 4  ;;  %v6206_v15 = vpack.c.bf16 %v1227_v2, %v1219_v3  ;;  %v1242_v46 = vld [vmem:[#allocation7 + $0x23e0] sm:$0xff]  ;;  %v1277_v62 = vld [vmem:[#allocation7 + $0x24f8] sm:$0xff] }
 0x352   :  { %6705 = vmatpush1.bf16.msra.mxu1 %v6704_v20  ;;  %6195 = vmatprep.subr.bf16.mxu0 %v6194_v21  ;;  %v1226_v20 = vld [vmem:[#allocation7 + $0x2360] sm:$0xff]  ;;  %v1220_v21 = vld [vmem:[#allocation7 + $0x2330] sm:$0xff]  ;;  %v6730_v7 = vpack.c.bf16 %v1277_v62, %v1269_v60  ;;  %v1333_v60 = vld [vmem:[#allocation7 + $0x26b8] sm:$0xff] }
 0x353   :  { %6707 = vmatprep.subr.bf16.mxu1 %v6706_v29  ;;  %v4807_v54 = vrot.slane %v4806_v49, 2  ;;  %v4852_v57 = vadd.f32 %v4851_v50, %v4850_v39  ;;  %v6208_v33 = vpack.c.bf16 %v1226_v20, %v1218_v19  ;;  %v6720_v35 = vpack.c.bf16 %v1228_v24, %v1220_v21  ;;  %v1236_v39 = vld [vmem:[#allocation7 + $0x23b0] sm:$0xff]  ;;  %v1274_v2 = vld [vmem:[#allocation7 + $0x24e0] sm:$0xff]  ;;  %v1341_v62 = vld [vmem:[#allocation7 + $0x26f8] sm:$0xff] }
 0x354   :  { %v6214_v50 = vpack.c.bf16 %v1259_v43, %v1251_v42  ;;  %v1282_v20 = vld [vmem:[#allocation7 + $0x2520] sm:$0xff]  ;;  %v1284_v24 = vld [vmem:[#allocation7 + $0x2530] sm:$0xff] }
 0x355   :  { %6197 = vmatpush1.bf16.msra.mxu0 %v6196_v16  ;;  %v4808_v5 = vadd.f32 %v4807_v54, %v4806_v49  ;;  %v4853_v6 = vrot.slane %v4852_v57, 2  ;;  %v1234_v16 = vld [vmem:[#allocation7 + $0x23a0] sm:$0xff]  ;;  %v6724_v49 = vpack.c.bf16 %v1244_v36, %v1236_v39  ;;  %v6736_v39 = vpack.c.bf16 %v1292_v25, %v1284_v24  ;;  %v1356_v25 = vld [vmem:[#allocation7 + $0x2770] sm:$0xff] }
 0x356   :  { %6709 = vmatpush1.bf16.msra.mxu1 %v6708_v40  ;;  %6199 = vmatprep.subr.bf16.mxu0 %v6198_v41  ;;  %v6722_v41 = vpack.c.bf16 %v1245_v4, %v1237_v31  ;;  %v6212_v38 = vpack.c.bf16 %v1242_v46, %v1234_v16  ;;  %v1299_v4 = vld [vmem:[#allocation7 + $0x25a8] sm:$0xff] }
 0x357   :  { %6711 = vmatprep.subr.bf16.mxu1 %v6710_v44  ;;  %v4809_v11 = vrot.slane %v4808_v5, 1  ;;  %v4854_v12 = vadd.f32 %v4853_v6, %v4852_v57  ;;  %v1253_v44 = vld [vmem:[#allocation7 + $0x2438] sm:$0xff]  ;;  %v1260_v57 = vld [vmem:[#allocation7 + $0x2470] sm:$0xff] }
 0x358   :  { %v6726_v54 = vpack.c.bf16 %v1261_v45, %v1253_v44  ;;  %v1276_v6 = vld [vmem:[#allocation7 + $0x24f0] sm:$0xff]  ;;  %v1315_v45 = vld [vmem:[#allocation7 + $0x2628] sm:$0xff] }
 0x359   :  { %6201 = vmatpush1.bf16.msra.mxu0 %v6200_v53  ;;  %v4810_v29 = vadd.f32 %v4809_v11, %v4808_v5  ;;  %v4855_v30 = vrot.slane %v4854_v12, 1  ;;  %v1252_v53 = vld [vmem:[#allocation7 + $0x2430] sm:$0xff]  ;;  %v1285_v11 = vld [vmem:[#allocation7 + $0x2538] sm:$0xff] }
 0x35a   :  { %6713 = vmatpush1.bf16.msra.mxu1 %v6712_v58  ;;  %6203 = vmatprep.subr.bf16.mxu0 %v6202_v59  ;;  %v1267_v58 = vld [vmem:[#allocation7 + $0x24a8] sm:$0xff]  ;;  %v6728_v1 = vpack.c.bf16 %v1260_v57, %v1252_v53  ;;  %v1268_v5 = vld [vmem:[#allocation7 + $0x24b0] sm:$0xff] }
 0x35b   :  { %6715 = vmatprep.subr.bf16.mxu1 %v6714_v0  ;;  %vm4811_vm2 = vcmp.gt.f32.partialorder %v4810_v29, 0.0  ;;  %v4856_v37 = vadd.f32 %v4855_v30, %v4854_v12  ;;  %v1275_v59 = vld [vmem:[#allocation7 + $0x24e8] sm:$0xff]  ;;  %v1266_v0 = vld [vmem:[#allocation7 + $0x24a0] sm:$0xff]  ;;  %v1293_v12 = vld [vmem:[#allocation7 + $0x2578] sm:$0xff]  ;;  %v6732_v19 = vpack.c.bf16 %v1276_v6, %v1268_v5  ;;  %v6746_v6 = vpack.c.bf16 %v1341_v62, %v1333_v60 }
 0x35c   :  { %v4812_v40 = vsel %vm4811_vm2, %v4810_v29, 1.0  ;;  %v6218_v3 = vpack.c.bf16 %v1275_v59, %v1267_v58  ;;  %v6734_v31 = vpack.c.bf16 %v1293_v12, %v1285_v11  ;;  %v1308_v44 = vld [vmem:[#allocation7 + $0x25f0] sm:$0xff]  ;;  %v1331_v58 = vld [vmem:[#allocation7 + $0x26a8] sm:$0xff]  ;;  %v1349_v11 = vld [vmem:[#allocation7 + $0x2738] sm:$0xff] }
 0x35d   :  { %6205 = vmatpush1.bf16.msra.mxu0 %v6204_v9  ;;  %7097 = vrcp.f32 %v4812_v40  ;;  %vm4857_vm3 = vcmp.gt.f32.partialorder %v4856_v37, 0.0  ;;  %v1291_v9 = vld [vmem:[#allocation7 + $0x2568] sm:$0xff]  ;;  %v1316_v53 = vld [vmem:[#allocation7 + $0x2630] sm:$0xff]  ;;  %v1357_v12 = vld [vmem:[#allocation7 + $0x2778] sm:$0xff] }
 0x35e   :  { %6717 = vmatpush1.bf16.msra.mxu1 %v6716_v14  ;;  %6207 = vmatprep.subr.bf16.mxu0 %v6206_v15  ;;  %v4858_v47 = vsel %vm4857_vm3, %v4856_v37, 1.0  ;;  %v6220_v15 = vpack.c.bf16 %v1274_v2, %v1266_v0  ;;  %v6222_v21 = vpack.c.bf16 %v1291_v9, %v1283_v8  ;;  %v1301_v37 = vld [vmem:[#allocation7 + $0x25b8] sm:$0xff]  ;;  %v1324_v57 = vld [vmem:[#allocation7 + $0x2670] sm:$0xff]  ;;  %v1339_v59 = vld [vmem:[#allocation7 + $0x26e8] sm:$0xff]  ;;  %v6750_v24 = vpack.c.bf16 %v1357_v12, %v1349_v11 }
 0x35f   :  { %6719 = vmatprep.subr.bf16.mxu1 %v6718_v22  ;;  %7099 = vrcp.f32 %v4858_v47  ;;  %v1290_v22 = vld [vmem:[#allocation7 + $0x2560] sm:$0xff]  ;;  %v1323_v47 = vld [vmem:[#allocation7 + $0x2668] sm:$0xff]  ;;  %v6744_v0 = vpack.c.bf16 %v1324_v57, %v1316_v53  ;;  %v1332_v5 = vld [vmem:[#allocation7 + $0x26b0] sm:$0xff] }
 0x360   :  { %v6224_v46 = vpack.c.bf16 %v1290_v22, %v1282_v20  ;;  %v1338_v2 = vld [vmem:[#allocation7 + $0x26e0] sm:$0xff]  ;;  %v1347_v8 = vld [vmem:[#allocation7 + $0x2728] sm:$0xff]  ;;  %v1348_v22 = vld [vmem:[#allocation7 + $0x2730] sm:$0xff] }
 0x361   :  { %6209 = vmatpush1.bf16.msra.mxu0 %v6208_v33  ;;  %v1307_v33 = vld [vmem:[#allocation7 + $0x25e8] sm:$0xff]  ;;  %v1346_v20 = vld [vmem:[#allocation7 + $0x2720] sm:$0xff]  ;;  %v1404_v62 = vld [vmem:[#allocation7 + $0x28f0] sm:$0xff] }
 0x362   :  { %6721 = vmatpush1.bf16.msra.mxu1 %v6720_v35  ;;  %6211 = vmatprep.subr.bf16.mxu0 %v6210_v10  ;;  %v1309_v35 = vld [vmem:[#allocation7 + $0x25f8] sm:$0xff]  ;;  %v6226_v40 = vpack.c.bf16 %v1307_v33, %v1299_v4  ;;  %v1355_v9 = vld [vmem:[#allocation7 + $0x2768] sm:$0xff]  ;;  %v6752_v33 = vpack.c.bf16 %v1356_v25, %v1348_v22  ;;  %v1394_v57 = vld [vmem:[#allocation7 + $0x28a0] sm:$0xff] }
 0x363   :  { %6723 = vmatprep.subr.bf16.mxu1 %v6722_v41  ;;  %v1306_v41 = vld [vmem:[#allocation7 + $0x25e0] sm:$0xff]  ;;  %v6738_v43 = vpack.c.bf16 %v1309_v35, %v1301_v37  ;;  %v1412_v11 = vld [vmem:[#allocation7 + $0x2930] sm:$0xff]  ;;  %v1437_v22 = vld [vmem:[#allocation7 + $0x29f8] sm:$0xff] }
 0x364   :  { %v1362_v35 = vld [vmem:[#allocation7 + $0x27a0] sm:$0xff] }
 0x365   :  { %6213 = vmatpush1.bf16.msra.mxu0 %v6212_v38  ;;  %v1317_v38 = vld [vmem:[#allocation7 + $0x2638] sm:$0xff] }
 0x366   :  { %6725 = vmatpush1.bf16.msra.mxu1 %v6724_v49  ;;  %6215 = vmatprep.subr.bf16.mxu0 %v6214_v50  ;;  %v6230_v50 = vpack.c.bf16 %v1323_v47, %v1315_v45  ;;  %v1386_v45 = vld [vmem:[#allocation7 + $0x2860] sm:$0xff]  ;;  %v1380_v47 = vld [vmem:[#allocation7 + $0x2830] sm:$0xff] }
 0x367   :  { %6727 = vmatprep.subr.bf16.mxu1 %v6726_v54  ;;  %v7098_v14 = vpop.eup %7097 }
 0x368   :  { %v4814_v27 = vmul.f32 %v7098_v14, %v7571_v18  ;;  %v4815_v29 = vmul.f32 %v7098_v14, %v7575_v26  ;;  %v1298_v18 = vld [vmem:[#allocation7 + $0x25a0] sm:$0xff]  ;;  %v1300_v26 = vld [vmem:[#allocation7 + $0x25b0] sm:$0xff] }
 0x369   :  { %6217 = vmatpush1.bf16.msra.mxu0 %v6216_v63  ;;  %v7100_v30 = vpop.eup %7099  ;;  %v6740_v49 = vpack.c.bf16 %v1308_v44, %v1300_v26  ;;  %v6232_v63 = vpack.c.bf16 %v1322_v52, %v1314_v51  ;;  %v1389_v26 = vld [vmem:[#allocation7 + $0x2878] sm:$0xff]  ;;  %v1378_v44 = vld [vmem:[#allocation7 + $0x2820] sm:$0xff] }
 0x36a   :  { %6729 = vmatpush1.bf16.msra.mxu1 %v6728_v1  ;;  %6219 = vmatprep.subr.bf16.mxu0 %v6218_v3  ;;  %v4860_v10 = vmul.f32 %v7100_v30, %v7581_v34  ;;  %v4861_v16 = vmul.f32 %v7100_v30, %v7585_v13  ;;  %v1325_v34 = vld [vmem:[#allocation7 + $0x2678] sm:$0xff]  ;;  %v6228_v13 = vpack.c.bf16 %v1306_v41, %v1298_v18  ;;  %v1330_v3 = vld [vmem:[#allocation7 + $0x26a0] sm:$0xff]  ;;  %v1387_v18 = vld [vmem:[#allocation7 + $0x2868] sm:$0xff] }
 0x36b   :  { %6731 = vmatprep.subr.bf16.mxu1 %v6730_v7  ;;  %v6742_v54 = vpack.c.bf16 %v1325_v34, %v1317_v38  ;;  %v6234_v1 = vpack.c.bf16 %v1339_v59, %v1331_v58  ;;  %v1340_v7 = vld [vmem:[#allocation7 + $0x26f0] sm:$0xff]  ;;  %v6236_v14 = vpack.c.bf16 %v1338_v2, %v1330_v3  ;;  %v1365_v30 = vld [vmem:[#allocation7 + $0x27b8] sm:$0xff]  ;;  %v6248_v52 = vpack.c.bf16 %v1386_v45, %v1378_v44  ;;  %v1402_v58 = vld [vmem:[#allocation7 + $0x28e0] sm:$0xff] }
 0x36c   :  { %v4862_v36 = vadd.f32 %v4860_v10, %v4814_v27  ;;  %v4863_v42 = vadd.f32 %v4861_v16, %v4815_v29  ;;  %v1363_v27 = vld [vmem:[#allocation7 + $0x27a8] sm:$0xff]  ;;  %v1370_v10 = vld [vmem:[#allocation7 + $0x27e0] sm:$0xff]  ;;  %v1364_v16 = vld [vmem:[#allocation7 + $0x27b0] sm:$0xff] }
 0x36d   :  { %6221 = vmatpush1.bf16.msra.mxu0 %v6220_v15  ;;  %v6748_v15 = vpack.c.bf16 %v1340_v7, %v1332_v5  ;;  %v1371_v29 = vld [vmem:[#allocation7 + $0x27e8] sm:$0xff]  ;;  %v1381_v41 = vld [vmem:[#allocation7 + $0x2838] sm:$0xff]  ;;  %v1388_v34 = vld [vmem:[#allocation7 + $0x2870] sm:$0xff]  ;;  %v6252_v5 = vpack.c.bf16 %v1402_v58, %v1394_v57 }
 0x36e   :  { %6733 = vmatpush1.bf16.msra.mxu1 %v6732_v19  ;;  %6223 = vmatprep.subr.bf16.mxu0 %v6222_v21  ;;  %4864 = vst [vmem:[#allocation11] sm:$0xff] %v4862_v36  ;;  %4865 = vst [vmem:[#allocation11 + $0x8] sm:$0xff] %v4863_v42  ;;  %v6238_v19 = vpack.c.bf16 %v1355_v9, %v1347_v8  ;;  %v1354_v21 = vld [vmem:[#allocation7 + $0x2760] sm:$0xff]  ;;  %v6242_v37 = vpack.c.bf16 %v1371_v29, %v1363_v27  ;;  %v1405_v51 = vld [vmem:[#allocation7 + $0x28f8] sm:$0xff] }
 0x36f   :  { %6735 = vmatprep.subr.bf16.mxu1 %v6734_v31  ;;  %v1373_v31 = vld [vmem:[#allocation7 + $0x27f8] sm:$0xff]  ;;  %v6240_v4 = vpack.c.bf16 %v1354_v21, %v1346_v20  ;;  %v6244_v36 = vpack.c.bf16 %v1370_v10, %v1362_v35  ;;  %v6758_v38 = vpack.c.bf16 %v1389_v26, %v1381_v41  ;;  %v6760_v53 = vpack.c.bf16 %v1388_v34, %v1380_v47  ;;  %v1396_v59 = vld [vmem:[#allocation7 + $0x28b0] sm:$0xff]  ;;  %v1410_v8 = vld [vmem:[#allocation7 + $0x2920] sm:$0xff] }
 0x370   :  { %v1413_v3 = vld [vmem:[#allocation7 + $0x2938] sm:$0xff]  ;;  %v1418_v9 = vld [vmem:[#allocation7 + $0x2960] sm:$0xff]  ;;  %v7151_v20 = vld [vmem:[#allocation4 + $0xc8] sm:$0xff] }
 0x371   :  { %6225 = vmatpush1.bf16.msra.mxu0 %v6224_v46  ;;  %v6754_v46 = vpack.c.bf16 %v1373_v31, %v1365_v30  ;;  %v1421_v2 = vld [vmem:[#allocation7 + $0x2978] sm:$0xff]  ;;  %v6256_v25 = vpack.c.bf16 %v1418_v9, %v1410_v8  ;;  %v1426_v30 = vld [vmem:[#allocation7 + $0x29a0] sm:$0xff]  ;;  %v1443_v35 = vld [vmem:[#allocation7 + $0x2a28] sm:$0xff] }
 0x372   :  { %6737 = vmatpush1.bf16.msra.mxu1 %v6736_v39  ;;  %6227 = vmatprep.subr.bf16.mxu0 %v6226_v40  ;;  %v1372_v39 = vld [vmem:[#allocation7 + $0x27f0] sm:$0xff]  ;;  %v1379_v40 = vld [vmem:[#allocation7 + $0x2828] sm:$0xff]  ;;  %v6766_v12 = vpack.c.bf16 %v1421_v2, %v1413_v3  ;;  %v1429_v21 = vld [vmem:[#allocation7 + $0x29b8] sm:$0xff] }
 0x373   :  { %6739 = vmatprep.subr.bf16.mxu1 %v6738_v43  ;;  %v6756_v42 = vpack.c.bf16 %v1372_v39, %v1364_v16  ;;  %v6246_v43 = vpack.c.bf16 %v1387_v18, %v1379_v40  ;;  %v1434_v31 = vld [vmem:[#allocation7 + $0x29e0] sm:$0xff]  ;;  %v1451_v10 = vld [vmem:[#allocation7 + $0x2a68] sm:$0xff]  ;;  %v7153_v16 = vld [vmem:[#allocation4 + $0x58] sm:$0xff] }
 0x374   :  { %v1453_v39 = vld [vmem:[#allocation7 + $0x2a78] sm:$0xff]  ;;  %v6260_v40 = vpack.c.bf16 %v1434_v31, %v1426_v30  ;;  %v6262_v41 = vpack.c.bf16 %v1451_v10, %v1443_v35  ;;  %v1442_v26 = vld [vmem:[#allocation7 + $0x2a20] sm:$0xff]  ;;  %v1452_v44 = vld [vmem:[#allocation7 + $0x2a70] sm:$0xff] }
 0x375   :  { %6229 = vmatpush1.bf16.msra.mxu0 %v6228_v13  ;;  %v1395_v13 = vld [vmem:[#allocation7 + $0x28a8] sm:$0xff]  ;;  %v1469_v34 = vld [vmem:[#allocation7 + $0x2af8] sm:$0xff]  ;;  %v1468_v57 = vld [vmem:[#allocation7 + $0x2af0] sm:$0xff] }
 0x376   :  { %6741 = vmatpush1.bf16.msra.mxu1 %v6740_v49  ;;  %6231 = vmatprep.subr.bf16.mxu0 %v6230_v50  ;;  %v1403_v49 = vld [vmem:[#allocation7 + $0x28e8] sm:$0xff]  ;;  %v1397_v50 = vld [vmem:[#allocation7 + $0x28b8] sm:$0xff]  ;;  %v1474_v3 = vld [vmem:[#allocation7 + $0x2b20] sm:$0xff] }
 0x377   :  { %6743 = vmatprep.subr.bf16.mxu1 %v6742_v54  ;;  %v6250_v54 = vpack.c.bf16 %v1403_v49, %v1395_v13  ;;  %v6762_v60 = vpack.c.bf16 %v1405_v51, %v1397_v50  ;;  %v1459_v45 = vld [vmem:[#allocation7 + $0x2aa8] sm:$0xff]  ;;  %v1458_v51 = vld [vmem:[#allocation7 + $0x2aa0] sm:$0xff]  ;;  %v1509_v30 = vld [vmem:[#allocation7 + $0x2c38] sm:$0xff] }
 0x378   :  { %v1467_v47 = vld [vmem:[#allocation7 + $0x2ae8] sm:$0xff]  ;;  %v1482_v2 = vld [vmem:[#allocation7 + $0x2b60] sm:$0xff]  ;;  %v1517_v31 = vld [vmem:[#allocation7 + $0x2c78] sm:$0xff] }
 0x379   :  { %6233 = vmatpush1.bf16.msra.mxu0 %v6232_v63  ;;  %v1411_v63 = vld [vmem:[#allocation7 + $0x2928] sm:$0xff]  ;;  %v6266_v50 = vpack.c.bf16 %v1467_v47, %v1459_v45  ;;  %v1506_v35 = vld [vmem:[#allocation7 + $0x2c20] sm:$0xff]  ;;  %v1524_v47 = vld [vmem:[#allocation7 + $0x2cb0] sm:$0xff] }
 0x37a   :  { %6745 = vmatpush1.bf16.msra.mxu1 %v6744_v0  ;;  %6235 = vmatprep.subr.bf16.mxu0 %v6234_v1  ;;  %v1419_v0 = vld [vmem:[#allocation7 + $0x2968] sm:$0xff]  ;;  %v7150_v1 = vld [vmem:[#allocation4 + $0x40] sm:$0xff] }
 0x37b   :  { %6747 = vmatprep.subr.bf16.mxu1 %v6746_v6  ;;  %v6764_v6 = vpack.c.bf16 %v1404_v62, %v1396_v59  ;;  %v6254_v7 = vpack.c.bf16 %v1419_v0, %v1411_v63  ;;  %v1475_v58 = vld [vmem:[#allocation7 + $0x2b28] sm:$0xff]  ;;  %v1485_v62 = vld [vmem:[#allocation7 + $0x2b78] sm:$0xff]  ;;  %v1514_v10 = vld [vmem:[#allocation7 + $0x2c60] sm:$0xff] }
 0x37c   :  { %v1483_v59 = vld [vmem:[#allocation7 + $0x2b68] sm:$0xff]  ;;  %v1530_v45 = vld [vmem:[#allocation7 + $0x2ce0] sm:$0xff] }
 0x37d   :  { %6237 = vmatpush1.bf16.msra.mxu0 %v6236_v14  ;;  %v1420_v14 = vld [vmem:[#allocation7 + $0x2970] sm:$0xff]  ;;  %v1491_v8 = vld [vmem:[#allocation7 + $0x2ba8] sm:$0xff] }
 0x37e   :  { %6749 = vmatpush1.bf16.msra.mxu1 %v6748_v15  ;;  %6239 = vmatprep.subr.bf16.mxu0 %v6238_v19  ;;  %v1427_v15 = vld [vmem:[#allocation7 + $0x29a8] sm:$0xff]  ;;  %v6768_v27 = vpack.c.bf16 %v1420_v14, %v1412_v11  ;;  %v1493_v11 = vld [vmem:[#allocation7 + $0x2bb8] sm:$0xff]  ;;  %v6272_v14 = vpack.c.bf16 %v1482_v2, %v1474_v3 }
 0x37f   :  { %6751 = vmatprep.subr.bf16.mxu1 %v6750_v24  ;;  %v1435_v19 = vld [vmem:[#allocation7 + $0x29e8] sm:$0xff]  ;;  %v7152_v24 = vld [vmem:[#allocation4 + $0xc0] sm:$0xff]  ;;  %v1565_v3 = vld [vmem:[#allocation7 + $0x2df8] sm:$0xff] }
 0x380   :  { %v6258_v29 = vpack.c.bf16 %v1435_v19, %v1427_v15  ;;  %v1499_v9 = vld [vmem:[#allocation7 + $0x2be8] sm:$0xff] }
 0x381   :  { %6241 = vmatpush1.bf16.msra.mxu0 %v6240_v4  ;;  %v1428_v4 = vld [vmem:[#allocation7 + $0x29b0] sm:$0xff]  ;;  %v6274_v19 = vpack.c.bf16 %v1499_v9, %v1491_v8  ;;  %v1562_v8 = vld [vmem:[#allocation7 + $0x2de0] sm:$0xff] }
 0x382   :  { %6753 = vmatpush1.bf16.msra.mxu1 %v6752_v33  ;;  %6243 = vmatprep.subr.bf16.mxu0 %v6242_v37  ;;  %v6770_v33 = vpack.c.bf16 %v1437_v22, %v1429_v21  ;;  %v1436_v37 = vld [vmem:[#allocation7 + $0x29f0] sm:$0xff]  ;;  %v1498_v21 = vld [vmem:[#allocation7 + $0x2be0] sm:$0xff] }
 0x383   :  { %6755 = vmatprep.subr.bf16.mxu1 %v6754_v46  ;;  %v1445_v46 = vld [vmem:[#allocation7 + $0x2a38] sm:$0xff]  ;;  %v6772_v18 = vpack.c.bf16 %v1436_v37, %v1428_v4  ;;  %v1492_v22 = vld [vmem:[#allocation7 + $0x2bb0] sm:$0xff] }
 0x384   :  { %v1556_v9 = vld [vmem:[#allocation7 + $0x2db0] sm:$0xff] }
 0x385   :  { %6245 = vmatpush1.bf16.msra.mxu0 %v6244_v36  ;;  %v1450_v36 = vld [vmem:[#allocation7 + $0x2a60] sm:$0xff] }
 0x386   :  { %6757 = vmatpush1.bf16.msra.mxu1 %v6756_v42  ;;  %6247 = vmatprep.subr.bf16.mxu0 %v6246_v43  ;;  %v1444_v42 = vld [vmem:[#allocation7 + $0x2a30] sm:$0xff]  ;;  %v6774_v43 = vpack.c.bf16 %v1453_v39, %v1445_v46  ;;  %v6264_v13 = vpack.c.bf16 %v1450_v36, %v1442_v26  ;;  %v6790_v46 = vpack.c.bf16 %v1517_v31, %v1509_v30  ;;  %v1533_v26 = vld [vmem:[#allocation7 + $0x2cf8] sm:$0xff] }
 0x387   :  { %6759 = vmatprep.subr.bf16.mxu1 %v6758_v38  ;;  %v1461_v38 = vld [vmem:[#allocation7 + $0x2ab8] sm:$0xff]  ;;  %v6776_v49 = vpack.c.bf16 %v1452_v44, %v1444_v42  ;;  %v1516_v39 = vld [vmem:[#allocation7 + $0x2c70] sm:$0xff]  ;;  %v6280_v36 = vpack.c.bf16 %v1514_v10, %v1506_v35  ;;  %v1522_v44 = vld [vmem:[#allocation7 + $0x2ca0] sm:$0xff] }
 0x388   :  { %3789 = vmatmul.mubr.f32.vlgmr.msra.gmra.mrb[4].mxu0 %v7150_v1  ;;  %v1580_v31 = vld [vmem:[#allocation7 + $0x2e70] sm:$0xff]  ;;  %v1597_v35 = vld [vmem:[#allocation7 + $0x2ef8] sm:$0xff] }
 0x389   :  { %6249 = vmatpush1.bf16.msra.mxu0 %v6248_v52  ;;  %4405 = vmatmul.mubr.f32.vlgmr.msra.gmra.mrb[4].mxu1 %v7150_v1  ;;  %v1466_v52 = vld [vmem:[#allocation7 + $0x2ae0] sm:$0xff]  ;;  %v6270_v1 = vpack.c.bf16 %v1483_v59, %v1475_v58  ;;  %v1540_v59 = vld [vmem:[#allocation7 + $0x2d30] sm:$0xff] }
 0x38a   :  { %6761 = vmatpush1.bf16.msra.mxu1 %v6760_v53  ;;  %6251 = vmatprep.subr.bf16.mxu0 %v6250_v54  ;;  %v1460_v53 = vld [vmem:[#allocation7 + $0x2ab0] sm:$0xff]  ;;  %v6778_v54 = vpack.c.bf16 %v1469_v34, %v1461_v38  ;;  %v6268_v63 = vpack.c.bf16 %v1466_v52, %v1458_v51  ;;  %v1549_v51 = vld [vmem:[#allocation7 + $0x2d78] sm:$0xff]  ;;  %v6284_v52 = vpack.c.bf16 %v1530_v45, %v1522_v44  ;;  %v1546_v58 = vld [vmem:[#allocation7 + $0x2d60] sm:$0xff] }
 0x38b   :  { %6763 = vmatprep.subr.bf16.mxu1 %v6762_v60  ;;  %3794 = vmatprep.mubr.f32.mxu0 %v7151_v20  ;;  %v1477_v60 = vld [vmem:[#allocation7 + $0x2b38] sm:$0xff]  ;;  %v6780_v0 = vpack.c.bf16 %v1468_v57, %v1460_v53  ;;  %v1532_v34 = vld [vmem:[#allocation7 + $0x2cf0] sm:$0xff]  ;;  %v1538_v57 = vld [vmem:[#allocation7 + $0x2d20] sm:$0xff] }
 0x38c   :  { %4410 = vmatprep.mubr.f32.mxu1 %v7151_v20  ;;  %3795 = vmatmul.mubr.f32.gmra.mrb[6].mxu0 %v7152_v24  ;;  %v1490_v20 = vld [vmem:[#allocation7 + $0x2ba0] sm:$0xff]  ;;  %v6796_v53 = vpack.c.bf16 %v1532_v34, %v1524_v47  ;;  %v6288_v2 = vpack.c.bf16 %v1546_v58, %v1538_v57  ;;  %v1613_v44 = vld [vmem:[#allocation7 + $0x2f78] sm:$0xff] }
 0x38d   :  { %6253 = vmatpush1.bf16.msra.mxu0 %v6252_v5  ;;  %4411 = vmatmul.mubr.f32.gmra.mrb[6].mxu1 %v7152_v24  ;;  %v1476_v5 = vld [vmem:[#allocation7 + $0x2b30] sm:$0xff]  ;;  %v6276_v4 = vpack.c.bf16 %v1498_v21, %v1490_v20  ;;  %v1581_v20 = vld [vmem:[#allocation7 + $0x2e78] sm:$0xff]  ;;  %v1602_v34 = vld [vmem:[#allocation7 + $0x2f20] sm:$0xff] }
 0x38e   :  { %6765 = vmatpush1.bf16.msra.mxu1 %v6764_v6  ;;  %6255 = vmatprep.subr.bf16.mxu0 %v6254_v7  ;;  %v6782_v6 = vpack.c.bf16 %v1485_v62, %v1477_v60  ;;  %v1484_v7 = vld [vmem:[#allocation7 + $0x2b70] sm:$0xff]  ;;  %v1629_v57 = vld [vmem:[#allocation7 + $0x2ff8] sm:$0xff] }
 0x38f   :  { %6767 = vmatprep.subr.bf16.mxu1 %v6766_v12  ;;  %3865 = vmatprep.mubr.f32.mxu0 %v7153_v16  ;;  %v1501_v12 = vld [vmem:[#allocation7 + $0x2bf8] sm:$0xff]  ;;  %v6784_v15 = vpack.c.bf16 %v1484_v7, %v1476_v5  ;;  %v1548_v62 = vld [vmem:[#allocation7 + $0x2d70] sm:$0xff]  ;;  %v1554_v7 = vld [vmem:[#allocation7 + $0x2da0] sm:$0xff] }
 0x390   :  { %4481 = vmatprep.mubr.f32.mxu1 %v7153_v16  ;;  %v6786_v24 = vpack.c.bf16 %v1501_v12, %v1493_v11  ;;  %v1508_v16 = vld [vmem:[#allocation7 + $0x2c30] sm:$0xff]  ;;  %v6800_v5 = vpack.c.bf16 %v1548_v62, %v1540_v59  ;;  %v6292_v21 = vpack.c.bf16 %v1562_v8, %v1554_v7  ;;  %v1618_v62 = vld [vmem:[#allocation7 + $0x2fa0] sm:$0xff]  ;;  %v1645_v7 = vld [vmem:[#allocation7 + $0x3078] sm:$0xff] }
 0x391   :  { %6257 = vmatpush1.bf16.msra.mxu0 %v6256_v25  ;;  %v1500_v25 = vld [vmem:[#allocation7 + $0x2bf0] sm:$0xff]  ;;  %v6792_v42 = vpack.c.bf16 %v1516_v39, %v1508_v16  ;;  %v1586_v39 = vld [vmem:[#allocation7 + $0x2ea0] sm:$0xff] }
 0x392   :  { %6769 = vmatpush1.bf16.msra.mxu1 %v6768_v27  ;;  %6259 = vmatprep.subr.bf16.mxu0 %v6258_v29  ;;  %v1507_v27 = vld [vmem:[#allocation7 + $0x2c28] sm:$0xff]  ;;  %v1564_v12 = vld [vmem:[#allocation7 + $0x2df0] sm:$0xff] }
 0x393   :  { %6771 = vmatprep.subr.bf16.mxu1 %v6770_v33  ;;  %v1515_v29 = vld [vmem:[#allocation7 + $0x2c68] sm:$0xff]  ;;  %v6788_v33 = vpack.c.bf16 %v1500_v25, %v1492_v22  ;;  %v6804_v22 = vpack.c.bf16 %v1564_v12, %v1556_v9  ;;  %v1570_v25 = vld [vmem:[#allocation7 + $0x2e20] sm:$0xff] }
 0x394   :  { %v6278_v37 = vpack.c.bf16 %v1515_v29, %v1507_v27  ;;  %v1578_v27 = vld [vmem:[#allocation7 + $0x2e60] sm:$0xff]  ;;  %v1572_v29 = vld [vmem:[#allocation7 + $0x2e30] sm:$0xff] }
 0x395   :  { %6261 = vmatpush1.bf16.msra.mxu0 %v6260_v40  ;;  %v1523_v40 = vld [vmem:[#allocation7 + $0x2ca8] sm:$0xff]  ;;  %v6296_v10 = vpack.c.bf16 %v1578_v27, %v1570_v25  ;;  %v6808_v16 = vpack.c.bf16 %v1580_v31, %v1572_v29  ;;  %v1634_v12 = vld [vmem:[#allocation7 + $0x3020] sm:$0xff]  ;;  %v1661_v25 = vld [vmem:[#allocation7 + $0x30f8] sm:$0xff] }
 0x396   :  { %6773 = vmatpush1.bf16.msra.mxu1 %v6772_v18  ;;  %6263 = vmatprep.subr.bf16.mxu0 %v6262_v41  ;;  %v1531_v18 = vld [vmem:[#allocation7 + $0x2ce8] sm:$0xff]  ;;  %v1525_v41 = vld [vmem:[#allocation7 + $0x2cb8] sm:$0xff]  ;;  %v1650_v31 = vld [vmem:[#allocation7 + $0x30a0] sm:$0xff] }
 0x397   :  { %6775 = vmatprep.subr.bf16.mxu1 %v6774_v43  ;;  %v6282_v43 = vpack.c.bf16 %v1531_v18, %v1523_v40  ;;  %v6794_v38 = vpack.c.bf16 %v1533_v26, %v1525_v41  ;;  %v1594_v40 = vld [vmem:[#allocation7 + $0x2ee0] sm:$0xff]  ;;  %v1588_v18 = vld [vmem:[#allocation7 + $0x2eb0] sm:$0xff] }
 0x398   :  { %v1596_v26 = vld [vmem:[#allocation7 + $0x2ef0] sm:$0xff]  ;;  %v6300_v45 = vpack.c.bf16 %v1594_v40, %v1586_v39  ;;  %v1669_v39 = vld [vmem:[#allocation7 + $0x3138] sm:$0xff] }
 0x399   :  { %6265 = vmatpush1.bf16.msra.mxu0 %v6264_v13  ;;  %v1539_v13 = vld [vmem:[#allocation7 + $0x2d28] sm:$0xff]  ;;  %v6812_v47 = vpack.c.bf16 %v1596_v26, %v1588_v18  ;;  %v1677_v40 = vld [vmem:[#allocation7 + $0x3178] sm:$0xff] }
 0x39a   :  { %6777 = vmatpush1.bf16.msra.mxu1 %v6776_v49  ;;  %6267 = vmatprep.subr.bf16.mxu0 %v6266_v50  ;;  %v1547_v49 = vld [vmem:[#allocation7 + $0x2d68] sm:$0xff]  ;;  %v1541_v50 = vld [vmem:[#allocation7 + $0x2d38] sm:$0xff] }
 0x39b   :  { %6779 = vmatprep.subr.bf16.mxu1 %v6778_v54  ;;  %v6286_v54 = vpack.c.bf16 %v1547_v49, %v1539_v13  ;;  %v6798_v60 = vpack.c.bf16 %v1549_v51, %v1541_v50  ;;  %v1610_v13 = vld [vmem:[#allocation7 + $0x2f60] sm:$0xff]  ;;  %v1604_v49 = vld [vmem:[#allocation7 + $0x2f30] sm:$0xff] }
 0x39c   :  { %v1612_v51 = vld [vmem:[#allocation7 + $0x2f70] sm:$0xff]  ;;  %v6304_v58 = vpack.c.bf16 %v1610_v13, %v1602_v34  ;;  %v7155_v34 = vld [vmem:[#allocation4 + $0xd8] sm:$0xff] }
 0x39d   :  { %6269 = vmatpush1.bf16.msra.mxu0 %v6268_v63  ;;  %v1555_v63 = vld [vmem:[#allocation7 + $0x2da8] sm:$0xff]  ;;  %v6816_v59 = vpack.c.bf16 %v1612_v51, %v1604_v49  ;;  %v1685_v13 = vld [vmem:[#allocation7 + $0x31b8] sm:$0xff] }
 0x39e   :  { %6781 = vmatpush1.bf16.msra.mxu1 %v6780_v0  ;;  %6271 = vmatprep.subr.bf16.mxu0 %v6270_v1  ;;  %v1563_v0 = vld [vmem:[#allocation7 + $0x2de8] sm:$0xff]  ;;  %v1557_v1 = vld [vmem:[#allocation7 + $0x2db8] sm:$0xff] }
 0x39f   :  { %6783 = vmatprep.subr.bf16.mxu1 %v6782_v6  ;;  %v6290_v6 = vpack.c.bf16 %v1563_v0, %v1555_v63  ;;  %v6802_v11 = vpack.c.bf16 %v1565_v3, %v1557_v1  ;;  %v1626_v63 = vld [vmem:[#allocation7 + $0x2fe0] sm:$0xff]  ;;  %v1620_v0 = vld [vmem:[#allocation7 + $0x2fb0] sm:$0xff]  ;;  %v1693_v49 = vld [vmem:[#allocation7 + $0x31f8] sm:$0xff] }
 0x3a0   :  { %v1628_v3 = vld [vmem:[#allocation7 + $0x2ff0] sm:$0xff]  ;;  %v6308_v8 = vpack.c.bf16 %v1626_v63, %v1618_v62  ;;  %v1699_v62 = vld [vmem:[#allocation7 + $0x3228] sm:$0xff] }
 0x3a1   :  { %6273 = vmatpush1.bf16.msra.mxu0 %v6272_v14  ;;  %v1571_v14 = vld [vmem:[#allocation7 + $0x2e28] sm:$0xff]  ;;  %v6820_v9 = vpack.c.bf16 %v1628_v3, %v1620_v0  ;;  %v1709_v3 = vld [vmem:[#allocation7 + $0x3278] sm:$0xff] }
 0x3a2   :  { %6785 = vmatpush1.bf16.msra.mxu1 %v6784_v15  ;;  %6275 = vmatprep.subr.bf16.mxu0 %v6274_v19  ;;  %v1579_v15 = vld [vmem:[#allocation7 + $0x2e68] sm:$0xff]  ;;  %v1573_v19 = vld [vmem:[#allocation7 + $0x2e38] sm:$0xff] }
 0x3a3   :  { %6787 = vmatprep.subr.bf16.mxu1 %v6786_v24  ;;  %v6294_v24 = vpack.c.bf16 %v1579_v15, %v1571_v14  ;;  %v6806_v30 = vpack.c.bf16 %v1581_v20, %v1573_v19  ;;  %v1642_v14 = vld [vmem:[#allocation7 + $0x3060] sm:$0xff]  ;;  %v1636_v15 = vld [vmem:[#allocation7 + $0x3030] sm:$0xff]  ;;  %v1707_v63 = vld [vmem:[#allocation7 + $0x3268] sm:$0xff] }
 0x3a4   :  { %v1644_v20 = vld [vmem:[#allocation7 + $0x3070] sm:$0xff]  ;;  %v6312_v27 = vpack.c.bf16 %v1642_v14, %v1634_v12  ;;  %v7157_v0 = vld [vmem:[#allocation4 + $0x68] sm:$0xff] }
 0x3a5   :  { %6277 = vmatpush1.bf16.msra.mxu0 %v6276_v4  ;;  %v1587_v4 = vld [vmem:[#allocation7 + $0x2ea8] sm:$0xff]  ;;  %v6824_v29 = vpack.c.bf16 %v1644_v20, %v1636_v15  ;;  %v1708_v12 = vld [vmem:[#allocation7 + $0x3270] sm:$0xff]  ;;  %v1725_v20 = vld [vmem:[#allocation7 + $0x32f8] sm:$0xff] }
 0x3a6   :  { %6789 = vmatpush1.bf16.msra.mxu1 %v6788_v33  ;;  %6279 = vmatprep.subr.bf16.mxu0 %v6278_v37  ;;  %v1595_v33 = vld [vmem:[#allocation7 + $0x2ee8] sm:$0xff]  ;;  %v1589_v37 = vld [vmem:[#allocation7 + $0x2eb8] sm:$0xff] }
 0x3a7   :  { %6791 = vmatprep.subr.bf16.mxu1 %v6790_v46  ;;  %v6298_v46 = vpack.c.bf16 %v1595_v33, %v1587_v4  ;;  %v6810_v41 = vpack.c.bf16 %v1597_v35, %v1589_v37  ;;  %v1658_v4 = vld [vmem:[#allocation7 + $0x30e0] sm:$0xff]  ;;  %v1652_v33 = vld [vmem:[#allocation7 + $0x30b0] sm:$0xff]  ;;  %v1715_v14 = vld [vmem:[#allocation7 + $0x32a8] sm:$0xff] }
 0x3a8   :  { %v1660_v35 = vld [vmem:[#allocation7 + $0x30f0] sm:$0xff]  ;;  %v6316_v18 = vpack.c.bf16 %v1658_v4, %v1650_v31  ;;  %v1723_v15 = vld [vmem:[#allocation7 + $0x32e8] sm:$0xff] }
 0x3a9   :  { %6281 = vmatpush1.bf16.msra.mxu0 %v6280_v36  ;;  %v1603_v36 = vld [vmem:[#allocation7 + $0x2f28] sm:$0xff]  ;;  %v1724_v31 = vld [vmem:[#allocation7 + $0x32f0] sm:$0xff] }
 0x3aa   :  { %6793 = vmatpush1.bf16.msra.mxu1 %v6792_v42  ;;  %6283 = vmatprep.subr.bf16.mxu0 %v6282_v43  ;;  %v1611_v42 = vld [vmem:[#allocation7 + $0x2f68] sm:$0xff]  ;;  %v1605_v43 = vld [vmem:[#allocation7 + $0x2f38] sm:$0xff] }
 0x3ab   :  { %6795 = vmatprep.subr.bf16.mxu1 %v6794_v38  ;;  %v6302_v38 = vpack.c.bf16 %v1611_v42, %v1603_v36  ;;  %v6814_v50 = vpack.c.bf16 %v1613_v44, %v1605_v43  ;;  %v1666_v36 = vld [vmem:[#allocation7 + $0x3120] sm:$0xff]  ;;  %v1668_v43 = vld [vmem:[#allocation7 + $0x3130] sm:$0xff]  ;;  %v6830_v44 = vpack.c.bf16 %v1677_v40, %v1669_v39  ;;  %v1731_v4 = vld [vmem:[#allocation7 + $0x3328] sm:$0xff] }
 0x3ac   :  { %v1674_v42 = vld [vmem:[#allocation7 + $0x3160] sm:$0xff] }
 0x3ad   :  { %6285 = vmatpush1.bf16.msra.mxu0 %v6284_v52  ;;  %v1619_v52 = vld [vmem:[#allocation7 + $0x2fa8] sm:$0xff]  ;;  %v6320_v51 = vpack.c.bf16 %v1674_v42, %v1666_v36  ;;  %v1730_v39 = vld [vmem:[#allocation7 + $0x3320] sm:$0xff] }
 0x3ae   :  { %6797 = vmatpush1.bf16.msra.mxu1 %v6796_v53  ;;  %6287 = vmatprep.subr.bf16.mxu0 %v6286_v54  ;;  %v1627_v53 = vld [vmem:[#allocation7 + $0x2fe8] sm:$0xff]  ;;  %v1621_v54 = vld [vmem:[#allocation7 + $0x2fb8] sm:$0xff]  ;;  %v1738_v40 = vld [vmem:[#allocation7 + $0x3360] sm:$0xff] }
 0x3af   :  { %6799 = vmatprep.subr.bf16.mxu1 %v6798_v60  ;;  %v6306_v60 = vpack.c.bf16 %v1627_v53, %v1619_v52  ;;  %v6818_v1 = vpack.c.bf16 %v1629_v57, %v1621_v54  ;;  %v1682_v54 = vld [vmem:[#allocation7 + $0x31a0] sm:$0xff]  ;;  %v1747_v36 = vld [vmem:[#allocation7 + $0x33a8] sm:$0xff] }
 0x3b0   :  { %v1690_v57 = vld [vmem:[#allocation7 + $0x31e0] sm:$0xff]  ;;  %v1755_v42 = vld [vmem:[#allocation7 + $0x33e8] sm:$0xff] }
 0x3b1   :  { %6289 = vmatpush1.bf16.msra.mxu0 %v6288_v2  ;;  %v1635_v2 = vld [vmem:[#allocation7 + $0x3028] sm:$0xff] }
 0x3b2   :  { %6801 = vmatpush1.bf16.msra.mxu1 %v6800_v5  ;;  %6291 = vmatprep.subr.bf16.mxu0 %v6290_v6  ;;  %v1643_v5 = vld [vmem:[#allocation7 + $0x3068] sm:$0xff]  ;;  %v1637_v6 = vld [vmem:[#allocation7 + $0x3038] sm:$0xff] }
 0x3b3   :  { %6803 = vmatprep.subr.bf16.mxu1 %v6802_v11  ;;  %v6310_v11 = vpack.c.bf16 %v1643_v5, %v1635_v2  ;;  %v6822_v19 = vpack.c.bf16 %v1645_v7, %v1637_v6  ;;  %v6324_v2 = vpack.c.bf16 %v1690_v57, %v1682_v54  ;;  %v6326_v6 = vpack.c.bf16 %v1707_v63, %v1699_v62  ;;  %v1698_v7 = vld [vmem:[#allocation7 + $0x3220] sm:$0xff]  ;;  %v1765_v54 = vld [vmem:[#allocation7 + $0x3438] sm:$0xff] }
 0x3b4   :  { %v1773_v57 = vld [vmem:[#allocation7 + $0x3478] sm:$0xff]  ;;  %v1762_v62 = vld [vmem:[#allocation7 + $0x3420] sm:$0xff] }
 0x3b5   :  { %6293 = vmatpush1.bf16.msra.mxu0 %v6292_v21  ;;  %v1651_v21 = vld [vmem:[#allocation7 + $0x30a8] sm:$0xff]  ;;  %v1770_v63 = vld [vmem:[#allocation7 + $0x3460] sm:$0xff] }
 0x3b6   :  { %6805 = vmatpush1.bf16.msra.mxu1 %v6804_v22  ;;  %6295 = vmatprep.subr.bf16.mxu0 %v6294_v24  ;;  %v1659_v22 = vld [vmem:[#allocation7 + $0x30e8] sm:$0xff]  ;;  %v1653_v24 = vld [vmem:[#allocation7 + $0x30b8] sm:$0xff] }
 0x3b7   :  { %6807 = vmatprep.subr.bf16.mxu1 %v6806_v30  ;;  %v6314_v30 = vpack.c.bf16 %v1659_v22, %v1651_v21  ;;  %v6826_v37 = vpack.c.bf16 %v1661_v25, %v1653_v24  ;;  %v6330_v24 = vpack.c.bf16 %v1723_v15, %v1715_v14  ;;  %v1714_v25 = vld [vmem:[#allocation7 + $0x32a0] sm:$0xff]  ;;  %v1780_v15 = vld [vmem:[#allocation7 + $0x34b0] sm:$0xff] }
 0x3b8   :  { %v1786_v14 = vld [vmem:[#allocation7 + $0x34e0] sm:$0xff] }
 0x3b9   :  { %6297 = vmatpush1.bf16.msra.mxu0 %v6296_v10  ;;  %v1667_v10 = vld [vmem:[#allocation7 + $0x3128] sm:$0xff] }
 0x3ba   :  { %6809 = vmatpush1.bf16.msra.mxu1 %v6808_v16  ;;  %6299 = vmatprep.subr.bf16.mxu0 %v6298_v46  ;;  %v1675_v16 = vld [vmem:[#allocation7 + $0x3168] sm:$0xff]  ;;  %v7154_v46 = vld [vmem:[#allocation4 + $0x50] sm:$0xff] }
 0x3bb   :  { %6811 = vmatprep.subr.bf16.mxu1 %v6810_v41  ;;  %v6828_v41 = vpack.c.bf16 %v1660_v35, %v1652_v33  ;;  %v6318_v26 = vpack.c.bf16 %v1675_v16, %v1667_v10  ;;  %v1739_v33 = vld [vmem:[#allocation7 + $0x3368] sm:$0xff]  ;;  %v1741_v35 = vld [vmem:[#allocation7 + $0x3378] sm:$0xff] }
 0x3bd   :  { %6301 = vmatpush1.bf16.msra.mxu0 %v6300_v45  ;;  %v1676_v45 = vld [vmem:[#allocation7 + $0x3170] sm:$0xff] }
 0x3be   :  { %6813 = vmatpush1.bf16.msra.mxu1 %v6812_v47  ;;  %6303 = vmatprep.subr.bf16.mxu0 %v6302_v38  ;;  %v1683_v47 = vld [vmem:[#allocation7 + $0x31a8] sm:$0xff]  ;;  %v6832_v52 = vpack.c.bf16 %v1676_v45, %v1668_v43  ;;  %v1749_v43 = vld [vmem:[#allocation7 + $0x33b8] sm:$0xff]  ;;  %v6336_v45 = vpack.c.bf16 %v1738_v40, %v1730_v39 }
 0x3bf   :  { %6815 = vmatprep.subr.bf16.mxu1 %v6814_v50  ;;  %v1691_v38 = vld [vmem:[#allocation7 + $0x31e8] sm:$0xff]  ;;  %v7156_v50 = vld [vmem:[#allocation4 + $0xd0] sm:$0xff]  ;;  %v1821_v39 = vld [vmem:[#allocation7 + $0x35f8] sm:$0xff] }
 0x3c0   :  { %v6322_v53 = vpack.c.bf16 %v1691_v38, %v1683_v47  ;;  %v6338_v38 = vpack.c.bf16 %v1755_v42, %v1747_v36  ;;  %v1818_v36 = vld [vmem:[#allocation7 + $0x35e0] sm:$0xff]  ;;  %v1812_v42 = vld [vmem:[#allocation7 + $0x35b0] sm:$0xff] }
 0x3c1   :  { %6305 = vmatpush1.bf16.msra.mxu0 %v6304_v58  ;;  %v1684_v58 = vld [vmem:[#allocation7 + $0x31b0] sm:$0xff] }
 0x3c2   :  { %6817 = vmatpush1.bf16.msra.mxu1 %v6816_v59  ;;  %6307 = vmatprep.subr.bf16.mxu0 %v6306_v60  ;;  %v6834_v59 = vpack.c.bf16 %v1693_v49, %v1685_v13  ;;  %v1692_v60 = vld [vmem:[#allocation7 + $0x31f0] sm:$0xff]  ;;  %v1754_v13 = vld [vmem:[#allocation7 + $0x33e0] sm:$0xff] }
 0x3c3   :  { %6819 = vmatprep.subr.bf16.mxu1 %v6818_v1  ;;  %v1701_v1 = vld [vmem:[#allocation7 + $0x3238] sm:$0xff]  ;;  %v6836_v5 = vpack.c.bf16 %v1692_v60, %v1684_v58  ;;  %v1748_v49 = vld [vmem:[#allocation7 + $0x33b0] sm:$0xff] }
 0x3c5   :  { %6309 = vmatpush1.bf16.msra.mxu0 %v6308_v8  ;;  %v1706_v8 = vld [vmem:[#allocation7 + $0x3260] sm:$0xff] }
 0x3c6   :  { %6821 = vmatpush1.bf16.msra.mxu1 %v6820_v9  ;;  %6311 = vmatprep.subr.bf16.mxu0 %v6310_v11  ;;  %v1700_v9 = vld [vmem:[#allocation7 + $0x3230] sm:$0xff]  ;;  %v6838_v11 = vpack.c.bf16 %v1709_v3, %v1701_v1  ;;  %v6328_v21 = vpack.c.bf16 %v1706_v8, %v1698_v7  ;;  %v6854_v1 = vpack.c.bf16 %v1773_v57, %v1765_v54  ;;  %v1789_v7 = vld [vmem:[#allocation7 + $0x34f8] sm:$0xff] }
 0x3c7   :  { %6823 = vmatprep.subr.bf16.mxu1 %v6822_v19  ;;  %v1717_v19 = vld [vmem:[#allocation7 + $0x32b8] sm:$0xff]  ;;  %v6840_v22 = vpack.c.bf16 %v1708_v12, %v1700_v9  ;;  %v1772_v3 = vld [vmem:[#allocation7 + $0x3470] sm:$0xff]  ;;  %v6344_v8 = vpack.c.bf16 %v1770_v63, %v1762_v62  ;;  %v1778_v12 = vld [vmem:[#allocation7 + $0x34a0] sm:$0xff] }
 0x3c8   :  { %3866 = vmatmul.mubr.f32.vlgmr.msra.gmra.mrb[4].mxu0 %v7154_v46  ;;  %v1836_v57 = vld [vmem:[#allocation7 + $0x3670] sm:$0xff]  ;;  %v1853_v62 = vld [vmem:[#allocation7 + $0x36f8] sm:$0xff] }
 0x3c9   :  { %6313 = vmatpush1.bf16.msra.mxu0 %v6312_v27  ;;  %4482 = vmatmul.mubr.f32.vlgmr.msra.gmra.mrb[4].mxu1 %v7154_v46  ;;  %v1722_v27 = vld [vmem:[#allocation7 + $0x32e0] sm:$0xff]  ;;  %v6334_v46 = vpack.c.bf16 %v1739_v33, %v1731_v4  ;;  %v1796_v33 = vld [vmem:[#allocation7 + $0x3530] sm:$0xff] }
 0x3ca   :  { %6825 = vmatpush1.bf16.msra.mxu1 %v6824_v29  ;;  %6315 = vmatprep.subr.bf16.mxu0 %v6314_v30  ;;  %v1716_v29 = vld [vmem:[#allocation7 + $0x32b0] sm:$0xff]  ;;  %v6842_v30 = vpack.c.bf16 %v1725_v20, %v1717_v19  ;;  %v6332_v10 = vpack.c.bf16 %v1722_v27, %v1714_v25  ;;  %v1805_v25 = vld [vmem:[#allocation7 + $0x3578] sm:$0xff]  ;;  %v6348_v27 = vpack.c.bf16 %v1786_v14, %v1778_v12  ;;  %v1802_v4 = vld [vmem:[#allocation7 + $0x3560] sm:$0xff] }
 0x3cb   :  { %6827 = vmatprep.subr.bf16.mxu1 %v6826_v37  ;;  %3871 = vmatprep.mubr.f32.mxu0 %v7155_v34  ;;  %v1733_v37 = vld [vmem:[#allocation7 + $0x3338] sm:$0xff]  ;;  %v6844_v16 = vpack.c.bf16 %v1724_v31, %v1716_v29  ;;  %v1788_v20 = vld [vmem:[#allocation7 + $0x34f0] sm:$0xff]  ;;  %v1794_v31 = vld [vmem:[#allocation7 + $0x3520] sm:$0xff] }
 0x3cc   :  { %4487 = vmatprep.mubr.f32.mxu1 %v7155_v34  ;;  %3872 = vmatmul.mubr.f32.gmra.mrb[6].mxu0 %v7156_v50  ;;  %v1746_v34 = vld [vmem:[#allocation7 + $0x33a0] sm:$0xff]  ;;  %v6860_v29 = vpack.c.bf16 %v1788_v20, %v1780_v15  ;;  %v6352_v40 = vpack.c.bf16 %v1802_v4, %v1794_v31  ;;  %v1869_v12 = vld [vmem:[#allocation7 + $0x3778] sm:$0xff] }
 0x3cd   :  { %6317 = vmatpush1.bf16.msra.mxu0 %v6316_v18  ;;  %4488 = vmatmul.mubr.f32.gmra.mrb[6].mxu1 %v7156_v50  ;;  %v1732_v18 = vld [vmem:[#allocation7 + $0x3330] sm:$0xff]  ;;  %v6340_v58 = vpack.c.bf16 %v1754_v13, %v1746_v34  ;;  %v1837_v34 = vld [vmem:[#allocation7 + $0x3678] sm:$0xff]  ;;  %v1858_v20 = vld [vmem:[#allocation7 + $0x3720] sm:$0xff] }
 0x3ce   :  { %6829 = vmatpush1.bf16.msra.mxu1 %v6828_v41  ;;  %6319 = vmatprep.subr.bf16.mxu0 %v6318_v26  ;;  %v6846_v41 = vpack.c.bf16 %v1741_v35, %v1733_v37  ;;  %v1740_v26 = vld [vmem:[#allocation7 + $0x3370] sm:$0xff]  ;;  %v1885_v31 = vld [vmem:[#allocation7 + $0x37f8] sm:$0xff] }
 0x3cf   :  { %6831 = vmatprep.subr.bf16.mxu1 %v6830_v44  ;;  %3942 = vmatprep.mubr.f32.mxu0 %v7157_v0  ;;  %v1757_v44 = vld [vmem:[#allocation7 + $0x33f8] sm:$0xff]  ;;  %v6848_v47 = vpack.c.bf16 %v1740_v26, %v1732_v18  ;;  %v1804_v35 = vld [vmem:[#allocation7 + $0x3570] sm:$0xff]  ;;  %v1810_v26 = vld [vmem:[#allocation7 + $0x35a0] sm:$0xff] }
 0x3d0   :  { %4558 = vmatprep.mubr.f32.mxu1 %v7157_v0  ;;  %v6850_v50 = vpack.c.bf16 %v1757_v44, %v1749_v43  ;;  %v1764_v0 = vld [vmem:[#allocation7 + $0x3430] sm:$0xff]  ;;  %v6864_v18 = vpack.c.bf16 %v1804_v35, %v1796_v33  ;;  %v6356_v13 = vpack.c.bf16 %v1818_v36, %v1810_v26  ;;  %v1874_v35 = vld [vmem:[#allocation7 + $0x37a0] sm:$0xff]  ;;  %v1901_v26 = vld [vmem:[#allocation7 + $0x3878] sm:$0xff] }
 0x3d1   :  { %6321 = vmatpush1.bf16.msra.mxu0 %v6320_v51  ;;  %v1756_v51 = vld [vmem:[#allocation7 + $0x33f0] sm:$0xff]  ;;  %v6856_v9 = vpack.c.bf16 %v1772_v3, %v1764_v0  ;;  %v1842_v3 = vld [vmem:[#allocation7 + $0x36a0] sm:$0xff] }
 0x3d2   :  { %6833 = vmatpush1.bf16.msra.mxu1 %v6832_v52  ;;  %6323 = vmatprep.subr.bf16.mxu0 %v6322_v53  ;;  %v1763_v52 = vld [vmem:[#allocation7 + $0x3428] sm:$0xff]  ;;  %v1820_v44 = vld [vmem:[#allocation7 + $0x35f0] sm:$0xff] }
 0x3d3   :  { %6835 = vmatprep.subr.bf16.mxu1 %v6834_v59  ;;  %v1771_v53 = vld [vmem:[#allocation7 + $0x3468] sm:$0xff]  ;;  %v6852_v59 = vpack.c.bf16 %v1756_v51, %v1748_v49  ;;  %v6868_v49 = vpack.c.bf16 %v1820_v44, %v1812_v42  ;;  %v1826_v51 = vld [vmem:[#allocation7 + $0x3620] sm:$0xff] }
 0x3d4   :  { %v6342_v60 = vpack.c.bf16 %v1771_v53, %v1763_v52  ;;  %v1834_v52 = vld [vmem:[#allocation7 + $0x3660] sm:$0xff]  ;;  %v1828_v53 = vld [vmem:[#allocation7 + $0x3630] sm:$0xff] }
 0x3d5   :  { %6325 = vmatpush1.bf16.msra.mxu0 %v6324_v2  ;;  %v1779_v2 = vld [vmem:[#allocation7 + $0x34a8] sm:$0xff]  ;;  %v6360_v63 = vpack.c.bf16 %v1834_v52, %v1826_v51  ;;  %v6872_v0 = vpack.c.bf16 %v1836_v57, %v1828_v53  ;;  %v1890_v44 = vld [vmem:[#allocation7 + $0x3820] sm:$0xff]  ;;  %v1917_v51 = vld [vmem:[#allocation7 + $0x38f8] sm:$0xff] }
 0x3d6   :  { %6837 = vmatpush1.bf16.msra.mxu1 %v6836_v5  ;;  %6327 = vmatprep.subr.bf16.mxu0 %v6326_v6  ;;  %v1787_v5 = vld [vmem:[#allocation7 + $0x34e8] sm:$0xff]  ;;  %v1781_v6 = vld [vmem:[#allocation7 + $0x34b8] sm:$0xff]  ;;  %v1906_v57 = vld [vmem:[#allocation7 + $0x38a0] sm:$0xff] }
 0x3d7   :  { %6839 = vmatprep.subr.bf16.mxu1 %v6838_v11  ;;  %v6346_v11 = vpack.c.bf16 %v1787_v5, %v1779_v2  ;;  %v6858_v19 = vpack.c.bf16 %v1789_v7, %v1781_v6  ;;  %v1850_v2 = vld [vmem:[#allocation7 + $0x36e0] sm:$0xff]  ;;  %v1844_v5 = vld [vmem:[#allocation7 + $0x36b0] sm:$0xff] }
 0x3d8   :  { %v1852_v7 = vld [vmem:[#allocation7 + $0x36f0] sm:$0xff]  ;;  %v6364_v14 = vpack.c.bf16 %v1850_v2, %v1842_v3  ;;  %v1925_v3 = vld [vmem:[#allocation7 + $0x3938] sm:$0xff] }
 0x3d9   :  { %6329 = vmatpush1.bf16.msra.mxu0 %v6328_v21  ;;  %v1795_v21 = vld [vmem:[#allocation7 + $0x3528] sm:$0xff]  ;;  %v6876_v15 = vpack.c.bf16 %v1852_v7, %v1844_v5  ;;  %v1933_v2 = vld [vmem:[#allocation7 + $0x3978] sm:$0xff] }
 0x3da   :  { %6841 = vmatpush1.bf16.msra.mxu1 %v6840_v22  ;;  %6331 = vmatprep.subr.bf16.mxu0 %v6330_v24  ;;  %v1803_v22 = vld [vmem:[#allocation7 + $0x3568] sm:$0xff]  ;;  %v1797_v24 = vld [vmem:[#allocation7 + $0x3538] sm:$0xff] }
 0x3db   :  { %6843 = vmatprep.subr.bf16.mxu1 %v6842_v30  ;;  %v6350_v30 = vpack.c.bf16 %v1803_v22, %v1795_v21  ;;  %v6862_v37 = vpack.c.bf16 %v1805_v25, %v1797_v24  ;;  %v1866_v21 = vld [vmem:[#allocation7 + $0x3760] sm:$0xff]  ;;  %v1860_v22 = vld [vmem:[#allocation7 + $0x3730] sm:$0xff] }
 0x3dc   :  { %v1868_v25 = vld [vmem:[#allocation7 + $0x3770] sm:$0xff]  ;;  %v6368_v4 = vpack.c.bf16 %v1866_v21, %v1858_v20  ;;  %v7159_v20 = vld [vmem:[#allocation4 + $0xe8] sm:$0xff]  ;;  %v1941_v21 = vld [vmem:[#allocation7 + $0x39b8] sm:$0xff] }
 0x3dd   :  { %6333 = vmatpush1.bf16.msra.mxu0 %v6332_v10  ;;  %v1811_v10 = vld [vmem:[#allocation7 + $0x35a8] sm:$0xff]  ;;  %v6880_v33 = vpack.c.bf16 %v1868_v25, %v1860_v22  ;;  %v1949_v22 = vld [vmem:[#allocation7 + $0x39f8] sm:$0xff] }
 0x3de   :  { %6845 = vmatpush1.bf16.msra.mxu1 %v6844_v16  ;;  %6335 = vmatprep.subr.bf16.mxu0 %v6334_v46  ;;  %v1819_v16 = vld [vmem:[#allocation7 + $0x35e8] sm:$0xff]  ;;  %v1813_v46 = vld [vmem:[#allocation7 + $0x35b8] sm:$0xff] }
 0x3df   :  { %6847 = vmatprep.subr.bf16.mxu1 %v6846_v41  ;;  %v6354_v41 = vpack.c.bf16 %v1819_v16, %v1811_v10  ;;  %v6866_v43 = vpack.c.bf16 %v1821_v39, %v1813_v46  ;;  %v1882_v10 = vld [vmem:[#allocation7 + $0x37e0] sm:$0xff]  ;;  %v1876_v16 = vld [vmem:[#allocation7 + $0x37b0] sm:$0xff] }
 0x3e0   :  { %v1884_v39 = vld [vmem:[#allocation7 + $0x37f0] sm:$0xff]  ;;  %v6372_v36 = vpack.c.bf16 %v1882_v10, %v1874_v35  ;;  %v1955_v35 = vld [vmem:[#allocation7 + $0x3a28] sm:$0xff] }
 0x3e1   :  { %6337 = vmatpush1.bf16.msra.mxu0 %v6336_v45  ;;  %v1827_v45 = vld [vmem:[#allocation7 + $0x3628] sm:$0xff]  ;;  %v6884_v42 = vpack.c.bf16 %v1884_v39, %v1876_v16  ;;  %v7161_v16 = vld [vmem:[#allocation4 + $0x78] sm:$0xff] }
 0x3e2   :  { %6849 = vmatpush1.bf16.msra.mxu1 %v6848_v47  ;;  %6339 = vmatprep.subr.bf16.mxu0 %v6338_v38  ;;  %v1835_v47 = vld [vmem:[#allocation7 + $0x3668] sm:$0xff]  ;;  %v1829_v38 = vld [vmem:[#allocation7 + $0x3638] sm:$0xff] }
 0x3e3   :  { %6851 = vmatprep.subr.bf16.mxu1 %v6850_v50  ;;  %v6358_v50 = vpack.c.bf16 %v1835_v47, %v1827_v45  ;;  %v6870_v54 = vpack.c.bf16 %v1837_v34, %v1829_v38  ;;  %v1898_v45 = vld [vmem:[#allocation7 + $0x3860] sm:$0xff]  ;;  %v1892_v47 = vld [vmem:[#allocation7 + $0x3830] sm:$0xff]  ;;  %v1963_v10 = vld [vmem:[#allocation7 + $0x3a68] sm:$0xff] }
 0x3e4   :  { %v1900_v34 = vld [vmem:[#allocation7 + $0x3870] sm:$0xff]  ;;  %v6376_v52 = vpack.c.bf16 %v1898_v45, %v1890_v44  ;;  %v1965_v39 = vld [vmem:[#allocation7 + $0x3a78] sm:$0xff]  ;;  %v1971_v45 = vld [vmem:[#allocation7 + $0x3aa8] sm:$0xff] }
 0x3e5   :  { %6341 = vmatpush1.bf16.msra.mxu0 %v6340_v58  ;;  %v1843_v58 = vld [vmem:[#allocation7 + $0x36a8] sm:$0xff]  ;;  %v6888_v53 = vpack.c.bf16 %v1900_v34, %v1892_v47  ;;  %v1964_v44 = vld [vmem:[#allocation7 + $0x3a70] sm:$0xff]  ;;  %v1981_v34 = vld [vmem:[#allocation7 + $0x3af8] sm:$0xff] }
 0x3e6   :  { %6853 = vmatpush1.bf16.msra.mxu1 %v6852_v59  ;;  %6343 = vmatprep.subr.bf16.mxu0 %v6342_v60  ;;  %v1851_v59 = vld [vmem:[#allocation7 + $0x36e8] sm:$0xff]  ;;  %v1845_v60 = vld [vmem:[#allocation7 + $0x36b8] sm:$0xff] }
 0x3e7   :  { %6855 = vmatprep.subr.bf16.mxu1 %v6854_v1  ;;  %v6362_v1 = vpack.c.bf16 %v1851_v59, %v1843_v58  ;;  %v6874_v6 = vpack.c.bf16 %v1853_v62, %v1845_v60  ;;  %v1914_v58 = vld [vmem:[#allocation7 + $0x38e0] sm:$0xff]  ;;  %v1908_v59 = vld [vmem:[#allocation7 + $0x38b0] sm:$0xff]  ;;  %v1979_v47 = vld [vmem:[#allocation7 + $0x3ae8] sm:$0xff] }
 0x3e8   :  { %v1916_v62 = vld [vmem:[#allocation7 + $0x38f0] sm:$0xff]  ;;  %v6380_v5 = vpack.c.bf16 %v1914_v58, %v1906_v57  ;;  %v1987_v58 = vld [vmem:[#allocation7 + $0x3b28] sm:$0xff] }
 0x3e9   :  { %6345 = vmatpush1.bf16.msra.mxu0 %v6344_v8  ;;  %v1859_v8 = vld [vmem:[#allocation7 + $0x3728] sm:$0xff]  ;;  %v1980_v57 = vld [vmem:[#allocation7 + $0x3af0] sm:$0xff] }
 0x3ea   :  { %6857 = vmatpush1.bf16.msra.mxu1 %v6856_v9  ;;  %6347 = vmatprep.subr.bf16.mxu0 %v6346_v11  ;;  %v1867_v9 = vld [vmem:[#allocation7 + $0x3768] sm:$0xff]  ;;  %v1861_v11 = vld [vmem:[#allocation7 + $0x3738] sm:$0xff] }
 0x3eb   :  { %6859 = vmatprep.subr.bf16.mxu1 %v6858_v19  ;;  %v6366_v19 = vpack.c.bf16 %v1867_v9, %v1859_v8  ;;  %v6878_v24 = vpack.c.bf16 %v1869_v12, %v1861_v11  ;;  %v1922_v8 = vld [vmem:[#allocation7 + $0x3920] sm:$0xff]  ;;  %v1924_v11 = vld [vmem:[#allocation7 + $0x3930] sm:$0xff]  ;;  %v6894_v12 = vpack.c.bf16 %v1933_v2, %v1925_v3 }
 0x3ec   :  { %v1930_v9 = vld [vmem:[#allocation7 + $0x3960] sm:$0xff] }
 0x3ed   :  { %6349 = vmatpush1.bf16.msra.mxu0 %v6348_v27  ;;  %v1875_v27 = vld [vmem:[#allocation7 + $0x37a8] sm:$0xff]  ;;  %v6384_v25 = vpack.c.bf16 %v1930_v9, %v1922_v8  ;;  %v1986_v3 = vld [vmem:[#allocation7 + $0x3b20] sm:$0xff] }
 0x3ee   :  { %6861 = vmatpush1.bf16.msra.mxu1 %v6860_v29  ;;  %6351 = vmatprep.subr.bf16.mxu0 %v6350_v30  ;;  %v1883_v29 = vld [vmem:[#allocation7 + $0x37e8] sm:$0xff]  ;;  %v1877_v30 = vld [vmem:[#allocation7 + $0x37b8] sm:$0xff]  ;;  %v1994_v2 = vld [vmem:[#allocation7 + $0x3b60] sm:$0xff] }
 0x3ef   :  { %6863 = vmatprep.subr.bf16.mxu1 %v6862_v37  ;;  %v6370_v37 = vpack.c.bf16 %v1883_v29, %v1875_v27  ;;  %v6882_v46 = vpack.c.bf16 %v1885_v31, %v1877_v30  ;;  %v1938_v30 = vld [vmem:[#allocation7 + $0x39a0] sm:$0xff]  ;;  %v2003_v8 = vld [vmem:[#allocation7 + $0x3ba8] sm:$0xff] }
 0x3f0   :  { %v1946_v31 = vld [vmem:[#allocation7 + $0x39e0] sm:$0xff]  ;;  %v2011_v9 = vld [vmem:[#allocation7 + $0x3be8] sm:$0xff] }
 0x3f1   :  { %6353 = vmatpush1.bf16.msra.mxu0 %v6352_v40  ;;  %v1891_v40 = vld [vmem:[#allocation7 + $0x3828] sm:$0xff] }
 0x3f2   :  { %6865 = vmatpush1.bf16.msra.mxu1 %v6864_v18  ;;  %6355 = vmatprep.subr.bf16.mxu0 %v6354_v41  ;;  %v1899_v18 = vld [vmem:[#allocation7 + $0x3868] sm:$0xff]  ;;  %v1893_v41 = vld [vmem:[#allocation7 + $0x3838] sm:$0xff] }
 0x3f3   :  { %6867 = vmatprep.subr.bf16.mxu1 %v6866_v43  ;;  %v6374_v43 = vpack.c.bf16 %v1899_v18, %v1891_v40  ;;  %v6886_v38 = vpack.c.bf16 %v1901_v26, %v1893_v41  ;;  %v6388_v40 = vpack.c.bf16 %v1946_v31, %v1938_v30  ;;  %v6390_v41 = vpack.c.bf16 %v1963_v10, %v1955_v35  ;;  %v1954_v26 = vld [vmem:[#allocation7 + $0x3a20] sm:$0xff]  ;;  %v2021_v30 = vld [vmem:[#allocation7 + $0x3c38] sm:$0xff] }
 0x3f4   :  { %v2029_v31 = vld [vmem:[#allocation7 + $0x3c78] sm:$0xff]  ;;  %v2018_v35 = vld [vmem:[#allocation7 + $0x3c20] sm:$0xff] }
 0x3f5   :  { %6357 = vmatpush1.bf16.msra.mxu0 %v6356_v13  ;;  %v1907_v13 = vld [vmem:[#allocation7 + $0x38a8] sm:$0xff]  ;;  %v2026_v10 = vld [vmem:[#allocation7 + $0x3c60] sm:$0xff] }
 0x3f6   :  { %6869 = vmatpush1.bf16.msra.mxu1 %v6868_v49  ;;  %6359 = vmatprep.subr.bf16.mxu0 %v6358_v50  ;;  %v1915_v49 = vld [vmem:[#allocation7 + $0x38e8] sm:$0xff]  ;;  %v1909_v50 = vld [vmem:[#allocation7 + $0x38b8] sm:$0xff] }
 0x3f7   :  { %6871 = vmatprep.subr.bf16.mxu1 %v6870_v54  ;;  %v6378_v54 = vpack.c.bf16 %v1915_v49, %v1907_v13  ;;  %v6890_v60 = vpack.c.bf16 %v1917_v51, %v1909_v50  ;;  %v6394_v50 = vpack.c.bf16 %v1979_v47, %v1971_v45  ;;  %v1970_v51 = vld [vmem:[#allocation7 + $0x3aa0] sm:$0xff]  ;;  %v2036_v47 = vld [vmem:[#allocation7 + $0x3cb0] sm:$0xff] }
 0x3f8   :  { %v2042_v45 = vld [vmem:[#allocation7 + $0x3ce0] sm:$0xff] }
 0x3f9   :  { %6361 = vmatpush1.bf16.msra.mxu0 %v6360_v63  ;;  %v1923_v63 = vld [vmem:[#allocation7 + $0x3928] sm:$0xff] }
 0x3fa   :  { %6873 = vmatpush1.bf16.msra.mxu1 %v6872_v0  ;;  %6363 = vmatprep.subr.bf16.mxu0 %v6362_v1  ;;  %v1931_v0 = vld [vmem:[#allocation7 + $0x3968] sm:$0xff]  ;;  %v7158_v1 = vld [vmem:[#allocation4 + $0x60] sm:$0xff] }
 0x3fb   :  { %6875 = vmatprep.subr.bf16.mxu1 %v6874_v6  ;;  %v6892_v6 = vpack.c.bf16 %v1916_v62, %v1908_v59  ;;  %v6382_v7 = vpack.c.bf16 %v1931_v0, %v1923_v63  ;;  %v1995_v59 = vld [vmem:[#allocation7 + $0x3b68] sm:$0xff]  ;;  %v1997_v62 = vld [vmem:[#allocation7 + $0x3b78] sm:$0xff] }
 0x3fd   :  { %6365 = vmatpush1.bf16.msra.mxu0 %v6364_v14  ;;  %v1932_v14 = vld [vmem:[#allocation7 + $0x3970] sm:$0xff] }
 0x3fe   :  { %6877 = vmatpush1.bf16.msra.mxu1 %v6876_v15  ;;  %6367 = vmatprep.subr.bf16.mxu0 %v6366_v19  ;;  %v1939_v15 = vld [vmem:[#allocation7 + $0x39a8] sm:$0xff]  ;;  %v6896_v27 = vpack.c.bf16 %v1932_v14, %v1924_v11  ;;  %v2005_v11 = vld [vmem:[#allocation7 + $0x3bb8] sm:$0xff]  ;;  %v6400_v14 = vpack.c.bf16 %v1994_v2, %v1986_v3 }
 0x3ff   :  { %6879 = vmatprep.subr.bf16.mxu1 %v6878_v24  ;;  %v1947_v19 = vld [vmem:[#allocation7 + $0x39e8] sm:$0xff]  ;;  %v7160_v24 = vld [vmem:[#allocation4 + $0xe0] sm:$0xff]  ;;  %v2077_v3 = vld [vmem:[#allocation7 + $0x3df8] sm:$0xff] }
 0x400   :  { %v6386_v29 = vpack.c.bf16 %v1947_v19, %v1939_v15  ;;  %v6402_v19 = vpack.c.bf16 %v2011_v9, %v2003_v8  ;;  %v2074_v8 = vld [vmem:[#allocation7 + $0x3de0] sm:$0xff]  ;;  %v2068_v9 = vld [vmem:[#allocation7 + $0x3db0] sm:$0xff] }
 0x401   :  { %6369 = vmatpush1.bf16.msra.mxu0 %v6368_v4  ;;  %v1940_v4 = vld [vmem:[#allocation7 + $0x39b0] sm:$0xff] }
 0x402   :  { %6881 = vmatpush1.bf16.msra.mxu1 %v6880_v33  ;;  %6371 = vmatprep.subr.bf16.mxu0 %v6370_v37  ;;  %v6898_v33 = vpack.c.bf16 %v1949_v22, %v1941_v21  ;;  %v1948_v37 = vld [vmem:[#allocation7 + $0x39f0] sm:$0xff]  ;;  %v2010_v21 = vld [vmem:[#allocation7 + $0x3be0] sm:$0xff] }
 0x403   :  { %6883 = vmatprep.subr.bf16.mxu1 %v6882_v46  ;;  %v1957_v46 = vld [vmem:[#allocation7 + $0x3a38] sm:$0xff]  ;;  %v6900_v18 = vpack.c.bf16 %v1948_v37, %v1940_v4  ;;  %v2004_v22 = vld [vmem:[#allocation7 + $0x3bb0] sm:$0xff] }
 0x405   :  { %6373 = vmatpush1.bf16.msra.mxu0 %v6372_v36  ;;  %v1962_v36 = vld [vmem:[#allocation7 + $0x3a60] sm:$0xff] }
 0x406   :  { %6885 = vmatpush1.bf16.msra.mxu1 %v6884_v42  ;;  %6375 = vmatprep.subr.bf16.mxu0 %v6374_v43  ;;  %v1956_v42 = vld [vmem:[#allocation7 + $0x3a30] sm:$0xff]  ;;  %v6902_v43 = vpack.c.bf16 %v1965_v39, %v1957_v46  ;;  %v6392_v13 = vpack.c.bf16 %v1962_v36, %v1954_v26  ;;  %v6918_v46 = vpack.c.bf16 %v2029_v31, %v2021_v30  ;;  %v2045_v26 = vld [vmem:[#allocation7 + $0x3cf8] sm:$0xff] }
 0x407   :  { %6887 = vmatprep.subr.bf16.mxu1 %v6886_v38  ;;  %v1973_v38 = vld [vmem:[#allocation7 + $0x3ab8] sm:$0xff]  ;;  %v6904_v49 = vpack.c.bf16 %v1964_v44, %v1956_v42  ;;  %v2028_v39 = vld [vmem:[#allocation7 + $0x3c70] sm:$0xff]  ;;  %v6408_v36 = vpack.c.bf16 %v2026_v10, %v2018_v35  ;;  %v2034_v44 = vld [vmem:[#allocation7 + $0x3ca0] sm:$0xff] }
 0x408   :  { %3943 = vmatmul.mubr.f32.vlgmr.msra.gmra.mrb[4].mxu0 %v7158_v1  ;;  %v2092_v31 = vld [vmem:[#allocation7 + $0x3e70] sm:$0xff]  ;;  %v2109_v35 = vld [vmem:[#allocation7 + $0x3ef8] sm:$0xff] }
 0x409   :  { %6377 = vmatpush1.bf16.msra.mxu0 %v6376_v52  ;;  %4559 = vmatmul.mubr.f32.vlgmr.msra.gmra.mrb[4].mxu1 %v7158_v1  ;;  %v1978_v52 = vld [vmem:[#allocation7 + $0x3ae0] sm:$0xff]  ;;  %v6398_v1 = vpack.c.bf16 %v1995_v59, %v1987_v58  ;;  %v2052_v59 = vld [vmem:[#allocation7 + $0x3d30] sm:$0xff] }
 0x40a   :  { %6889 = vmatpush1.bf16.msra.mxu1 %v6888_v53  ;;  %6379 = vmatprep.subr.bf16.mxu0 %v6378_v54  ;;  %v1972_v53 = vld [vmem:[#allocation7 + $0x3ab0] sm:$0xff]  ;;  %v6906_v54 = vpack.c.bf16 %v1981_v34, %v1973_v38  ;;  %v6396_v63 = vpack.c.bf16 %v1978_v52, %v1970_v51  ;;  %v2061_v51 = vld [vmem:[#allocation7 + $0x3d78] sm:$0xff]  ;;  %v6412_v52 = vpack.c.bf16 %v2042_v45, %v2034_v44  ;;  %v2058_v58 = vld [vmem:[#allocation7 + $0x3d60] sm:$0xff] }
 0x40b   :  { %6891 = vmatprep.subr.bf16.mxu1 %v6890_v60  ;;  %3948 = vmatprep.mubr.f32.mxu0 %v7159_v20  ;;  %v1989_v60 = vld [vmem:[#allocation7 + $0x3b38] sm:$0xff]  ;;  %v6908_v0 = vpack.c.bf16 %v1980_v57, %v1972_v53  ;;  %v2044_v34 = vld [vmem:[#allocation7 + $0x3cf0] sm:$0xff]  ;;  %v2050_v57 = vld [vmem:[#allocation7 + $0x3d20] sm:$0xff] }
 0x40c   :  { %4564 = vmatprep.mubr.f32.mxu1 %v7159_v20  ;;  %3949 = vmatmul.mubr.f32.gmra.mrb[6].mxu0 %v7160_v24  ;;  %v2002_v20 = vld [vmem:[#allocation7 + $0x3ba0] sm:$0xff]  ;;  %v6924_v53 = vpack.c.bf16 %v2044_v34, %v2036_v47  ;;  %v6416_v2 = vpack.c.bf16 %v2058_v58, %v2050_v57  ;;  %v2125_v44 = vld [vmem:[#allocation7 + $0x3f78] sm:$0xff] }
 0x40d   :  { %6381 = vmatpush1.bf16.msra.mxu0 %v6380_v5  ;;  %4565 = vmatmul.mubr.f32.gmra.mrb[6].mxu1 %v7160_v24  ;;  %v1988_v5 = vld [vmem:[#allocation7 + $0x3b30] sm:$0xff]  ;;  %v6404_v4 = vpack.c.bf16 %v2010_v21, %v2002_v20  ;;  %v2093_v20 = vld [vmem:[#allocation7 + $0x3e78] sm:$0xff]  ;;  %v2114_v34 = vld [vmem:[#allocation7 + $0x3f20] sm:$0xff] }
 0x40e   :  { %6893 = vmatpush1.bf16.msra.mxu1 %v6892_v6  ;;  %6383 = vmatprep.subr.bf16.mxu0 %v6382_v7  ;;  %v6910_v6 = vpack.c.bf16 %v1997_v62, %v1989_v60  ;;  %v1996_v7 = vld [vmem:[#allocation7 + $0x3b70] sm:$0xff]  ;;  %v2141_v57 = vld [vmem:[#allocation7 + $0x3ff8] sm:$0xff] }
 0x40f   :  { %6895 = vmatprep.subr.bf16.mxu1 %v6894_v12  ;;  %4019 = vmatprep.mubr.f32.mxu0 %v7161_v16  ;;  %v2013_v12 = vld [vmem:[#allocation7 + $0x3bf8] sm:$0xff]  ;;  %v6912_v15 = vpack.c.bf16 %v1996_v7, %v1988_v5  ;;  %v2060_v62 = vld [vmem:[#allocation7 + $0x3d70] sm:$0xff]  ;;  %v2066_v7 = vld [vmem:[#allocation7 + $0x3da0] sm:$0xff] }
 0x410   :  { %4635 = vmatprep.mubr.f32.mxu1 %v7161_v16  ;;  %v6914_v24 = vpack.c.bf16 %v2013_v12, %v2005_v11  ;;  %v2020_v16 = vld [vmem:[#allocation7 + $0x3c30] sm:$0xff]  ;;  %v6928_v5 = vpack.c.bf16 %v2060_v62, %v2052_v59  ;;  %v6420_v21 = vpack.c.bf16 %v2074_v8, %v2066_v7  ;;  %v2130_v62 = vld [vmem:[#allocation7 + $0x3fa0] sm:$0xff]  ;;  %v7163_v7 = vld [vmem:[#allocation4 + $0xf8] sm:$0xff] }
 0x411   :  { %6385 = vmatpush1.bf16.msra.mxu0 %v6384_v25  ;;  %v2012_v25 = vld [vmem:[#allocation7 + $0x3bf0] sm:$0xff]  ;;  %v6920_v42 = vpack.c.bf16 %v2028_v39, %v2020_v16  ;;  %v2098_v39 = vld [vmem:[#allocation7 + $0x3ea0] sm:$0xff] }
 0x412   :  { %6897 = vmatpush1.bf16.msra.mxu1 %v6896_v27  ;;  %6387 = vmatprep.subr.bf16.mxu0 %v6386_v29  ;;  %v2019_v27 = vld [vmem:[#allocation7 + $0x3c28] sm:$0xff]  ;;  %v2076_v12 = vld [vmem:[#allocation7 + $0x3df0] sm:$0xff] }
 0x413   :  { %6899 = vmatprep.subr.bf16.mxu1 %v6898_v33  ;;  %v2027_v29 = vld [vmem:[#allocation7 + $0x3c68] sm:$0xff]  ;;  %v6916_v33 = vpack.c.bf16 %v2012_v25, %v2004_v22  ;;  %v6932_v22 = vpack.c.bf16 %v2076_v12, %v2068_v9  ;;  %v2082_v25 = vld [vmem:[#allocation7 + $0x3e20] sm:$0xff]  ;;  %v7164_v8 = vld [vmem:[#allocation4 + $0xf0] sm:$0xff]  ;;  %v4656_v9 = vpop.xlane.xlu0 %4655  ;;  %v4686_v12 = vpop.xlane.xlu1 %4685 }
 0x414   :  { %v6406_v37 = vpack.c.bf16 %v2027_v29, %v2019_v27  ;;  %v2090_v27 = vld [vmem:[#allocation7 + $0x3e60] sm:$0xff]  ;;  %v2084_v29 = vld [vmem:[#allocation7 + $0x3e30] sm:$0xff] }
 0x415   :  { %6389 = vmatpush1.bf16.msra.mxu0 %v6388_v40  ;;  %v2035_v40 = vld [vmem:[#allocation7 + $0x3ca8] sm:$0xff]  ;;  %v6424_v10 = vpack.c.bf16 %v2090_v27, %v2082_v25  ;;  %v6936_v16 = vpack.c.bf16 %v2092_v31, %v2084_v29  ;;  %v2162_v29 = vsub.s32 4, %v7389_v32  ;;  %v2170_v31 = vsub.s32 6, %v7389_v32 }
 0x416   :  { %6901 = vmatpush1.bf16.msra.mxu1 %v6900_v18  ;;  %6391 = vmatprep.subr.bf16.mxu0 %v6390_v41  ;;  %v2043_v18 = vld [vmem:[#allocation7 + $0x3ce8] sm:$0xff]  ;;  %v2037_v41 = vld [vmem:[#allocation7 + $0x3cb8] sm:$0xff] }
 0x417   :  { %6903 = vmatprep.subr.bf16.mxu1 %v6902_v43  ;;  %v6410_v43 = vpack.c.bf16 %v2043_v18, %v2035_v40  ;;  %v6922_v38 = vpack.c.bf16 %v2045_v26, %v2037_v41  ;;  %v2106_v40 = vld [vmem:[#allocation7 + $0x3ee0] sm:$0xff]  ;;  %v2100_v18 = vld [vmem:[#allocation7 + $0x3eb0] sm:$0xff] }
 0x418   :  { %v2108_v26 = vld [vmem:[#allocation7 + $0x3ef0] sm:$0xff]  ;;  %v6428_v45 = vpack.c.bf16 %v2106_v40, %v2098_v39 }
 0x419   :  { %6393 = vmatpush1.bf16.msra.mxu0 %v6392_v13  ;;  %v2051_v13 = vld [vmem:[#allocation7 + $0x3d28] sm:$0xff]  ;;  %v6940_v47 = vpack.c.bf16 %v2108_v26, %v2100_v18 }
 0x41a   :  { %6905 = vmatpush1.bf16.msra.mxu1 %v6904_v49  ;;  %6395 = vmatprep.subr.bf16.mxu0 %v6394_v50  ;;  %v2059_v49 = vld [vmem:[#allocation7 + $0x3d68] sm:$0xff]  ;;  %v2053_v50 = vld [vmem:[#allocation7 + $0x3d38] sm:$0xff] }
 0x41b   :  { %6907 = vmatprep.subr.bf16.mxu1 %v6906_v54  ;;  %v6414_v54 = vpack.c.bf16 %v2059_v49, %v2051_v13  ;;  %v6926_v60 = vpack.c.bf16 %v2061_v51, %v2053_v50  ;;  %v2122_v13 = vld [vmem:[#allocation7 + $0x3f60] sm:$0xff]  ;;  %v2116_v49 = vld [vmem:[#allocation7 + $0x3f30] sm:$0xff] }
 0x41c   :  { %v2124_v51 = vld [vmem:[#allocation7 + $0x3f70] sm:$0xff]  ;;  %v6432_v58 = vpack.c.bf16 %v2122_v13, %v2114_v34 }
 0x41d   :  { %6397 = vmatpush1.bf16.msra.mxu0 %v6396_v63  ;;  %v2067_v63 = vld [vmem:[#allocation7 + $0x3da8] sm:$0xff]  ;;  %v6944_v59 = vpack.c.bf16 %v2124_v51, %v2116_v49 }
 0x41e   :  { %6909 = vmatpush1.bf16.msra.mxu1 %v6908_v0  ;;  %6399 = vmatprep.subr.bf16.mxu0 %v6398_v1  ;;  %v2075_v0 = vld [vmem:[#allocation7 + $0x3de8] sm:$0xff]  ;;  %v2069_v1 = vld [vmem:[#allocation7 + $0x3db8] sm:$0xff] }
 0x41f   :  { %6911 = vmatprep.subr.bf16.mxu1 %v6910_v6  ;;  %v6418_v6 = vpack.c.bf16 %v2075_v0, %v2067_v63  ;;  %v6930_v11 = vpack.c.bf16 %v2077_v3, %v2069_v1  ;;  %v2138_v63 = vld [vmem:[#allocation7 + $0x3fe0] sm:$0xff]  ;;  %v2132_v1 = vld [vmem:[#allocation7 + $0x3fb0] sm:$0xff] }
 0x420   :  { %v2140_v3 = vld [vmem:[#allocation7 + $0x3ff0] sm:$0xff] }
 0x421   :  { %6401 = vmatpush1.bf16.msra.mxu0 %v6400_v14  ;;  %v2083_v14 = vld [vmem:[#allocation7 + $0x3e28] sm:$0xff] }
 0x422   :  { %6913 = vmatpush1.bf16.msra.mxu1 %v6912_v15  ;;  %6403 = vmatprep.subr.bf16.mxu0 %v6402_v19  ;;  %v2091_v15 = vld [vmem:[#allocation7 + $0x3e68] sm:$0xff]  ;;  %v2085_v19 = vld [vmem:[#allocation7 + $0x3e38] sm:$0xff] }
 0x423   :  { %6915 = vmatprep.subr.bf16.mxu1 %v6914_v24  ;;  %v6422_v24 = vpack.c.bf16 %v2091_v15, %v2083_v14  ;;  %v6934_v30 = vpack.c.bf16 %v2093_v20, %v2085_v19  ;;  %v4659_v14 = vsub.f32 %v7416_v17, %v4656_v9  ;;  %v4689_v19 = vsub.f32 %v7418_v23, %v4686_v12  ;;  %v4688_v20 = vpop.xlane.xlu1 %4687 }
 0x424   :  { %v4690_v25 = vsub.f32 %v7455_v48, %v4688_v20  ;;  %v2166_v17 = vsub.s32 5, %v7389_v32  ;;  %v2174_v23 = vsub.s32 7, %v7389_v32 }
 0x425   :  { %6405 = vmatpush1.bf16.msra.mxu0 %v6404_v4  ;;  %v2099_v4 = vld [vmem:[#allocation7 + $0x3ea8] sm:$0xff] }
 0x426   :  { %6917 = vmatpush1.bf16.msra.mxu1 %v6916_v33  ;;  %6407 = vmatprep.subr.bf16.mxu0 %v6406_v37  ;;  %v2107_v33 = vld [vmem:[#allocation7 + $0x3ee8] sm:$0xff]  ;;  %v2101_v37 = vld [vmem:[#allocation7 + $0x3eb8] sm:$0xff] }
 0x427   :  { %6919 = vmatprep.subr.bf16.mxu1 %v6918_v46  ;;  %v6426_v46 = vpack.c.bf16 %v2107_v33, %v2099_v4  ;;  %v6938_v41 = vpack.c.bf16 %v2109_v35, %v2101_v37  ;;  %v4712_v4 = vpop.xlane.xlu1 %4711  ;;  %v4693_v33 = vmul.f32 1.442695, %v4690_v25 }
 0x428   :  { %v4714_v48 = vsub.f32 %v7476_v61, %v4712_v4 }
 0x429   :  { %6409 = vmatpush1.bf16.msra.mxu0 %v6408_v36  ;;  %v2115_v36 = vld [vmem:[#allocation7 + $0x3f28] sm:$0xff] }
 0x42a   :  { %6921 = vmatpush1.bf16.msra.mxu1 %v6920_v42  ;;  %6411 = vmatprep.subr.bf16.mxu0 %v6410_v43  ;;  %v2123_v42 = vld [vmem:[#allocation7 + $0x3f68] sm:$0xff]  ;;  %v2117_v43 = vld [vmem:[#allocation7 + $0x3f38] sm:$0xff] }
 0x42b   :  { %6923 = vmatprep.subr.bf16.mxu1 %v6922_v38  ;;  %v6430_v38 = vpack.c.bf16 %v2123_v42, %v2115_v36  ;;  %v6942_v50 = vpack.c.bf16 %v2125_v44, %v2117_v43 }
 0x42d   :  { %6413 = vmatpush1.bf16.msra.mxu0 %v6412_v52  ;;  %v2131_v52 = vld [vmem:[#allocation7 + $0x3fa8] sm:$0xff] }
 0x42e   :  { %6925 = vmatpush1.bf16.msra.mxu1 %v6924_v53  ;;  %6415 = vmatprep.subr.bf16.mxu0 %v6414_v54  ;;  %v2139_v53 = vld [vmem:[#allocation7 + $0x3fe8] sm:$0xff]  ;;  %v2133_v54 = vld [vmem:[#allocation7 + $0x3fb8] sm:$0xff] }
 0x42f   :  { %6927 = vmatprep.subr.bf16.mxu1 %v6926_v60  ;;  %v6434_v60 = vpack.c.bf16 %v2139_v53, %v2131_v52  ;;  %v6946_v0 = vpack.c.bf16 %v2141_v57, %v2133_v54 }
 0x431   :  { %6417 = vmatpush1.bf16.msra.mxu0 %v6416_v2  ;;  %v6436_v2 = vpack.c.bf16 %v2138_v63, %v2130_v62 }
 0x432   :  { %6929 = vmatpush1.bf16.msra.mxu1 %v6928_v5  ;;  %6419 = vmatprep.subr.bf16.mxu0 %v6418_v6  ;;  %v6948_v5 = vpack.c.bf16 %v2140_v3, %v2132_v1  ;;  %v7162_v6 = vld [vmem:[#allocation4 + $0x70] sm:$0xff] }
 0x433   :  { %6931 = vmatprep.subr.bf16.mxu1 %v6930_v11  ;;  %v4710_v11 = vpop.xlane.xlu0 %4709 }
 0x434   :  { %v4713_v27 = vsub.f32 %v7430_v28, %v4710_v11 }
 0x435   :  { %6421 = vmatpush1.bf16.msra.mxu0 %v6420_v21  ;;  %v4661_v21 = vmul.f32 1.442695, %v4659_v14 }
 0x436   :  { %6933 = vmatpush1.bf16.msra.mxu1 %v6932_v22  ;;  %6423 = vmatprep.subr.bf16.mxu0 %v6422_v24  ;;  %v4691_v24 = vmul.f32 1.442695, %v4689_v19  ;;  %v4715_v37 = vmul.f32 1.442695, %v4713_v27 }
 0x437   :  { %6935 = vmatprep.subr.bf16.mxu1 %v6934_v30  ;;  %v4658_v15 = vpop.xlane.xlu0 %4657  ;;  %7101 = vpow2.f32 %v4661_v21 }
 0x438   :  { %v4660_v22 = vsub.f32 %v7459_v55, %v4658_v15  ;;  %7103 = vpow2.f32 %v4691_v24  ;;  %v7165_v55 = vld [vmem:[#allocation9] sm:$0xff] }
 0x439   :  { %6425 = vmatpush1.bf16.msra.mxu0 %v6424_v10  ;;  %v2163_v35 = vrot.slane %v7165_v55, %v2162_v29  ;;  %v2171_v28 = vrot.slane %v7165_v55, %v2170_v31  ;;  %v2167_v10 = vrot.slane %v7165_v55, %v2166_v17 }
 0x43a   :  { %6937 = vmatpush1.bf16.msra.mxu1 %v6936_v16  ;;  %6427 = vmatprep.subr.bf16.mxu0 %v6426_v46  ;;  %v4663_v30 = vmul.f32 1.442695, %v4660_v22  ;;  %v2175_v16 = vrot.slane %v7165_v55, %v2174_v23 }
 0x43b   :  { %6939 = vmatprep.subr.bf16.mxu1 %v6938_v41  ;;  %v4717_v41 = vmul.f32 1.442695, %v4714_v48 }
 0x43c   :  { %7105 = vpow2.f32 %v4663_v30 }
 0x43d   :  { %6429 = vmatpush1.bf16.msra.mxu0 %v6428_v45  ;;  %7107 = vpow2.f32 %v4715_v37 }
 0x43e   :  { %6941 = vmatpush1.bf16.msra.mxu1 %v6940_v47  ;;  %6431 = vmatprep.subr.bf16.mxu0 %v6430_v38  ;;  %7109 = vpow2.f32 %v4693_v33 }
 0x43f   :  { %6943 = vmatprep.subr.bf16.mxu1 %v6942_v50  ;;  %7111 = vpow2.f32 %v4717_v41 }
 0x441   :  { %6433 = vmatpush1.bf16.msra.mxu0 %v6432_v58  ;;  %v7102_v44 = vpop.eup %7101 }
 0x442   :  { %6945 = vmatpush1.bf16.msra.mxu1 %v6944_v59  ;;  %6435 = vmatprep.subr.bf16.mxu0 %v6434_v60  ;;  %v7104_v50 = vpop.eup %7103  ;;  %v4665_v53 = vsel %vm4650_vm0, %v7102_v44, 0.0 }
 0x443   :  { %6947 = vmatprep.subr.bf16.mxu1 %v6946_v0  ;;  %v4695_v58 = vsel %vm4650_vm0, %v7104_v50, 0.0 }
 0x445   :  { %6437 = vmatpush1.bf16.msra.mxu0 %v6436_v2 }
 0x446   :  { %6949 = vmatpush1.bf16.msra.mxu1 %v6948_v5  ;;  %v7106_v54 = vpop.eup %7105 }
 0x447   :  { %v7108_v57 = vpop.eup %7107  ;;  %v4666_v59 = vsel %vm4650_vm0, %v7106_v54, 0.0 }
 0x448   :  { %4020 = vmatmul.mubr.f32.vlgmr.msra.gmra.mrb[4].mxu0 %v7162_v6  ;;  %v7110_v60 = vpop.eup %7109  ;;  %v4719_v62 = vsel %vm4650_vm0, %v7108_v57, 0.0 }
 0x449   :  { %4636 = vmatmul.mubr.f32.vlgmr.msra.gmra.mrb[4].mxu1 %v7162_v6  ;;  %4025 = vmatprep.mubr.f32.mxu0 %v7163_v7  ;;  %v4696_v63 = vsel %vm4650_vm0, %v7110_v60, 0.0  ;;  %v7112_v0 = vpop.eup %7111 }
 0x44a   :  { %4641 = vmatprep.mubr.f32.mxu1 %v7163_v7  ;;  %v4720_v1 = vsel %vm4650_vm0, %v7112_v0, 0.0 }
 0x44c   :  { %4026 = vmatmul.mubr.f32.gmra.mrb[6].mxu0 %v7164_v8 }
 0x44d   :  { %4642 = vmatmul.mubr.f32.gmra.mrb[6].mxu1 %v7164_v8 }
 0x51b   :  { %v4021_v46 = vpop.f32.mrb[4].mxu0 }
 0x51c   :  { %v6958_v39 = vadd.f32 %v4021_v46, %v2163_v35  ;;  %v4637_v40 = vpop.f32.mrb[4].mxu1  ;;  %v4023_v18 = vpop.f32.mrb[5].mxu0 }
 0x51d   :  { %v6962_v26 = vadd.f32 %v4637_v40, %v2171_v28  ;;  %v6959_v32 = vadd.f32 %v4023_v18, %v2167_v10  ;;  %v4639_v36 = vpop.f32.mrb[5].mxu1 }
 0x51e   :  { %v6963_v42 = vadd.f32 %v4639_v36, %v2175_v16  ;;  %v4731_v43 = vsel %vm4650_vm0, %v6958_v39, -inf }
 0x51f   :  { %4757 = vst [vmem:[#allocation10 + $0x30] sm:$0xff] %v6962_v26  ;;  %4755 = vst [vmem:[#allocation10 + $0x28] sm:$0xff] %v6959_v32  ;;  %v4027_v61 = vpop.f32.mrb[6].mxu0  ;;  %4733 = vmax.xlane.f32.xlu0 %v4731_v43 }
 0x520   :  { %4759 = vst [vmem:[#allocation10 + $0x38] sm:$0xff] %v6963_v42  ;;  %v6960_v45 = vadd.f32 %v4027_v61, %v2163_v35  ;;  %v4643_v47 = vpop.f32.mrb[6].mxu1  ;;  %v4029_v38 = vpop.f32.mrb[7].mxu0 }
 0x521   :  { %v6964_v34 = vadd.f32 %v4643_v47, %v2171_v28  ;;  %v6961_v13 = vadd.f32 %v4029_v38, %v2167_v10  ;;  %v4645_v49 = vpop.f32.mrb[7].mxu1 }
 0x522   :  { %v6965_v51 = vadd.f32 %v4645_v49, %v2175_v16  ;;  %v4732_v52 = vsel %vm4650_vm0, %v6960_v45, -inf }
 0x523   :  { %4758 = vst [vmem:[#allocation10 + $0x70] sm:$0xff] %v6964_v34  ;;  %4756 = vst [vmem:[#allocation10 + $0x68] sm:$0xff] %v6961_v13  ;;  %4735 = vmax.xlane.f32.xlu1 %v4732_v52  ;;  %4667 = vadd.xlane.f32.xlu0 %v4665_v53 }
 0x524   :  { %4760 = vst [vmem:[#allocation10 + $0x78] sm:$0xff] %v6965_v51 }
 0x527   :  { %4697 = vadd.xlane.f32.xlu0 %v4695_v58  ;;  %4669 = vadd.xlane.f32.xlu1 %v4666_v59 }
 0x52b   :  { %4721 = vadd.xlane.f32.xlu0 %v4719_v62  ;;  %4699 = vadd.xlane.f32.xlu1 %v4696_v63 }
 0x52f   :  { %4723 = vadd.xlane.f32.xlu1 %v4720_v1 }
 0x5ac   :  { %v4734_v3 = vpop.xlane.xlu0 %4733 }
 0x5ad   :  { %v4737_v2 = vsub.f32 %v6958_v39, %v4734_v3 }
 0x5af   :  { %v4739_v5 = vmul.f32 1.442695, %v4737_v2 }
 0x5b0   :  { %v4736_v6 = vpop.xlane.xlu1 %4735  ;;  %v4668_v7 = vpop.xlane.xlu0 %4667 }
 0x5b1   :  { %7113 = vpow2.f32 %v4739_v5  ;;  %v4738_v8 = vsub.f32 %v6960_v45, %v4736_v6 }
 0x5b2   :  { %7115 = vrcp.f32 %v4668_v7 }
 0x5b3   :  { %v4741_v9 = vmul.f32 1.442695, %v4738_v8 }
 0x5b4   :  { %v4670_v11 = vpop.xlane.xlu1 %4669  ;;  %v4698_v12 = vpop.xlane.xlu0 %4697 }
 0x5b5   :  { %7117 = vpow2.f32 %v4741_v9 }
 0x5b6   :  { %7119 = vrcp.f32 %v4670_v11 }
 0x5b7   :  { %7121 = vrcp.f32 %v4698_v12 }
 0x5b8   :  { %v4700_v14 = vpop.xlane.xlu1 %4699  ;;  %v4722_v15 = vpop.xlane.xlu0 %4721 }
 0x5b9   :  { %7123 = vrcp.f32 %v4700_v14 }
 0x5ba   :  { %7125 = vrcp.f32 %v4722_v15 }
 0x5bb   :  { %v7114_v19 = vpop.eup %7113 }
 0x5bc   :  { %v7116_v20 = vpop.eup %7115  ;;  %v4724_v21 = vpop.xlane.xlu1 %4723  ;;  %v4743_v22 = vsel %vm4650_vm0, %v7114_v19, 0.0 }
 0x5bd   :  { %v4673_v24 = vmul.f32 %v7116_v20, %v4665_v53  ;;  %7127 = vrcp.f32 %v4724_v21  ;;  %4745 = vadd.xlane.f32.xlu0 %v4743_v22 }
 0x5bf   :  { %v7118_v25 = vpop.eup %7117  ;;  %4675 = vst [vmem:[#allocation10] sm:$0xff] %v4673_v24 }
 0x5c0   :  { %v7120_v27 = vpop.eup %7119  ;;  %v4744_v29 = vsel %vm4650_vm0, %v7118_v25, 0.0 }
 0x5c1   :  { %v7122_v30 = vpop.eup %7121  ;;  %v4674_v31 = vmul.f32 %v7120_v27, %v4666_v59  ;;  %4747 = vadd.xlane.f32.xlu1 %v4744_v29 }
 0x5c2   :  { %v4703_v17 = vmul.f32 %v7122_v30, %v4695_v58 }
 0x5c3   :  { %v7124_v4 = vpop.eup %7123  ;;  %4676 = vst [vmem:[#allocation10 + $0x40] sm:$0xff] %v4674_v31 }
 0x5c4   :  { %v7126_v23 = vpop.eup %7125  ;;  %4705 = vst [vmem:[#allocation10 + $0x10] sm:$0xff] %v4703_v17  ;;  %v4704_v33 = vmul.f32 %v7124_v4, %v4696_v63 }
 0x5c5   :  { %v4727_v37 = vmul.f32 %v7126_v23, %v4719_v62 }
 0x5c6   :  { %4706 = vst [vmem:[#allocation10 + $0x50] sm:$0xff] %v4704_v33 }
 0x5c7   :  { %v7128_v55 = vpop.eup %7127  ;;  %4729 = vst [vmem:[#allocation10 + $0x18] sm:$0xff] %v4727_v37 }
 0x5c8   :  { %v4728_v35 = vmul.f32 %v7128_v55, %v4720_v1 }
 0x5ca   :  { %4730 = vst [vmem:[#allocation10 + $0x58] sm:$0xff] %v4728_v35 }
 0x5cb   :  { %7253 = shalt.err (!%p7250_p3)
}
 0x5cc   :  { %s7254_s23 = scalar_lea.hbm %s7657_s5, 256 }
 0x5cd   :  { %p7255_p4 = scmp.ne.s32.totalorder %s7657_s5, %s7254_s23  ;;  %p7258_p5 = scmp.lt.u32.totalorder %s7254_s23, %s7657_s5 }
 0x5cf   :  { %p7260_p6 = pnand %p7258_p5, %p7255_p4 }
 0x5d1   :  { %7263 = shalt.err (!%p7260_p6)
}
 0x5d2   :  { %s7305_s28 = smov 8   ;;  %s7306_s6 = smov [#allocation10]  }
 0x5d3   :  { %4889 = dma.vmem_to_hbm [thread:$0]  %s4884_s19, 256, %s7657_s5, [#allocation12], %s7302_s26, %s7302_s26, %s7305_s28  }
 0x5d4   :  { %s4871_s7 = sshll.u32 %s7306_s6, 4  ;;  %s4872_s7 = int_to_ptr.vmem [resolvable:$true] %s4871_s7 }
 0x5d5   :  { %s7264_s8 = scalar_lea.vmem %s4872_s7, 2048  ;;  %p7269_p8 = scmp.lt.s32.totalorder %s4872_s7, %s4872_s7 }
 0x5d6   :  { %p7265_p7 = scmp.ne.s32.totalorder %s4872_s7, %s7264_s8  ;;  %p7270_p9 = scmp.lt.s32.totalorder %s7264_s8, %s7264_s8 }
 0x5d8   :  { %p7271_p10 = por %p7270_p9, %p7269_p8 }
 0x5da   :  { %p7272_p11 = pnand %p7271_p10, %p7265_p7 }
 0x64a   :  { %v4746_v56 = vpop.xlane.xlu0 %4745 }
 0x64b   :  { %7129 = vrcp.f32 %v4746_v56 }
 0x64e   :  { %v4748_v48 = vpop.xlane.xlu1 %4747 }
 0x64f   :  { %7131 = vrcp.f32 %v4748_v48 }
 0x655   :  { %v7130_v28 = vpop.eup %7129 }
 0x656   :  { %v4751_v10 = vmul.f32 %v7130_v28, %v4743_v22 }
 0x658   :  { %4753 = vst [vmem:[#allocation10 + $0x20] sm:$0xff] %v4751_v10 }
 0x659   :  { %v7132_v16 = vpop.eup %7131 }
 0x65a   :  { %v4752_v46 = vmul.f32 %v7132_v16, %v4744_v29 }
 0x65c   :  { %4754 = vst [vmem:[#allocation10 + $0x60] sm:$0xff] %v4752_v46 }
 0x65d   :  { %7275 = shalt.err (!%p7272_p11)
}
 0x65e   :  { %s7276_s9 = scalar_lea.hbm %s7656_s4, 2048 }
 0x65f   :  { %p7277_p12 = scmp.ne.s32.totalorder %s7656_s4, %s7276_s9  ;;  %p7280_p13 = scmp.lt.u32.totalorder %s7276_s9, %s7656_s4 }
 0x661   :  { %p7282_p0 = pnand %p7280_p13, %p7277_p12 }
 0x663   :  { %7285 = shalt.err (!%p7282_p0)
}
 0x664   :  { %4877 = dma.vmem_to_hbm [thread:$0]  %s4872_s7, 2048, %s7656_s4, [#allocation6], %s7298_s12, %s7298_s12, %s7299_s13  }
 0x665   :  { %7292 = dma.done.wait [#allocation6], 2048  }
 0x666   :  { %7293 = vsyncadd [#allocation6], 4294965248 }
 0x667   :  { %7294 = dma.done.wait [#allocation12], 256  }
 0x668   :  { %7295 = vsyncadd [#allocation12], 4294967040 }
 0x669   :  { %4896 = vsyncpa [#allocation5], 1 }
 0x66a   :  { %4897 = vsyncpa [#allocation8], 1 }
 0x66b   :  { %4898 = vsyncpa [#allocation6], 1 }
 0x66c   :  { %4899 = vsyncpa [#allocation12], 1 }

</bundles_post_ra>
